<compile_context>
chip_gen: v6e
topology: v6e:2x2x1
jax: 0.10.0
libtpu: 0.0.40
codegen_flags: <defaults>
</compile_context>

<pallas_src>
import functools

import jax
import jax.numpy as jnp
from jax.experimental import pallas as pl
from jax.experimental.pallas import tpu as pltpu

_EPS = 1e-5  # torch.nn.LayerNorm default


# ----------------------------- Pallas kernels -------------------------------

def _layernorm_f32(y, g, beta):
    mean = jnp.mean(y, axis=-1, keepdims=True)
    var = jnp.mean((y - mean) ** 2, axis=-1, keepdims=True)
    return (y - mean) * jax.lax.rsqrt(var + _EPS) * g + beta


def _msa_block_kernel(x_ref, w_lin_ref, b_lin_ref, g_ref, beta_ref,
                      w_qkv_ref, b_qkv_ref, w_o_ref, b_o_ref, o_ref,
                      *, n_heads, head_dim):
    """Fused: linear_msa -> layernorm -> window self-attention -> +residual.

    x_ref / o_ref hold one (1, wh, ww, D) spatial window of the token-major
    activations (window partition is done by the BlockSpec index_map).
    """
    wh, ww, d = x_ref.shape[1], x_ref.shape[2], x_ref.shape[3]
    seq = wh * ww

    x = x_ref[0].reshape(seq, d).astype(jnp.float32)          # residual

    # linear_msa + layernorm (per token)
    y = jnp.dot(x, w_lin_ref[...], preferred_element_type=jnp.float32)
    y = y + b_lin_ref[...]
    y = _layernorm_f32(y, g_ref[...], beta_ref[...])

    # fused QKV projection: (seq, D) @ (D, 3D)
    qkv = jnp.dot(y, w_qkv_ref[...], preferred_element_type=jnp.float32)
    qkv = qkv + b_qkv_ref[...]

    w_o = w_o_ref[...]
    scale = 1.0 / (head_dim ** 0.5)
    acc = x + b_o_ref[...]                 # residual + out-proj bias

    for h in range(n_heads):               # short static loop; heads share QKV
        lo = h * head_dim
        q = qkv[:, lo:lo + head_dim] * scale
        k = qkv[:, d + lo:d + lo + head_dim]
        v = qkv[:, 2 * d + lo:2 * d + lo + head_dim]

        s = jax.lax.dot_general(q, k, (((1,), (1,)), ((), ())),
                                preferred_element_type=jnp.float32)
        s = s - jnp.max(s, axis=-1, keepdims=True)
        p = jnp.exp(s)
        p = p * pl.reciprocal(jnp.sum(p, axis=-1, keepdims=True), approx=True)

        oh = jnp.dot(p, v, preferred_element_type=jnp.float32)
        # fold this head's rows of the output projection into the accumulator
        acc = acc + jnp.dot(oh, w_o[lo:lo + head_dim, :],
                            preferred_element_type=jnp.float32)

    o_ref[0] = acc.reshape(wh, ww, d).astype(o_ref.dtype)


def _mlp_block_kernel(x_ref, w_lin_ref, b_lin_ref, g_ref, beta_ref,
                      w1_ref, b1_ref, w2_ref, b2_ref, o_ref):
    """Fused: linear_mlp -> layernorm -> MLP (linear/relu/linear) -> +residual."""
    x = x_ref[...].astype(jnp.float32)                         # residual

    y = jnp.dot(x, w_lin_ref[...], preferred_element_type=jnp.float32)
    y = y + b_lin_ref[...]
    y = _layernorm_f32(y, g_ref[...], beta_ref[...])

    h = jnp.dot(y, w1_ref[...], preferred_element_type=jnp.float32) + b1_ref[...]
    h = jnp.maximum(h, 0.0)   # reference MLP uses torch.relu (docstring says gelu)
    out = x + jnp.dot(h, w2_ref[...], preferred_element_type=jnp.float32)
    out = out + b2_ref[...]

    o_ref[...] = out.astype(o_ref.dtype)


# --------------------------- pallas_call wrappers ---------------------------

def _rep_spec(shape):
    """Resident (non-tiled) operand: same block for every grid step."""
    nd = len(shape)
    return pl.BlockSpec(shape, lambda *_: (0,) * nd)


def msa_block_op(x, p, n_heads):
    """x: (B, H, W, D) token-major (already shifted if needed)."""
    b, hh, ww, d = x.shape
    gh = gw = 2                              # n_windows = 4 (2x2 grid)
    wh, wwin = hh // gh, ww // gw
    assert wwin % 8 == 0, "window width must be a multiple of 8 (sublane tile)"
    head_dim = d // n_heads

    kernel = functools.partial(_msa_block_kernel,
                               n_heads=n_heads, head_dim=head_dim)
    win_spec = pl.BlockSpec((1, wh, wwin, d), lambda bi, i, j: (bi, i, j, 0))

    return pl.pallas_call(
        kernel,
        out_shape=jax.ShapeDtypeStruct(x.shape, x.dtype),
        grid=(b, gh, gw),
        in_specs=[win_spec,
                  _rep_spec((d, d)), _rep_spec((1, d)),
                  _rep_spec((1, d)), _rep_spec((1, d)),
                  _rep_spec((d, 3 * d)), _rep_spec((1, 3 * d)),
                  _rep_spec((d, d)), _rep_spec((1, d))],
        out_specs=win_spec,
        compiler_params=pltpu.CompilerParams(
            dimension_semantics=("parallel", "parallel", "parallel")),
    )(x, p['w_msa_lin'], p['b_msa_lin'], p['g_msa'], p['beta_msa'],
      p['w_qkv'], p['b_qkv'], p['w_o'], p['b_o'])


def _row_tile(m):
    for t in (1024, 512, 256, 128):
        if m % t == 0:
            return t
    return m


def mlp_block_op(x, p):
    """x: (M, D) flattened tokens."""
    m, d = x.shape
    tm = _row_tile(m)
    row_spec = pl.BlockSpec((tm, d), lambda i: (i, 0))

    return pl.pallas_call(
        _mlp_block_kernel,
        out_shape=jax.ShapeDtypeStruct((m, d), x.dtype),
        grid=(m // tm,),
        in_specs=[row_spec,
                  _rep_spec((d, d)), _rep_spec((1, d)),
                  _rep_spec((1, d)), _rep_spec((1, d)),
                  _rep_spec((d, d)), _rep_spec((1, d)),
                  _rep_spec((d, d)), _rep_spec((1, d))],
        out_specs=row_spec,
        compiler_params=pltpu.CompilerParams(
            dimension_semantics=("parallel",)),
    )(x, p['w_mlp_lin'], p['b_mlp_lin'], p['g_mlp'], p['beta_mlp'],
      p['w1'], p['b1'], p['w2'], p['b2'])


# ------------------------------ forward pass --------------------------------

def swing_block_fwd(x_nchw, p, n_heads, shift):
    """SwingBlock forward: x (B, dim, H, W) -> (B, dim, H, W)."""
    b, d, hh, ww = x_nchw.shape
    x = jnp.transpose(x_nchw, (0, 2, 3, 1))          # token-major (B, H, W, D)

    # --- linear -> layernorm -> (S)W-MSA -> +residual  (one fused kernel) ---
    wh, wwin = hh // 2, ww // 2
    if shift:
        x_s = jnp.roll(x, (-(wh // 2), -(wwin // 2)), axis=(1, 2))
    else:
        x_s = x
    y = msa_block_op(x_s, p, n_heads)
    if shift:
        x = jnp.roll(y, (wh // 2, wwin // 2), axis=(1, 2))
    else:
        x = y

    # --- linear -> layernorm -> MLP -> +residual  (one fused kernel) --------
    flat = x.reshape(b * hh * ww, d)
    flat = mlp_block_op(flat, p)
    x = flat.reshape(b, hh, ww, d)

    return jnp.transpose(x, (0, 3, 1, 2))            # back to NCHW


# ----------------------------- parameter init -------------------------------

def _uniform(key, shape, bound):
    return jax.random.uniform(key, shape, jnp.float32, -bound, bound)


def swing_block_params(key, dim, n_heads):
    assert dim % n_heads == 0
    ks = jax.random.split(key, 10)
    bound = 1.0 / (dim ** 0.5)
    return {
        # linear_msa + norm_msa
        'w_msa_lin': _uniform(ks[0], (dim, dim), bound),
        'b_msa_lin': _uniform(ks[1], (1, dim), bound),
        'g_msa': jnp.ones((1, dim), jnp.float32),
        'beta_msa': jnp.zeros((1, dim), jnp.float32),
        # MultiheadAttention: fused in-projection (D, 3D) and out-projection
        'w_qkv': _uniform(ks[2], (dim, 3 * dim), bound),
        'b_qkv': jnp.zeros((1, 3 * dim), jnp.float32),
        'w_o': _uniform(ks[3], (dim, dim), bound),
        'b_o': jnp.zeros((1, dim), jnp.float32),
        # linear_mlp + norm_mlp
        'w_mlp_lin': _uniform(ks[4], (dim, dim), bound),
        'b_mlp_lin': _uniform(ks[5], (1, dim), bound),
        'g_mlp': jnp.ones((1, dim), jnp.float32),
        'beta_mlp': jnp.zeros((1, dim), jnp.float32),
        # MLP
        'w1': _uniform(ks[6], (dim, dim), bound),
        'b1': _uniform(ks[7], (1, dim), bound),
        'w2': _uniform(ks[8], (dim, dim), bound),
        'b2': _uniform(ks[9], (1, dim), bound),
    }


# --------------------------------- main --------------------------------------

if __name__ == "__main__":
    key = jax.random.PRNGKey(0)
    pkey, xkey = jax.random.split(key)

    dim, n_heads = 96, 3                     # head_dim = 32
    k1, k2 = jax.random.split(pkey)
    params = [swing_block_params(k1, dim, n_heads),
              swing_block_params(k2, dim, n_heads)]

    x = jax.random.normal(xkey, (2, dim, 16, 16), jnp.float32)   # NCHW

    @jax.jit
    def fwd(params, x):
        # "Swing block x2": W-MSA block then SW-MSA (shifted) block.
        x = swing_block_fwd(x, params[0], n_heads, shift=False)
        x = swing_block_fwd(x, params[1], n_heads, shift=True)
        return x

    out = fwd(params, x)
    jax.block_until_ready(out)
    assert out.shape == x.shape, out.shape
    print("KERNEL_OK")
</pallas_src>

<mosaic_0001>
module attributes {stable_mosaic.version = 11 : i64} {
  func.func @_mlp_block_kernel(%arg0: i32, %arg1: memref<512x96xf32, #tpu.memory_space<vmem>>, %arg2: memref<96x96xf32, #tpu.memory_space<vmem>>, %arg3: memref<1x96xf32, #tpu.memory_space<vmem>>, %arg4: memref<1x96xf32, #tpu.memory_space<vmem>>, %arg5: memref<1x96xf32, #tpu.memory_space<vmem>>, %arg6: memref<96x96xf32, #tpu.memory_space<vmem>>, %arg7: memref<1x96xf32, #tpu.memory_space<vmem>>, %arg8: memref<96x96xf32, #tpu.memory_space<vmem>>, %arg9: memref<1x96xf32, #tpu.memory_space<vmem>>, %arg10: memref<512x96xf32, #tpu.memory_space<vmem>>) attributes {dimension_semantics = [#tpu.dimension_semantics<parallel>], iteration_bounds = array<i64: 1>, scalar_prefetch = 0 : i64, scratch_operands = 0 : i64, tpu.core_type = #tpu.core_type<tc>, window_params = [{transform_indices = @transform_0, window_bounds = array<i64: 512, 96>}, {pipeline_mode = #tpu.pipeline_mode<synchronous>, transform_indices = @transform_1, window_bounds = array<i64: 96, 96>}, {pipeline_mode = #tpu.pipeline_mode<synchronous>, transform_indices = @transform_2, window_bounds = array<i64: 1, 96>}, {pipeline_mode = #tpu.pipeline_mode<synchronous>, transform_indices = @transform_3, window_bounds = array<i64: 1, 96>}, {pipeline_mode = #tpu.pipeline_mode<synchronous>, transform_indices = @transform_4, window_bounds = array<i64: 1, 96>}, {pipeline_mode = #tpu.pipeline_mode<synchronous>, transform_indices = @transform_5, window_bounds = array<i64: 96, 96>}, {pipeline_mode = #tpu.pipeline_mode<synchronous>, transform_indices = @transform_6, window_bounds = array<i64: 1, 96>}, {pipeline_mode = #tpu.pipeline_mode<synchronous>, transform_indices = @transform_7, window_bounds = array<i64: 96, 96>}, {pipeline_mode = #tpu.pipeline_mode<synchronous>, transform_indices = @transform_8, window_bounds = array<i64: 1, 96>}, {transform_indices = @transform_9, window_bounds = array<i64: 512, 96>}]} {
    %c0 = arith.constant 0 : index
    %c0_0 = arith.constant 0 : index
    %0 = vector.load %arg1[%c0, %c0_0] : memref<512x96xf32, #tpu.memory_space<vmem>>, vector<512x96xf32>
    %c0_1 = arith.constant 0 : index
    %c0_2 = arith.constant 0 : index
    %1 = vector.load %arg2[%c0_1, %c0_2] : memref<96x96xf32, #tpu.memory_space<vmem>>, vector<96x96xf32>
    %cst = arith.constant dense<0.000000e+00> : vector<512x96xf32>
    %2 = tpu.matmul %0, %1, %cst {dimension_numbers = #tpu.dot_dimension_numbers<[1], [0], [0], [1], [0, 0, 1, 1], [], []>} : vector<512x96xf32>, vector<96x96xf32>, vector<512x96xf32> -> vector<512x96xf32>
    %c0_3 = arith.constant 0 : index
    %c0_4 = arith.constant 0 : index
    %3 = vector.load %arg3[%c0_3, %c0_4] : memref<1x96xf32, #tpu.memory_space<vmem>>, vector<1x96xf32>
    %4 = vector.broadcast %3 : vector<1x96xf32> to vector<512x96xf32>
    %5 = arith.addf %2, %4 : vector<512x96xf32>
    %c0_5 = arith.constant 0 : index
    %c0_6 = arith.constant 0 : index
    %6 = vector.load %arg4[%c0_5, %c0_6] : memref<1x96xf32, #tpu.memory_space<vmem>>, vector<1x96xf32>
    %c0_7 = arith.constant 0 : index
    %c0_8 = arith.constant 0 : index
    %7 = vector.load %arg5[%c0_7, %c0_8] : memref<1x96xf32, #tpu.memory_space<vmem>>, vector<1x96xf32>
    %cst_9 = arith.constant dense<0.000000e+00> : vector<512xf32>
    %8 = vector.multi_reduction <add>, %5, %cst_9 [1] : vector<512x96xf32> to vector<512xf32>
    %9 = vector.shape_cast %8 : vector<512xf32> to vector<512x1xf32>
    %cst_10 = arith.constant 9.600000e+01 : f32
    %10 = vector.broadcast %cst_10 : f32 to vector<512x1xf32>
    %11 = arith.divf %9, %10 : vector<512x1xf32>
    %12 = vector.broadcast %11 : vector<512x1xf32> to vector<512x96xf32>
    %13 = arith.subf %5, %12 : vector<512x96xf32>
    %14 = arith.mulf %13, %13 : vector<512x96xf32>
    %cst_11 = arith.constant dense<0.000000e+00> : vector<512xf32>
    %15 = vector.multi_reduction <add>, %14, %cst_11 [1] : vector<512x96xf32> to vector<512xf32>
    %16 = vector.shape_cast %15 : vector<512xf32> to vector<512x1xf32>
    %cst_12 = arith.constant 9.600000e+01 : f32
    %17 = vector.broadcast %cst_12 : f32 to vector<512x1xf32>
    %18 = arith.divf %16, %17 : vector<512x1xf32>
    %19 = vector.broadcast %11 : vector<512x1xf32> to vector<512x96xf32>
    %20 = arith.subf %5, %19 : vector<512x96xf32>
    %cst_13 = arith.constant 9.99999974E-6 : f32
    %21 = vector.broadcast %cst_13 : f32 to vector<512x1xf32>
    %22 = arith.addf %18, %21 : vector<512x1xf32>
    %23 = math.rsqrt %22 : vector<512x1xf32>
    %24 = vector.broadcast %23 : vector<512x1xf32> to vector<512x96xf32>
    %25 = arith.mulf %20, %24 : vector<512x96xf32>
    %26 = vector.broadcast %6 : vector<1x96xf32> to vector<512x96xf32>
    %27 = arith.mulf %25, %26 : vector<512x96xf32>
    %28 = vector.broadcast %7 : vector<1x96xf32> to vector<512x96xf32>
    %29 = arith.addf %27, %28 : vector<512x96xf32>
    %c0_14 = arith.constant 0 : index
    %c0_15 = arith.constant 0 : index
    %30 = vector.load %arg6[%c0_14, %c0_15] : memref<96x96xf32, #tpu.memory_space<vmem>>, vector<96x96xf32>
    %cst_16 = arith.constant dense<0.000000e+00> : vector<512x96xf32>
    %31 = tpu.matmul %29, %30, %cst_16 {dimension_numbers = #tpu.dot_dimension_numbers<[1], [0], [0], [1], [0, 0, 1, 1], [], []>} : vector<512x96xf32>, vector<96x96xf32>, vector<512x96xf32> -> vector<512x96xf32>
    %c0_17 = arith.constant 0 : index
    %c0_18 = arith.constant 0 : index
    %32 = vector.load %arg7[%c0_17, %c0_18] : memref<1x96xf32, #tpu.memory_space<vmem>>, vector<1x96xf32>
    %33 = vector.broadcast %32 : vector<1x96xf32> to vector<512x96xf32>
    %34 = arith.addf %31, %33 : vector<512x96xf32>
    %cst_19 = arith.constant 0.000000e+00 : f32
    %35 = vector.broadcast %cst_19 : f32 to vector<512x96xf32>
    %36 = arith.maximumf %34, %35 : vector<512x96xf32>
    %c0_20 = arith.constant 0 : index
    %c0_21 = arith.constant 0 : index
    %37 = vector.load %arg8[%c0_20, %c0_21] : memref<96x96xf32, #tpu.memory_space<vmem>>, vector<96x96xf32>
    %cst_22 = arith.constant dense<0.000000e+00> : vector<512x96xf32>
    %38 = tpu.matmul %36, %37, %cst_22 {dimension_numbers = #tpu.dot_dimension_numbers<[1], [0], [0], [1], [0, 0, 1, 1], [], []>} : vector<512x96xf32>, vector<96x96xf32>, vector<512x96xf32> -> vector<512x96xf32>
    %39 = arith.addf %0, %38 : vector<512x96xf32>
    %c0_23 = arith.constant 0 : index
    %c0_24 = arith.constant 0 : index
    %40 = vector.load %arg9[%c0_23, %c0_24] : memref<1x96xf32, #tpu.memory_space<vmem>>, vector<1x96xf32>
    %41 = vector.broadcast %40 : vector<1x96xf32> to vector<512x96xf32>
    %42 = arith.addf %39, %41 : vector<512x96xf32>
    %c0_25 = arith.constant 0 : index
    %c0_26 = arith.constant 0 : index
    %43 = vector.load %arg10[%c0_25, %c0_26] : memref<512x96xf32, #tpu.memory_space<vmem>>, vector<512x96xf32>
    tpu.vector_store %arg10[%c0_25, %c0_26], %42 {strides = array<i32>} : memref<512x96xf32, #tpu.memory_space<vmem>>, vector<512x96xf32>,
    return
  }
  func.func @transform_0(%arg0: i32) -> (i32, i32) {
    %c0_i32 = arith.constant 0 : i32
    %c0_i32_0 = arith.constant 0 : i32
    return %arg0, %c0_i32 : i32, i32
  }
  func.func @transform_1(%arg0: i32) -> (i32, i32) {
    %c0_i32 = arith.constant 0 : i32
    %c0_i32_0 = arith.constant 0 : i32
    %c0_i32_1 = arith.constant 0 : i32
    return %c0_i32, %c0_i32_0 : i32, i32
  }
  func.func @transform_2(%arg0: i32) -> (i32, i32) {
    %c0_i32 = arith.constant 0 : i32
    %c0_i32_0 = arith.constant 0 : i32
    %c0_i32_1 = arith.constant 0 : i32
    return %c0_i32, %c0_i32_0 : i32, i32
  }
  func.func @transform_3(%arg0: i32) -> (i32, i32) {
    %c0_i32 = arith.constant 0 : i32
    %c0_i32_0 = arith.constant 0 : i32
    %c0_i32_1 = arith.constant 0 : i32
    return %c0_i32, %c0_i32_0 : i32, i32
  }
  func.func @transform_4(%arg0: i32) -> (i32, i32) {
    %c0_i32 = arith.constant 0 : i32
    %c0_i32_0 = arith.constant 0 : i32
    %c0_i32_1 = arith.constant 0 : i32
    return %c0_i32, %c0_i32_0 : i32, i32
  }
  func.func @transform_5(%arg0: i32) -> (i32, i32) {
    %c0_i32 = arith.constant 0 : i32
    %c0_i32_0 = arith.constant 0 : i32
    %c0_i32_1 = arith.constant 0 : i32
    return %c0_i32, %c0_i32_0 : i32, i32
  }
  func.func @transform_6(%arg0: i32) -> (i32, i32) {
    %c0_i32 = arith.constant 0 : i32
    %c0_i32_0 = arith.constant 0 : i32
    %c0_i32_1 = arith.constant 0 : i32
    return %c0_i32, %c0_i32_0 : i32, i32
  }
  func.func @transform_7(%arg0: i32) -> (i32, i32) {
    %c0_i32 = arith.constant 0 : i32
    %c0_i32_0 = arith.constant 0 : i32
    %c0_i32_1 = arith.constant 0 : i32
    return %c0_i32, %c0_i32_0 : i32, i32
  }
  func.func @transform_8(%arg0: i32) -> (i32, i32) {
    %c0_i32 = arith.constant 0 : i32
    %c0_i32_0 = arith.constant 0 : i32
    %c0_i32_1 = arith.constant 0 : i32
    return %c0_i32, %c0_i32_0 : i32, i32
  }
  func.func @transform_9(%arg0: i32) -> (i32, i32) {
    %c0_i32 = arith.constant 0 : i32
    %c0_i32_0 = arith.constant 0 : i32
    return %arg0, %c0_i32 : i32, i32
  }
}

module attributes {stable_mosaic.version = 11 : i64} {
  func.func @_msa_block_kernel(%arg0: i32, %arg1: i32, %arg2: i32, %arg3: memref<1x8x8x96xf32, #tpu.memory_space<vmem>>, %arg4: memref<96x96xf32, #tpu.memory_space<vmem>>, %arg5: memref<1x96xf32, #tpu.memory_space<vmem>>, %arg6: memref<1x96xf32, #tpu.memory_space<vmem>>, %arg7: memref<1x96xf32, #tpu.memory_space<vmem>>, %arg8: memref<96x288xf32, #tpu.memory_space<vmem>>, %arg9: memref<1x288xf32, #tpu.memory_space<vmem>>, %arg10: memref<96x96xf32, #tpu.memory_space<vmem>>, %arg11: memref<1x96xf32, #tpu.memory_space<vmem>>, %arg12: memref<1x8x8x96xf32, #tpu.memory_space<vmem>>) attributes {dimension_semantics = [#tpu.dimension_semantics<parallel>, #tpu.dimension_semantics<parallel>, #tpu.dimension_semantics<parallel>], iteration_bounds = array<i64: 2, 2, 2>, scalar_prefetch = 0 : i64, scratch_operands = 0 : i64, tpu.core_type = #tpu.core_type<tc>, window_params = [{transform_indices = @transform_0, window_bounds = array<i64: 1, 8, 8, 96>}, {pipeline_mode = #tpu.pipeline_mode<synchronous>, transform_indices = @transform_1, window_bounds = array<i64: 96, 96>}, {pipeline_mode = #tpu.pipeline_mode<synchronous>, transform_indices = @transform_2, window_bounds = array<i64: 1, 96>}, {pipeline_mode = #tpu.pipeline_mode<synchronous>, transform_indices = @transform_3, window_bounds = array<i64: 1, 96>}, {pipeline_mode = #tpu.pipeline_mode<synchronous>, transform_indices = @transform_4, window_bounds = array<i64: 1, 96>}, {pipeline_mode = #tpu.pipeline_mode<synchronous>, transform_indices = @transform_5, window_bounds = array<i64: 96, 288>}, {pipeline_mode = #tpu.pipeline_mode<synchronous>, transform_indices = @transform_6, window_bounds = array<i64: 1, 288>}, {pipeline_mode = #tpu.pipeline_mode<synchronous>, transform_indices = @transform_7, window_bounds = array<i64: 96, 96>}, {pipeline_mode = #tpu.pipeline_mode<synchronous>, transform_indices = @transform_8, window_bounds = array<i64: 1, 96>}, {transform_indices = @transform_9, window_bounds = array<i64: 1, 8, 8, 96>}]} {
    %c0 = arith.constant 0 : index
    %c0_0 = arith.constant 0 : index
    %c0_1 = arith.constant 0 : index
    %c0_2 = arith.constant 0 : index
    %0 = vector.load %arg3[%c0, %c0_0, %c0_1, %c0_2] : memref<1x8x8x96xf32, #tpu.memory_space<vmem>>, vector<1x8x8x96xf32>
    %1 = vector.shape_cast %0 : vector<1x8x8x96xf32> to vector<8x8x96xf32>
    %2 = vector.shape_cast %1 : vector<8x8x96xf32> to vector<64x96xf32>
    %c0_3 = arith.constant 0 : index
    %c0_4 = arith.constant 0 : index
    %3 = vector.load %arg4[%c0_3, %c0_4] : memref<96x96xf32, #tpu.memory_space<vmem>>, vector<96x96xf32>
    %cst = arith.constant dense<0.000000e+00> : vector<64x96xf32>
    %4 = tpu.matmul %2, %3, %cst {dimension_numbers = #tpu.dot_dimension_numbers<[1], [0], [0], [1], [0, 0, 1, 1], [], []>} : vector<64x96xf32>, vector<96x96xf32>, vector<64x96xf32> -> vector<64x96xf32>
    %c0_5 = arith.constant 0 : index
    %c0_6 = arith.constant 0 : index
    %5 = vector.load %arg5[%c0_5, %c0_6] : memref<1x96xf32, #tpu.memory_space<vmem>>, vector<1x96xf32>
    %6 = vector.broadcast %5 : vector<1x96xf32> to vector<64x96xf32>
    %7 = arith.addf %4, %6 : vector<64x96xf32>
    %c0_7 = arith.constant 0 : index
    %c0_8 = arith.constant 0 : index
    %8 = vector.load %arg6[%c0_7, %c0_8] : memref<1x96xf32, #tpu.memory_space<vmem>>, vector<1x96xf32>
    %c0_9 = arith.constant 0 : index
    %c0_10 = arith.constant 0 : index
    %9 = vector.load %arg7[%c0_9, %c0_10] : memref<1x96xf32, #tpu.memory_space<vmem>>, vector<1x96xf32>
    %cst_11 = arith.constant dense<0.000000e+00> : vector<64xf32>
    %10 = vector.multi_reduction <add>, %7, %cst_11 [1] : vector<64x96xf32> to vector<64xf32>
    %11 = vector.shape_cast %10 : vector<64xf32> to vector<64x1xf32>
    %cst_12 = arith.constant 9.600000e+01 : f32
    %12 = vector.broadcast %cst_12 : f32 to vector<64x1xf32>
    %13 = arith.divf %11, %12 : vector<64x1xf32>
    %14 = vector.broadcast %13 : vector<64x1xf32> to vector<64x96xf32>
    %15 = arith.subf %7, %14 : vector<64x96xf32>
    %16 = arith.mulf %15, %15 : vector<64x96xf32>
    %cst_13 = arith.constant dense<0.000000e+00> : vector<64xf32>
    %17 = vector.multi_reduction <add>, %16, %cst_13 [1] : vector<64x96xf32> to vector<64xf32>
    %18 = vector.shape_cast %17 : vector<64xf32> to vector<64x1xf32>
    %cst_14 = arith.constant 9.600000e+01 : f32
    %19 = vector.broadcast %cst_14 : f32 to vector<64x1xf32>
    %20 = arith.divf %18, %19 : vector<64x1xf32>
    %21 = vector.broadcast %13 : vector<64x1xf32> to vector<64x96xf32>
    %22 = arith.subf %7, %21 : vector<64x96xf32>
    %cst_15 = arith.constant 9.99999974E-6 : f32
    %23 = vector.broadcast %cst_15 : f32 to vector<64x1xf32>
    %24 = arith.addf %20, %23 : vector<64x1xf32>
    %25 = math.rsqrt %24 : vector<64x1xf32>
    %26 = vector.broadcast %25 : vector<64x1xf32> to vector<64x96xf32>
    %27 = arith.mulf %22, %26 : vector<64x96xf32>
    %28 = vector.broadcast %8 : vector<1x96xf32> to vector<64x96xf32>
    %29 = arith.mulf %27, %28 : vector<64x96xf32>
    %30 = vector.broadcast %9 : vector<1x96xf32> to vector<64x96xf32>
    %31 = arith.addf %29, %30 : vector<64x96xf32>
    %c0_16 = arith.constant 0 : index
    %c0_17 = arith.constant 0 : index
    %32 = vector.load %arg8[%c0_16, %c0_17] : memref<96x288xf32, #tpu.memory_space<vmem>>, vector<96x288xf32>
    %cst_18 = arith.constant dense<0.000000e+00> : vector<64x288xf32>
    %33 = tpu.matmul %31, %32, %cst_18 {dimension_numbers = #tpu.dot_dimension_numbers<[1], [0], [0], [1], [0, 0, 1, 1], [], []>} : vector<64x96xf32>, vector<96x288xf32>, vector<64x288xf32> -> vector<64x288xf32>
    %c0_19 = arith.constant 0 : index
    %c0_20 = arith.constant 0 : index
    %34 = vector.load %arg9[%c0_19, %c0_20] : memref<1x288xf32, #tpu.memory_space<vmem>>, vector<1x288xf32>
    %35 = vector.broadcast %34 : vector<1x288xf32> to vector<64x288xf32>
    %36 = arith.addf %33, %35 : vector<64x288xf32>
    %c0_21 = arith.constant 0 : index
    %c0_22 = arith.constant 0 : index
    %37 = vector.load %arg10[%c0_21, %c0_22] : memref<96x96xf32, #tpu.memory_space<vmem>>, vector<96x96xf32>
    %c0_23 = arith.constant 0 : index
    %c0_24 = arith.constant 0 : index
    %38 = vector.load %arg11[%c0_23, %c0_24] : memref<1x96xf32, #tpu.memory_space<vmem>>, vector<1x96xf32>
    %39 = vector.broadcast %38 : vector<1x96xf32> to vector<64x96xf32>
    %40 = arith.addf %2, %39 : vector<64x96xf32>
    %41 = vector.extract_strided_slice %36 {offsets = [0, 0], sizes = [64, 32], strides = [1, 1]} : vector<64x288xf32> to vector<64x32xf32>
    %cst_25 = arith.constant 0.176776692 : f32
    %42 = vector.broadcast %cst_25 : f32 to vector<64x32xf32>
    %43 = arith.mulf %41, %42 : vector<64x32xf32>
    %44 = vector.extract_strided_slice %36 {offsets = [0, 96], sizes = [64, 32], strides = [1, 1]} : vector<64x288xf32> to vector<64x32xf32>
    %45 = vector.extract_strided_slice %36 {offsets = [0, 192], sizes = [64, 32], strides = [1, 1]} : vector<64x288xf32> to vector<64x32xf32>
    %cst_26 = arith.constant dense<0.000000e+00> : vector<64x64xf32>
    %46 = tpu.matmul %43, %44, %cst_26 {dimension_numbers = #tpu.dot_dimension_numbers<[1], [1], [0], [0], [0, 0, 1, 0], [], []>} : vector<64x32xf32>, vector<64x32xf32>, vector<64x64xf32> -> vector<64x64xf32>
    %cst_27 = arith.constant dense<0xFF800000> : vector<64xf32>
    %47 = vector.multi_reduction <maximumf>, %46, %cst_27 [1] : vector<64x64xf32> to vector<64xf32>
    %48 = vector.shape_cast %47 : vector<64xf32> to vector<64x1xf32>
    %49 = vector.broadcast %48 : vector<64x1xf32> to vector<64x64xf32>
    %50 = arith.subf %46, %49 : vector<64x64xf32>
    %51 = math.exp %50 : vector<64x64xf32>
    %cst_28 = arith.constant dense<0.000000e+00> : vector<64xf32>
    %52 = vector.multi_reduction <add>, %51, %cst_28 [1] : vector<64x64xf32> to vector<64xf32>
    %53 = vector.shape_cast %52 : vector<64xf32> to vector<64x1xf32>
    %54 = tpu.reciprocal %53 {approx = true} : vector<64x1xf32> -> vector<64x1xf32>
    %55 = vector.broadcast %54 : vector<64x1xf32> to vector<64x64xf32>
    %56 = arith.mulf %51, %55 : vector<64x64xf32>
    %cst_29 = arith.constant dense<0.000000e+00> : vector<64x32xf32>
    %57 = tpu.matmul %56, %45, %cst_29 {dimension_numbers = #tpu.dot_dimension_numbers<[1], [0], [0], [1], [0, 0, 1, 1], [], []>} : vector<64x64xf32>, vector<64x32xf32>, vector<64x32xf32> -> vector<64x32xf32>
    %58 = vector.extract_strided_slice %37 {offsets = [0, 0], sizes = [32, 96], strides = [1, 1]} : vector<96x96xf32> to vector<32x96xf32>
    %cst_30 = arith.constant dense<0.000000e+00> : vector<64x96xf32>
    %59 = tpu.matmul %57, %58, %cst_30 {dimension_numbers = #tpu.dot_dimension_numbers<[1], [0], [0], [1], [0, 0, 1, 1], [], []>} : vector<64x32xf32>, vector<32x96xf32>, vector<64x96xf32> -> vector<64x96xf32>
    %60 = arith.addf %40, %59 : vector<64x96xf32>
    %61 = vector.extract_strided_slice %36 {offsets = [0, 32], sizes = [64, 32], strides = [1, 1]} : vector<64x288xf32> to vector<64x32xf32>
    %cst_31 = arith.constant 0.176776692 : f32
    %62 = vector.broadcast %cst_31 : f32 to vector<64x32xf32>
    %63 = arith.mulf %61, %62 : vector<64x32xf32>
    %64 = vector.extract_strided_slice %36 {offsets = [0, 128], sizes = [64, 32], strides = [1, 1]} : vector<64x288xf32> to vector<64x32xf32>
    %65 = vector.extract_strided_slice %36 {offsets = [0, 224], sizes = [64, 32], strides = [1, 1]} : vector<64x288xf32> to vector<64x32xf32>
    %cst_32 = arith.constant dense<0.000000e+00> : vector<64x64xf32>
    %66 = tpu.matmul %63, %64, %cst_32 {dimension_numbers = #tpu.dot_dimension_numbers<[1], [1], [0], [0], [0, 0, 1, 0], [], []>} : vector<64x32xf32>, vector<64x32xf32>, vector<64x64xf32> -> vector<64x64xf32>
    %cst_33 = arith.constant dense<0xFF800000> : vector<64xf32>
    %67 = vector.multi_reduction <maximumf>, %66, %cst_33 [1] : vector<64x64xf32> to vector<64xf32>
    %68 = vector.shape_cast %67 : vector<64xf32> to vector<64x1xf32>
    %69 = vector.broadcast %68 : vector<64x1xf32> to vector<64x64xf32>
    %70 = arith.subf %66, %69 : vector<64x64xf32>
    %71 = math.exp %70 : vector<64x64xf32>
    %cst_34 = arith.constant dense<0.000000e+00> : vector<64xf32>
    %72 = vector.multi_reduction <add>, %71, %cst_34 [1] : vector<64x64xf32> to vector<64xf32>
    %73 = vector.shape_cast %72 : vector<64xf32> to vector<64x1xf32>
    %74 = tpu.reciprocal %73 {approx = true} : vector<64x1xf32> -> vector<64x1xf32>
    %75 = vector.broadcast %74 : vector<64x1xf32> to vector<64x64xf32>
    %76 = arith.mulf %71, %75 : vector<64x64xf32>
    %cst_35 = arith.constant dense<0.000000e+00> : vector<64x32xf32>
    %77 = tpu.matmul %76, %65, %cst_35 {dimension_numbers = #tpu.dot_dimension_numbers<[1], [0], [0], [1], [0, 0, 1, 1], [], []>} : vector<64x64xf32>, vector<64x32xf32>, vector<64x32xf32> -> vector<64x32xf32>
    %78 = vector.extract_strided_slice %37 {offsets = [32, 0], sizes = [32, 96], strides = [1, 1]} : vector<96x96xf32> to vector<32x96xf32>
    %cst_36 = arith.constant dense<0.000000e+00> : vector<64x96xf32>
    %79 = tpu.matmul %77, %78, %cst_36 {dimension_numbers = #tpu.dot_dimension_numbers<[1], [0], [0], [1], [0, 0, 1, 1], [], []>} : vector<64x32xf32>, vector<32x96xf32>, vector<64x96xf32> -> vector<64x96xf32>
    %80 = arith.addf %60, %79 : vector<64x96xf32>
    %81 = vector.extract_strided_slice %36 {offsets = [0, 64], sizes = [64, 32], strides = [1, 1]} : vector<64x288xf32> to vector<64x32xf32>
    %cst_37 = arith.constant 0.176776692 : f32
    %82 = vector.broadcast %cst_37 : f32 to vector<64x32xf32>
    %83 = arith.mulf %81, %82 : vector<64x32xf32>
    %84 = vector.extract_strided_slice %36 {offsets = [0, 160], sizes = [64, 32], strides = [1, 1]} : vector<64x288xf32> to vector<64x32xf32>
    %85 = vector.extract_strided_slice %36 {offsets = [0, 256], sizes = [64, 32], strides = [1, 1]} : vector<64x288xf32> to vector<64x32xf32>
    %cst_38 = arith.constant dense<0.000000e+00> : vector<64x64xf32>
    %86 = tpu.matmul %83, %84, %cst_38 {dimension_numbers = #tpu.dot_dimension_numbers<[1], [1], [0], [0], [0, 0, 1, 0], [], []>} : vector<64x32xf32>, vector<64x32xf32>, vector<64x64xf32> -> vector<64x64xf32>
    %cst_39 = arith.constant dense<0xFF800000> : vector<64xf32>
    %87 = vector.multi_reduction <maximumf>, %86, %cst_39 [1] : vector<64x64xf32> to vector<64xf32>
    %88 = vector.shape_cast %87 : vector<64xf32> to vector<64x1xf32>
    %89 = vector.broadcast %88 : vector<64x1xf32> to vector<64x64xf32>
    %90 = arith.subf %86, %89 : vector<64x64xf32>
    %91 = math.exp %90 : vector<64x64xf32>
    %cst_40 = arith.constant dense<0.000000e+00> : vector<64xf32>
    %92 = vector.multi_reduction <add>, %91, %cst_40 [1] : vector<64x64xf32> to vector<64xf32>
    %93 = vector.shape_cast %92 : vector<64xf32> to vector<64x1xf32>
    %94 = tpu.reciprocal %93 {approx = true} : vector<64x1xf32> -> vector<64x1xf32>
    %95 = vector.broadcast %94 : vector<64x1xf32> to vector<64x64xf32>
    %96 = arith.mulf %91, %95 : vector<64x64xf32>
    %cst_41 = arith.constant dense<0.000000e+00> : vector<64x32xf32>
    %97 = tpu.matmul %96, %85, %cst_41 {dimension_numbers = #tpu.dot_dimension_numbers<[1], [0], [0], [1], [0, 0, 1, 1], [], []>} : vector<64x64xf32>, vector<64x32xf32>, vector<64x32xf32> -> vector<64x32xf32>
    %98 = vector.extract_strided_slice %37 {offsets = [64, 0], sizes = [32, 96], strides = [1, 1]} : vector<96x96xf32> to vector<32x96xf32>
    %cst_42 = arith.constant dense<0.000000e+00> : vector<64x96xf32>
    %99 = tpu.matmul %97, %98, %cst_42 {dimension_numbers = #tpu.dot_dimension_numbers<[1], [0], [0], [1], [0, 0, 1, 1], [], []>} : vector<64x32xf32>, vector<32x96xf32>, vector<64x96xf32> -> vector<64x96xf32>
    %100 = arith.addf %80, %99 : vector<64x96xf32>
    %101 = vector.shape_cast %100 : vector<64x96xf32> to vector<8x8x96xf32>
    %c0_43 = arith.constant 0 : index
    %c0_44 = arith.constant 0 : index
    %c0_45 = arith.constant 0 : index
    %c0_46 = arith.constant 0 : index
    %102 = vector.load %arg12[%c0_43, %c0_44, %c0_45, %c0_46] : memref<1x8x8x96xf32, #tpu.memory_space<vmem>>, vector<1x8x8x96xf32>
    %103 = vector.shape_cast %102 : vector<1x8x8x96xf32> to vector<8x8x96xf32>
    %104 = vector.shape_cast %101 : vector<8x8x96xf32> to vector<1x8x8x96xf32>
    tpu.vector_store %arg12[%c0_43, %c0_44, %c0_45, %c0_46], %104 {strides = array<i32>} : memref<1x8x8x96xf32, #tpu.memory_space<vmem>>, vector<1x8x8x96xf32>,
    return
  }
  func.func @transform_0(%arg0: i32, %arg1: i32, %arg2: i32) -> (i32, i32, i32, i32) {
    %c0_i32 = arith.constant 0 : i32
    %c0_i32_0 = arith.constant 0 : i32
    return %arg0, %arg1, %arg2, %c0_i32 : i32, i32, i32, i32
  }
  func.func @transform_1(%arg0: i32, %arg1: i32, %arg2: i32) -> (i32, i32) {
    %c0_i32 = arith.constant 0 : i32
    %c0_i32_0 = arith.constant 0 : i32
    %c0_i32_1 = arith.constant 0 : i32
    return %c0_i32, %c0_i32_0 : i32, i32
  }
  func.func @transform_2(%arg0: i32, %arg1: i32, %arg2: i32) -> (i32, i32) {
    %c0_i32 = arith.constant 0 : i32
    %c0_i32_0 = arith.constant 0 : i32
    %c0_i32_1 = arith.constant 0 : i32
    return %c0_i32, %c0_i32_0 : i32, i32
  }
  func.func @transform_3(%arg0: i32, %arg1: i32, %arg2: i32) -> (i32, i32) {
    %c0_i32 = arith.constant 0 : i32
    %c0_i32_0 = arith.constant 0 : i32
    %c0_i32_1 = arith.constant 0 : i32
    return %c0_i32, %c0_i32_0 : i32, i32
  }
  func.func @transform_4(%arg0: i32, %arg1: i32, %arg2: i32) -> (i32, i32) {
    %c0_i32 = arith.constant 0 : i32
    %c0_i32_0 = arith.constant 0 : i32
    %c0_i32_1 = arith.constant 0 : i32
    return %c0_i32, %c0_i32_0 : i32, i32
  }
  func.func @transform_5(%arg0: i32, %arg1: i32, %arg2: i32) -> (i32, i32) {
    %c0_i32 = arith.constant 0 : i32
    %c0_i32_0 = arith.constant 0 : i32
    %c0_i32_1 = arith.constant 0 : i32
    return %c0_i32, %c0_i32_0 : i32, i32
  }
  func.func @transform_6(%arg0: i32, %arg1: i32, %arg2: i32) -> (i32, i32) {
    %c0_i32 = arith.constant 0 : i32
    %c0_i32_0 = arith.constant 0 : i32
    %c0_i32_1 = arith.constant 0 : i32
    return %c0_i32, %c0_i32_0 : i32, i32
  }
  func.func @transform_7(%arg0: i32, %arg1: i32, %arg2: i32) -> (i32, i32) {
    %c0_i32 = arith.constant 0 : i32
    %c0_i32_0 = arith.constant 0 : i32
    %c0_i32_1 = arith.constant 0 : i32
    return %c0_i32, %c0_i32_0 : i32, i32
  }
  func.func @transform_8(%arg0: i32, %arg1: i32, %arg2: i32) -> (i32, i32) {
    %c0_i32 = arith.constant 0 : i32
    %c0_i32_0 = arith.constant 0 : i32
    %c0_i32_1 = arith.constant 0 : i32
    return %c0_i32, %c0_i32_0 : i32, i32
  }
  func.func @transform_9(%arg0: i32, %arg1: i32, %arg2: i32) -> (i32, i32, i32, i32) {
    %c0_i32 = arith.constant 0 : i32
    %c0_i32_0 = arith.constant 0 : i32
    return %arg0, %arg1, %arg2, %c0_i32 : i32, i32, i32, i32
  }
}

module attributes {stable_mosaic.version = 11 : i64} {
  func.func @_msa_block_kernel(%arg0: i32, %arg1: i32, %arg2: i32, %arg3: memref<1x8x8x96xf32, #tpu.memory_space<vmem>>, %arg4: memref<96x96xf32, #tpu.memory_space<vmem>>, %arg5: memref<1x96xf32, #tpu.memory_space<vmem>>, %arg6: memref<1x96xf32, #tpu.memory_space<vmem>>, %arg7: memref<1x96xf32, #tpu.memory_space<vmem>>, %arg8: memref<96x288xf32, #tpu.memory_space<vmem>>, %arg9: memref<1x288xf32, #tpu.memory_space<vmem>>, %arg10: memref<96x96xf32, #tpu.memory_space<vmem>>, %arg11: memref<1x96xf32, #tpu.memory_space<vmem>>, %arg12: memref<1x8x8x96xf32, #tpu.memory_space<vmem>>) attributes {dimension_semantics = [#tpu.dimension_semantics<parallel>, #tpu.dimension_semantics<parallel>, #tpu.dimension_semantics<parallel>], iteration_bounds = array<i64: 2, 2, 2>, scalar_prefetch = 0 : i64, scratch_operands = 0 : i64, tpu.core_type = #tpu.core_type<tc>, window_params = [{transform_indices = @transform_0, window_bounds = array<i64: 1, 8, 8, 96>}, {pipeline_mode = #tpu.pipeline_mode<synchronous>, transform_indices = @transform_1, window_bounds = array<i64: 96, 96>}, {pipeline_mode = #tpu.pipeline_mode<synchronous>, transform_indices = @transform_2, window_bounds = array<i64: 1, 96>}, {pipeline_mode = #tpu.pipeline_mode<synchronous>, transform_indices = @transform_3, window_bounds = array<i64: 1, 96>}, {pipeline_mode = #tpu.pipeline_mode<synchronous>, transform_indices = @transform_4, window_bounds = array<i64: 1, 96>}, {pipeline_mode = #tpu.pipeline_mode<synchronous>, transform_indices = @transform_5, window_bounds = array<i64: 96, 288>}, {pipeline_mode = #tpu.pipeline_mode<synchronous>, transform_indices = @transform_6, window_bounds = array<i64: 1, 288>}, {pipeline_mode = #tpu.pipeline_mode<synchronous>, transform_indices = @transform_7, window_bounds = array<i64: 96, 96>}, {pipeline_mode = #tpu.pipeline_mode<synchronous>, transform_indices = @transform_8, window_bounds = array<i64: 1, 96>}, {transform_indices = @transform_9, window_bounds = array<i64: 1, 8, 8, 96>}]} {
    %c0 = arith.constant 0 : index
    %c0_0 = arith.constant 0 : index
    %c0_1 = arith.constant 0 : index
    %c0_2 = arith.constant 0 : index
    %0 = vector.load %arg3[%c0, %c0_0, %c0_1, %c0_2] : memref<1x8x8x96xf32, #tpu.memory_space<vmem>>, vector<1x8x8x96xf32>
    %1 = vector.shape_cast %0 : vector<1x8x8x96xf32> to vector<8x8x96xf32>
    %2 = vector.shape_cast %1 : vector<8x8x96xf32> to vector<64x96xf32>
    %c0_3 = arith.constant 0 : index
    %c0_4 = arith.constant 0 : index
    %3 = vector.load %arg4[%c0_3, %c0_4] : memref<96x96xf32, #tpu.memory_space<vmem>>, vector<96x96xf32>
    %cst = arith.constant dense<0.000000e+00> : vector<64x96xf32>
    %4 = tpu.matmul %2, %3, %cst {dimension_numbers = #tpu.dot_dimension_numbers<[1], [0], [0], [1], [0, 0, 1, 1], [], []>} : vector<64x96xf32>, vector<96x96xf32>, vector<64x96xf32> -> vector<64x96xf32>
    %c0_5 = arith.constant 0 : index
    %c0_6 = arith.constant 0 : index
    %5 = vector.load %arg5[%c0_5, %c0_6] : memref<1x96xf32, #tpu.memory_space<vmem>>, vector<1x96xf32>
    %6 = vector.broadcast %5 : vector<1x96xf32> to vector<64x96xf32>
    %7 = arith.addf %4, %6 : vector<64x96xf32>
    %c0_7 = arith.constant 0 : index
    %c0_8 = arith.constant 0 : index
    %8 = vector.load %arg6[%c0_7, %c0_8] : memref<1x96xf32, #tpu.memory_space<vmem>>, vector<1x96xf32>
    %c0_9 = arith.constant 0 : index
    %c0_10 = arith.constant 0 : index
    %9 = vector.load %arg7[%c0_9, %c0_10] : memref<1x96xf32, #tpu.memory_space<vmem>>, vector<1x96xf32>
    %cst_11 = arith.constant dense<0.000000e+00> : vector<64xf32>
    %10 = vector.multi_reduction <add>, %7, %cst_11 [1] : vector<64x96xf32> to vector<64xf32>
    %11 = vector.shape_cast %10 : vector<64xf32> to vector<64x1xf32>
    %cst_12 = arith.constant 9.600000e+01 : f32
    %12 = vector.broadcast %cst_12 : f32 to vector<64x1xf32>
    %13 = arith.divf %11, %12 : vector<64x1xf32>
    %14 = vector.broadcast %13 : vector<64x1xf32> to vector<64x96xf32>
    %15 = arith.subf %7, %14 : vector<64x96xf32>
    %16 = arith.mulf %15, %15 : vector<64x96xf32>
    %cst_13 = arith.constant dense<0.000000e+00> : vector<64xf32>
    %17 = vector.multi_reduction <add>, %16, %cst_13 [1] : vector<64x96xf32> to vector<64xf32>
    %18 = vector.shape_cast %17 : vector<64xf32> to vector<64x1xf32>
    %cst_14 = arith.constant 9.600000e+01 : f32
    %19 = vector.broadcast %cst_14 : f32 to vector<64x1xf32>
    %20 = arith.divf %18, %19 : vector<64x1xf32>
    %21 = vector.broadcast %13 : vector<64x1xf32> to vector<64x96xf32>
    %22 = arith.subf %7, %21 : vector<64x96xf32>
    %cst_15 = arith.constant 9.99999974E-6 : f32
    %23 = vector.broadcast %cst_15 : f32 to vector<64x1xf32>
    %24 = arith.addf %20, %23 : vector<64x1xf32>
    %25 = math.rsqrt %24 : vector<64x1xf32>
    %26 = vector.broadcast %25 : vector<64x1xf32> to vector<64x96xf32>
    %27 = arith.mulf %22, %26 : vector<64x96xf32>
    %28 = vector.broadcast %8 : vector<1x96xf32> to vector<64x96xf32>
    %29 = arith.mulf %27, %28 : vector<64x96xf32>
    %30 = vector.broadcast %9 : vector<1x96xf32> to vector<64x96xf32>
    %31 = arith.addf %29, %30 : vector<64x96xf32>
    %c0_16 = arith.constant 0 : index
    %c0_17 = arith.constant 0 : index
    %32 = vector.load %arg8[%c0_16, %c0_17] : memref<96x288xf32, #tpu.memory_space<vmem>>, vector<96x288xf32>
    %cst_18 = arith.constant dense<0.000000e+00> : vector<64x288xf32>
    %33 = tpu.matmul %31, %32, %cst_18 {dimension_numbers = #tpu.dot_dimension_numbers<[1], [0], [0], [1], [0, 0, 1, 1], [], []>} : vector<64x96xf32>, vector<96x288xf32>, vector<64x288xf32> -> vector<64x288xf32>
    %c0_19 = arith.constant 0 : index
    %c0_20 = arith.constant 0 : index
    %34 = vector.load %arg9[%c0_19, %c0_20] : memref<1x288xf32, #tpu.memory_space<vmem>>, vector<1x288xf32>
    %35 = vector.broadcast %34 : vector<1x288xf32> to vector<64x288xf32>
    %36 = arith.addf %33, %35 : vector<64x288xf32>
    %c0_21 = arith.constant 0 : index
    %c0_22 = arith.constant 0 : index
    %37 = vector.load %arg10[%c0_21, %c0_22] : memref<96x96xf32, #tpu.memory_space<vmem>>, vector<96x96xf32>
    %c0_23 = arith.constant 0 : index
    %c0_24 = arith.constant 0 : index
    %38 = vector.load %arg11[%c0_23, %c0_24] : memref<1x96xf32, #tpu.memory_space<vmem>>, vector<1x96xf32>
    %39 = vector.broadcast %38 : vector<1x96xf32> to vector<64x96xf32>
    %40 = arith.addf %2, %39 : vector<64x96xf32>
    %41 = vector.extract_strided_slice %36 {offsets = [0, 0], sizes = [64, 32], strides = [1, 1]} : vector<64x288xf32> to vector<64x32xf32>
    %cst_25 = arith.constant 0.176776692 : f32
    %42 = vector.broadcast %cst_25 : f32 to vector<64x32xf32>
    %43 = arith.mulf %41, %42 : vector<64x32xf32>
    %44 = vector.extract_strided_slice %36 {offsets = [0, 96], sizes = [64, 32], strides = [1, 1]} : vector<64x288xf32> to vector<64x32xf32>
    %45 = vector.extract_strided_slice %36 {offsets = [0, 192], sizes = [64, 32], strides = [1, 1]} : vector<64x288xf32> to vector<64x32xf32>
    %cst_26 = arith.constant dense<0.000000e+00> : vector<64x64xf32>
    %46 = tpu.matmul %43, %44, %cst_26 {dimension_numbers = #tpu.dot_dimension_numbers<[1], [1], [0], [0], [0, 0, 1, 0], [], []>} : vector<64x32xf32>, vector<64x32xf32>, vector<64x64xf32> -> vector<64x64xf32>
    %cst_27 = arith.constant dense<0xFF800000> : vector<64xf32>
    %47 = vector.multi_reduction <maximumf>, %46, %cst_27 [1] : vector<64x64xf32> to vector<64xf32>
    %48 = vector.shape_cast %47 : vector<64xf32> to vector<64x1xf32>
    %49 = vector.broadcast %48 : vector<64x1xf32> to vector<64x64xf32>
    %50 = arith.subf %46, %49 : vector<64x64xf32>
    %51 = math.exp %50 : vector<64x64xf32>
    %cst_28 = arith.constant dense<0.000000e+00> : vector<64xf32>
    %52 = vector.multi_reduction <add>, %51, %cst_28 [1] : vector<64x64xf32> to vector<64xf32>
    %53 = vector.shape_cast %52 : vector<64xf32> to vector<64x1xf32>
    %54 = tpu.reciprocal %53 {approx = true} : vector<64x1xf32> -> vector<64x1xf32>
    %55 = vector.broadcast %54 : vector<64x1xf32> to vector<64x64xf32>
    %56 = arith.mulf %51, %55 : vector<64x64xf32>
    %cst_29 = arith.constant dense<0.000000e+00> : vector<64x32xf32>
    %57 = tpu.matmul %56, %45, %cst_29 {dimension_numbers = #tpu.dot_dimension_numbers<[1], [0], [0], [1], [0, 0, 1, 1], [], []>} : vector<64x64xf32>, vector<64x32xf32>, vector<64x32xf32> -> vector<64x32xf32>
    %58 = vector.extract_strided_slice %37 {offsets = [0, 0], sizes = [32, 96], strides = [1, 1]} : vector<96x96xf32> to vector<32x96xf32>
    %cst_30 = arith.constant dense<0.000000e+00> : vector<64x96xf32>
    %59 = tpu.matmul %57, %58, %cst_30 {dimension_numbers = #tpu.dot_dimension_numbers<[1], [0], [0], [1], [0, 0, 1, 1], [], []>} : vector<64x32xf32>, vector<32x96xf32>, vector<64x96xf32> -> vector<64x96xf32>
    %60 = arith.addf %40, %59 : vector<64x96xf32>
    %61 = vector.extract_strided_slice %36 {offsets = [0, 32], sizes = [64, 32], strides = [1, 1]} : vector<64x288xf32> to vector<64x32xf32>
    %cst_31 = arith.constant 0.176776692 : f32
    %62 = vector.broadcast %cst_31 : f32 to vector<64x32xf32>
    %63 = arith.mulf %61, %62 : vector<64x32xf32>
    %64 = vector.extract_strided_slice %36 {offsets = [0, 128], sizes = [64, 32], strides = [1, 1]} : vector<64x288xf32> to vector<64x32xf32>
    %65 = vector.extract_strided_slice %36 {offsets = [0, 224], sizes = [64, 32], strides = [1, 1]} : vector<64x288xf32> to vector<64x32xf32>
    %cst_32 = arith.constant dense<0.000000e+00> : vector<64x64xf32>
    %66 = tpu.matmul %63, %64, %cst_32 {dimension_numbers = #tpu.dot_dimension_numbers<[1], [1], [0], [0], [0, 0, 1, 0], [], []>} : vector<64x32xf32>, vector<64x32xf32>, vector<64x64xf32> -> vector<64x64xf32>
    %cst_33 = arith.constant dense<0xFF800000> : vector<64xf32>
    %67 = vector.multi_reduction <maximumf>, %66, %cst_33 [1] : vector<64x64xf32> to vector<64xf32>
    %68 = vector.shape_cast %67 : vector<64xf32> to vector<64x1xf32>
    %69 = vector.broadcast %68 : vector<64x1xf32> to vector<64x64xf32>
    %70 = arith.subf %66, %69 : vector<64x64xf32>
    %71 = math.exp %70 : vector<64x64xf32>
    %cst_34 = arith.constant dense<0.000000e+00> : vector<64xf32>
    %72 = vector.multi_reduction <add>, %71, %cst_34 [1] : vector<64x64xf32> to vector<64xf32>
    %73 = vector.shape_cast %72 : vector<64xf32> to vector<64x1xf32>
    %74 = tpu.reciprocal %73 {approx = true} : vector<64x1xf32> -> vector<64x1xf32>
    %75 = vector.broadcast %74 : vector<64x1xf32> to vector<64x64xf32>
    %76 = arith.mulf %71, %75 : vector<64x64xf32>
    %cst_35 = arith.constant dense<0.000000e+00> : vector<64x32xf32>
    %77 = tpu.matmul %76, %65, %cst_35 {dimension_numbers = #tpu.dot_dimension_numbers<[1], [0], [0], [1], [0, 0, 1, 1], [], []>} : vector<64x64xf32>, vector<64x32xf32>, vector<64x32xf32> -> vector<64x32xf32>
    %78 = vector.extract_strided_slice %37 {offsets = [32, 0], sizes = [32, 96], strides = [1, 1]} : vector<96x96xf32> to vector<32x96xf32>
    %cst_36 = arith.constant dense<0.000000e+00> : vector<64x96xf32>
    %79 = tpu.matmul %77, %78, %cst_36 {dimension_numbers = #tpu.dot_dimension_numbers<[1], [0], [0], [1], [0, 0, 1, 1], [], []>} : vector<64x32xf32>, vector<32x96xf32>, vector<64x96xf32> -> vector<64x96xf32>
    %80 = arith.addf %60, %79 : vector<64x96xf32>
    %81 = vector.extract_strided_slice %36 {offsets = [0, 64], sizes = [64, 32], strides = [1, 1]} : vector<64x288xf32> to vector<64x32xf32>
    %cst_37 = arith.constant 0.176776692 : f32
    %82 = vector.broadcast %cst_37 : f32 to vector<64x32xf32>
    %83 = arith.mulf %81, %82 : vector<64x32xf32>
    %84 = vector.extract_strided_slice %36 {offsets = [0, 160], sizes = [64, 32], strides = [1, 1]} : vector<64x288xf32> to vector<64x32xf32>
    %85 = vector.extract_strided_slice %36 {offsets = [0, 256], sizes = [64, 32], strides = [1, 1]} : vector<64x288xf32> to vector<64x32xf32>
    %cst_38 = arith.constant dense<0.000000e+00> : vector<64x64xf32>
    %86 = tpu.matmul %83, %84, %cst_38 {dimension_numbers = #tpu.dot_dimension_numbers<[1], [1], [0], [0], [0, 0, 1, 0], [], []>} : vector<64x32xf32>, vector<64x32xf32>, vector<64x64xf32> -> vector<64x64xf32>
    %cst_39 = arith.constant dense<0xFF800000> : vector<64xf32>
    %87 = vector.multi_reduction <maximumf>, %86, %cst_39 [1] : vector<64x64xf32> to vector<64xf32>
    %88 = vector.shape_cast %87 : vector<64xf32> to vector<64x1xf32>
    %89 = vector.broadcast %88 : vector<64x1xf32> to vector<64x64xf32>
    %90 = arith.subf %86, %89 : vector<64x64xf32>
    %91 = math.exp %90 : vector<64x64xf32>
    %cst_40 = arith.constant dense<0.000000e+00> : vector<64xf32>
    %92 = vector.multi_reduction <add>, %91, %cst_40 [1] : vector<64x64xf32> to vector<64xf32>
    %93 = vector.shape_cast %92 : vector<64xf32> to vector<64x1xf32>
    %94 = tpu.reciprocal %93 {approx = true} : vector<64x1xf32> -> vector<64x1xf32>
    %95 = vector.broadcast %94 : vector<64x1xf32> to vector<64x64xf32>
    %96 = arith.mulf %91, %95 : vector<64x64xf32>
    %cst_41 = arith.constant dense<0.000000e+00> : vector<64x32xf32>
    %97 = tpu.matmul %96, %85, %cst_41 {dimension_numbers = #tpu.dot_dimension_numbers<[1], [0], [0], [1], [0, 0, 1, 1], [], []>} : vector<64x64xf32>, vector<64x32xf32>, vector<64x32xf32> -> vector<64x32xf32>
    %98 = vector.extract_strided_slice %37 {offsets = [64, 0], sizes = [32, 96], strides = [1, 1]} : vector<96x96xf32> to vector<32x96xf32>
    %cst_42 = arith.constant dense<0.000000e+00> : vector<64x96xf32>
    %99 = tpu.matmul %97, %98, %cst_42 {dimension_numbers = #tpu.dot_dimension_numbers<[1], [0], [0], [1], [0, 0, 1, 1], [], []>} : vector<64x32xf32>, vector<32x96xf32>, vector<64x96xf32> -> vector<64x96xf32>
    %100 = arith.addf %80, %99 : vector<64x96xf32>
    %101 = vector.shape_cast %100 : vector<64x96xf32> to vector<8x8x96xf32>
    %c0_43 = arith.constant 0 : index
    %c0_44 = arith.constant 0 : index
    %c0_45 = arith.constant 0 : index
    %c0_46 = arith.constant 0 : index
    %102 = vector.load %arg12[%c0_43, %c0_44, %c0_45, %c0_46] : memref<1x8x8x96xf32, #tpu.memory_space<vmem>>, vector<1x8x8x96xf32>
    %103 = vector.shape_cast %102 : vector<1x8x8x96xf32> to vector<8x8x96xf32>
    %104 = vector.shape_cast %101 : vector<8x8x96xf32> to vector<1x8x8x96xf32>
    tpu.vector_store %arg12[%c0_43, %c0_44, %c0_45, %c0_46], %104 {strides = array<i32>} : memref<1x8x8x96xf32, #tpu.memory_space<vmem>>, vector<1x8x8x96xf32>,
    return
  }
  func.func @transform_0(%arg0: i32, %arg1: i32, %arg2: i32) -> (i32, i32, i32, i32) {
    %c0_i32 = arith.constant 0 : i32
    %c0_i32_0 = arith.constant 0 : i32
    return %arg0, %arg1, %arg2, %c0_i32 : i32, i32, i32, i32
  }
  func.func @transform_1(%arg0: i32, %arg1: i32, %arg2: i32) -> (i32, i32) {
    %c0_i32 = arith.constant 0 : i32
    %c0_i32_0 = arith.constant 0 : i32
    %c0_i32_1 = arith.constant 0 : i32
    return %c0_i32, %c0_i32_0 : i32, i32
  }
  func.func @transform_2(%arg0: i32, %arg1: i32, %arg2: i32) -> (i32, i32) {
    %c0_i32 = arith.constant 0 : i32
    %c0_i32_0 = arith.constant 0 : i32
    %c0_i32_1 = arith.constant 0 : i32
    return %c0_i32, %c0_i32_0 : i32, i32
  }
  func.func @transform_3(%arg0: i32, %arg1: i32, %arg2: i32) -> (i32, i32) {
    %c0_i32 = arith.constant 0 : i32
    %c0_i32_0 = arith.constant 0 : i32
    %c0_i32_1 = arith.constant 0 : i32
    return %c0_i32, %c0_i32_0 : i32, i32
  }
  func.func @transform_4(%arg0: i32, %arg1: i32, %arg2: i32) -> (i32, i32) {
    %c0_i32 = arith.constant 0 : i32
    %c0_i32_0 = arith.constant 0 : i32
    %c0_i32_1 = arith.constant 0 : i32
    return %c0_i32, %c0_i32_0 : i32, i32
  }
  func.func @transform_5(%arg0: i32, %arg1: i32, %arg2: i32) -> (i32, i32) {
    %c0_i32 = arith.constant 0 : i32
    %c0_i32_0 = arith.constant 0 : i32
    %c0_i32_1 = arith.constant 0 : i32
    return %c0_i32, %c0_i32_0 : i32, i32
  }
  func.func @transform_6(%arg0: i32, %arg1: i32, %arg2: i32) -> (i32, i32) {
    %c0_i32 = arith.constant 0 : i32
    %c0_i32_0 = arith.constant 0 : i32
    %c0_i32_1 = arith.constant 0 : i32
    return %c0_i32, %c0_i32_0 : i32, i32
  }
  func.func @transform_7(%arg0: i32, %arg1: i32, %arg2: i32) -> (i32, i32) {
    %c0_i32 = arith.constant 0 : i32
    %c0_i32_0 = arith.constant 0 : i32
    %c0_i32_1 = arith.constant 0 : i32
    return %c0_i32, %c0_i32_0 : i32, i32
  }
  func.func @transform_8(%arg0: i32, %arg1: i32, %arg2: i32) -> (i32, i32) {
    %c0_i32 = arith.constant 0 : i32
    %c0_i32_0 = arith.constant 0 : i32
    %c0_i32_1 = arith.constant 0 : i32
    return %c0_i32, %c0_i32_0 : i32, i32
  }
  func.func @transform_9(%arg0: i32, %arg1: i32, %arg2: i32) -> (i32, i32, i32, i32) {
    %c0_i32 = arith.constant 0 : i32
    %c0_i32_0 = arith.constant 0 : i32
    return %arg0, %arg1, %arg2, %c0_i32 : i32, i32, i32, i32
  }
}

module attributes {stable_mosaic.version = 11 : i64} {
  func.func @_mlp_block_kernel(%arg0: i32, %arg1: memref<512x96xf32, #tpu.memory_space<vmem>>, %arg2: memref<96x96xf32, #tpu.memory_space<vmem>>, %arg3: memref<1x96xf32, #tpu.memory_space<vmem>>, %arg4: memref<1x96xf32, #tpu.memory_space<vmem>>, %arg5: memref<1x96xf32, #tpu.memory_space<vmem>>, %arg6: memref<96x96xf32, #tpu.memory_space<vmem>>, %arg7: memref<1x96xf32, #tpu.memory_space<vmem>>, %arg8: memref<96x96xf32, #tpu.memory_space<vmem>>, %arg9: memref<1x96xf32, #tpu.memory_space<vmem>>, %arg10: memref<512x96xf32, #tpu.memory_space<vmem>>) attributes {dimension_semantics = [#tpu.dimension_semantics<parallel>], iteration_bounds = array<i64: 1>, scalar_prefetch = 0 : i64, scratch_operands = 0 : i64, tpu.core_type = #tpu.core_type<tc>, window_params = [{transform_indices = @transform_0, window_bounds = array<i64: 512, 96>}, {pipeline_mode = #tpu.pipeline_mode<synchronous>, transform_indices = @transform_1, window_bounds = array<i64: 96, 96>}, {pipeline_mode = #tpu.pipeline_mode<synchronous>, transform_indices = @transform_2, window_bounds = array<i64: 1, 96>}, {pipeline_mode = #tpu.pipeline_mode<synchronous>, transform_indices = @transform_3, window_bounds = array<i64: 1, 96>}, {pipeline_mode = #tpu.pipeline_mode<synchronous>, transform_indices = @transform_4, window_bounds = array<i64: 1, 96>}, {pipeline_mode = #tpu.pipeline_mode<synchronous>, transform_indices = @transform_5, window_bounds = array<i64: 96, 96>}, {pipeline_mode = #tpu.pipeline_mode<synchronous>, transform_indices = @transform_6, window_bounds = array<i64: 1, 96>}, {pipeline_mode = #tpu.pipeline_mode<synchronous>, transform_indices = @transform_7, window_bounds = array<i64: 96, 96>}, {pipeline_mode = #tpu.pipeline_mode<synchronous>, transform_indices = @transform_8, window_bounds = array<i64: 1, 96>}, {transform_indices = @transform_9, window_bounds = array<i64: 512, 96>}]} {
    %c0 = arith.constant 0 : index
    %c0_0 = arith.constant 0 : index
    %0 = vector.load %arg1[%c0, %c0_0] : memref<512x96xf32, #tpu.memory_space<vmem>>, vector<512x96xf32>
    %c0_1 = arith.constant 0 : index
    %c0_2 = arith.constant 0 : index
    %1 = vector.load %arg2[%c0_1, %c0_2] : memref<96x96xf32, #tpu.memory_space<vmem>>, vector<96x96xf32>
    %cst = arith.constant dense<0.000000e+00> : vector<512x96xf32>
    %2 = tpu.matmul %0, %1, %cst {dimension_numbers = #tpu.dot_dimension_numbers<[1], [0], [0], [1], [0, 0, 1, 1], [], []>} : vector<512x96xf32>, vector<96x96xf32>, vector<512x96xf32> -> vector<512x96xf32>
    %c0_3 = arith.constant 0 : index
    %c0_4 = arith.constant 0 : index
    %3 = vector.load %arg3[%c0_3, %c0_4] : memref<1x96xf32, #tpu.memory_space<vmem>>, vector<1x96xf32>
    %4 = vector.broadcast %3 : vector<1x96xf32> to vector<512x96xf32>
    %5 = arith.addf %2, %4 : vector<512x96xf32>
    %c0_5 = arith.constant 0 : index
    %c0_6 = arith.constant 0 : index
    %6 = vector.load %arg4[%c0_5, %c0_6] : memref<1x96xf32, #tpu.memory_space<vmem>>, vector<1x96xf32>
    %c0_7 = arith.constant 0 : index
    %c0_8 = arith.constant 0 : index
    %7 = vector.load %arg5[%c0_7, %c0_8] : memref<1x96xf32, #tpu.memory_space<vmem>>, vector<1x96xf32>
    %cst_9 = arith.constant dense<0.000000e+00> : vector<512xf32>
    %8 = vector.multi_reduction <add>, %5, %cst_9 [1] : vector<512x96xf32> to vector<512xf32>
    %9 = vector.shape_cast %8 : vector<512xf32> to vector<512x1xf32>
    %cst_10 = arith.constant 9.600000e+01 : f32
    %10 = vector.broadcast %cst_10 : f32 to vector<512x1xf32>
    %11 = arith.divf %9, %10 : vector<512x1xf32>
    %12 = vector.broadcast %11 : vector<512x1xf32> to vector<512x96xf32>
    %13 = arith.subf %5, %12 : vector<512x96xf32>
    %14 = arith.mulf %13, %13 : vector<512x96xf32>
    %cst_11 = arith.constant dense<0.000000e+00> : vector<512xf32>
    %15 = vector.multi_reduction <add>, %14, %cst_11 [1] : vector<512x96xf32> to vector<512xf32>
    %16 = vector.shape_cast %15 : vector<512xf32> to vector<512x1xf32>
    %cst_12 = arith.constant 9.600000e+01 : f32
    %17 = vector.broadcast %cst_12 : f32 to vector<512x1xf32>
    %18 = arith.divf %16, %17 : vector<512x1xf32>
    %19 = vector.broadcast %11 : vector<512x1xf32> to vector<512x96xf32>
    %20 = arith.subf %5, %19 : vector<512x96xf32>
    %cst_13 = arith.constant 9.99999974E-6 : f32
    %21 = vector.broadcast %cst_13 : f32 to vector<512x1xf32>
    %22 = arith.addf %18, %21 : vector<512x1xf32>
    %23 = math.rsqrt %22 : vector<512x1xf32>
    %24 = vector.broadcast %23 : vector<512x1xf32> to vector<512x96xf32>
    %25 = arith.mulf %20, %24 : vector<512x96xf32>
    %26 = vector.broadcast %6 : vector<1x96xf32> to vector<512x96xf32>
    %27 = arith.mulf %25, %26 : vector<512x96xf32>
    %28 = vector.broadcast %7 : vector<1x96xf32> to vector<512x96xf32>
    %29 = arith.addf %27, %28 : vector<512x96xf32>
    %c0_14 = arith.constant 0 : index
    %c0_15 = arith.constant 0 : index
    %30 = vector.load %arg6[%c0_14, %c0_15] : memref<96x96xf32, #tpu.memory_space<vmem>>, vector<96x96xf32>
    %cst_16 = arith.constant dense<0.000000e+00> : vector<512x96xf32>
    %31 = tpu.matmul %29, %30, %cst_16 {dimension_numbers = #tpu.dot_dimension_numbers<[1], [0], [0], [1], [0, 0, 1, 1], [], []>} : vector<512x96xf32>, vector<96x96xf32>, vector<512x96xf32> -> vector<512x96xf32>
    %c0_17 = arith.constant 0 : index
    %c0_18 = arith.constant 0 : index
    %32 = vector.load %arg7[%c0_17, %c0_18] : memref<1x96xf32, #tpu.memory_space<vmem>>, vector<1x96xf32>
    %33 = vector.broadcast %32 : vector<1x96xf32> to vector<512x96xf32>
    %34 = arith.addf %31, %33 : vector<512x96xf32>
    %cst_19 = arith.constant 0.000000e+00 : f32
    %35 = vector.broadcast %cst_19 : f32 to vector<512x96xf32>
    %36 = arith.maximumf %34, %35 : vector<512x96xf32>
    %c0_20 = arith.constant 0 : index
    %c0_21 = arith.constant 0 : index
    %37 = vector.load %arg8[%c0_20, %c0_21] : memref<96x96xf32, #tpu.memory_space<vmem>>, vector<96x96xf32>
    %cst_22 = arith.constant dense<0.000000e+00> : vector<512x96xf32>
    %38 = tpu.matmul %36, %37, %cst_22 {dimension_numbers = #tpu.dot_dimension_numbers<[1], [0], [0], [1], [0, 0, 1, 1], [], []>} : vector<512x96xf32>, vector<96x96xf32>, vector<512x96xf32> -> vector<512x96xf32>
    %39 = arith.addf %0, %38 : vector<512x96xf32>
    %c0_23 = arith.constant 0 : index
    %c0_24 = arith.constant 0 : index
    %40 = vector.load %arg9[%c0_23, %c0_24] : memref<1x96xf32, #tpu.memory_space<vmem>>, vector<1x96xf32>
    %41 = vector.broadcast %40 : vector<1x96xf32> to vector<512x96xf32>
    %42 = arith.addf %39, %41 : vector<512x96xf32>
    %c0_25 = arith.constant 0 : index
    %c0_26 = arith.constant 0 : index
    %43 = vector.load %arg10[%c0_25, %c0_26] : memref<512x96xf32, #tpu.memory_space<vmem>>, vector<512x96xf32>
    tpu.vector_store %arg10[%c0_25, %c0_26], %42 {strides = array<i32>} : memref<512x96xf32, #tpu.memory_space<vmem>>, vector<512x96xf32>,
    return
  }
  func.func @transform_0(%arg0: i32) -> (i32, i32) {
    %c0_i32 = arith.constant 0 : i32
    %c0_i32_0 = arith.constant 0 : i32
    return %arg0, %c0_i32 : i32, i32
  }
  func.func @transform_1(%arg0: i32) -> (i32, i32) {
    %c0_i32 = arith.constant 0 : i32
    %c0_i32_0 = arith.constant 0 : i32
    %c0_i32_1 = arith.constant 0 : i32
    return %c0_i32, %c0_i32_0 : i32, i32
  }
  func.func @transform_2(%arg0: i32) -> (i32, i32) {
    %c0_i32 = arith.constant 0 : i32
    %c0_i32_0 = arith.constant 0 : i32
    %c0_i32_1 = arith.constant 0 : i32
    return %c0_i32, %c0_i32_0 : i32, i32
  }
  func.func @transform_3(%arg0: i32) -> (i32, i32) {
    %c0_i32 = arith.constant 0 : i32
    %c0_i32_0 = arith.constant 0 : i32
    %c0_i32_1 = arith.constant 0 : i32
    return %c0_i32, %c0_i32_0 : i32, i32
  }
  func.func @transform_4(%arg0: i32) -> (i32, i32) {
    %c0_i32 = arith.constant 0 : i32
    %c0_i32_0 = arith.constant 0 : i32
    %c0_i32_1 = arith.constant 0 : i32
    return %c0_i32, %c0_i32_0 : i32, i32
  }
  func.func @transform_5(%arg0: i32) -> (i32, i32) {
    %c0_i32 = arith.constant 0 : i32
    %c0_i32_0 = arith.constant 0 : i32
    %c0_i32_1 = arith.constant 0 : i32
    return %c0_i32, %c0_i32_0 : i32, i32
  }
  func.func @transform_6(%arg0: i32) -> (i32, i32) {
    %c0_i32 = arith.constant 0 : i32
    %c0_i32_0 = arith.constant 0 : i32
    %c0_i32_1 = arith.constant 0 : i32
    return %c0_i32, %c0_i32_0 : i32, i32
  }
  func.func @transform_7(%arg0: i32) -> (i32, i32) {
    %c0_i32 = arith.constant 0 : i32
    %c0_i32_0 = arith.constant 0 : i32
    %c0_i32_1 = arith.constant 0 : i32
    return %c0_i32, %c0_i32_0 : i32, i32
  }
  func.func @transform_8(%arg0: i32) -> (i32, i32) {
    %c0_i32 = arith.constant 0 : i32
    %c0_i32_0 = arith.constant 0 : i32
    %c0_i32_1 = arith.constant 0 : i32
    return %c0_i32, %c0_i32_0 : i32, i32
  }
  func.func @transform_9(%arg0: i32) -> (i32, i32) {
    %c0_i32 = arith.constant 0 : i32
    %c0_i32_0 = arith.constant 0 : i32
    return %arg0, %c0_i32 : i32, i32
  }
}

</mosaic_0001>

<bundles_post_ra>
// kernel: fwd.5
= control target key start
LH: loop header
LB: loop body
LE: loop exit
PB: predicated region body
PF: predicated region fallthrough
CT: control target
= control target key end

     0   :  { %vm115_vm0 = vcmask 785408   ;;  %s6268_s1 = inlined_call_operand.vmem [shape: f32[96,96], index: 1, kind: input, shape index: {}]   ;;  %s6269_s0 = inlined_call_operand.vmem [shape: f32[512,96], index: 0, kind: input, shape index: {}]   ;;  %s6270_s2 = inlined_call_operand.vmem [shape: f32[1,96], index: 2, kind: input, shape index: {}]   ;;  %s6271_s5 = inlined_call_operand.vmem [shape: f32[96,96], index: 5, kind: input, shape index: {}]   ;;  %s6272_s3 = inlined_call_operand.vmem [shape: f32[1,96], index: 3, kind: input, shape index: {}]   ;;  %s6273_s4 = inlined_call_operand.vmem [shape: f32[1,96], index: 4, kind: input, shape index: {}]   ;;  %s6274_s7 = inlined_call_operand.vmem [shape: f32[96,96], index: 7, kind: input, shape index: {}]   ;;  %s6275_s6 = inlined_call_operand.vmem [shape: f32[1,96], index: 6, kind: input, shape index: {}]   ;;  %s6276_s8 = inlined_call_operand.vmem [shape: f32[1,96], index: 8, kind: input, shape index: {}]   ;;  %s6277_s9 = inlined_call_operand.vmem [shape: f32[512,96], index: 9, kind: output, shape index: {}]  }
   0x1   :  { %v107_v0 = vld [vmem:[%s6268_s1 + $0x58] sm:$0xff]  ;;  %v106_v1 = vld [vmem:[%s6268_s1 + $0x50] sm:$0xff]  ;;  %v105_v2 = vld [vmem:[%s6268_s1 + $0x48] sm:$0xff] }
   0x2   :  { %3545 = vmatprep.subr.mxu0 %v107_v0  ;;  %3905 = vmatprep.subr.mxu1 %v107_v0  ;;  %v104_v3 = vld [vmem:[%s6268_s1 + $0x40] sm:$0xff]  ;;  %v103_v4 = vld [vmem:[%s6268_s1 + $0x38] sm:$0xff]  ;;  %v102_v5 = vld [vmem:[%s6268_s1 + $0x30] sm:$0xff] }
   0x3   :  { %3546 = vmatpush3.msra.mxu0 %v107_v0  ;;  %3917 = vmatpush3.msra.mxu1 %v107_v0  ;;  %v101_v6 = vld [vmem:[%s6268_s1 + $0x28] sm:$0xff]  ;;  %v100_v7 = vld [vmem:[%s6268_s1 + $0x20] sm:$0xff]  ;;  %v99_v8 = vld [vmem:[%s6268_s1 + $0x18] sm:$0xff] }
   0x4   :  { %3547 = vmatprep.subr.mxu0 %v106_v1  ;;  %3906 = vmatprep.subr.mxu1 %v106_v1  ;;  %v98_v9 = vld [vmem:[%s6268_s1 + $0x10] sm:$0xff]  ;;  %v97_v10 = vld [vmem:[%s6268_s1 + $0x8] sm:$0xff]  ;;  %v96_v11 = vld [vmem:[%s6268_s1] sm:$0xff] }
   0x5   :  { %3548 = vmatpush3.msra.mxu0 %v106_v1  ;;  %3918 = vmatpush3.msra.mxu1 %v106_v1  ;;  %v32_v12 = vld [vmem:[%s6269_s0] sm:$0xff]  ;;  %v33_v14 = vld [vmem:[%s6269_s0 + $0x8] sm:$0xff]  ;;  %v34_v16 = vld [vmem:[%s6269_s0 + $0x10] sm:$0xff] }
   0x6   :  { %3549 = vmatprep.subr.mxu0 %v105_v2  ;;  %3907 = vmatprep.subr.mxu1 %v105_v2  ;;  %v64_v13 = vld [vmem:[%s6269_s0 + $0x100] sm:$0xff]  ;;  %v65_v15 = vld [vmem:[%s6269_s0 + $0x108] sm:$0xff]  ;;  %v66_v17 = vld [vmem:[%s6269_s0 + $0x110] sm:$0xff] }
   0x7   :  { %3550 = vmatpush3.msra.mxu0 %v105_v2  ;;  %3919 = vmatpush3.msra.mxu1 %v105_v2  ;;  %v35_v18 = vld [vmem:[%s6269_s0 + $0x18] sm:$0xff]  ;;  %v36_v20 = vld [vmem:[%s6269_s0 + $0x20] sm:$0xff]  ;;  %v37_v22 = vld [vmem:[%s6269_s0 + $0x28] sm:$0xff] }
   0x8   :  { %3551 = vmatprep.subr.mxu0 %v104_v3  ;;  %3908 = vmatprep.subr.mxu1 %v104_v3  ;;  %v67_v19 = vld [vmem:[%s6269_s0 + $0x118] sm:$0xff]  ;;  %v68_v21 = vld [vmem:[%s6269_s0 + $0x120] sm:$0xff]  ;;  %v69_v23 = vld [vmem:[%s6269_s0 + $0x128] sm:$0xff] }
   0x9   :  { %3552 = vmatpush3.msra.mxu0 %v104_v3  ;;  %3920 = vmatpush3.msra.mxu1 %v104_v3  ;;  %v38_v24 = vld [vmem:[%s6269_s0 + $0x30] sm:$0xff]  ;;  %v39_v26 = vld [vmem:[%s6269_s0 + $0x38] sm:$0xff]  ;;  %v40_v28 = vld [vmem:[%s6269_s0 + $0x40] sm:$0xff] }
   0xa   :  { %3553 = vmatprep.subr.mxu0 %v103_v4  ;;  %3909 = vmatprep.subr.mxu1 %v103_v4  ;;  %v70_v25 = vld [vmem:[%s6269_s0 + $0x130] sm:$0xff]  ;;  %v71_v27 = vld [vmem:[%s6269_s0 + $0x138] sm:$0xff]  ;;  %v72_v29 = vld [vmem:[%s6269_s0 + $0x140] sm:$0xff] }
   0xb   :  { %3554 = vmatpush3.msra.mxu0 %v103_v4  ;;  %3921 = vmatpush3.msra.mxu1 %v103_v4  ;;  %v41_v30 = vld [vmem:[%s6269_s0 + $0x48] sm:$0xff]  ;;  %v42_v32 = vld [vmem:[%s6269_s0 + $0x50] sm:$0xff]  ;;  %v43_v34 = vld [vmem:[%s6269_s0 + $0x58] sm:$0xff] }
   0xc   :  { %3555 = vmatprep.subr.mxu0 %v102_v5  ;;  %3910 = vmatprep.subr.mxu1 %v102_v5  ;;  %v73_v31 = vld [vmem:[%s6269_s0 + $0x148] sm:$0xff]  ;;  %v74_v33 = vld [vmem:[%s6269_s0 + $0x150] sm:$0xff]  ;;  %v75_v35 = vld [vmem:[%s6269_s0 + $0x158] sm:$0xff] }
   0xd   :  { %3556 = vmatpush3.msra.mxu0 %v102_v5  ;;  %3922 = vmatpush3.msra.mxu1 %v102_v5  ;;  %v44_v36 = vld [vmem:[%s6269_s0 + $0x60] sm:$0xff]  ;;  %v45_v38 = vld [vmem:[%s6269_s0 + $0x68] sm:$0xff]  ;;  %v46_v40 = vld [vmem:[%s6269_s0 + $0x70] sm:$0xff] }
   0xe   :  { %3557 = vmatprep.subr.mxu0 %v101_v6  ;;  %3911 = vmatprep.subr.mxu1 %v101_v6  ;;  %v76_v37 = vld [vmem:[%s6269_s0 + $0x160] sm:$0xff]  ;;  %v77_v39 = vld [vmem:[%s6269_s0 + $0x168] sm:$0xff]  ;;  %v78_v41 = vld [vmem:[%s6269_s0 + $0x170] sm:$0xff] }
   0xf   :  { %3558 = vmatpush3.msra.mxu0 %v101_v6  ;;  %3923 = vmatpush3.msra.mxu1 %v101_v6  ;;  %v47_v42 = vld [vmem:[%s6269_s0 + $0x78] sm:$0xff]  ;;  %v48_v44 = vld [vmem:[%s6269_s0 + $0x80] sm:$0xff]  ;;  %v49_v46 = vld [vmem:[%s6269_s0 + $0x88] sm:$0xff] }
  0x10   :  { %3559 = vmatprep.subr.mxu0 %v100_v7  ;;  %3912 = vmatprep.subr.mxu1 %v100_v7  ;;  %v79_v43 = vld [vmem:[%s6269_s0 + $0x178] sm:$0xff]  ;;  %v80_v45 = vld [vmem:[%s6269_s0 + $0x180] sm:$0xff]  ;;  %v81_v47 = vld [vmem:[%s6269_s0 + $0x188] sm:$0xff] }
  0x11   :  { %3560 = vmatpush3.msra.mxu0 %v100_v7  ;;  %3924 = vmatpush3.msra.mxu1 %v100_v7  ;;  %v50_v48 = vld [vmem:[%s6269_s0 + $0x90] sm:$0xff]  ;;  %v51_v50 = vld [vmem:[%s6269_s0 + $0x98] sm:$0xff]  ;;  %v52_v52 = vld [vmem:[%s6269_s0 + $0xa0] sm:$0xff] }
  0x12   :  { %3561 = vmatprep.subr.mxu0 %v99_v8  ;;  %3913 = vmatprep.subr.mxu1 %v99_v8  ;;  %v82_v49 = vld [vmem:[%s6269_s0 + $0x190] sm:$0xff]  ;;  %v83_v51 = vld [vmem:[%s6269_s0 + $0x198] sm:$0xff]  ;;  %v84_v53 = vld [vmem:[%s6269_s0 + $0x1a0] sm:$0xff] }
  0x13   :  { %3562 = vmatpush3.msra.mxu0 %v99_v8  ;;  %3925 = vmatpush3.msra.mxu1 %v99_v8  ;;  %v53_v54 = vld [vmem:[%s6269_s0 + $0xa8] sm:$0xff]  ;;  %v54_v56 = vld [vmem:[%s6269_s0 + $0xb0] sm:$0xff]  ;;  %v55_v58 = vld [vmem:[%s6269_s0 + $0xb8] sm:$0xff] }
  0x14   :  { %3563 = vmatprep.subr.mxu0 %v98_v9  ;;  %3914 = vmatprep.subr.mxu1 %v98_v9  ;;  %v85_v55 = vld [vmem:[%s6269_s0 + $0x1a8] sm:$0xff]  ;;  %v86_v57 = vld [vmem:[%s6269_s0 + $0x1b0] sm:$0xff]  ;;  %v87_v59 = vld [vmem:[%s6269_s0 + $0x1b8] sm:$0xff] }
  0x15   :  { %3564 = vmatpush3.msra.mxu0 %v98_v9  ;;  %3926 = vmatpush3.msra.mxu1 %v98_v9  ;;  %v56_v60 = vld [vmem:[%s6269_s0 + $0xc0] sm:$0xff]  ;;  %v57_v62 = vld [vmem:[%s6269_s0 + $0xc8] sm:$0xff]  ;;  %v58_v0 = vld [vmem:[%s6269_s0 + $0xd0] sm:$0xff] }
  0x16   :  { %3565 = vmatprep.subr.mxu0 %v97_v10  ;;  %3915 = vmatprep.subr.mxu1 %v97_v10  ;;  %v88_v61 = vld [vmem:[%s6269_s0 + $0x1c0] sm:$0xff]  ;;  %v89_v63 = vld [vmem:[%s6269_s0 + $0x1c8] sm:$0xff]  ;;  %v90_v1 = vld [vmem:[%s6269_s0 + $0x1d0] sm:$0xff] }
  0x17   :  { %3566 = vmatpush3.msra.mxu0 %v97_v10  ;;  %3927 = vmatpush3.msra.mxu1 %v97_v10  ;;  %v59_v2 = vld [vmem:[%s6269_s0 + $0xd8] sm:$0xff]  ;;  %v60_v4 = vld [vmem:[%s6269_s0 + $0xe0] sm:$0xff]  ;;  %v61_v6 = vld [vmem:[%s6269_s0 + $0xe8] sm:$0xff] }
  0x18   :  { %3567 = vmatprep.subr.mxu0 %v96_v11  ;;  %3916 = vmatprep.subr.mxu1 %v96_v11  ;;  %v91_v3 = vld [vmem:[%s6269_s0 + $0x1d8] sm:$0xff]  ;;  %v92_v5 = vld [vmem:[%s6269_s0 + $0x1e0] sm:$0xff]  ;;  %v93_v7 = vld [vmem:[%s6269_s0 + $0x1e8] sm:$0xff] }
  0x19   :  { %3568 = vmatpush3.msra.mxu0 %v96_v11  ;;  %3928 = vmatpush3.msra.mxu1 %v96_v11  ;;  %v62_v8 = vld [vmem:[%s6269_s0 + $0xf0] sm:$0xff]  ;;  %v63_v10 = vld [vmem:[%s6269_s0 + $0xf8] sm:$0xff] }
  0x1a   :  { %3569 = vmatprep.mubr.msk.f32.mxu0 %vm115_vm0, %v32_v12  ;;  %3617 = vmatprep.mubr.msk.f32.mxu1 %vm115_vm0, %v64_v13  ;;  %v94_v9 = vld [vmem:[%s6269_s0 + $0x1f0] sm:$0xff]  ;;  %v95_v11 = vld [vmem:[%s6269_s0 + $0x1f8] sm:$0xff]  ;;  %v4468_v12 = vld [vmem:[%s6270_s2] ss:$0 sm:$0xff] }
  0x1b   :  { %3570 = vmatmul.mubr.msk.f32.vlgmr.msra.gmra.mxu0 %vm115_vm0, %v33_v14  ;;  %3618 = vmatmul.mubr.msk.f32.vlgmr.msra.gmra.mxu1 %vm115_vm0, %v65_v15 }
  0x1c   :  { %3572 = vmatprep.mubr.msk.f32.mxu0 %vm115_vm0, %v34_v16  ;;  %3620 = vmatprep.mubr.msk.f32.mxu1 %vm115_vm0, %v66_v17 }
  0x1f   :  { %3573 = vmatmul.mubr.msk.f32.gmra.mxu0 %vm115_vm0, %v35_v18  ;;  %3621 = vmatmul.mubr.msk.f32.gmra.mxu1 %vm115_vm0, %v67_v19 }
  0x20   :  { %3575 = vmatprep.mubr.msk.f32.mxu0 %vm115_vm0, %v36_v20  ;;  %3623 = vmatprep.mubr.msk.f32.mxu1 %vm115_vm0, %v68_v21 }
  0x23   :  { %3576 = vmatmul.mubr.msk.f32.gmra.mxu0 %vm115_vm0, %v37_v22  ;;  %3624 = vmatmul.mubr.msk.f32.gmra.mxu1 %vm115_vm0, %v69_v23 }
  0x24   :  { %3578 = vmatprep.mubr.msk.f32.mxu0 %vm115_vm0, %v38_v24  ;;  %3626 = vmatprep.mubr.msk.f32.mxu1 %vm115_vm0, %v70_v25 }
  0x27   :  { %3579 = vmatmul.mubr.msk.f32.gmra.mxu0 %vm115_vm0, %v39_v26  ;;  %3627 = vmatmul.mubr.msk.f32.gmra.mxu1 %vm115_vm0, %v71_v27 }
  0x28   :  { %3581 = vmatprep.mubr.msk.f32.mxu0 %vm115_vm0, %v40_v28  ;;  %3629 = vmatprep.mubr.msk.f32.mxu1 %vm115_vm0, %v72_v29 }
  0x2b   :  { %3582 = vmatmul.mubr.msk.f32.gmra.mxu0 %vm115_vm0, %v41_v30  ;;  %3630 = vmatmul.mubr.msk.f32.gmra.mxu1 %vm115_vm0, %v73_v31 }
  0x2c   :  { %3584 = vmatprep.mubr.msk.f32.mxu0 %vm115_vm0, %v42_v32  ;;  %3632 = vmatprep.mubr.msk.f32.mxu1 %vm115_vm0, %v74_v33 }
  0x2f   :  { %3585 = vmatmul.mubr.msk.f32.gmra.mxu0 %vm115_vm0, %v43_v34  ;;  %3633 = vmatmul.mubr.msk.f32.gmra.mxu1 %vm115_vm0, %v75_v35 }
  0x30   :  { %3587 = vmatprep.mubr.msk.f32.mxu0 %vm115_vm0, %v44_v36  ;;  %3635 = vmatprep.mubr.msk.f32.mxu1 %vm115_vm0, %v76_v37 }
  0x33   :  { %3588 = vmatmul.mubr.msk.f32.gmra.mxu0 %vm115_vm0, %v45_v38  ;;  %3636 = vmatmul.mubr.msk.f32.gmra.mxu1 %vm115_vm0, %v77_v39 }
  0x34   :  { %3590 = vmatprep.mubr.msk.f32.mxu0 %vm115_vm0, %v46_v40  ;;  %3638 = vmatprep.mubr.msk.f32.mxu1 %vm115_vm0, %v78_v41 }
  0x37   :  { %3591 = vmatmul.mubr.msk.f32.gmra.mxu0 %vm115_vm0, %v47_v42  ;;  %3639 = vmatmul.mubr.msk.f32.gmra.mxu1 %vm115_vm0, %v79_v43 }
  0x38   :  { %3593 = vmatprep.mubr.msk.f32.mxu0 %vm115_vm0, %v48_v44  ;;  %3641 = vmatprep.mubr.msk.f32.mxu1 %vm115_vm0, %v80_v45 }
  0x3b   :  { %3594 = vmatmul.mubr.msk.f32.gmra.mxu0 %vm115_vm0, %v49_v46  ;;  %3642 = vmatmul.mubr.msk.f32.gmra.mxu1 %vm115_vm0, %v81_v47 }
  0x3c   :  { %3596 = vmatprep.mubr.msk.f32.mxu0 %vm115_vm0, %v50_v48  ;;  %3644 = vmatprep.mubr.msk.f32.mxu1 %vm115_vm0, %v82_v49 }
  0x3f   :  { %3597 = vmatmul.mubr.msk.f32.gmra.mxu0 %vm115_vm0, %v51_v50  ;;  %3645 = vmatmul.mubr.msk.f32.gmra.mxu1 %vm115_vm0, %v83_v51 }
  0x40   :  { %3599 = vmatprep.mubr.msk.f32.mxu0 %vm115_vm0, %v52_v52  ;;  %3647 = vmatprep.mubr.msk.f32.mxu1 %vm115_vm0, %v84_v53 }
  0x43   :  { %3600 = vmatmul.mubr.msk.f32.gmra.mxu0 %vm115_vm0, %v53_v54  ;;  %3648 = vmatmul.mubr.msk.f32.gmra.mxu1 %vm115_vm0, %v85_v55 }
  0x44   :  { %3602 = vmatprep.mubr.msk.f32.mxu0 %vm115_vm0, %v54_v56  ;;  %3650 = vmatprep.mubr.msk.f32.mxu1 %vm115_vm0, %v86_v57 }
  0x47   :  { %3603 = vmatmul.mubr.msk.f32.gmra.mxu0 %vm115_vm0, %v55_v58  ;;  %3651 = vmatmul.mubr.msk.f32.gmra.mxu1 %vm115_vm0, %v87_v59 }
  0x48   :  { %3605 = vmatprep.mubr.msk.f32.mxu0 %vm115_vm0, %v56_v60  ;;  %3653 = vmatprep.mubr.msk.f32.mxu1 %vm115_vm0, %v88_v61 }
  0x4b   :  { %3606 = vmatmul.mubr.msk.f32.gmra.mxu0 %vm115_vm0, %v57_v62  ;;  %3654 = vmatmul.mubr.msk.f32.gmra.mxu1 %vm115_vm0, %v89_v63 }
  0x4c   :  { %3608 = vmatprep.mubr.msk.f32.mxu0 %vm115_vm0, %v58_v0  ;;  %3656 = vmatprep.mubr.msk.f32.mxu1 %vm115_vm0, %v90_v1 }
  0x4f   :  { %3609 = vmatmul.mubr.msk.f32.gmra.mxu0 %vm115_vm0, %v59_v2  ;;  %3657 = vmatmul.mubr.msk.f32.gmra.mxu1 %vm115_vm0, %v91_v3 }
  0x50   :  { %3611 = vmatprep.mubr.msk.f32.mxu0 %vm115_vm0, %v60_v4  ;;  %3659 = vmatprep.mubr.msk.f32.mxu1 %vm115_vm0, %v92_v5 }
  0x53   :  { %3612 = vmatmul.mubr.msk.f32.gmra.mxu0 %vm115_vm0, %v61_v6  ;;  %3660 = vmatmul.mubr.msk.f32.gmra.mxu1 %vm115_vm0, %v93_v7 }
  0x54   :  { %3614 = vmatprep.mubr.msk.f32.mxu0 %vm115_vm0, %v62_v8  ;;  %3662 = vmatprep.mubr.msk.f32.mxu1 %vm115_vm0, %v94_v9 }
  0x57   :  { %3615 = vmatmul.mubr.msk.f32.gmra.mxu0 %vm115_vm0, %v63_v10  ;;  %3663 = vmatmul.mubr.msk.f32.gmra.mxu1 %vm115_vm0, %v95_v11 }
  0xdb   :  { %v3571_v13 = vpop.f32.mrf.mxu0  ;;  %v3619_v14 = vpop.f32.mrf.mxu1 }
  0xdc   :  { %v4471_v15 = vadd.f32 %v3571_v13, %v4468_v12  ;;  %v4474_v16 = vadd.f32 %v3619_v14, %v4468_v12 }
  0xdd   :  { %v374_v17 = vpop.f32.mrf.mxu0  ;;  %v534_v18 = vpop.f32.mrf.mxu1 }
  0xde   :  { %v4477_v19 = vadd.f32 %v4468_v12, %v374_v17  ;;  %v794_v20 = vsel %vm115_vm0, %v4474_v16, 0.0  ;;  %v698_v21 = vsel %vm115_vm0, %v4471_v15, 0.0  ;;  %v4490_v27 = vadd.f32 %v4468_v12, %v534_v18 }
  0xdf   :  { %795 = vadd.xlane.f32.xlu1 %v794_v20  ;;  %699 = vadd.xlane.f32.xlu0 %v698_v21  ;;  %v3574_v22 = vpop.f32.mrf.mxu0  ;;  %v3622_v23 = vpop.f32.mrf.mxu1 }
  0xe0   :  { %v4484_v24 = vadd.f32 %v3574_v22, %v4468_v12  ;;  %v4487_v25 = vadd.f32 %v3622_v23, %v4468_v12  ;;  %v695_v29 = vsel %vm115_vm0, %v4477_v19, 0.0  ;;  %v791_v35 = vsel %vm115_vm0, %v4490_v27, 0.0 }
  0xe1   :  { %v384_v26 = vpop.f32.mrf.mxu0  ;;  %v544_v30 = vpop.f32.mrf.mxu1 }
  0xe2   :  { %v704_v28 = vsel %vm115_vm0, %v4484_v24, 0.0  ;;  %v800_v32 = vsel %vm115_vm0, %v4487_v25, 0.0  ;;  %v4499_v33 = vadd.f32 %v4468_v12, %v384_v26  ;;  %v4502_v34 = vadd.f32 %v4468_v12, %v544_v30 }
  0xe3   :  { %705 = vadd.xlane.f32.xlu1 %v704_v28  ;;  %696 = vadd.xlane.f32.xlu0 %v695_v29  ;;  %v3577_v31 = vpop.f32.mrf.mxu0  ;;  %v3625_v37 = vpop.f32.mrf.mxu1 }
  0xe4   :  { %v4507_v38 = vadd.f32 %v3577_v31, %v4468_v12  ;;  %v701_v40 = vsel %vm115_vm0, %v4499_v33, 0.0  ;;  %v797_v41 = vsel %vm115_vm0, %v4502_v34, 0.0  ;;  %v4517_v44 = vadd.f32 %v3625_v37, %v4468_v12 }
  0xe5   :  { %v394_v36 = vpop.f32.mrf.mxu0  ;;  %v554_v42 = vpop.f32.mrf.mxu1 }
  0xe6   :  { %v4510_v39 = vadd.f32 %v4468_v12, %v394_v36  ;;  %v4520_v45 = vadd.f32 %v4468_v12, %v554_v42  ;;  %v710_v46 = vsel %vm115_vm0, %v4507_v38, 0.0  ;;  %v806_v52 = vsel %vm115_vm0, %v4517_v44, 0.0 }
  0xe7   :  { %801 = vadd.xlane.f32.xlu1 %v800_v32  ;;  %792 = vadd.xlane.f32.xlu0 %v791_v35  ;;  %v3580_v43 = vpop.f32.mrf.mxu0  ;;  %v3628_v49 = vpop.f32.mrf.mxu1 }
  0xe8   :  { %v707_v47 = vsel %vm115_vm0, %v4510_v39, 0.0  ;;  %v4527_v50 = vadd.f32 %v3580_v43, %v4468_v12  ;;  %v803_v53 = vsel %vm115_vm0, %v4520_v45, 0.0  ;;  %v4537_v56 = vadd.f32 %v3628_v49, %v4468_v12 }
  0xe9   :  { %v404_v48 = vpop.f32.mrf.mxu0  ;;  %v564_v54 = vpop.f32.mrf.mxu1 }
  0xea   :  { %v4530_v51 = vadd.f32 %v4468_v12, %v404_v48  ;;  %v4540_v57 = vadd.f32 %v4468_v12, %v564_v54  ;;  %v716_v58 = vsel %vm115_vm0, %v4527_v50, 0.0  ;;  %v812_v0 = vsel %vm115_vm0, %v4537_v56, 0.0 }
  0xeb   :  { %702 = vadd.xlane.f32.xlu1 %v701_v40  ;;  %798 = vadd.xlane.f32.xlu0 %v797_v41  ;;  %v3583_v55 = vpop.f32.mrf.mxu0  ;;  %v3631_v61 = vpop.f32.mrf.mxu1 }
  0xec   :  { %v713_v59 = vsel %vm115_vm0, %v4530_v51, 0.0  ;;  %v4547_v62 = vadd.f32 %v3583_v55, %v4468_v12  ;;  %v809_v1 = vsel %vm115_vm0, %v4540_v57, 0.0  ;;  %v4557_v4 = vadd.f32 %v3631_v61, %v4468_v12 }
  0xed   :  { %v414_v60 = vpop.f32.mrf.mxu0  ;;  %v574_v2 = vpop.f32.mrf.mxu1 }
  0xee   :  { %v4550_v63 = vadd.f32 %v4468_v12, %v414_v60  ;;  %v4560_v5 = vadd.f32 %v4468_v12, %v574_v2  ;;  %v722_v6 = vsel %vm115_vm0, %v4547_v62, 0.0  ;;  %v818_v13 = vsel %vm115_vm0, %v4557_v4, 0.0 }
  0xef   :  { %711 = vadd.xlane.f32.xlu1 %v710_v46  ;;  %708 = vadd.xlane.f32.xlu0 %v707_v47  ;;  %v3586_v3 = vpop.f32.mrf.mxu0  ;;  %v3634_v9 = vpop.f32.mrf.mxu1 }
  0xf0   :  { %v719_v7 = vsel %vm115_vm0, %v4550_v63, 0.0  ;;  %v4567_v10 = vadd.f32 %v3586_v3, %v4468_v12  ;;  %v815_v14 = vsel %vm115_vm0, %v4560_v5, 0.0  ;;  %v4577_v20 = vadd.f32 %v3634_v9, %v4468_v12 }
  0xf1   :  { %v424_v8 = vpop.f32.mrf.mxu0  ;;  %v584_v17 = vpop.f32.mrf.mxu1 }
  0xf2   :  { %v4570_v11 = vadd.f32 %v4468_v12, %v424_v8  ;;  %v4580_v21 = vadd.f32 %v4468_v12, %v584_v17  ;;  %v728_v22 = vsel %vm115_vm0, %v4567_v10, 0.0  ;;  %v824_v32 = vsel %vm115_vm0, %v4577_v20, 0.0 }
  0xf3   :  { %807 = vadd.xlane.f32.xlu1 %v806_v52  ;;  %804 = vadd.xlane.f32.xlu0 %v803_v53  ;;  %v3589_v18 = vpop.f32.mrf.mxu0  ;;  %v3637_v28 = vpop.f32.mrf.mxu1 }
  0xf4   :  { %v725_v23 = vsel %vm115_vm0, %v4570_v11, 0.0  ;;  %v4587_v30 = vadd.f32 %v3589_v18, %v4468_v12  ;;  %v821_v35 = vsel %vm115_vm0, %v4580_v21, 0.0  ;;  %v4597_v40 = vadd.f32 %v3637_v28, %v4468_v12 }
  0xf5   :  { %v434_v26 = vpop.f32.mrf.mxu0  ;;  %v594_v36 = vpop.f32.mrf.mxu1 }
  0xf6   :  { %v4590_v31 = vadd.f32 %v4468_v12, %v434_v26  ;;  %v4600_v41 = vadd.f32 %v4468_v12, %v594_v36  ;;  %v734_v42 = vsel %vm115_vm0, %v4587_v30, 0.0  ;;  %v830_v52 = vsel %vm115_vm0, %v4597_v40, 0.0 }
  0xf7   :  { %717 = vadd.xlane.f32.xlu1 %v716_v58  ;;  %714 = vadd.xlane.f32.xlu0 %v713_v59  ;;  %v3592_v29 = vpop.f32.mrf.mxu0  ;;  %v3640_v46 = vpop.f32.mrf.mxu1 }
  0xf8   :  { %v731_v43 = vsel %vm115_vm0, %v4590_v31, 0.0  ;;  %v4607_v48 = vadd.f32 %v3592_v29, %v4468_v12  ;;  %v827_v53 = vsel %vm115_vm0, %v4600_v41, 0.0  ;;  %v4617_v59 = vadd.f32 %v3640_v46, %v4468_v12 }
  0xf9   :  { %v444_v37 = vpop.f32.mrf.mxu0  ;;  %v604_v54 = vpop.f32.mrf.mxu1 }
  0xfa   :  { %v4610_v49 = vadd.f32 %v4468_v12, %v444_v37  ;;  %v4620_v60 = vadd.f32 %v4468_v12, %v604_v54  ;;  %v740_v61 = vsel %vm115_vm0, %v4607_v48, 0.0 }
  0xfb   :  { %813 = vadd.xlane.f32.xlu1 %v812_v0  ;;  %810 = vadd.xlane.f32.xlu0 %v809_v1  ;;  %v3595_v47 = vpop.f32.mrf.mxu0  ;;  %v3643_v1 = vpop.f32.mrf.mxu1 }
  0xfc   :  { %v737_v0 = vsel %vm115_vm0, %v4610_v49, 0.0  ;;  %v4627_v3 = vadd.f32 %v3595_v47, %v4468_v12  ;;  %v833_v8 = vsel %vm115_vm0, %v4620_v60, 0.0 }
  0xfd   :  { %v454_v55 = vpop.f32.mrf.mxu0  ;;  %v614_v9 = vpop.f32.mrf.mxu1 }
  0xfe   :  { %v4640_v17 = vadd.f32 %v4468_v12, %v614_v9  ;;  %v746_v18 = vsel %vm115_vm0, %v4627_v3, 0.0 }
  0xff   :  { %723 = vadd.xlane.f32.xlu1 %v722_v6  ;;  %720 = vadd.xlane.f32.xlu0 %v719_v7  ;;  %v3598_v58 = vpop.f32.mrf.mxu0  ;;  %v4630_v6 = vadd.f32 %v4468_v12, %v454_v55  ;;  %v836_v7 = vsel %vm115_vm0, %v4617_v59, 0.0 }
 0x100   :  { %6316 = vst [vmem:[#allocation2_spill] sm:$0xff] %v4640_v17  ;;  %v4647_v29 = vadd.f32 %v3598_v58, %v4468_v12  ;;  %v839_v36 = vsel %vm115_vm0, %v4640_v17, 0.0 }
 0x101   :  { %v464_v2 = vpop.f32.mrf.mxu0 }
 0x102   :  { %v752_v47 = vsel %vm115_vm0, %v4647_v29, 0.0 }
 0x103   :  { %819 = vadd.xlane.f32.xlu1 %v818_v13  ;;  %816 = vadd.xlane.f32.xlu0 %v815_v14  ;;  %v3601_v13 = vpop.f32.mrf.mxu0  ;;  %v4637_v14 = vadd.f32 %v3643_v1, %v4468_v12 }
 0x104   :  { %v4667_v55 = vadd.f32 %v3601_v13, %v4468_v12 }
 0x105   :  { %v474_v26 = vpop.f32.mrf.mxu0 }
 0x106   :  { %v4670_v58 = vadd.f32 %v4468_v12, %v474_v26  ;;  %v758_v9 = vsel %vm115_vm0, %v4667_v55, 0.0 }
 0x107   :  { %729 = vadd.xlane.f32.xlu1 %v728_v22  ;;  %726 = vadd.xlane.f32.xlu0 %v725_v23  ;;  %v743_v22 = vsel %vm115_vm0, %v4630_v6, 0.0  ;;  %v3646_v23 = vpop.f32.mrf.mxu1  ;;  %v3604_v28 = vpop.f32.mrf.mxu0 }
 0x108   :  { %v755_v13 = vsel %vm115_vm0, %v4670_v58, 0.0 }
 0x109   :  { %v624_v37 = vpop.f32.mrf.mxu1 }
 0x10a   :  { %v4660_v46 = vadd.f32 %v4468_v12, %v624_v37 }
 0x10b   :  { %825 = vadd.xlane.f32.xlu1 %v824_v32  ;;  %822 = vadd.xlane.f32.xlu0 %v821_v35  ;;  %v4650_v32 = vadd.f32 %v4468_v12, %v464_v2  ;;  %v842_v35 = vsel %vm115_vm0, %v4637_v14, 0.0 }
 0x10c   :  { %6318 = vst [vmem:[#allocation4_spill] sm:$0xff] %v4660_v46 }
 0x10f   :  { %735 = vadd.xlane.f32.xlu1 %v734_v42  ;;  %732 = vadd.xlane.f32.xlu0 %v731_v43  ;;  %v484_v42 = vpop.f32.mrf.mxu0  ;;  %v4657_v43 = vadd.f32 %v3646_v23, %v4468_v12  ;;  %v4687_v23 = vadd.f32 %v3604_v28, %v4468_v12 }
 0x110   :  { %v4690_v26 = vadd.f32 %v4468_v12, %v484_v42 }
 0x111   :  { %6317 = vst [vmem:[#allocation3_spill] sm:$0xff] %v4657_v43  ;;  %v3607_v54 = vpop.f32.mrf.mxu0  ;;  %v764_v42 = vsel %vm115_vm0, %v4687_v23, 0.0 }
 0x113   :  { %831 = vadd.xlane.f32.xlu1 %v830_v52  ;;  %828 = vadd.xlane.f32.xlu0 %v827_v53  ;;  %v749_v52 = vsel %vm115_vm0, %v4650_v32, 0.0  ;;  %v3649_v53 = vpop.f32.mrf.mxu1  ;;  %v494_v2 = vpop.f32.mrf.mxu0 }
 0x115   :  { %v634_v1 = vpop.f32.mrf.mxu1 }
 0x117   :  { %741 = vadd.xlane.f32.xlu1 %v740_v61  ;;  %738 = vadd.xlane.f32.xlu0 %v737_v0  ;;  %v848_v61 = vsel %vm115_vm0, %v4657_v43, 0.0  ;;  %v845_v0 = vsel %vm115_vm0, %v4660_v46, 0.0 }
 0x11b   :  { %837 = vadd.xlane.f32.xlu1 %v836_v7  ;;  %834 = vadd.xlane.f32.xlu0 %v833_v8  ;;  %v4677_v7 = vadd.f32 %v3649_v53, %v4468_v12  ;;  %v4680_v8 = vadd.f32 %v4468_v12, %v634_v1 }
 0x11d   :  { %6319 = vst [vmem:[#allocation5_spill] sm:$0xff] %v4677_v7  ;;  %6320 = vst [vmem:[#allocation6_spill] sm:$0xff] %v4680_v8 }
 0x11f   :  { %747 = vadd.xlane.f32.xlu1 %v746_v18  ;;  %744 = vadd.xlane.f32.xlu0 %v743_v22  ;;  %v3652_v18 = vpop.f32.mrf.mxu1  ;;  %v3610_v22 = vpop.f32.mrf.mxu0 }
 0x120   :  { %v4697_v53 = vadd.f32 %v3652_v18, %v4468_v12 }
 0x121   :  { %v644_v37 = vpop.f32.mrf.mxu1 }
 0x122   :  { %6321 = vst [vmem:[#allocation7_spill] sm:$0xff] %v4697_v53  ;;  %v4700_v28 = vadd.f32 %v4468_v12, %v644_v37  ;;  %v860_v18 = vsel %vm115_vm0, %v4697_v53, 0.0 }
 0x123   :  { %843 = vadd.xlane.f32.xlu1 %v842_v35  ;;  %840 = vadd.xlane.f32.xlu0 %v839_v36  ;;  %v854_v35 = vsel %vm115_vm0, %v4677_v7, 0.0  ;;  %v851_v36 = vsel %vm115_vm0, %v4680_v8, 0.0 }
 0x124   :  { %6322 = vst [vmem:[#allocation8_spill] sm:$0xff] %v4700_v28 }
 0x127   :  { %753 = vadd.xlane.f32.xlu1 %v752_v47  ;;  %750 = vadd.xlane.f32.xlu0 %v749_v52  ;;  %v504_v47 = vpop.f32.mrf.mxu0  ;;  %v3655_v52 = vpop.f32.mrf.mxu1 }
 0x128   :  { %v4747_v46 = vadd.f32 %v3655_v52, %v4468_v12 }
 0x129   :  { %v654_v1 = vpop.f32.mrf.mxu1 }
 0x12a   :  { %v866_v52 = vsel %vm115_vm0, %v4747_v46, 0.0 }
 0x12b   :  { %849 = vadd.xlane.f32.xlu1 %v848_v61  ;;  %846 = vadd.xlane.f32.xlu0 %v845_v0  ;;  %v761_v61 = vsel %vm115_vm0, %v4690_v26, 0.0  ;;  %v3613_v0 = vpop.f32.mrf.mxu0  ;;  %v3658_v37 = vpop.f32.mrf.mxu1 }
 0x12c   :  { %v4757_v43 = vadd.f32 %v3658_v37, %v4468_v12 }
 0x12e   :  { %6324 = vst [vmem:[#allocation10_spill] sm:$0xff] %v4757_v43  ;;  %v872_v37 = vsel %vm115_vm0, %v4757_v43, 0.0 }
 0x12f   :  { %759 = vadd.xlane.f32.xlu1 %v758_v9  ;;  %756 = vadd.xlane.f32.xlu0 %v755_v13  ;;  %v4707_v9 = vadd.f32 %v3607_v54, %v4468_v12  ;;  %v4710_v13 = vadd.f32 %v4468_v12, %v494_v2 }
 0x131   :  { %v770_v54 = vsel %vm115_vm0, %v4707_v9, 0.0  ;;  %v767_v2 = vsel %vm115_vm0, %v4710_v13, 0.0 }
 0x133   :  { %855 = vadd.xlane.f32.xlu1 %v854_v35  ;;  %852 = vadd.xlane.f32.xlu0 %v851_v36  ;;  %v857_v35 = vsel %vm115_vm0, %v4700_v28, 0.0  ;;  %v514_v36 = vpop.f32.mrf.mxu0  ;;  %v664_v28 = vpop.f32.mrf.mxu1 }
 0x135   :  { %v3616_v53 = vpop.f32.mrf.mxu0  ;;  %v3661_v7 = vpop.f32.mrf.mxu1 }
 0x136   :  { %v4767_v17 = vadd.f32 %v3661_v7, %v4468_v12 }
 0x137   :  { %765 = vadd.xlane.f32.xlu1 %v764_v42  ;;  %762 = vadd.xlane.f32.xlu0 %v761_v61  ;;  %v4717_v42 = vadd.f32 %v3610_v22, %v4468_v12  ;;  %v4720_v61 = vadd.f32 %v4468_v12, %v504_v47  ;;  %v524_v8 = vpop.f32.mrf.mxu0 }
 0x138   :  { %6326 = vst [vmem:[#allocation12_spill] sm:$0xff] %v4767_v17  ;;  %v878_v7 = vsel %vm115_vm0, %v4767_v17, 0.0 }
 0x139   :  { %v776_v22 = vsel %vm115_vm0, %v4717_v42, 0.0  ;;  %v773_v47 = vsel %vm115_vm0, %v4720_v61, 0.0 }
 0x13b   :  { %861 = vadd.xlane.f32.xlu1 %v860_v18  ;;  %858 = vadd.xlane.f32.xlu0 %v857_v35  ;;  %v4727_v18 = vadd.f32 %v3613_v0, %v4468_v12  ;;  %v4730_v35 = vadd.f32 %v4468_v12, %v514_v36 }
 0x13d   :  { %v782_v0 = vsel %vm115_vm0, %v4727_v18, 0.0  ;;  %v779_v36 = vsel %vm115_vm0, %v4730_v35, 0.0 }
 0x13f   :  { %771 = vadd.xlane.f32.xlu1 %v770_v54  ;;  %768 = vadd.xlane.f32.xlu0 %v767_v2  ;;  %v4737_v54 = vadd.f32 %v3616_v53, %v4468_v12  ;;  %v4740_v2 = vadd.f32 %v4468_v12, %v524_v8 }
 0x141   :  { %v788_v53 = vsel %vm115_vm0, %v4737_v54, 0.0  ;;  %v785_v8 = vsel %vm115_vm0, %v4740_v2, 0.0 }
 0x143   :  { %777 = vadd.xlane.f32.xlu1 %v776_v22  ;;  %774 = vadd.xlane.f32.xlu0 %v773_v47  ;;  %v4750_v22 = vadd.f32 %v4468_v12, %v654_v1  ;;  %v674_v47 = vpop.f32.mrf.mxu1 }
 0x145   :  { %6323 = vst [vmem:[#allocation9_spill] sm:$0xff] %v4750_v22  ;;  %v863_v1 = vsel %vm115_vm0, %v4750_v22, 0.0 }
 0x147   :  { %783 = vadd.xlane.f32.xlu1 %v782_v0  ;;  %780 = vadd.xlane.f32.xlu0 %v779_v36  ;;  %v4760_v0 = vadd.f32 %v4468_v12, %v664_v28  ;;  %v3664_v36 = vpop.f32.mrf.mxu1 }
 0x148   :  { %v4777_v22 = vadd.f32 %v3664_v36, %v4468_v12 }
 0x149   :  { %6325 = vst [vmem:[#allocation11_spill] sm:$0xff] %v4760_v0  ;;  %v869_v28 = vsel %vm115_vm0, %v4760_v0, 0.0 }
 0x14a   :  { %6328 = vst [vmem:[#allocation14_spill] sm:$0xff] %v4777_v22 }
 0x14b   :  { %789 = vadd.xlane.f32.xlu1 %v788_v53  ;;  %786 = vadd.xlane.f32.xlu0 %v785_v8  ;;  %v4770_v53 = vadd.f32 %v4468_v12, %v674_v47  ;;  %v684_v8 = vpop.f32.mrf.mxu1 }
 0x14d   :  { %6327 = vst [vmem:[#allocation13_spill] sm:$0xff] %v4770_v53  ;;  %v875_v47 = vsel %vm115_vm0, %v4770_v53, 0.0 }
 0x14f   :  { %867 = vadd.xlane.f32.xlu1 %v866_v52  ;;  %864 = vadd.xlane.f32.xlu0 %v863_v1  ;;  %v4780_v52 = vadd.f32 %v4468_v12, %v684_v8  ;;  %v884_v1 = vsel %vm115_vm0, %v4777_v22, 0.0 }
 0x151   :  { %6329 = vst [vmem:[#allocation15_spill] sm:$0xff] %v4780_v52 }
 0x153   :  { %873 = vadd.xlane.f32.xlu1 %v872_v37  ;;  %870 = vadd.xlane.f32.xlu0 %v869_v28  ;;  %v881_v37 = vsel %vm115_vm0, %v4780_v52, 0.0 }
 0x157   :  { %879 = vadd.xlane.f32.xlu1 %v878_v7  ;;  %876 = vadd.xlane.f32.xlu0 %v875_v47 }
 0x15b   :  { %885 = vadd.xlane.f32.xlu1 %v884_v1  ;;  %882 = vadd.xlane.f32.xlu0 %v881_v37 }
 0x168   :  { %v4790_v36 = vpop.xlane.xlu1 %795  ;;  %v700_v12 = vpop.xlane.xlu0 %699 }
 0x169   :  { %v889_v28 = vmul.f32 0.010416667, %v700_v12 }
 0x16b   :  { %v4793_v8 = vsub.f32 %v4471_v15, %v889_v28 }
 0x16c   :  { %v706_v17 = vpop.xlane.xlu1 %705  ;;  %v697_v0 = vpop.xlane.xlu0 %696 }
 0x16d   :  { %6330 = vst [vmem:[#allocation16_spill] sm:$0xff] %v4793_v8  ;;  %v891_v53 = vmul.f32 0.010416667, %v706_v17  ;;  %v888_v7 = vmul.f32 0.010416667, %v697_v0  ;;  %v1017_v47 = vmul.f32 %v4793_v8, %v4793_v8 }
 0x16f   :  { %v4798_v22 = vsub.f32 %v4484_v24, %v891_v53  ;;  %v4801_v1 = vsub.f32 %v4477_v19, %v888_v7  ;;  %v1083_v37 = vsel %vm115_vm0, %v1017_v47, 0.0 }
 0x170   :  { %v4804_v52 = vpop.xlane.xlu1 %801  ;;  %1084 = vadd.xlane.f32.xlu1 %v1083_v37  ;;  %v4806_v15 = vpop.xlane.xlu0 %792 }
 0x171   :  { %6331 = vst [vmem:[#allocation17_spill] sm:$0xff] %v4798_v22  ;;  %6332 = vst [vmem:[#allocation18_spill] sm:$0xff] %v4801_v1  ;;  %v1019_v17 = vmul.f32 %v4798_v22, %v4798_v22  ;;  %v1016_v0 = vmul.f32 %v4801_v1, %v4801_v1 }
 0x173   :  { %v1089_v12 = vsel %vm115_vm0, %v1019_v17, 0.0  ;;  %v1080_v24 = vsel %vm115_vm0, %v1016_v0, 0.0 }
 0x174   :  { %1090 = vadd.xlane.f32.xlu1 %v1089_v12  ;;  %v703_v19 = vpop.xlane.xlu1 %702  ;;  %1081 = vadd.xlane.f32.xlu0 %v1080_v24  ;;  %v4814_v53 = vpop.xlane.xlu0 %798 }
 0x175   :  { %v890_v28 = vmul.f32 0.010416667, %v703_v19 }
 0x177   :  { %v4817_v7 = vsub.f32 %v4499_v33, %v890_v28 }
 0x178   :  { %v712_v47 = vpop.xlane.xlu1 %711  ;;  %v709_v37 = vpop.xlane.xlu0 %708 }
 0x179   :  { %6333 = vst [vmem:[#allocation19_spill] sm:$0xff] %v4817_v7  ;;  %v893_v8 = vmul.f32 0.010416667, %v712_v47  ;;  %v892_v22 = vmul.f32 0.010416667, %v709_v37  ;;  %v1018_v1 = vmul.f32 %v4817_v7, %v4817_v7 }
 0x17b   :  { %v4822_v17 = vsub.f32 %v4507_v38, %v893_v8  ;;  %v4825_v0 = vsub.f32 %v4510_v39, %v892_v22  ;;  %v1086_v12 = vsel %vm115_vm0, %v1018_v1, 0.0  ;;  %v1679_v39 = vld [vmem:[%s6271_s5 + $0x58] sm:$0xff] }
 0x17c   :  { %v4828_v24 = vpop.xlane.xlu1 %807  ;;  %1087 = vadd.xlane.f32.xlu0 %v1086_v12  ;;  %v4830_v33 = vpop.xlane.xlu0 %804  ;;  %3665 = vmatprep.subr.mxu1 %v1679_v39  ;;  %v1678_v12 = vld [vmem:[%s6271_s5 + $0x50] sm:$0xff] }
 0x17d   :  { %6334 = vst [vmem:[#allocation20_spill] sm:$0xff] %v4822_v17  ;;  %6335 = vst [vmem:[#allocation21_spill] sm:$0xff] %v4825_v0  ;;  %v1021_v19 = vmul.f32 %v4822_v17, %v4822_v17  ;;  %v1020_v28 = vmul.f32 %v4825_v0, %v4825_v0  ;;  %3666 = vmatpush3.msra.mxu1 %v1679_v39  ;;  %v1670_v17 = vld [vmem:[%s6271_s5 + $0x10] sm:$0xff] }
 0x17e   :  { %3667 = vmatprep.subr.mxu1 %v1678_v12 }
 0x17f   :  { %v1095_v47 = vsel %vm115_vm0, %v1021_v19, 0.0  ;;  %v1092_v38 = vsel %vm115_vm0, %v1020_v28, 0.0  ;;  %3668 = vmatpush3.msra.mxu1 %v1678_v12 }
 0x180   :  { %1096 = vadd.xlane.f32.xlu1 %v1095_v47  ;;  %v718_v22 = vpop.xlane.xlu1 %717  ;;  %1093 = vadd.xlane.f32.xlu0 %v1092_v38  ;;  %v715_v8 = vpop.xlane.xlu0 %714  ;;  %v1677_v47 = vld [vmem:[%s6271_s5 + $0x48] sm:$0xff] }
 0x181   :  { %v895_v1 = vmul.f32 0.010416667, %v718_v22  ;;  %v894_v37 = vmul.f32 0.010416667, %v715_v8  ;;  %3669 = vmatprep.subr.mxu1 %v1677_v47 }
 0x182   :  { %3670 = vmatpush3.msra.mxu1 %v1677_v47  ;;  %v1674_v47 = vld [vmem:[%s6271_s5 + $0x30] sm:$0xff] }
 0x183   :  { %v4845_v19 = vsub.f32 %v4527_v50, %v895_v1  ;;  %v4848_v28 = vsub.f32 %v4530_v51, %v894_v37  ;;  %v1676_v51 = vld [vmem:[%s6271_s5 + $0x40] sm:$0xff]  ;;  %v1675_v37 = vld [vmem:[%s6271_s5 + $0x38] sm:$0xff] }
 0x184   :  { %v4853_v38 = vpop.xlane.xlu1 %813  ;;  %v4855_v22 = vpop.xlane.xlu0 %810  ;;  %3671 = vmatprep.subr.mxu1 %v1676_v51 }
 0x185   :  { %6336 = vst [vmem:[#allocation22_spill] sm:$0xff] %v4845_v19  ;;  %6337 = vst [vmem:[#allocation23_spill] sm:$0xff] %v4848_v28  ;;  %v1023_v8 = vmul.f32 %v4845_v19, %v4845_v19  ;;  %v1022_v50 = vmul.f32 %v4848_v28, %v4848_v28  ;;  %3672 = vmatpush3.msra.mxu1 %v1676_v51 }
 0x186   :  { %3673 = vmatprep.subr.mxu1 %v1675_v37 }
 0x187   :  { %v1101_v39 = vsel %vm115_vm0, %v1023_v8, 0.0  ;;  %v1098_v1 = vsel %vm115_vm0, %v1022_v50, 0.0  ;;  %3674 = vmatpush3.msra.mxu1 %v1675_v37 }
 0x188   :  { %1102 = vadd.xlane.f32.xlu1 %v1101_v39  ;;  %v724_v12 = vpop.xlane.xlu1 %723  ;;  %1099 = vadd.xlane.f32.xlu0 %v1098_v1  ;;  %v721_v19 = vpop.xlane.xlu0 %720  ;;  %v1673_v39 = vld [vmem:[%s6271_s5 + $0x28] sm:$0xff] }
 0x189   :  { %v897_v28 = vmul.f32 0.010416667, %v724_v12  ;;  %v896_v0 = vmul.f32 0.010416667, %v721_v19  ;;  %3675 = vmatprep.subr.mxu1 %v1674_v47 }
 0x18a   :  { %3676 = vmatpush3.msra.mxu1 %v1674_v47 }
 0x18b   :  { %v4873_v8 = vsub.f32 %v4547_v62, %v897_v28  ;;  %v4876_v50 = vsub.f32 %v4550_v63, %v896_v0  ;;  %3677 = vmatprep.subr.mxu1 %v1673_v39  ;;  %v1672_v63 = vld [vmem:[%s6271_s5 + $0x20] sm:$0xff] }
 0x18c   :  { %v4881_v1 = vpop.xlane.xlu1 %819  ;;  %v4883_v19 = vpop.xlane.xlu0 %816  ;;  %3678 = vmatpush3.msra.mxu1 %v1673_v39 }
 0x18d   :  { %6338 = vst [vmem:[#allocation24_spill] sm:$0xff] %v4873_v8  ;;  %6339 = vst [vmem:[#allocation25_spill] sm:$0xff] %v4876_v50  ;;  %v1025_v51 = vmul.f32 %v4873_v8, %v4873_v8  ;;  %v1024_v62 = vmul.f32 %v4876_v50, %v4876_v50  ;;  %v1671_v8 = vld [vmem:[%s6271_s5 + $0x18] sm:$0xff]  ;;  %3679 = vmatprep.subr.mxu1 %v1672_v63 }
 0x18e   :  { %3680 = vmatpush3.msra.mxu1 %v1672_v63  ;;  %v1669_v63 = vld [vmem:[%s6271_s5 + $0x8] sm:$0xff] }
 0x18f   :  { %v1107_v0 = vsel %vm115_vm0, %v1025_v51, 0.0  ;;  %v1104_v28 = vsel %vm115_vm0, %v1024_v62, 0.0  ;;  %3681 = vmatprep.subr.mxu1 %v1671_v8 }
 0x190   :  { %1108 = vadd.xlane.f32.xlu1 %v1107_v0  ;;  %v730_v37 = vpop.xlane.xlu1 %729  ;;  %1105 = vadd.xlane.f32.xlu0 %v1104_v28  ;;  %v727_v12 = vpop.xlane.xlu0 %726 }
 0x191   :  { %v899_v50 = vmul.f32 0.010416667, %v730_v37  ;;  %v898_v47 = vmul.f32 0.010416667, %v727_v12  ;;  %3682 = vmatpush3.msra.mxu1 %v1671_v8  ;;  %v1668_v8 = vld [vmem:[%s6271_s5] sm:$0xff] }
 0x192   :  { %3683 = vmatprep.subr.mxu1 %v1670_v17 }
 0x193   :  { %v4901_v51 = vsub.f32 %v4567_v10, %v899_v50  ;;  %v4904_v39 = vsub.f32 %v4570_v11, %v898_v47  ;;  %3684 = vmatpush3.msra.mxu1 %v1670_v17 }
 0x194   :  { %v4906_v62 = vpop.xlane.xlu1 %825  ;;  %v4908_v0 = vpop.xlane.xlu0 %822  ;;  %3685 = vmatprep.subr.mxu1 %v1669_v63 }
 0x195   :  { %6340 = vst [vmem:[#allocation26_spill] sm:$0xff] %v4901_v51  ;;  %6341 = vst [vmem:[#allocation27_spill] sm:$0xff] %v4904_v39  ;;  %v1027_v28 = vmul.f32 %v4901_v51, %v4901_v51  ;;  %v1026_v10 = vmul.f32 %v4904_v39, %v4904_v39  ;;  %3686 = vmatpush3.msra.mxu1 %v1669_v63 }
 0x196   :  { %3687 = vmatprep.subr.mxu1 %v1668_v8 }
 0x197   :  { %v1113_v11 = vsel %vm115_vm0, %v1027_v28, 0.0  ;;  %v1110_v50 = vsel %vm115_vm0, %v1026_v10, 0.0  ;;  %3688 = vmatpush3.msra.mxu1 %v1668_v8 }
 0x198   :  { %1114 = vadd.xlane.f32.xlu1 %v1113_v11  ;;  %v736_v37 = vpop.xlane.xlu1 %735  ;;  %1111 = vadd.xlane.f32.xlu0 %v1110_v50  ;;  %v733_v12 = vpop.xlane.xlu0 %732 }
 0x199   :  { %v901_v47 = vmul.f32 0.010416667, %v736_v37  ;;  %v900_v51 = vmul.f32 0.010416667, %v733_v12 }
 0x19b   :  { %v4923_v39 = vsub.f32 %v4587_v30, %v901_v47  ;;  %v4926_v17 = vsub.f32 %v4590_v31, %v900_v51 }
 0x19c   :  { %v4928_v28 = vpop.xlane.xlu1 %831  ;;  %v4930_v10 = vpop.xlane.xlu0 %828 }
 0x19d   :  { %6342 = vst [vmem:[#allocation28_spill] sm:$0xff] %v4923_v39  ;;  %6343 = vst [vmem:[#allocation29_spill] sm:$0xff] %v4926_v17  ;;  %v1029_v11 = vmul.f32 %v4923_v39, %v4923_v39  ;;  %v1028_v50 = vmul.f32 %v4926_v17, %v4926_v17 }
 0x19f   :  { %v1119_v63 = vsel %vm115_vm0, %v1029_v11, 0.0  ;;  %v1116_v37 = vsel %vm115_vm0, %v1028_v50, 0.0 }
 0x1a0   :  { %1120 = vadd.xlane.f32.xlu1 %v1119_v63  ;;  %v742_v30 = vpop.xlane.xlu1 %741  ;;  %1117 = vadd.xlane.f32.xlu0 %v1116_v37  ;;  %v739_v31 = vpop.xlane.xlu0 %738 }
 0x1a1   :  { %v903_v51 = vmul.f32 0.010416667, %v742_v30  ;;  %v902_v8 = vmul.f32 0.010416667, %v739_v31 }
 0x1a3   :  { %v4939_v12 = vsub.f32 %v4607_v48, %v903_v51  ;;  %v4942_v47 = vsub.f32 %v4610_v49, %v902_v8 }
 0x1a4   :  { %v4944_v39 = vpop.xlane.xlu1 %837  ;;  %v4946_v7 = vpop.xlane.xlu0 %834 }
 0x1a5   :  { %6344 = vst [vmem:[#allocation30_spill] sm:$0xff] %v4939_v12  ;;  %6345 = vst [vmem:[#allocation31_spill] sm:$0xff] %v4942_v47  ;;  %v1031_v11 = vmul.f32 %v4939_v12, %v4939_v12  ;;  %v1030_v50 = vmul.f32 %v4942_v47, %v4942_v47 }
 0x1a7   :  { %v1125_v63 = vsel %vm115_vm0, %v1031_v11, 0.0  ;;  %v1122_v37 = vsel %vm115_vm0, %v1030_v50, 0.0 }
 0x1a8   :  { %1126 = vadd.xlane.f32.xlu1 %v1125_v63  ;;  %v748_v48 = vpop.xlane.xlu1 %747  ;;  %1123 = vadd.xlane.f32.xlu0 %v1122_v37  ;;  %v745_v30 = vpop.xlane.xlu0 %744 }
 0x1a9   :  { %v905_v49 = vmul.f32 0.010416667, %v748_v48  ;;  %v904_v31 = vmul.f32 0.010416667, %v745_v30 }
 0x1ab   :  { %v4955_v51 = vsub.f32 %v4627_v3, %v905_v49  ;;  %v4958_v8 = vsub.f32 %v4630_v6, %v904_v31 }
 0x1ac   :  { %v4960_v12 = vpop.xlane.xlu1 %843  ;;  %v4962_v17 = vpop.xlane.xlu0 %840 }
 0x1ad   :  { %6346 = vst [vmem:[#allocation32_spill] sm:$0xff] %v4955_v51  ;;  %6347 = vst [vmem:[#allocation33_spill] sm:$0xff] %v4958_v8  ;;  %v1033_v11 = vmul.f32 %v4955_v51, %v4955_v51  ;;  %v1032_v50 = vmul.f32 %v4958_v8, %v4958_v8 }
 0x1af   :  { %v1131_v63 = vsel %vm115_vm0, %v1033_v11, 0.0  ;;  %v1128_v37 = vsel %vm115_vm0, %v1032_v50, 0.0 }
 0x1b0   :  { %1132 = vadd.xlane.f32.xlu1 %v1131_v63  ;;  %v754_v3 = vpop.xlane.xlu1 %753  ;;  %1129 = vadd.xlane.f32.xlu0 %v1128_v37  ;;  %v751_v48 = vpop.xlane.xlu0 %750 }
 0x1b1   :  { %v907_v6 = vmul.f32 0.010416667, %v754_v3  ;;  %v906_v30 = vmul.f32 0.010416667, %v751_v48 }
 0x1b3   :  { %v4971_v49 = vsub.f32 %v4647_v29, %v907_v6  ;;  %v4974_v31 = vsub.f32 %v4650_v32, %v906_v30 }
 0x1b4   :  { %v4976_v51 = vpop.xlane.xlu1 %849  ;;  %v4978_v47 = vpop.xlane.xlu0 %846 }
 0x1b5   :  { %6348 = vst [vmem:[#allocation34_spill] sm:$0xff] %v4971_v49  ;;  %6349 = vst [vmem:[#allocation35_spill] sm:$0xff] %v4974_v31  ;;  %v1035_v11 = vmul.f32 %v4971_v49, %v4971_v49  ;;  %v1034_v50 = vmul.f32 %v4974_v31, %v4974_v31 }
 0x1b7   :  { %v1137_v63 = vsel %vm115_vm0, %v1035_v11, 0.0  ;;  %v1134_v37 = vsel %vm115_vm0, %v1034_v50, 0.0 }
 0x1b8   :  { %1138 = vadd.xlane.f32.xlu1 %v1137_v63  ;;  %v760_v29 = vpop.xlane.xlu1 %759  ;;  %1135 = vadd.xlane.f32.xlu0 %v1134_v37  ;;  %v757_v3 = vpop.xlane.xlu0 %756 }
 0x1b9   :  { %v909_v32 = vmul.f32 0.010416667, %v760_v29  ;;  %v908_v48 = vmul.f32 0.010416667, %v757_v3 }
 0x1bb   :  { %v4987_v6 = vsub.f32 %v4667_v55, %v909_v32  ;;  %v4990_v30 = vsub.f32 %v4670_v58, %v908_v48 }
 0x1bc   :  { %v4992_v49 = vpop.xlane.xlu1 %855  ;;  %v4994_v8 = vpop.xlane.xlu0 %852 }
 0x1bd   :  { %6350 = vst [vmem:[#allocation36_spill] sm:$0xff] %v4987_v6  ;;  %6351 = vst [vmem:[#allocation37_spill] sm:$0xff] %v4990_v30  ;;  %v1037_v11 = vmul.f32 %v4987_v6, %v4987_v6  ;;  %v1036_v50 = vmul.f32 %v4990_v30, %v4990_v30 }
 0x1bf   :  { %v1143_v63 = vsel %vm115_vm0, %v1037_v11, 0.0  ;;  %v1140_v37 = vsel %vm115_vm0, %v1036_v50, 0.0 }
 0x1c0   :  { %1144 = vadd.xlane.f32.xlu1 %v1143_v63  ;;  %v766_v55 = vpop.xlane.xlu1 %765  ;;  %1141 = vadd.xlane.f32.xlu0 %v1140_v37  ;;  %v763_v29 = vpop.xlane.xlu0 %762 }
 0x1c1   :  { %v911_v58 = vmul.f32 0.010416667, %v766_v55  ;;  %v910_v3 = vmul.f32 0.010416667, %v763_v29 }
 0x1c3   :  { %v5003_v32 = vsub.f32 %v4687_v23, %v911_v58  ;;  %v5006_v48 = vsub.f32 %v4690_v26, %v910_v3 }
 0x1c4   :  { %v5008_v6 = vpop.xlane.xlu1 %861  ;;  %v5010_v31 = vpop.xlane.xlu0 %858 }
 0x1c5   :  { %6352 = vst [vmem:[#allocation38_spill] sm:$0xff] %v5003_v32  ;;  %6353 = vst [vmem:[#allocation39_spill] sm:$0xff] %v5006_v48  ;;  %v1039_v11 = vmul.f32 %v5003_v32, %v5003_v32  ;;  %v1038_v50 = vmul.f32 %v5006_v48, %v5006_v48 }
 0x1c7   :  { %v1149_v63 = vsel %vm115_vm0, %v1039_v11, 0.0  ;;  %v1146_v37 = vsel %vm115_vm0, %v1038_v50, 0.0 }
 0x1c8   :  { %1150 = vadd.xlane.f32.xlu1 %v1149_v63  ;;  %v772_v23 = vpop.xlane.xlu1 %771  ;;  %1147 = vadd.xlane.f32.xlu0 %v1146_v37  ;;  %v769_v55 = vpop.xlane.xlu0 %768 }
 0x1c9   :  { %v913_v26 = vmul.f32 0.010416667, %v772_v23  ;;  %v912_v29 = vmul.f32 0.010416667, %v769_v55 }
 0x1cb   :  { %v5019_v58 = vsub.f32 %v4707_v9, %v913_v26  ;;  %v5022_v3 = vsub.f32 %v4710_v13, %v912_v29 }
 0x1cc   :  { %v778_v32 = vpop.xlane.xlu1 %777  ;;  %v775_v30 = vpop.xlane.xlu0 %774 }
 0x1cd   :  { %v915_v43 = vmul.f32 0.010416667, %v778_v32  ;;  %v914_v48 = vmul.f32 0.010416667, %v775_v30  ;;  %v1041_v11 = vmul.f32 %v5019_v58, %v5019_v58  ;;  %v1040_v50 = vmul.f32 %v5022_v3, %v5022_v3 }
 0x1cf   :  { %v5029_v63 = vsub.f32 %v4717_v42, %v915_v43  ;;  %v5032_v37 = vsub.f32 %v4720_v61, %v914_v48  ;;  %v1155_v9 = vsel %vm115_vm0, %v1041_v11, 0.0  ;;  %v1152_v13 = vsel %vm115_vm0, %v1040_v50, 0.0 }
 0x1d0   :  { %1156 = vadd.xlane.f32.xlu1 %v1155_v9  ;;  %v784_v23 = vpop.xlane.xlu1 %783  ;;  %1153 = vadd.xlane.f32.xlu0 %v1152_v13  ;;  %v781_v30 = vpop.xlane.xlu0 %780  ;;  %v921_v42 = vmul.f32 0.010416667, %v4790_v36  ;;  %v920_v61 = vmul.f32 0.010416667, %v4806_v15 }
 0x1d1   :  { %v917_v32 = vmul.f32 0.010416667, %v784_v23  ;;  %v916_v55 = vmul.f32 0.010416667, %v781_v30  ;;  %v1043_v26 = vmul.f32 %v5029_v63, %v5029_v63  ;;  %v1042_v43 = vmul.f32 %v5032_v37, %v5032_v37 }
 0x1d2   :  { %v5055_v15 = vsub.f32 %v4474_v16, %v921_v42  ;;  %v924_v42 = vmul.f32 0.010416667, %v4830_v33 }
 0x1d3   :  { %v5043_v48 = vsub.f32 %v4727_v18, %v917_v32  ;;  %v5046_v29 = vsub.f32 %v4730_v35, %v916_v55  ;;  %v1161_v11 = vsel %vm115_vm0, %v1043_v26, 0.0  ;;  %v1158_v50 = vsel %vm115_vm0, %v1042_v43, 0.0 }
 0x1d4   :  { %1162 = vadd.xlane.f32.xlu1 %v1161_v11  ;;  %v790_v9 = vpop.xlane.xlu1 %789  ;;  %1159 = vadd.xlane.f32.xlu0 %v1158_v50  ;;  %v787_v13 = vpop.xlane.xlu0 %786  ;;  %v923_v35 = vmul.f32 0.010416667, %v4804_v52  ;;  %v5059_v32 = vsub.f32 %v4490_v27, %v920_v61  ;;  %v922_v55 = vmul.f32 0.010416667, %v4814_v53  ;;  %v1049_v53 = vmul.f32 %v5055_v15, %v5055_v15 }
 0x1d5   :  { %v919_v23 = vmul.f32 0.010416667, %v790_v9  ;;  %v918_v30 = vmul.f32 0.010416667, %v787_v13  ;;  %v1045_v36 = vmul.f32 %v5043_v48, %v5043_v48  ;;  %v1044_v18 = vmul.f32 %v5046_v29, %v5046_v29 }
 0x1d6   :  { %v5075_v52 = vsub.f32 %v4487_v25, %v923_v35  ;;  %v1048_v13 = vmul.f32 %v5059_v32, %v5059_v32 }
 0x1d7   :  { %v5063_v26 = vsub.f32 %v4737_v54, %v919_v23  ;;  %v5066_v43 = vsub.f32 %v4740_v2, %v918_v30  ;;  %v1167_v11 = vsel %vm115_vm0, %v1045_v36, 0.0  ;;  %v1164_v50 = vsel %vm115_vm0, %v1044_v18, 0.0 }
 0x1d8   :  { %1168 = vadd.xlane.f32.xlu1 %v1167_v11  ;;  %1165 = vadd.xlane.f32.xlu0 %v1164_v50  ;;  %v5078_v54 = vsub.f32 %v4502_v34, %v922_v55  ;;  %v925_v2 = vmul.f32 0.010416667, %v4828_v24  ;;  %v1179_v34 = vsel %vm115_vm0, %v1049_v53, 0.0  ;;  %v1051_v24 = vmul.f32 %v5075_v52, %v5075_v52  ;;  %v5114_v50 = vpop.xlane.xlu1 %867 }
 0x1d9   :  { %v1047_v16 = vmul.f32 %v5063_v26, %v5063_v26  ;;  %v1046_v27 = vmul.f32 %v5066_v43, %v5066_v43  ;;  %v5097_v23 = vsub.f32 %v4520_v45, %v924_v42  ;;  %v927_v30 = vmul.f32 0.010416667, %v4853_v38 }
 0x1da   :  { %v5089_v25 = vsub.f32 %v4517_v44, %v925_v2  ;;  %v1050_v33 = vmul.f32 %v5078_v54, %v5078_v54  ;;  %v926_v36 = vmul.f32 0.010416667, %v4855_v22  ;;  %v1176_v18 = vsel %vm115_vm0, %v1048_v13, 0.0 }
 0x1db   :  { %v1173_v61 = vsel %vm115_vm0, %v1047_v16, 0.0  ;;  %v1170_v9 = vsel %vm115_vm0, %v1046_v27, 0.0  ;;  %v929_v44 = vmul.f32 0.010416667, %v4881_v1  ;;  %v1185_v35 = vsel %vm115_vm0, %v1051_v24, 0.0 }
 0x1dc   :  { %1174 = vadd.xlane.f32.xlu1 %v1173_v61  ;;  %1171 = vadd.xlane.f32.xlu0 %v1170_v9  ;;  %v1182_v55 = vsel %vm115_vm0, %v1050_v33, 0.0  ;;  %v1053_v11 = vmul.f32 %v5089_v25, %v5089_v25  ;;  %v5108_v45 = vsub.f32 %v4537_v56, %v927_v30  ;;  %v5111_v38 = vsub.f32 %v4540_v57, %v926_v36 }
 0x1dd   :  { %v928_v22 = vmul.f32 0.010416667, %v4883_v19  ;;  %v1052_v1 = vmul.f32 %v5097_v23, %v5097_v23  ;;  %v5119_v16 = vsub.f32 %v4557_v4, %v929_v44  ;;  %v931_v27 = vmul.f32 0.010416667, %v4906_v62  ;;  %v5127_v19 = vpop.xlane.xlu0 %864  ;;  %v5134_v62 = vpop.xlane.xlu1 %873 }
 0x1de   :  { %v930_v56 = vmul.f32 0.010416667, %v4908_v0  ;;  %v1191_v2 = vsel %vm115_vm0, %v1053_v11, 0.0  ;;  %v1055_v42 = vmul.f32 %v5108_v45, %v5108_v45  ;;  %v1054_v4 = vmul.f32 %v5111_v38, %v5111_v38 }
 0x1df   :  { %v5125_v57 = vsub.f32 %v4560_v5, %v928_v22  ;;  %v1188_v53 = vsel %vm115_vm0, %v1052_v1, 0.0  ;;  %v5137_v0 = vsub.f32 %v4577_v20, %v931_v27  ;;  %v933_v61 = vmul.f32 0.010416667, %v4928_v28 }
 0x1e0   :  { %1180 = vadd.xlane.f32.xlu1 %v1179_v34  ;;  %1177 = vadd.xlane.f32.xlu0 %v1176_v18  ;;  %v5140_v5 = vsub.f32 %v4580_v21, %v930_v56  ;;  %v1057_v9 = vmul.f32 %v5119_v16, %v5119_v16  ;;  %v932_v13 = vmul.f32 0.010416667, %v4930_v10  ;;  %v1197_v34 = vsel %vm115_vm0, %v1055_v42, 0.0  ;;  %v6354_v42 = vld [vmem:[#allocation2_spill] sm:$0xff] }
 0x1e1   :  { %v1194_v24 = vsel %vm115_vm0, %v1054_v4, 0.0  ;;  %v1056_v33 = vmul.f32 %v5125_v57, %v5125_v57  ;;  %v5150_v20 = vpop.xlane.xlu0 %870  ;;  %v5153_v21 = vsub.f32 %v4597_v40, %v933_v61  ;;  %v1059_v30 = vmul.f32 %v5137_v0, %v5137_v0 }
 0x1e2   :  { %v1203_v28 = vsel %vm115_vm0, %v1057_v9, 0.0  ;;  %v1058_v10 = vmul.f32 %v5140_v5, %v5140_v5  ;;  %v5161_v36 = vsub.f32 %v4600_v41, %v932_v13  ;;  %v935_v18 = vmul.f32 0.010416667, %v4944_v39 }
 0x1e3   :  { %v934_v44 = vmul.f32 0.010416667, %v4946_v7  ;;  %v1200_v40 = vsel %vm115_vm0, %v1056_v33, 0.0  ;;  %v1209_v11 = vsel %vm115_vm0, %v1059_v30, 0.0  ;;  %v1061_v41 = vmul.f32 %v5153_v21, %v5153_v21 }
 0x1e4   :  { %1186 = vadd.xlane.f32.xlu1 %v1185_v35  ;;  %1183 = vadd.xlane.f32.xlu0 %v1182_v55  ;;  %v5165_v35 = vpop.xlane.xlu1 %879  ;;  %v937_v55 = vmul.f32 0.010416667, %v4960_v12  ;;  %v1206_v22 = vsel %vm115_vm0, %v1058_v10, 0.0  ;;  %v5174_v1 = vsub.f32 %v4617_v59, %v935_v18  ;;  %v936_v39 = vmul.f32 0.010416667, %v4962_v17 }
 0x1e5   :  { %v5177_v7 = vsub.f32 %v4620_v60, %v934_v44  ;;  %v5180_v27 = vpop.xlane.xlu0 %876  ;;  %v1060_v12 = vmul.f32 %v5161_v36, %v5161_v36  ;;  %v938_v59 = vmul.f32 0.010416667, %v4978_v47  ;;  %v1215_v60 = vsel %vm115_vm0, %v1061_v41, 0.0  ;;  %v6356_v47 = vld [vmem:[#allocation4_spill] sm:$0xff] }
 0x1e6   :  { %v5185_v56 = vsub.f32 %v4637_v14, %v937_v55  ;;  %v5193_v17 = vsub.f32 %v6354_v42, %v936_v39  ;;  %v1063_v61 = vmul.f32 %v5174_v1, %v5174_v1  ;;  %v940_v10 = vmul.f32 0.010416667, %v4994_v8  ;;  %v6357_v39 = vld [vmem:[#allocation5_spill] sm:$0xff] }
 0x1e7   :  { %v1212_v4 = vsel %vm115_vm0, %v1060_v12, 0.0  ;;  %v1062_v14 = vmul.f32 %v5177_v7, %v5177_v7  ;;  %v5204_v13 = vsub.f32 %v6356_v47, %v938_v59  ;;  %v945_v47 = vmul.f32 0.010416667, %v5114_v50 }
 0x1e8   :  { %1192 = vadd.xlane.f32.xlu1 %v1191_v2  ;;  %1189 = vadd.xlane.f32.xlu0 %v1188_v53  ;;  %v939_v2 = vmul.f32 0.010416667, %v4976_v51  ;;  %v5189_v53 = vpop.xlane.xlu1 %885  ;;  %v6355_v51 = vld [vmem:[#allocation3_spill] sm:$0xff]  ;;  %v1065_v33 = vmul.f32 %v5185_v56, %v5185_v56  ;;  %v1221_v18 = vsel %vm115_vm0, %v1063_v61, 0.0  ;;  %v942_v61 = vmul.f32 0.010416667, %v5010_v31 }
 0x1e9   :  { %v1218_v44 = vsel %vm115_vm0, %v1062_v14, 0.0  ;;  %v1066_v8 = vmul.f32 %v5204_v13, %v5204_v13  ;;  %v6360_v31 = vld [vmem:[#allocation8_spill] sm:$0xff] }
 0x1ea   :  { %v5201_v9 = vsub.f32 %v6355_v51, %v939_v2  ;;  %v1227_v41 = vsel %vm115_vm0, %v1065_v33, 0.0 }
 0x1ec   :  { %1198 = vadd.xlane.f32.xlu1 %v1197_v34  ;;  %1195 = vadd.xlane.f32.xlu0 %v1194_v24  ;;  %v5206_v34 = vpop.xlane.xlu0 %882 }
 0x1f0   :  { %1204 = vadd.xlane.f32.xlu1 %v1203_v28  ;;  %1201 = vadd.xlane.f32.xlu0 %v1200_v40  ;;  %v941_v28 = vmul.f32 0.010416667, %v4992_v49  ;;  %v1064_v40 = vmul.f32 %v5193_v17, %v5193_v17  ;;  %v1067_v49 = vmul.f32 %v5201_v9, %v5201_v9 }
 0x1f2   :  { %v5222_v12 = vsub.f32 %v6357_v39, %v941_v28  ;;  %v1224_v14 = vsel %vm115_vm0, %v1064_v40, 0.0  ;;  %v1233_v28 = vsel %vm115_vm0, %v1067_v49, 0.0  ;;  %v6361_v40 = vld [vmem:[#allocation9_spill] sm:$0xff] }
 0x1f4   :  { %1210 = vadd.xlane.f32.xlu1 %v1209_v11  ;;  %1207 = vadd.xlane.f32.xlu0 %v1206_v22 }
 0x1f8   :  { %1216 = vadd.xlane.f32.xlu1 %v1215_v60  ;;  %1213 = vadd.xlane.f32.xlu0 %v1212_v4  ;;  %v6358_v60 = vld [vmem:[#allocation6_spill] sm:$0xff]  ;;  %v943_v4 = vmul.f32 0.010416667, %v5008_v6  ;;  %v6359_v6 = vld [vmem:[#allocation7_spill] sm:$0xff] }
 0x1f9   :  { %v1085_v24 = vpop.xlane.xlu1 %1084  ;;  %v5225_v42 = vsub.f32 %v6358_v60, %v940_v10  ;;  %v1069_v10 = vmul.f32 %v5222_v12, %v5222_v12  ;;  %v6362_v60 = vld [vmem:[#allocation10_spill] sm:$0xff] }
 0x1fa   :  { %v1273_v30 = vmul.f32 0.010416667, %v1085_v24  ;;  %v944_v24 = vmul.f32 0.010416667, %v5127_v19  ;;  %v5245_v19 = vsub.f32 %v4747_v46, %v945_v47 }
 0x1fb   :  { %v1068_v50 = vmul.f32 %v5225_v42, %v5225_v42 }
 0x1fc   :  { %v1337_v55 = vadd.f32 1e-05, %v1273_v30  ;;  %1222 = vadd.xlane.f32.xlu1 %v1221_v18  ;;  %1219 = vadd.xlane.f32.xlu0 %v1218_v44  ;;  %v1230_v30 = vsel %vm115_vm0, %v1066_v8, 0.0  ;;  %v5237_v18 = vsub.f32 %v6359_v6, %v943_v4  ;;  %v5240_v44 = vsub.f32 %v6360_v31, %v942_v61 }
 0x1fd   :  { %v1091_v11 = vpop.xlane.xlu1 %1090  ;;  %v1082_v22 = vpop.xlane.xlu0 %1081  ;;  %v1239_v8 = vsel %vm115_vm0, %v1069_v10, 0.0  ;;  %v1236_v39 = vsel %vm115_vm0, %v1068_v50, 0.0  ;;  %v948_v31 = vmul.f32 0.010416667, %v5180_v27  ;;  %v951_v27 = vmul.f32 0.010416667, %v5189_v53 }
 0x1fe   :  { %3929 = vrsqrt.f32 %v1337_v55  ;;  %v1275_v2 = vmul.f32 0.010416667, %v1091_v11  ;;  %v1272_v59 = vmul.f32 0.010416667, %v1082_v22  ;;  %v5248_v55 = vsub.f32 %v6361_v40, %v944_v24 }
 0x1ff   :  { %v947_v11 = vmul.f32 0.010416667, %v5134_v62  ;;  %v1070_v46 = vmul.f32 %v5240_v44, %v5240_v44 }
 0x200   :  { %v1336_v51 = vadd.f32 1e-05, %v1272_v59  ;;  %1228 = vadd.xlane.f32.xlu1 %v1227_v41  ;;  %1225 = vadd.xlane.f32.xlu0 %v1224_v14  ;;  %v1339_v33 = vadd.f32 1e-05, %v1275_v2  ;;  %v946_v41 = vmul.f32 0.010416667, %v5150_v20  ;;  %v1071_v2 = vmul.f32 %v5237_v18, %v5237_v18 }
 0x201   :  { %v5259_v62 = vsub.f32 %v6362_v60, %v947_v11  ;;  %v1073_v20 = vmul.f32 %v5245_v19, %v5245_v19  ;;  %v1072_v14 = vmul.f32 %v5248_v55, %v5248_v55  ;;  %v1242_v6 = vsel %vm115_vm0, %v1070_v46, 0.0 }
 0x202   :  { %3931 = vrsqrt.f32 %v1336_v51  ;;  %v6363_v51 = vld [vmem:[#allocation11_spill] sm:$0xff]  ;;  %v1245_v10 = vsel %vm115_vm0, %v1071_v2, 0.0  ;;  %v950_v46 = vmul.f32 0.010416667, %v5206_v34 }
 0x203   :  { %3933 = vrsqrt.f32 %v1339_v33  ;;  %v5266_v47 = vsub.f32 %v6363_v51, %v946_v41  ;;  %v1251_v11 = vsel %vm115_vm0, %v1073_v20, 0.0  ;;  %v6364_v41 = vld [vmem:[#allocation16_spill] sm:$0xff] }
 0x204   :  { %1234 = vadd.xlane.f32.xlu1 %v1233_v28  ;;  %1231 = vadd.xlane.f32.xlu0 %v1230_v30  ;;  %v949_v30 = vmul.f32 0.010416667, %v5165_v35  ;;  %v1248_v35 = vsel %vm115_vm0, %v1072_v14, 0.0 }
 0x205   :  { %v1088_v22 = vpop.xlane.xlu0 %1087 }
 0x206   :  { %v1274_v49 = vmul.f32 0.010416667, %v1088_v22  ;;  %v1075_v22 = vmul.f32 %v5259_v62, %v5259_v62 }
 0x208   :  { %v1338_v59 = vadd.f32 1e-05, %v1274_v49  ;;  %1240 = vadd.xlane.f32.xlu1 %v1239_v8  ;;  %1237 = vadd.xlane.f32.xlu0 %v1236_v39  ;;  %v1074_v8 = vmul.f32 %v5266_v47, %v5266_v47  ;;  %v6365_v39 = vld [vmem:[#allocation12_spill] sm:$0xff]  ;;  %v1257_v51 = vsel %vm115_vm0, %v1075_v22, 0.0 }
 0x209   :  { %v1097_v4 = vpop.xlane.xlu1 %1096  ;;  %v1094_v61 = vpop.xlane.xlu0 %1093  ;;  %v5280_v2 = vsub.f32 %v6365_v39, %v949_v30 }
 0x20a   :  { %3935 = vrsqrt.f32 %v1338_v59  ;;  %v1277_v24 = vmul.f32 0.010416667, %v1097_v4  ;;  %v1276_v33 = vmul.f32 0.010416667, %v1094_v61  ;;  %v5287_v59 = vld [vmem:[%s6272_s3] ss:$0 sm:$0xff] }
 0x20b   :  { %v3930_v28 = vpop.eup %3929  ;;  %v6366_v4 = vld [vmem:[#allocation13_spill] sm:$0xff] }
 0x20c   :  { %v1341_v50 = vadd.f32 1e-05, %v1277_v24  ;;  %v1340_v40 = vadd.f32 1e-05, %v1276_v33  ;;  %1246 = vadd.xlane.f32.xlu1 %v1245_v10  ;;  %1243 = vadd.xlane.f32.xlu0 %v1242_v6  ;;  %v1465_v49 = vmul.f32 %v3930_v28, %v6364_v41  ;;  %v5290_v61 = vsub.f32 %v6366_v4, %v948_v31  ;;  %v6367_v24 = vld [vmem:[#allocation18_spill] sm:$0xff]  ;;  %v6369_v31 = vld [vmem:[#allocation15_spill] sm:$0xff] }
 0x20d   :  { %v1254_v10 = vsel %vm115_vm0, %v1074_v8, 0.0  ;;  %v6368_v6 = vld [vmem:[#allocation14_spill] sm:$0xff]  ;;  %v1077_v41 = vmul.f32 %v5280_v2, %v5280_v2 }
 0x20e   :  { %3937 = vrsqrt.f32 %v1341_v50  ;;  %v1535_v34 = vmul.f32 %v5287_v59, %v1465_v49  ;;  %v5297_v50 = vsub.f32 %v6368_v6, %v951_v27  ;;  %v1076_v8 = vmul.f32 %v5290_v61, %v5290_v61  ;;  %v6370_v27 = vld [vmem:[#allocation17_spill] sm:$0xff] }
 0x20f   :  { %3939 = vrsqrt.f32 %v1340_v40  ;;  %v3932_v60 = vpop.eup %3931  ;;  %v5300_v40 = vsub.f32 %v6369_v31, %v950_v46 }
 0x210   :  { %1252 = vadd.xlane.f32.xlu1 %v1251_v11  ;;  %1249 = vadd.xlane.f32.xlu0 %v1248_v35  ;;  %v1464_v53 = vmul.f32 %v3932_v60, %v6367_v24  ;;  %v3934_v33 = vpop.eup %3933  ;;  %v5305_v11 = vld [vmem:[%s6273_s4] ss:$0 sm:$0xff]  ;;  %v1260_v24 = vsel %vm115_vm0, %v1076_v8, 0.0 }
 0x211   :  { %v1103_v20 = vpop.xlane.xlu1 %1102  ;;  %v1100_v14 = vpop.xlane.xlu0 %1099  ;;  %v1467_v46 = vmul.f32 %v3934_v33, %v6370_v27  ;;  %v1605_v60 = vadd.f32 %v5305_v11, %v1535_v34 }
 0x212   :  { %v1279_v28 = vmul.f32 0.010416667, %v1103_v20  ;;  %v1278_v30 = vmul.f32 0.010416667, %v1100_v14  ;;  %v1534_v22 = vmul.f32 %v5287_v59, %v1464_v53  ;;  %v1263_v20 = vsel %vm115_vm0, %v1077_v41, 0.0  ;;  %v6371_v53 = vld [vmem:[#allocation19_spill] sm:$0xff] }
 0x213   :  { %v1079_v14 = vmul.f32 %v5297_v50, %v5297_v50 }
 0x214   :  { %v1343_v49 = vadd.f32 1e-05, %v1279_v28  ;;  %v1342_v35 = vadd.f32 1e-05, %v1278_v30  ;;  %1258 = vadd.xlane.f32.xlu1 %v1257_v51  ;;  %1255 = vadd.xlane.f32.xlu0 %v1254_v10  ;;  %v1604_v39 = vadd.f32 %v5305_v11, %v1534_v22  ;;  %v1078_v51 = vmul.f32 %v5300_v40, %v5300_v40 }
 0x215   :  { %v1537_v30 = vmul.f32 %v5287_v59, %v1467_v46  ;;  %v1269_v41 = vsel %vm115_vm0, %v1079_v14, 0.0 }
 0x216   :  { %3941 = vrsqrt.f32 %v1343_v49  ;;  %3689 = vmatprep.mubr.msk.f32.mxu1 %vm115_vm0, %v1604_v39  ;;  %v1266_v49 = vsel %vm115_vm0, %v1078_v51, 0.0 }
 0x217   :  { %v3936_v4 = vpop.eup %3935  ;;  %3943 = vrsqrt.f32 %v1342_v35  ;;  %3690 = vmatmul.mubr.msk.f32.vlgmr.msra.gmra.mxu1 %vm115_vm0, %v1605_v60  ;;  %v6372_v60 = vld [vmem:[#allocation20_spill] sm:$0xff]  ;;  %v1607_v46 = vadd.f32 %v5305_v11, %v1537_v30 }
 0x218   :  { %1264 = vadd.xlane.f32.xlu1 %v1263_v20  ;;  %v1466_v33 = vmul.f32 %v3936_v4, %v6371_v53  ;;  %1261 = vadd.xlane.f32.xlu0 %v1260_v24  ;;  %v6373_v20 = vld [vmem:[#allocation21_spill] sm:$0xff] }
 0x219   :  { %v1109_v34 = vpop.xlane.xlu1 %1108  ;;  %v1106_v28 = vpop.xlane.xlu0 %1105 }
 0x21a   :  { %v1281_v10 = vmul.f32 0.010416667, %v1109_v34  ;;  %v1280_v6 = vmul.f32 0.010416667, %v1106_v28  ;;  %v1536_v31 = vmul.f32 %v5287_v59, %v1466_v33 }
 0x21b   :  { %v3938_v22 = vpop.eup %3937 }
 0x21c   :  { %v3940_v35 = vpop.eup %3939  ;;  %v1345_v39 = vadd.f32 1e-05, %v1281_v10  ;;  %v1344_v27 = vadd.f32 1e-05, %v1280_v6  ;;  %1270 = vadd.xlane.f32.xlu1 %v1269_v41  ;;  %v1606_v8 = vadd.f32 %v5305_v11, %v1536_v31  ;;  %v1469_v4 = vmul.f32 %v3938_v22, %v6372_v60  ;;  %1267 = vadd.xlane.f32.xlu0 %v1266_v49  ;;  %v6374_v49 = vld [vmem:[#allocation22_spill] sm:$0xff] }
 0x21d   :  { %v1468_v24 = vmul.f32 %v3940_v35, %v6373_v20 }
 0x21e   :  { %3945 = vrsqrt.f32 %v1345_v39  ;;  %3692 = vmatprep.mubr.msk.f32.mxu1 %vm115_vm0, %v1606_v8  ;;  %v1539_v14 = vmul.f32 %v5287_v59, %v1469_v4  ;;  %v6375_v39 = vld [vmem:[#allocation23_spill] sm:$0xff] }
 0x21f   :  { %3947 = vrsqrt.f32 %v1344_v27  ;;  %3693 = vmatmul.mubr.msk.f32.gmra.mxu1 %vm115_vm0, %v1607_v46  ;;  %v1538_v51 = vmul.f32 %v5287_v59, %v1468_v24 }
 0x220   :  { %v1609_v53 = vadd.f32 %v5305_v11, %v1539_v14 }
 0x221   :  { %v1115_v33 = vpop.xlane.xlu1 %1114  ;;  %v1112_v34 = vpop.xlane.xlu0 %1111  ;;  %v1608_v28 = vadd.f32 %v5305_v11, %v1538_v51 }
 0x222   :  { %v1283_v10 = vmul.f32 0.010416667, %v1115_v33  ;;  %v1282_v30 = vmul.f32 0.010416667, %v1112_v34 }
 0x223   :  { %v3942_v6 = vpop.eup %3941  ;;  %3695 = vmatprep.mubr.msk.f32.mxu1 %vm115_vm0, %v1608_v28 }
 0x224   :  { %v3944_v31 = vpop.eup %3943  ;;  %v1347_v22 = vadd.f32 1e-05, %v1283_v10  ;;  %v1346_v41 = vadd.f32 1e-05, %v1282_v30  ;;  %3696 = vmatmul.mubr.msk.f32.gmra.mxu1 %vm115_vm0, %v1609_v53  ;;  %v1471_v35 = vmul.f32 %v3942_v6, %v6374_v49  ;;  %v6376_v10 = vld [vmem:[#allocation24_spill] sm:$0xff]  ;;  %v6377_v6 = vld [vmem:[#allocation25_spill] sm:$0xff] }
 0x225   :  { %v1470_v27 = vmul.f32 %v3944_v31, %v6375_v39 }
 0x226   :  { %3949 = vrsqrt.f32 %v1347_v22  ;;  %v1541_v8 = vmul.f32 %v5287_v59, %v1471_v35 }
 0x227   :  { %3951 = vrsqrt.f32 %v1346_v41  ;;  %v1540_v60 = vmul.f32 %v5287_v59, %v1470_v27 }
 0x228   :  { %v1611_v4 = vadd.f32 %v5305_v11, %v1541_v8 }
 0x229   :  { %v1121_v46 = vpop.xlane.xlu1 %1120  ;;  %v1118_v20 = vpop.xlane.xlu0 %1117  ;;  %v1610_v24 = vadd.f32 %v5305_v11, %v1540_v60 }
 0x22a   :  { %v1285_v14 = vmul.f32 0.010416667, %v1121_v46  ;;  %v1284_v51 = vmul.f32 0.010416667, %v1118_v20 }
 0x22b   :  { %v3946_v33 = vpop.eup %3945  ;;  %3698 = vmatprep.mubr.msk.f32.mxu1 %vm115_vm0, %v1610_v24 }
 0x22c   :  { %v3948_v53 = vpop.eup %3947  ;;  %v1349_v34 = vadd.f32 1e-05, %v1285_v14  ;;  %v1348_v28 = vadd.f32 1e-05, %v1284_v51  ;;  %3699 = vmatmul.mubr.msk.f32.gmra.mxu1 %vm115_vm0, %v1611_v4  ;;  %v1473_v30 = vmul.f32 %v3946_v33, %v6376_v10  ;;  %v6378_v14 = vld [vmem:[#allocation26_spill] sm:$0xff]  ;;  %v6379_v33 = vld [vmem:[#allocation27_spill] sm:$0xff] }
 0x22d   :  { %v1472_v31 = vmul.f32 %v3948_v53, %v6377_v6 }
 0x22e   :  { %3953 = vrsqrt.f32 %v1349_v34  ;;  %v1543_v22 = vmul.f32 %v5287_v59, %v1473_v30 }
 0x22f   :  { %3955 = vrsqrt.f32 %v1348_v28  ;;  %v1542_v41 = vmul.f32 %v5287_v59, %v1472_v31 }
 0x230   :  { %v1613_v49 = vadd.f32 %v5305_v11, %v1543_v22 }
 0x231   :  { %v1127_v35 = vpop.xlane.xlu1 %1126  ;;  %v1124_v39 = vpop.xlane.xlu0 %1123  ;;  %v1612_v27 = vadd.f32 %v5305_v11, %v1542_v41 }
 0x232   :  { %v1287_v8 = vmul.f32 0.010416667, %v1127_v35  ;;  %v1286_v60 = vmul.f32 0.010416667, %v1124_v39 }
 0x233   :  { %v3950_v46 = vpop.eup %3949  ;;  %3701 = vmatprep.mubr.msk.f32.mxu1 %vm115_vm0, %v1612_v27 }
 0x234   :  { %v3952_v4 = vpop.eup %3951  ;;  %v1351_v20 = vadd.f32 1e-05, %v1287_v8  ;;  %v1350_v24 = vadd.f32 1e-05, %v1286_v60  ;;  %3702 = vmatmul.mubr.msk.f32.gmra.mxu1 %vm115_vm0, %v1613_v49  ;;  %v1475_v51 = vmul.f32 %v3950_v46, %v6378_v14  ;;  %v6380_v8 = vld [vmem:[#allocation28_spill] sm:$0xff]  ;;  %v6381_v46 = vld [vmem:[#allocation29_spill] sm:$0xff] }
 0x235   :  { %v1474_v53 = vmul.f32 %v3952_v4, %v6379_v33 }
 0x236   :  { %3957 = vrsqrt.f32 %v1351_v20  ;;  %v1545_v34 = vmul.f32 %v5287_v59, %v1475_v51 }
 0x237   :  { %3959 = vrsqrt.f32 %v1350_v24  ;;  %v1544_v28 = vmul.f32 %v5287_v59, %v1474_v53 }
 0x238   :  { %v1615_v10 = vadd.f32 %v5305_v11, %v1545_v34  ;;  %v2339_v34 = vld [vmem:[%s6274_s7 + $0x58] sm:$0xff] }
 0x239   :  { %v1133_v30 = vpop.xlane.xlu1 %1132  ;;  %v1130_v6 = vpop.xlane.xlu0 %1129  ;;  %v1614_v31 = vadd.f32 %v5305_v11, %v1544_v28  ;;  %v2338_v28 = vld [vmem:[%s6274_s7 + $0x50] sm:$0xff]  ;;  %3785 = vmatprep.subr.mxu0 %v2339_v34 }
 0x23a   :  { %v1289_v22 = vmul.f32 0.010416667, %v1133_v30  ;;  %v1288_v41 = vmul.f32 0.010416667, %v1130_v6  ;;  %3786 = vmatpush3.msra.mxu0 %v2339_v34 }
 0x23b   :  { %v3954_v35 = vpop.eup %3953  ;;  %3704 = vmatprep.mubr.msk.f32.mxu1 %vm115_vm0, %v1614_v31  ;;  %v2337_v31 = vld [vmem:[%s6274_s7 + $0x48] sm:$0xff]  ;;  %3787 = vmatprep.subr.mxu0 %v2338_v28 }
 0x23c   :  { %v3956_v49 = vpop.eup %3955  ;;  %v1353_v39 = vadd.f32 1e-05, %v1289_v22  ;;  %v1352_v27 = vadd.f32 1e-05, %v1288_v41  ;;  %3705 = vmatmul.mubr.msk.f32.gmra.mxu1 %vm115_vm0, %v1615_v10  ;;  %v1477_v60 = vmul.f32 %v3954_v35, %v6380_v8  ;;  %3788 = vmatpush3.msra.mxu0 %v2338_v28 }
 0x23d   :  { %v1476_v4 = vmul.f32 %v3956_v49, %v6381_v46  ;;  %v6382_v49 = vld [vmem:[#allocation30_spill] sm:$0xff]  ;;  %3789 = vmatprep.subr.mxu0 %v2337_v31 }
 0x23e   :  { %3961 = vrsqrt.f32 %v1353_v39  ;;  %v1547_v20 = vmul.f32 %v5287_v59, %v1477_v60  ;;  %v2336_v60 = vld [vmem:[%s6274_s7 + $0x40] sm:$0xff]  ;;  %3790 = vmatpush3.msra.mxu0 %v2337_v31 }
 0x23f   :  { %3963 = vrsqrt.f32 %v1352_v27  ;;  %v1546_v24 = vmul.f32 %v5287_v59, %v1476_v4  ;;  %v6383_v27 = vld [vmem:[#allocation31_spill] sm:$0xff]  ;;  %3791 = vmatprep.subr.mxu0 %v2336_v60 }
 0x240   :  { %v1617_v14 = vadd.f32 %v5305_v11, %v1547_v20  ;;  %v2335_v20 = vld [vmem:[%s6274_s7 + $0x38] sm:$0xff]  ;;  %3792 = vmatpush3.msra.mxu0 %v2336_v60 }
 0x241   :  { %v1139_v51 = vpop.xlane.xlu1 %1138  ;;  %v1136_v33 = vpop.xlane.xlu0 %1135  ;;  %v1616_v53 = vadd.f32 %v5305_v11, %v1546_v24  ;;  %3793 = vmatprep.subr.mxu0 %v2335_v20 }
 0x242   :  { %v1291_v10 = vmul.f32 0.010416667, %v1139_v51  ;;  %v1290_v30 = vmul.f32 0.010416667, %v1136_v33  ;;  %3794 = vmatpush3.msra.mxu0 %v2335_v20 }
 0x243   :  { %v3958_v6 = vpop.eup %3957  ;;  %3707 = vmatprep.mubr.msk.f32.mxu1 %vm115_vm0, %v1616_v53  ;;  %v2334_v53 = vld [vmem:[%s6274_s7 + $0x30] sm:$0xff] }
 0x244   :  { %v3960_v22 = vpop.eup %3959  ;;  %v1355_v41 = vadd.f32 1e-05, %v1291_v10  ;;  %v1354_v35 = vadd.f32 1e-05, %v1290_v30  ;;  %3708 = vmatmul.mubr.msk.f32.gmra.mxu1 %vm115_vm0, %v1617_v14  ;;  %v1479_v39 = vmul.f32 %v3958_v6, %v6382_v49  ;;  %v2333_v30 = vld [vmem:[%s6274_s7 + $0x28] sm:$0xff]  ;;  %3795 = vmatprep.subr.mxu0 %v2334_v53  ;;  %v6385_v49 = vld [vmem:[#allocation33_spill] sm:$0xff] }
 0x245   :  { %v1478_v8 = vmul.f32 %v3960_v22, %v6383_v27  ;;  %3796 = vmatpush3.msra.mxu0 %v2334_v53  ;;  %v2332_v27 = vld [vmem:[%s6274_s7 + $0x20] sm:$0xff] }
 0x246   :  { %3965 = vrsqrt.f32 %v1355_v41  ;;  %v1549_v46 = vmul.f32 %v5287_v59, %v1479_v39  ;;  %v6384_v41 = vld [vmem:[#allocation32_spill] sm:$0xff]  ;;  %3797 = vmatprep.subr.mxu0 %v2333_v30 }
 0x247   :  { %3967 = vrsqrt.f32 %v1354_v35  ;;  %v1548_v4 = vmul.f32 %v5287_v59, %v1478_v8  ;;  %3798 = vmatpush3.msra.mxu0 %v2333_v30 }
 0x248   :  { %v1619_v24 = vadd.f32 %v5305_v11, %v1549_v46  ;;  %3799 = vmatprep.subr.mxu0 %v2332_v27 }
 0x249   :  { %v1145_v14 = vpop.xlane.xlu1 %1144  ;;  %v1142_v51 = vpop.xlane.xlu0 %1141  ;;  %v1618_v33 = vadd.f32 %v5305_v11, %v1548_v4  ;;  %3800 = vmatpush3.msra.mxu0 %v2332_v27 }
 0x24a   :  { %v1293_v34 = vmul.f32 0.010416667, %v1145_v14  ;;  %v1292_v28 = vmul.f32 0.010416667, %v1142_v51 }
 0x24b   :  { %v3962_v10 = vpop.eup %3961  ;;  %3710 = vmatprep.mubr.msk.f32.mxu1 %vm115_vm0, %v1618_v33 }
 0x24c   :  { %v3964_v6 = vpop.eup %3963  ;;  %v1357_v31 = vadd.f32 1e-05, %v1293_v34  ;;  %v1356_v22 = vadd.f32 1e-05, %v1292_v28  ;;  %3711 = vmatmul.mubr.msk.f32.gmra.mxu1 %vm115_vm0, %v1619_v24  ;;  %v1481_v35 = vmul.f32 %v3962_v10, %v6384_v41  ;;  %v6386_v10 = vld [vmem:[#allocation34_spill] sm:$0xff] }
 0x24d   :  { %v1480_v39 = vmul.f32 %v3964_v6, %v6385_v49  ;;  %v6387_v6 = vld [vmem:[#allocation35_spill] sm:$0xff] }
 0x24e   :  { %3969 = vrsqrt.f32 %v1357_v31  ;;  %v1551_v8 = vmul.f32 %v5287_v59, %v1481_v35  ;;  %v2331_v35 = vld [vmem:[%s6274_s7 + $0x18] sm:$0xff] }
 0x24f   :  { %3971 = vrsqrt.f32 %v1356_v22  ;;  %v1550_v60 = vmul.f32 %v5287_v59, %v1480_v39  ;;  %3801 = vmatprep.subr.mxu0 %v2331_v35 }
 0x250   :  { %v1621_v46 = vadd.f32 %v5305_v11, %v1551_v8  ;;  %3802 = vmatpush3.msra.mxu0 %v2331_v35 }
 0x251   :  { %v1151_v4 = vpop.xlane.xlu1 %1150  ;;  %v1148_v20 = vpop.xlane.xlu0 %1147  ;;  %v1620_v24 = vadd.f32 %v5305_v11, %v1550_v60  ;;  %v2330_v60 = vld [vmem:[%s6274_s7 + $0x10] sm:$0xff] }
 0x252   :  { %v1295_v14 = vmul.f32 0.010416667, %v1151_v4  ;;  %v1294_v51 = vmul.f32 0.010416667, %v1148_v20  ;;  %3803 = vmatprep.subr.mxu0 %v2330_v60 }
 0x253   :  { %v3966_v33 = vpop.eup %3965  ;;  %3713 = vmatprep.mubr.msk.f32.mxu1 %vm115_vm0, %v1620_v24  ;;  %3804 = vmatpush3.msra.mxu0 %v2330_v60  ;;  %v2329_v24 = vld [vmem:[%s6274_s7 + $0x8] sm:$0xff] }
 0x254   :  { %v3968_v53 = vpop.eup %3967  ;;  %v1359_v34 = vadd.f32 1e-05, %v1295_v14  ;;  %v1358_v28 = vadd.f32 1e-05, %v1294_v51  ;;  %3714 = vmatmul.mubr.msk.f32.gmra.mxu1 %vm115_vm0, %v1621_v46  ;;  %v1483_v30 = vmul.f32 %v3966_v33, %v6386_v10  ;;  %3805 = vmatprep.subr.mxu0 %v2329_v24 }
 0x255   :  { %v1482_v31 = vmul.f32 %v3968_v53, %v6387_v6  ;;  %v6388_v53 = vld [vmem:[#allocation36_spill] sm:$0xff]  ;;  %3806 = vmatpush3.msra.mxu0 %v2329_v24 }
 0x256   :  { %3973 = vrsqrt.f32 %v1359_v34  ;;  %v1553_v22 = vmul.f32 %v5287_v59, %v1483_v30  ;;  %v6389_v30 = vld [vmem:[#allocation37_spill] sm:$0xff] }
 0x257   :  { %3975 = vrsqrt.f32 %v1358_v28  ;;  %v1552_v41 = vmul.f32 %v5287_v59, %v1482_v31  ;;  %v2328_v31 = vld [vmem:[%s6274_s7] sm:$0xff] }
 0x258   :  { %v1623_v49 = vadd.f32 %v5305_v11, %v1553_v22  ;;  %3807 = vmatprep.subr.mxu0 %v2328_v31 }
 0x259   :  { %v1157_v39 = vpop.xlane.xlu1 %1156  ;;  %v1154_v27 = vpop.xlane.xlu0 %1153  ;;  %v1622_v8 = vadd.f32 %v5305_v11, %v1552_v41  ;;  %3808 = vmatpush3.msra.mxu0 %v2328_v31 }
 0x25a   :  { %v1297_v46 = vmul.f32 0.010416667, %v1157_v39  ;;  %v1296_v4 = vmul.f32 0.010416667, %v1154_v27 }
 0x25b   :  { %v3970_v20 = vpop.eup %3969  ;;  %3716 = vmatprep.mubr.msk.f32.mxu1 %vm115_vm0, %v1622_v8 }
 0x25c   :  { %v3972_v14 = vpop.eup %3971  ;;  %v1361_v51 = vadd.f32 1e-05, %v1297_v46  ;;  %v1360_v33 = vadd.f32 1e-05, %v1296_v4  ;;  %3717 = vmatmul.mubr.msk.f32.gmra.mxu1 %vm115_vm0, %v1623_v49  ;;  %v1485_v34 = vmul.f32 %v3970_v20, %v6388_v53 }
 0x25d   :  { %v1163_v28 = vpop.xlane.xlu1 %1162  ;;  %v1160_v10 = vpop.xlane.xlu0 %1159  ;;  %v1484_v6 = vmul.f32 %v3972_v14, %v6389_v30 }
 0x25e   :  { %3977 = vrsqrt.f32 %v1361_v51  ;;  %v1299_v22 = vmul.f32 0.010416667, %v1163_v28  ;;  %v1298_v41 = vmul.f32 0.010416667, %v1160_v10  ;;  %v1555_v35 = vmul.f32 %v5287_v59, %v1485_v34  ;;  %v6390_v34 = vld [vmem:[#allocation38_spill] sm:$0xff] }
 0x25f   :  { %3979 = vrsqrt.f32 %v1360_v33  ;;  %v1554_v49 = vmul.f32 %v5287_v59, %v1484_v6  ;;  %v6391_v6 = vld [vmem:[#allocation39_spill] sm:$0xff] }
 0x260   :  { %v1363_v39 = vadd.f32 1e-05, %v1299_v22  ;;  %v1362_v27 = vadd.f32 1e-05, %v1298_v41  ;;  %v1625_v8 = vadd.f32 %v5305_v11, %v1555_v35 }
 0x261   :  { %v1169_v60 = vpop.xlane.xlu1 %1168  ;;  %v1166_v46 = vpop.xlane.xlu0 %1165  ;;  %v1624_v4 = vadd.f32 %v5305_v11, %v1554_v49 }
 0x262   :  { %3981 = vrsqrt.f32 %v1363_v39  ;;  %v1301_v20 = vmul.f32 0.010416667, %v1169_v60  ;;  %v1300_v24 = vmul.f32 0.010416667, %v1166_v46 }
 0x263   :  { %v3974_v14 = vpop.eup %3973  ;;  %3983 = vrsqrt.f32 %v1362_v27  ;;  %3719 = vmatprep.mubr.msk.f32.mxu1 %vm115_vm0, %v1624_v4 }
 0x264   :  { %v3976_v51 = vpop.eup %3975  ;;  %v1365_v33 = vadd.f32 1e-05, %v1301_v20  ;;  %v1364_v53 = vadd.f32 1e-05, %v1300_v24  ;;  %3720 = vmatmul.mubr.msk.f32.gmra.mxu1 %vm115_vm0, %v1625_v8  ;;  %v1487_v28 = vmul.f32 %v3974_v14, %v6390_v34 }
 0x265   :  { %v1175_v10 = vpop.xlane.xlu1 %1174  ;;  %v1172_v30 = vpop.xlane.xlu0 %1171  ;;  %v1486_v31 = vmul.f32 %v3976_v51, %v6391_v6 }
 0x266   :  { %3985 = vrsqrt.f32 %v1365_v33  ;;  %v1303_v22 = vmul.f32 0.010416667, %v1175_v10  ;;  %v1302_v41 = vmul.f32 0.010416667, %v1172_v30  ;;  %v1557_v35 = vmul.f32 %v5287_v59, %v1487_v28 }
 0x267   :  { %3987 = vrsqrt.f32 %v1364_v53  ;;  %v1556_v49 = vmul.f32 %v5287_v59, %v1486_v31 }
 0x268   :  { %v1367_v39 = vadd.f32 1e-05, %v1303_v22  ;;  %v1366_v27 = vadd.f32 1e-05, %v1302_v41  ;;  %v1627_v60 = vadd.f32 %v5305_v11, %v1557_v35 }
 0x269   :  { %v1181_v46 = vpop.xlane.xlu1 %1180  ;;  %v1178_v8 = vpop.xlane.xlu0 %1177  ;;  %v1626_v4 = vadd.f32 %v5305_v11, %v1556_v49 }
 0x26a   :  { %3989 = vrsqrt.f32 %v1367_v39  ;;  %v1305_v20 = vmul.f32 0.010416667, %v1181_v46  ;;  %v1304_v24 = vmul.f32 0.010416667, %v1178_v8 }
 0x26b   :  { %v3978_v14 = vpop.eup %3977  ;;  %3991 = vrsqrt.f32 %v1366_v27  ;;  %3722 = vmatprep.mubr.msk.f32.mxu1 %vm115_vm0, %v1626_v4 }
 0x26c   :  { %v3980_v51 = vpop.eup %3979  ;;  %v1369_v33 = vadd.f32 1e-05, %v1305_v20  ;;  %v1368_v53 = vadd.f32 1e-05, %v1304_v24  ;;  %3723 = vmatmul.mubr.msk.f32.gmra.mxu1 %vm115_vm0, %v1627_v60  ;;  %v1489_v34 = vmul.f32 %v3978_v14, %v5019_v58 }
 0x26d   :  { %v1187_v28 = vpop.xlane.xlu1 %1186  ;;  %v1184_v10 = vpop.xlane.xlu0 %1183  ;;  %v1488_v30 = vmul.f32 %v3980_v51, %v5022_v3 }
 0x26e   :  { %3993 = vrsqrt.f32 %v1369_v33  ;;  %v1307_v6 = vmul.f32 0.010416667, %v1187_v28  ;;  %v1306_v31 = vmul.f32 0.010416667, %v1184_v10  ;;  %v1559_v22 = vmul.f32 %v5287_v59, %v1489_v34 }
 0x26f   :  { %v3982_v41 = vpop.eup %3981  ;;  %3995 = vrsqrt.f32 %v1368_v53  ;;  %v1558_v35 = vmul.f32 %v5287_v59, %v1488_v30 }
 0x270   :  { %v3984_v49 = vpop.eup %3983  ;;  %v1371_v39 = vadd.f32 1e-05, %v1307_v6  ;;  %v1370_v27 = vadd.f32 1e-05, %v1306_v31  ;;  %v1629_v60 = vadd.f32 %v5305_v11, %v1559_v22  ;;  %v1491_v58 = vmul.f32 %v3982_v41, %v5029_v63 }
 0x271   :  { %v1193_v46 = vpop.xlane.xlu1 %1192  ;;  %v1190_v8 = vpop.xlane.xlu0 %1189  ;;  %v1628_v3 = vadd.f32 %v5305_v11, %v1558_v35  ;;  %v1490_v4 = vmul.f32 %v3984_v49, %v5032_v37 }
 0x272   :  { %3997 = vrsqrt.f32 %v1371_v39  ;;  %v1309_v20 = vmul.f32 0.010416667, %v1193_v46  ;;  %v1308_v24 = vmul.f32 0.010416667, %v1190_v8  ;;  %v1561_v14 = vmul.f32 %v5287_v59, %v1491_v58 }
 0x273   :  { %v3986_v51 = vpop.eup %3985  ;;  %3999 = vrsqrt.f32 %v1370_v27  ;;  %3725 = vmatprep.mubr.msk.f32.mxu1 %vm115_vm0, %v1628_v3  ;;  %v1560_v33 = vmul.f32 %v5287_v59, %v1490_v4 }
 0x274   :  { %v3988_v53 = vpop.eup %3987  ;;  %v1373_v34 = vadd.f32 1e-05, %v1309_v20  ;;  %v1372_v63 = vadd.f32 1e-05, %v1308_v24  ;;  %3726 = vmatmul.mubr.msk.f32.gmra.mxu1 %vm115_vm0, %v1629_v60  ;;  %v1631_v28 = vadd.f32 %v5305_v11, %v1561_v14  ;;  %v1493_v37 = vmul.f32 %v3986_v51, %v5043_v48 }
 0x275   :  { %v1199_v10 = vpop.xlane.xlu1 %1198  ;;  %v1196_v30 = vpop.xlane.xlu0 %1195  ;;  %v1630_v6 = vadd.f32 %v5305_v11, %v1560_v33  ;;  %v1492_v31 = vmul.f32 %v3988_v53, %v5046_v29 }
 0x276   :  { %4001 = vrsqrt.f32 %v1373_v34  ;;  %v1311_v22 = vmul.f32 0.010416667, %v1199_v10  ;;  %v1310_v41 = vmul.f32 0.010416667, %v1196_v30  ;;  %v1563_v35 = vmul.f32 %v5287_v59, %v1493_v37 }
 0x277   :  { %v3990_v49 = vpop.eup %3989  ;;  %4003 = vrsqrt.f32 %v1372_v63  ;;  %3728 = vmatprep.mubr.msk.f32.mxu1 %vm115_vm0, %v1630_v6  ;;  %v1562_v39 = vmul.f32 %v5287_v59, %v1492_v31 }
 0x278   :  { %v3992_v27 = vpop.eup %3991  ;;  %v1375_v60 = vadd.f32 1e-05, %v1311_v22  ;;  %v1374_v48 = vadd.f32 1e-05, %v1310_v41  ;;  %3729 = vmatmul.mubr.msk.f32.gmra.mxu1 %vm115_vm0, %v1631_v28  ;;  %v1633_v58 = vadd.f32 %v5305_v11, %v1563_v35  ;;  %v1495_v29 = vmul.f32 %v3990_v49, %v5063_v26 }
 0x279   :  { %v1205_v46 = vpop.xlane.xlu1 %1204  ;;  %v1202_v8 = vpop.xlane.xlu0 %1201  ;;  %v1632_v3 = vadd.f32 %v5305_v11, %v1562_v39  ;;  %v1494_v4 = vmul.f32 %v3992_v27, %v5066_v43 }
 0x27a   :  { %4005 = vrsqrt.f32 %v1375_v60  ;;  %v1313_v20 = vmul.f32 0.010416667, %v1205_v46  ;;  %v1312_v24 = vmul.f32 0.010416667, %v1202_v8  ;;  %v1565_v14 = vmul.f32 %v5287_v59, %v1495_v29 }
 0x27b   :  { %v3994_v51 = vpop.eup %3993  ;;  %4007 = vrsqrt.f32 %v1374_v48  ;;  %3731 = vmatprep.mubr.msk.f32.mxu1 %vm115_vm0, %v1632_v3  ;;  %v1564_v33 = vmul.f32 %v5287_v59, %v1494_v4 }
 0x27c   :  { %v3996_v53 = vpop.eup %3995  ;;  %v1377_v34 = vadd.f32 1e-05, %v1313_v20  ;;  %v1376_v26 = vadd.f32 1e-05, %v1312_v24  ;;  %3732 = vmatmul.mubr.msk.f32.gmra.mxu1 %vm115_vm0, %v1633_v58  ;;  %v1635_v63 = vadd.f32 %v5305_v11, %v1565_v14  ;;  %v1497_v43 = vmul.f32 %v3994_v51, %v5055_v15 }
 0x27d   :  { %v1211_v28 = vpop.xlane.xlu1 %1210  ;;  %v1208_v37 = vpop.xlane.xlu0 %1207  ;;  %v1634_v10 = vadd.f32 %v5305_v11, %v1564_v33  ;;  %v1496_v30 = vmul.f32 %v3996_v53, %v5059_v32 }
 0x27e   :  { %4009 = vrsqrt.f32 %v1377_v34  ;;  %v1315_v6 = vmul.f32 0.010416667, %v1211_v28  ;;  %v1314_v31 = vmul.f32 0.010416667, %v1208_v37  ;;  %v1567_v22 = vmul.f32 %v5287_v59, %v1497_v43 }
 0x27f   :  { %v3998_v41 = vpop.eup %3997  ;;  %4011 = vrsqrt.f32 %v1376_v26  ;;  %3734 = vmatprep.mubr.msk.f32.mxu1 %vm115_vm0, %v1634_v10  ;;  %v1566_v35 = vmul.f32 %v5287_v59, %v1496_v30 }
 0x280   :  { %v4000_v49 = vpop.eup %3999  ;;  %v1379_v39 = vadd.f32 1e-05, %v1315_v6  ;;  %v1378_v15 = vadd.f32 1e-05, %v1314_v31  ;;  %3735 = vmatmul.mubr.msk.f32.gmra.mxu1 %vm115_vm0, %v1635_v63  ;;  %v1637_v27 = vadd.f32 %v5305_v11, %v1567_v22  ;;  %v1499_v32 = vmul.f32 %v3998_v41, %v5075_v52 }
 0x281   :  { %v1217_v60 = vpop.xlane.xlu1 %1216  ;;  %v1214_v48 = vpop.xlane.xlu0 %1213  ;;  %v1636_v58 = vadd.f32 %v5305_v11, %v1566_v35  ;;  %v1498_v29 = vmul.f32 %v4000_v49, %v5078_v54 }
 0x282   :  { %4013 = vrsqrt.f32 %v1379_v39  ;;  %v1317_v46 = vmul.f32 0.010416667, %v1217_v60  ;;  %v1316_v8 = vmul.f32 0.010416667, %v1214_v48  ;;  %v1569_v3 = vmul.f32 %v5287_v59, %v1499_v32 }
 0x283   :  { %v4002_v4 = vpop.eup %4001  ;;  %4015 = vrsqrt.f32 %v1378_v15  ;;  %3737 = vmatprep.mubr.msk.f32.mxu1 %vm115_vm0, %v1636_v58  ;;  %v1568_v20 = vmul.f32 %v5287_v59, %v1498_v29 }
 0x284   :  { %v4004_v24 = vpop.eup %4003  ;;  %v1381_v14 = vadd.f32 1e-05, %v1317_v46  ;;  %v1380_v52 = vadd.f32 1e-05, %v1316_v8  ;;  %3738 = vmatmul.mubr.msk.f32.gmra.mxu1 %vm115_vm0, %v1637_v27  ;;  %v1639_v51 = vadd.f32 %v5305_v11, %v1569_v3  ;;  %v1501_v54 = vmul.f32 %v4002_v4, %v5089_v25 }
 0x285   :  { %v1223_v33 = vpop.xlane.xlu1 %1222  ;;  %v1220_v53 = vpop.xlane.xlu0 %1219  ;;  %v1638_v34 = vadd.f32 %v5305_v11, %v1568_v20  ;;  %v1500_v26 = vmul.f32 %v4004_v24, %v5097_v23 }
 0x286   :  { %4017 = vrsqrt.f32 %v1381_v14  ;;  %v1319_v63 = vmul.f32 0.010416667, %v1223_v33  ;;  %v1318_v43 = vmul.f32 0.010416667, %v1220_v53  ;;  %v1571_v28 = vmul.f32 %v5287_v59, %v1501_v54 }
 0x287   :  { %v4006_v37 = vpop.eup %4005  ;;  %4019 = vrsqrt.f32 %v1380_v52  ;;  %3740 = vmatprep.mubr.msk.f32.mxu1 %vm115_vm0, %v1638_v34  ;;  %v1570_v10 = vmul.f32 %v5287_v59, %v1500_v26 }
 0x288   :  { %v4008_v30 = vpop.eup %4007  ;;  %v1383_v6 = vadd.f32 1e-05, %v1319_v63  ;;  %v1382_v25 = vadd.f32 1e-05, %v1318_v43  ;;  %3741 = vmatmul.mubr.msk.f32.gmra.mxu1 %vm115_vm0, %v1639_v51  ;;  %v1641_v31 = vadd.f32 %v5305_v11, %v1571_v28  ;;  %v1503_v23 = vmul.f32 %v4006_v37, %v5108_v45 }
 0x289   :  { %v1229_v22 = vpop.xlane.xlu1 %1228  ;;  %v1226_v41 = vpop.xlane.xlu0 %1225  ;;  %v1640_v35 = vadd.f32 %v5305_v11, %v1570_v10  ;;  %v1502_v49 = vmul.f32 %v4008_v30, %v5111_v38 }
 0x28a   :  { %4021 = vrsqrt.f32 %v1383_v6  ;;  %v1321_v39 = vmul.f32 0.010416667, %v1229_v22  ;;  %v1320_v15 = vmul.f32 0.010416667, %v1226_v41  ;;  %v1573_v27 = vmul.f32 %v5287_v59, %v1503_v23 }
 0x28b   :  { %v4010_v32 = vpop.eup %4009  ;;  %4023 = vrsqrt.f32 %v1382_v25  ;;  %3743 = vmatprep.mubr.msk.f32.mxu1 %vm115_vm0, %v1640_v35  ;;  %v1572_v60 = vmul.f32 %v5287_v59, %v1502_v49 }
 0x28c   :  { %v4012_v48 = vpop.eup %4011  ;;  %v1385_v58 = vadd.f32 1e-05, %v1321_v39  ;;  %v1384_v45 = vadd.f32 1e-05, %v1320_v15  ;;  %3744 = vmatmul.mubr.msk.f32.gmra.mxu1 %vm115_vm0, %v1641_v31  ;;  %v1643_v29 = vadd.f32 %v5305_v11, %v1573_v27  ;;  %v1505_v38 = vmul.f32 %v4010_v32, %v5119_v16 }
 0x28d   :  { %v1235_v46 = vpop.xlane.xlu1 %1234  ;;  %v1232_v8 = vpop.xlane.xlu0 %1231  ;;  %v1642_v3 = vadd.f32 %v5305_v11, %v1572_v60  ;;  %v1504_v4 = vmul.f32 %v4012_v48, %v5125_v57 }
 0x28e   :  { %4025 = vrsqrt.f32 %v1385_v58  ;;  %v1323_v20 = vmul.f32 0.010416667, %v1235_v46  ;;  %v1322_v24 = vmul.f32 0.010416667, %v1232_v8  ;;  %v1575_v14 = vmul.f32 %v5287_v59, %v1505_v38 }
 0x28f   :  { %v4014_v52 = vpop.eup %4013  ;;  %4027 = vrsqrt.f32 %v1384_v45  ;;  %3746 = vmatprep.mubr.msk.f32.mxu1 %vm115_vm0, %v1642_v3  ;;  %v1574_v51 = vmul.f32 %v5287_v59, %v1504_v4 }
 0x290   :  { %v4016_v54 = vpop.eup %4015  ;;  %v1387_v33 = vadd.f32 1e-05, %v1323_v20  ;;  %v1386_v16 = vadd.f32 1e-05, %v1322_v24  ;;  %3747 = vmatmul.mubr.msk.f32.gmra.mxu1 %vm115_vm0, %v1643_v29  ;;  %v1645_v53 = vadd.f32 %v5305_v11, %v1575_v14  ;;  %v1507_v57 = vmul.f32 %v4014_v52, %v5137_v0 }
 0x291   :  { %v1241_v34 = vpop.xlane.xlu1 %1240  ;;  %v1238_v26 = vpop.xlane.xlu0 %1237  ;;  %v1644_v63 = vadd.f32 %v5305_v11, %v1574_v51  ;;  %v1506_v43 = vmul.f32 %v4016_v54, %v5140_v5 }
 0x292   :  { %4029 = vrsqrt.f32 %v1387_v33  ;;  %v1325_v28 = vmul.f32 0.010416667, %v1241_v34  ;;  %v1324_v37 = vmul.f32 0.010416667, %v1238_v26  ;;  %v1577_v10 = vmul.f32 %v5287_v59, %v1507_v57 }
 0x293   :  { %v4018_v30 = vpop.eup %4017  ;;  %4031 = vrsqrt.f32 %v1386_v16  ;;  %3749 = vmatprep.mubr.msk.f32.mxu1 %vm115_vm0, %v1644_v63  ;;  %v1576_v6 = vmul.f32 %v5287_v59, %v1506_v43 }
 0x294   :  { %v4020_v25 = vpop.eup %4019  ;;  %v1389_v31 = vadd.f32 1e-05, %v1325_v28  ;;  %v1388_v0 = vadd.f32 1e-05, %v1324_v37  ;;  %3750 = vmatmul.mubr.msk.f32.gmra.mxu1 %vm115_vm0, %v1645_v53  ;;  %v1647_v23 = vadd.f32 %v5305_v11, %v1577_v10  ;;  %v1509_v5 = vmul.f32 %v4018_v30, %v5153_v21 }
 0x295   :  { %v1247_v22 = vpop.xlane.xlu1 %1246  ;;  %v1244_v41 = vpop.xlane.xlu0 %1243  ;;  %v1646_v35 = vadd.f32 %v5305_v11, %v1576_v6  ;;  %v1508_v49 = vmul.f32 %v4020_v25, %v5161_v36 }
 0x296   :  { %4033 = vrsqrt.f32 %v1389_v31  ;;  %v1327_v39 = vmul.f32 0.010416667, %v1247_v22  ;;  %v1326_v15 = vmul.f32 0.010416667, %v1244_v41  ;;  %v1579_v27 = vmul.f32 %v5287_v59, %v1509_v5 }
 0x297   :  { %v4022_v32 = vpop.eup %4021  ;;  %4035 = vrsqrt.f32 %v1388_v0  ;;  %3752 = vmatprep.mubr.msk.f32.mxu1 %vm115_vm0, %v1646_v35  ;;  %v1578_v60 = vmul.f32 %v5287_v59, %v1508_v49 }
 0x298   :  { %v4024_v48 = vpop.eup %4023  ;;  %v1391_v58 = vadd.f32 1e-05, %v1327_v39  ;;  %v1390_v21 = vadd.f32 1e-05, %v1326_v15  ;;  %3753 = vmatmul.mubr.msk.f32.gmra.mxu1 %vm115_vm0, %v1647_v23  ;;  %v1649_v45 = vadd.f32 %v5305_v11, %v1579_v27  ;;  %v1511_v36 = vmul.f32 %v4022_v32, %v5174_v1 }
 0x299   :  { %v1253_v29 = vpop.xlane.xlu1 %1252  ;;  %v1250_v38 = vpop.xlane.xlu0 %1249  ;;  %v1648_v46 = vadd.f32 %v5305_v11, %v1578_v60  ;;  %v1510_v8 = vmul.f32 %v4024_v48, %v5177_v7 }
 0x29a   :  { %4037 = vrsqrt.f32 %v1391_v58  ;;  %v1329_v3 = vmul.f32 0.010416667, %v1253_v29  ;;  %v1328_v4 = vmul.f32 0.010416667, %v1250_v38  ;;  %v1581_v20 = vmul.f32 %v5287_v59, %v1511_v36 }
 0x29b   :  { %v4026_v24 = vpop.eup %4025  ;;  %4039 = vrsqrt.f32 %v1390_v21  ;;  %3755 = vmatprep.mubr.msk.f32.mxu1 %vm115_vm0, %v1648_v46  ;;  %v1580_v14 = vmul.f32 %v5287_v59, %v1510_v8  ;;  %v5547_v59 = vld [vmem:[%s6272_s3] ss:$0 sm:$0xff] }
 0x29c   :  { %v4028_v52 = vpop.eup %4027  ;;  %v1393_v51 = vadd.f32 1e-05, %v1329_v3  ;;  %v1392_v1 = vadd.f32 1e-05, %v1328_v4  ;;  %3756 = vmatmul.mubr.msk.f32.gmra.mxu1 %vm115_vm0, %v1649_v45  ;;  %v1651_v54 = vadd.f32 %v5305_v11, %v1581_v20  ;;  %v1513_v7 = vmul.f32 %v4026_v24, %v5185_v56 }
 0x29d   :  { %v1259_v33 = vpop.xlane.xlu1 %1258  ;;  %v1256_v16 = vpop.xlane.xlu0 %1255  ;;  %v1650_v53 = vadd.f32 %v5305_v11, %v1580_v14  ;;  %v1512_v57 = vmul.f32 %v4028_v52, %v5193_v17 }
 0x29e   :  { %4041 = vrsqrt.f32 %v1393_v51  ;;  %v1331_v34 = vmul.f32 0.010416667, %v1259_v33  ;;  %v1330_v26 = vmul.f32 0.010416667, %v1256_v16  ;;  %v1583_v63 = vmul.f32 %v5547_v59, %v1513_v7 }
 0x29f   :  { %v4030_v43 = vpop.eup %4029  ;;  %4043 = vrsqrt.f32 %v1392_v1  ;;  %3758 = vmatprep.mubr.msk.f32.mxu1 %vm115_vm0, %v1650_v53  ;;  %v1582_v56 = vmul.f32 %v5547_v59, %v1512_v57 }
 0x2a0   :  { %v4032_v28 = vpop.eup %4031  ;;  %v1395_v37 = vadd.f32 1e-05, %v1331_v34  ;;  %v1394_v10 = vadd.f32 1e-05, %v1330_v26  ;;  %3759 = vmatmul.mubr.msk.f32.gmra.mxu1 %vm115_vm0, %v1651_v54  ;;  %v1653_v17 = vadd.f32 %v5305_v11, %v1583_v63  ;;  %v1515_v30 = vmul.f32 %v4030_v43, %v5201_v9  ;;  %v5564_v9 = vld [vmem:[%s6273_s4] ss:$0 sm:$0xff] }
 0x2a1   :  { %v1265_v6 = vpop.xlane.xlu1 %1264  ;;  %v1652_v25 = vadd.f32 %v5305_v11, %v1582_v56  ;;  %v1514_v31 = vmul.f32 %v4032_v28, %v5204_v13  ;;  %v1262_v23 = vpop.xlane.xlu0 %1261 }
 0x2a2   :  { %4045 = vrsqrt.f32 %v1395_v37  ;;  %v1333_v0 = vmul.f32 0.010416667, %v1265_v6  ;;  %v1585_v5 = vmul.f32 %v5547_v59, %v1515_v30  ;;  %v1332_v41 = vmul.f32 0.010416667, %v1262_v23 }
 0x2a3   :  { %v4034_v22 = vpop.eup %4033  ;;  %4047 = vrsqrt.f32 %v1394_v10  ;;  %3761 = vmatprep.mubr.msk.f32.mxu1 %vm115_vm0, %v1652_v25  ;;  %v1584_v35 = vmul.f32 %v5547_v59, %v1514_v31 }
 0x2a4   :  { %v4036_v49 = vpop.eup %4035  ;;  %v1397_v39 = vadd.f32 1e-05, %v1333_v0  ;;  %3762 = vmatmul.mubr.msk.f32.gmra.mxu1 %vm115_vm0, %v1653_v17  ;;  %v1655_v13 = vadd.f32 %v5564_v9, %v1585_v5  ;;  %v1517_v11 = vmul.f32 %v4034_v22, %v5222_v12  ;;  %v1396_v15 = vadd.f32 1e-05, %v1332_v41 }
 0x2a5   :  { %v1271_v27 = vpop.xlane.xlu1 %1270  ;;  %v1654_v32 = vadd.f32 %v5564_v9, %v1584_v35  ;;  %v1516_v60 = vmul.f32 %v4036_v49, %v5225_v42  ;;  %v1268_v58 = vpop.xlane.xlu0 %1267 }
 0x2a6   :  { %4049 = vrsqrt.f32 %v1397_v39  ;;  %v1335_v48 = vmul.f32 0.010416667, %v1271_v27  ;;  %v1587_v21 = vmul.f32 %v5547_v59, %v1517_v11  ;;  %v1334_v36 = vmul.f32 0.010416667, %v1268_v58 }
 0x2a7   :  { %v4038_v45 = vpop.eup %4037  ;;  %4051 = vrsqrt.f32 %v1396_v15  ;;  %3764 = vmatprep.mubr.msk.f32.mxu1 %vm115_vm0, %v1654_v32  ;;  %v1586_v29 = vmul.f32 %v5547_v59, %v1516_v60 }
 0x2a8   :  { %v4040_v38 = vpop.eup %4039  ;;  %v1399_v12 = vadd.f32 1e-05, %v1335_v48  ;;  %3765 = vmatmul.mubr.msk.f32.gmra.mxu1 %vm115_vm0, %v1655_v13  ;;  %v1657_v46 = vadd.f32 %v5564_v9, %v1587_v21  ;;  %v1519_v42 = vmul.f32 %v4038_v45, %v5237_v18  ;;  %v1398_v8 = vadd.f32 1e-05, %v1334_v36 }
 0x2a9   :  { %v1656_v3 = vadd.f32 %v5564_v9, %v1586_v29  ;;  %v1518_v4 = vmul.f32 %v4040_v38, %v5240_v44 }
 0x2aa   :  { %4053 = vrsqrt.f32 %v1399_v12  ;;  %v1589_v20 = vmul.f32 %v5547_v59, %v1519_v42 }
 0x2ab   :  { %v4042_v24 = vpop.eup %4041  ;;  %4055 = vrsqrt.f32 %v1398_v8  ;;  %3767 = vmatprep.mubr.msk.f32.mxu1 %vm115_vm0, %v1656_v3  ;;  %v1588_v14 = vmul.f32 %v5547_v59, %v1518_v4 }
 0x2ac   :  { %v4044_v52 = vpop.eup %4043  ;;  %3768 = vmatmul.mubr.msk.f32.gmra.mxu1 %vm115_vm0, %v1657_v46  ;;  %v1659_v51 = vadd.f32 %v5564_v9, %v1589_v20  ;;  %v1521_v18 = vmul.f32 %v4042_v24, %v5245_v19 }
 0x2ad   :  { %v1658_v1 = vadd.f32 %v5564_v9, %v1588_v14  ;;  %v1520_v44 = vmul.f32 %v4044_v52, %v5248_v55 }
 0x2ae   :  { %v1591_v54 = vmul.f32 %v5547_v59, %v1521_v18 }
 0x2af   :  { %v4046_v7 = vpop.eup %4045  ;;  %3770 = vmatprep.mubr.msk.f32.mxu1 %vm115_vm0, %v1658_v1  ;;  %v1590_v33 = vmul.f32 %v5547_v59, %v1520_v44 }
 0x2b0   :  { %v4048_v16 = vpop.eup %4047  ;;  %3771 = vmatmul.mubr.msk.f32.gmra.mxu1 %vm115_vm0, %v1659_v51  ;;  %v1661_v53 = vadd.f32 %v5564_v9, %v1591_v54  ;;  %v1523_v57 = vmul.f32 %v4046_v7, %v5259_v62 }
 0x2b1   :  { %v1660_v19 = vadd.f32 %v5564_v9, %v1590_v33  ;;  %v1522_v34 = vmul.f32 %v4048_v16, %v5266_v47 }
 0x2b2   :  { %v1593_v55 = vmul.f32 %v5547_v59, %v1523_v57 }
 0x2b3   :  { %v4050_v26 = vpop.eup %4049  ;;  %3773 = vmatprep.mubr.msk.f32.mxu1 %vm115_vm0, %v1660_v19  ;;  %v1592_v63 = vmul.f32 %v5547_v59, %v1522_v34 }
 0x2b4   :  { %v4052_v43 = vpop.eup %4051  ;;  %3774 = vmatmul.mubr.msk.f32.gmra.mxu1 %vm115_vm0, %v1661_v53  ;;  %v1663_v56 = vadd.f32 %v5564_v9, %v1593_v55  ;;  %v1525_v28 = vmul.f32 %v4050_v26, %v5280_v2 }
 0x2b5   :  { %v1662_v62 = vadd.f32 %v5564_v9, %v1592_v63  ;;  %v1524_v37 = vmul.f32 %v4052_v43, %v5290_v61 }
 0x2b6   :  { %v1595_v47 = vmul.f32 %v5547_v59, %v1525_v28 }
 0x2b7   :  { %v4054_v10 = vpop.eup %4053  ;;  %3776 = vmatprep.mubr.msk.f32.mxu1 %vm115_vm0, %v1662_v62  ;;  %v1594_v17 = vmul.f32 %v5547_v59, %v1524_v37 }
 0x2b8   :  { %v4056_v30 = vpop.eup %4055  ;;  %3777 = vmatmul.mubr.msk.f32.gmra.mxu1 %vm115_vm0, %v1663_v56  ;;  %v1665_v6 = vadd.f32 %v5564_v9, %v1595_v47  ;;  %v1527_v25 = vmul.f32 %v4054_v10, %v5297_v50  ;;  %v5621_v50 = vld [vmem:[%s6275_s6] ss:$0 sm:$0xff] }
 0x2b9   :  { %v1664_v2 = vadd.f32 %v5564_v9, %v1594_v17  ;;  %v1526_v31 = vmul.f32 %v4056_v30, %v5300_v40 }
 0x2ba   :  { %v1597_v61 = vmul.f32 %v5547_v59, %v1527_v25 }
 0x2bb   :  { %3779 = vmatprep.mubr.msk.f32.mxu1 %vm115_vm0, %v1664_v2  ;;  %v1596_v0 = vmul.f32 %v5547_v59, %v1526_v31 }
 0x2bc   :  { %3780 = vmatmul.mubr.msk.f32.gmra.mxu1 %vm115_vm0, %v1665_v6  ;;  %v1667_v23 = vadd.f32 %v5564_v9, %v1597_v61 }
 0x2bd   :  { %v1666_v5 = vadd.f32 %v5564_v9, %v1596_v0 }
 0x2bf   :  { %3782 = vmatprep.mubr.msk.f32.mxu1 %vm115_vm0, %v1666_v5 }
 0x2c0   :  { %3783 = vmatmul.mubr.msk.f32.gmra.mxu1 %vm115_vm0, %v1667_v23 }
 0x2d7   :  { %v3691_v40 = vpop.f32.mrf.mxu1 }
 0x2d8   :  { %v1951_v22 = vadd.f32 %v3691_v40, %v5621_v50 }
 0x2d9   :  { %v1945_v41 = vpop.f32.mrf.mxu1 }
 0x2da   :  { %v1946_v59 = vadd.f32 %v5621_v50, %v1945_v41  ;;  %v2265_v49 = vmax.f32 %v1951_v22, 0.0 }
 0x2dc   :  { %v2264_v35 = vmax.f32 %v1946_v59, 0.0 }
 0x2de   :  { %3809 = vmatprep.mubr.msk.f32.mxu0 %vm115_vm0, %v2264_v35 }
 0x2df   :  { %v3694_v39 = vpop.f32.mrf.mxu1  ;;  %3810 = vmatmul.mubr.msk.f32.vlgmr.msra.gmra.mxu0 %vm115_vm0, %v2265_v49 }
 0x2e0   :  { %v1961_v9 = vadd.f32 %v3694_v39, %v5621_v50 }
 0x2e1   :  { %v1955_v13 = vpop.f32.mrf.mxu1 }
 0x2e2   :  { %v1956_v11 = vadd.f32 %v5621_v50, %v1955_v13  ;;  %v2267_v32 = vmax.f32 %v1961_v9, 0.0 }
 0x2e4   :  { %v2266_v15 = vmax.f32 %v1956_v11, 0.0  ;;  %v3697_v27 = vpop.f32.mrf.mxu1 }
 0x2e5   :  { %v1971_v60 = vadd.f32 %v3697_v27, %v5621_v50 }
 0x2e6   :  { %v1965_v48 = vpop.f32.mrf.mxu1  ;;  %3812 = vmatprep.mubr.msk.f32.mxu0 %vm115_vm0, %v2266_v15 }
 0x2e7   :  { %v1966_v58 = vadd.f32 %v5621_v50, %v1965_v48  ;;  %3813 = vmatmul.mubr.msk.f32.gmra.mxu0 %vm115_vm0, %v2267_v32  ;;  %v2269_v45 = vmax.f32 %v1971_v60, 0.0 }
 0x2e9   :  { %v2268_v21 = vmax.f32 %v1966_v58, 0.0 }
 0x2eb   :  { %3815 = vmatprep.mubr.msk.f32.mxu0 %vm115_vm0, %v2268_v21 }
 0x2ec   :  { %v3700_v36 = vpop.f32.mrf.mxu1  ;;  %3816 = vmatmul.mubr.msk.f32.gmra.mxu0 %vm115_vm0, %v2269_v45 }
 0x2ed   :  { %v1981_v29 = vadd.f32 %v3700_v36, %v5621_v50 }
 0x2ee   :  { %v1975_v38 = vpop.f32.mrf.mxu1 }
 0x2ef   :  { %v1976_v12 = vadd.f32 %v5621_v50, %v1975_v38  ;;  %v2271_v42 = vmax.f32 %v1981_v29, 0.0 }
 0x2f1   :  { %v2270_v46 = vmax.f32 %v1976_v12, 0.0 }
 0x2f3   :  { %3818 = vmatprep.mubr.msk.f32.mxu0 %vm115_vm0, %v2270_v46 }
 0x2f4   :  { %v3703_v8 = vpop.f32.mrf.mxu1  ;;  %3819 = vmatmul.mubr.msk.f32.gmra.mxu0 %vm115_vm0, %v2271_v42 }
 0x2f5   :  { %v1991_v3 = vadd.f32 %v3703_v8, %v5621_v50 }
 0x2f6   :  { %v1985_v4 = vpop.f32.mrf.mxu1 }
 0x2f7   :  { %v1986_v20 = vadd.f32 %v5621_v50, %v1985_v4  ;;  %v2273_v14 = vmax.f32 %v1991_v3, 0.0 }
 0x2f9   :  { %v2272_v24 = vmax.f32 %v1986_v20, 0.0 }
 0x2fb   :  { %3821 = vmatprep.mubr.msk.f32.mxu0 %vm115_vm0, %v2272_v24 }
 0x2fc   :  { %v3706_v52 = vpop.f32.mrf.mxu1  ;;  %3822 = vmatmul.mubr.msk.f32.gmra.mxu0 %vm115_vm0, %v2273_v14 }
 0x2fd   :  { %v2001_v51 = vadd.f32 %v3706_v52, %v5621_v50 }
 0x2fe   :  { %v1995_v18 = vpop.f32.mrf.mxu1 }
 0x2ff   :  { %v1996_v1 = vadd.f32 %v5621_v50, %v1995_v18  ;;  %v2275_v54 = vmax.f32 %v2001_v51, 0.0 }
 0x301   :  { %v2274_v44 = vmax.f32 %v1996_v1, 0.0 }
 0x303   :  { %3824 = vmatprep.mubr.msk.f32.mxu0 %vm115_vm0, %v2274_v44 }
 0x304   :  { %v3709_v7 = vpop.f32.mrf.mxu1  ;;  %3825 = vmatmul.mubr.msk.f32.gmra.mxu0 %vm115_vm0, %v2275_v54 }
 0x305   :  { %v2011_v33 = vadd.f32 %v3709_v7, %v5621_v50 }
 0x306   :  { %v2005_v16 = vpop.f32.mrf.mxu1 }
 0x307   :  { %v2006_v53 = vadd.f32 %v5621_v50, %v2005_v16  ;;  %v2277_v19 = vmax.f32 %v2011_v33, 0.0 }
 0x309   :  { %v2276_v57 = vmax.f32 %v2006_v53, 0.0 }
 0x30b   :  { %3827 = vmatprep.mubr.msk.f32.mxu0 %vm115_vm0, %v2276_v57 }
 0x30c   :  { %v3712_v34 = vpop.f32.mrf.mxu1  ;;  %3828 = vmatmul.mubr.msk.f32.gmra.mxu0 %vm115_vm0, %v2277_v19 }
 0x30d   :  { %v2021_v55 = vadd.f32 %v3712_v34, %v5621_v50 }
 0x30e   :  { %v2015_v26 = vpop.f32.mrf.mxu1 }
 0x30f   :  { %v2016_v63 = vadd.f32 %v5621_v50, %v2015_v26  ;;  %v2279_v56 = vmax.f32 %v2021_v55, 0.0 }
 0x311   :  { %v2278_v43 = vmax.f32 %v2016_v63, 0.0 }
 0x313   :  { %3830 = vmatprep.mubr.msk.f32.mxu0 %vm115_vm0, %v2278_v43 }
 0x314   :  { %v3715_v28 = vpop.f32.mrf.mxu1  ;;  %3831 = vmatmul.mubr.msk.f32.gmra.mxu0 %vm115_vm0, %v2279_v56 }
 0x315   :  { %v2031_v62 = vadd.f32 %v3715_v28, %v5621_v50 }
 0x316   :  { %v2025_v37 = vpop.f32.mrf.mxu1 }
 0x317   :  { %v2026_v47 = vadd.f32 %v5621_v50, %v2025_v37  ;;  %v2281_v17 = vmax.f32 %v2031_v62, 0.0 }
 0x319   :  { %v2280_v10 = vmax.f32 %v2026_v47, 0.0 }
 0x31b   :  { %3833 = vmatprep.mubr.msk.f32.mxu0 %vm115_vm0, %v2280_v10 }
 0x31c   :  { %v3718_v30 = vpop.f32.mrf.mxu1  ;;  %3834 = vmatmul.mubr.msk.f32.gmra.mxu0 %vm115_vm0, %v2281_v17 }
 0x31d   :  { %v2041_v6 = vadd.f32 %v3718_v30, %v5621_v50 }
 0x31e   :  { %v2035_v25 = vpop.f32.mrf.mxu1 }
 0x31f   :  { %v2036_v2 = vadd.f32 %v5621_v50, %v2035_v25  ;;  %v2283_v61 = vmax.f32 %v2041_v6, 0.0 }
 0x321   :  { %v2282_v31 = vmax.f32 %v2036_v2, 0.0 }
 0x323   :  { %3836 = vmatprep.mubr.msk.f32.mxu0 %vm115_vm0, %v2282_v31 }
 0x324   :  { %v3721_v0 = vpop.f32.mrf.mxu1  ;;  %3837 = vmatmul.mubr.msk.f32.gmra.mxu0 %vm115_vm0, %v2283_v61 }
 0x325   :  { %v2051_v23 = vadd.f32 %v3721_v0, %v5621_v50 }
 0x326   :  { %v2045_v5 = vpop.f32.mrf.mxu1 }
 0x327   :  { %v2046_v40 = vadd.f32 %v5621_v50, %v2045_v5  ;;  %v2285_v41 = vmax.f32 %v2051_v23, 0.0 }
 0x329   :  { %v2284_v22 = vmax.f32 %v2046_v40, 0.0 }
 0x32b   :  { %3839 = vmatprep.mubr.msk.f32.mxu0 %vm115_vm0, %v2284_v22 }
 0x32c   :  { %v3724_v59 = vpop.f32.mrf.mxu1  ;;  %3840 = vmatmul.mubr.msk.f32.gmra.mxu0 %vm115_vm0, %v2285_v41 }
 0x32d   :  { %v2061_v35 = vadd.f32 %v3724_v59, %v5621_v50 }
 0x32e   :  { %v2055_v49 = vpop.f32.mrf.mxu1 }
 0x32f   :  { %v2056_v39 = vadd.f32 %v5621_v50, %v2055_v49  ;;  %v2287_v13 = vmax.f32 %v2061_v35, 0.0 }
 0x331   :  { %v2286_v9 = vmax.f32 %v2056_v39, 0.0 }
 0x333   :  { %3842 = vmatprep.mubr.msk.f32.mxu0 %vm115_vm0, %v2286_v9 }
 0x334   :  { %v3727_v11 = vpop.f32.mrf.mxu1  ;;  %3843 = vmatmul.mubr.msk.f32.gmra.mxu0 %vm115_vm0, %v2287_v13 }
 0x335   :  { %v2071_v15 = vadd.f32 %v3727_v11, %v5621_v50 }
 0x336   :  { %v2065_v27 = vpop.f32.mrf.mxu1 }
 0x337   :  { %v2066_v32 = vadd.f32 %v5621_v50, %v2065_v27  ;;  %v2289_v58 = vmax.f32 %v2071_v15, 0.0 }
 0x338   :  { %v3730_v60 = vpop.f32.mrf.mxu1 }
 0x339   :  { %v2288_v48 = vmax.f32 %v2066_v32, 0.0  ;;  %v2081_v21 = vadd.f32 %v3730_v60, %v5621_v50 }
 0x33a   :  { %v2075_v45 = vpop.f32.mrf.mxu1 }
 0x33b   :  { %v2076_v36 = vadd.f32 %v5621_v50, %v2075_v45  ;;  %3845 = vmatprep.mubr.msk.f32.mxu0 %vm115_vm0, %v2288_v48  ;;  %v2291_v12 = vmax.f32 %v2081_v21, 0.0 }
 0x33c   :  { %v3733_v29 = vpop.f32.mrf.mxu1  ;;  %3846 = vmatmul.mubr.msk.f32.gmra.mxu0 %vm115_vm0, %v2289_v58 }
 0x33d   :  { %v2290_v38 = vmax.f32 %v2076_v36, 0.0  ;;  %v2091_v46 = vadd.f32 %v3733_v29, %v5621_v50 }
 0x33e   :  { %v2085_v42 = vpop.f32.mrf.mxu1 }
 0x33f   :  { %v2086_v8 = vadd.f32 %v5621_v50, %v2085_v42  ;;  %3848 = vmatprep.mubr.msk.f32.mxu0 %vm115_vm0, %v2290_v38  ;;  %v2293_v20 = vmax.f32 %v2091_v46, 0.0 }
 0x340   :  { %v3736_v3 = vpop.f32.mrf.mxu1  ;;  %3849 = vmatmul.mubr.msk.f32.gmra.mxu0 %vm115_vm0, %v2291_v12 }
 0x341   :  { %v2292_v4 = vmax.f32 %v2086_v8, 0.0  ;;  %v2101_v24 = vadd.f32 %v3736_v3, %v5621_v50 }
 0x342   :  { %v2095_v14 = vpop.f32.mrf.mxu1 }
 0x343   :  { %v2096_v52 = vadd.f32 %v5621_v50, %v2095_v14  ;;  %3851 = vmatprep.mubr.msk.f32.mxu0 %vm115_vm0, %v2292_v4  ;;  %v2295_v1 = vmax.f32 %v2101_v24, 0.0 }
 0x344   :  { %v3739_v51 = vpop.f32.mrf.mxu1  ;;  %3852 = vmatmul.mubr.msk.f32.gmra.mxu0 %vm115_vm0, %v2293_v20 }
 0x345   :  { %v2294_v18 = vmax.f32 %v2096_v52, 0.0  ;;  %v2111_v44 = vadd.f32 %v3739_v51, %v5621_v50 }
 0x346   :  { %v2105_v54 = vpop.f32.mrf.mxu1 }
 0x347   :  { %v2106_v7 = vadd.f32 %v5621_v50, %v2105_v54  ;;  %3854 = vmatprep.mubr.msk.f32.mxu0 %vm115_vm0, %v2294_v18  ;;  %v2297_v53 = vmax.f32 %v2111_v44, 0.0 }
 0x348   :  { %v3742_v33 = vpop.f32.mrf.mxu1  ;;  %3855 = vmatmul.mubr.msk.f32.gmra.mxu0 %vm115_vm0, %v2295_v1 }
 0x349   :  { %v2296_v16 = vmax.f32 %v2106_v7, 0.0  ;;  %v2121_v57 = vadd.f32 %v3742_v33, %v5621_v50 }
 0x34a   :  { %v2115_v19 = vpop.f32.mrf.mxu1 }
 0x34b   :  { %v2116_v34 = vadd.f32 %v5621_v50, %v2115_v19  ;;  %3857 = vmatprep.mubr.msk.f32.mxu0 %vm115_vm0, %v2296_v16  ;;  %v2299_v63 = vmax.f32 %v2121_v57, 0.0 }
 0x34c   :  { %v3745_v55 = vpop.f32.mrf.mxu1  ;;  %3858 = vmatmul.mubr.msk.f32.gmra.mxu0 %vm115_vm0, %v2297_v53 }
 0x34d   :  { %v2298_v26 = vmax.f32 %v2116_v34, 0.0  ;;  %v2131_v43 = vadd.f32 %v3745_v55, %v5621_v50 }
 0x34e   :  { %v2125_v56 = vpop.f32.mrf.mxu1 }
 0x34f   :  { %v2126_v28 = vadd.f32 %v5621_v50, %v2125_v56  ;;  %3860 = vmatprep.mubr.msk.f32.mxu0 %vm115_vm0, %v2298_v26  ;;  %v2301_v47 = vmax.f32 %v2131_v43, 0.0 }
 0x350   :  { %v3748_v62 = vpop.f32.mrf.mxu1  ;;  %3861 = vmatmul.mubr.msk.f32.gmra.mxu0 %vm115_vm0, %v2299_v63 }
 0x351   :  { %v2300_v37 = vmax.f32 %v2126_v28, 0.0  ;;  %v2141_v10 = vadd.f32 %v3748_v62, %v5621_v50 }
 0x352   :  { %v2135_v17 = vpop.f32.mrf.mxu1 }
 0x353   :  { %v2136_v30 = vadd.f32 %v5621_v50, %v2135_v17  ;;  %3863 = vmatprep.mubr.msk.f32.mxu0 %vm115_vm0, %v2300_v37  ;;  %v2303_v2 = vmax.f32 %v2141_v10, 0.0 }
 0x354   :  { %v3751_v6 = vpop.f32.mrf.mxu1  ;;  %3864 = vmatmul.mubr.msk.f32.gmra.mxu0 %vm115_vm0, %v2301_v47 }
 0x355   :  { %v2302_v25 = vmax.f32 %v2136_v30, 0.0  ;;  %v2151_v31 = vadd.f32 %v3751_v6, %v5621_v50 }
 0x356   :  { %v2145_v61 = vpop.f32.mrf.mxu1 }
 0x357   :  { %v2146_v0 = vadd.f32 %v5621_v50, %v2145_v61  ;;  %3866 = vmatprep.mubr.msk.f32.mxu0 %vm115_vm0, %v2302_v25  ;;  %v2305_v40 = vmax.f32 %v2151_v31, 0.0 }
 0x358   :  { %v3754_v23 = vpop.f32.mrf.mxu1  ;;  %3867 = vmatmul.mubr.msk.f32.gmra.mxu0 %vm115_vm0, %v2303_v2 }
 0x359   :  { %v2304_v5 = vmax.f32 %v2146_v0, 0.0  ;;  %v2161_v22 = vadd.f32 %v3754_v23, %v5621_v50 }
 0x35a   :  { %v2155_v41 = vpop.f32.mrf.mxu1 }
 0x35b   :  { %v2156_v59 = vadd.f32 %v5621_v50, %v2155_v41  ;;  %3869 = vmatprep.mubr.msk.f32.mxu0 %vm115_vm0, %v2304_v5  ;;  %v2307_v39 = vmax.f32 %v2161_v22, 0.0 }
 0x35c   :  { %v3757_v35 = vpop.f32.mrf.mxu1  ;;  %3870 = vmatmul.mubr.msk.f32.gmra.mxu0 %vm115_vm0, %v2305_v40 }
 0x35d   :  { %v2306_v49 = vmax.f32 %v2156_v59, 0.0  ;;  %v2171_v9 = vadd.f32 %v3757_v35, %v5621_v50  ;;  %v5754_v35 = vld [vmem:[%s6276_s8] ss:$0 sm:$0xff] }
 0x35e   :  { %v2165_v13 = vpop.f32.mrf.mxu1 }
 0x35f   :  { %v2166_v11 = vadd.f32 %v5621_v50, %v2165_v13  ;;  %3872 = vmatprep.mubr.msk.f32.mxu0 %vm115_vm0, %v2306_v49  ;;  %v2309_v32 = vmax.f32 %v2171_v9, 0.0  ;;  %v4060_v13 = vld [vmem:[%s6269_s0] sm:$0xff] }
 0x360   :  { %v3760_v15 = vpop.f32.mrf.mxu1  ;;  %3873 = vmatmul.mubr.msk.f32.gmra.mxu0 %vm115_vm0, %v2307_v39 }
 0x361   :  { %v2308_v27 = vmax.f32 %v2166_v11, 0.0  ;;  %v2181_v60 = vadd.f32 %v3760_v15, %v5621_v50 }
 0x362   :  { %v2175_v48 = vpop.f32.mrf.mxu1 }
 0x363   :  { %v2176_v58 = vadd.f32 %v5621_v50, %v2175_v48  ;;  %3875 = vmatprep.mubr.msk.f32.mxu0 %vm115_vm0, %v2308_v27  ;;  %v2311_v36 = vmax.f32 %v2181_v60, 0.0 }
 0x364   :  { %v3763_v21 = vpop.f32.mrf.mxu1  ;;  %3876 = vmatmul.mubr.msk.f32.gmra.mxu0 %vm115_vm0, %v2309_v32  ;;  %v4061_v32 = vld [vmem:[%s6269_s0 + $0x18] sm:$0xff] }
 0x365   :  { %v2310_v45 = vmax.f32 %v2176_v58, 0.0  ;;  %v2191_v29 = vadd.f32 %v3763_v21, %v5621_v50  ;;  %v4062_v21 = vld [vmem:[%s6269_s0 + $0x10] sm:$0xff] }
 0x366   :  { %v2185_v38 = vpop.f32.mrf.mxu1 }
 0x367   :  { %v2186_v12 = vadd.f32 %v5621_v50, %v2185_v38  ;;  %3878 = vmatprep.mubr.msk.f32.mxu0 %vm115_vm0, %v2310_v45  ;;  %v2313_v8 = vmax.f32 %v2191_v29, 0.0  ;;  %v4063_v38 = vld [vmem:[%s6269_s0 + $0x28] sm:$0xff] }
 0x368   :  { %v3766_v46 = vpop.f32.mrf.mxu1  ;;  %3879 = vmatmul.mubr.msk.f32.gmra.mxu0 %vm115_vm0, %v2311_v36 }
 0x369   :  { %v2312_v42 = vmax.f32 %v2186_v12, 0.0  ;;  %v2201_v3 = vadd.f32 %v3766_v46, %v5621_v50 }
 0x36a   :  { %v2195_v4 = vpop.f32.mrf.mxu1 }
 0x36b   :  { %v2196_v20 = vadd.f32 %v5621_v50, %v2195_v4  ;;  %3881 = vmatprep.mubr.msk.f32.mxu0 %vm115_vm0, %v2312_v42  ;;  %v2315_v52 = vmax.f32 %v2201_v3, 0.0 }
 0x36c   :  { %v3769_v24 = vpop.f32.mrf.mxu1  ;;  %3882 = vmatmul.mubr.msk.f32.gmra.mxu0 %vm115_vm0, %v2313_v8  ;;  %v4064_v8 = vld [vmem:[%s6269_s0 + $0x20] sm:$0xff] }
 0x36d   :  { %v2314_v14 = vmax.f32 %v2196_v20, 0.0  ;;  %v2211_v51 = vadd.f32 %v3769_v24, %v5621_v50  ;;  %v4065_v24 = vld [vmem:[%s6269_s0 + $0x38] sm:$0xff] }
 0x36e   :  { %v2205_v18 = vpop.f32.mrf.mxu1 }
 0x36f   :  { %v2206_v1 = vadd.f32 %v5621_v50, %v2205_v18  ;;  %3884 = vmatprep.mubr.msk.f32.mxu0 %vm115_vm0, %v2314_v14  ;;  %v2317_v7 = vmax.f32 %v2211_v51, 0.0  ;;  %v4066_v18 = vld [vmem:[%s6269_s0 + $0x30] sm:$0xff] }
 0x370   :  { %v3772_v44 = vpop.f32.mrf.mxu1  ;;  %3885 = vmatmul.mubr.msk.f32.gmra.mxu0 %vm115_vm0, %v2315_v52 }
 0x371   :  { %v2316_v54 = vmax.f32 %v2206_v1, 0.0  ;;  %v2221_v33 = vadd.f32 %v3772_v44, %v5621_v50 }
 0x372   :  { %v2215_v16 = vpop.f32.mrf.mxu1 }
 0x373   :  { %v2216_v53 = vadd.f32 %v5621_v50, %v2215_v16  ;;  %3887 = vmatprep.mubr.msk.f32.mxu0 %vm115_vm0, %v2316_v54  ;;  %v2319_v34 = vmax.f32 %v2221_v33, 0.0 }
 0x374   :  { %v3775_v57 = vpop.f32.mrf.mxu1  ;;  %3888 = vmatmul.mubr.msk.f32.gmra.mxu0 %vm115_vm0, %v2317_v7  ;;  %v4067_v7 = vld [vmem:[%s6269_s0 + $0x48] sm:$0xff] }
 0x375   :  { %v2318_v19 = vmax.f32 %v2216_v53, 0.0  ;;  %v2231_v55 = vadd.f32 %v3775_v57, %v5621_v50  ;;  %v4068_v57 = vld [vmem:[%s6269_s0 + $0x40] sm:$0xff] }
 0x376   :  { %v2225_v26 = vpop.f32.mrf.mxu1 }
 0x377   :  { %v2226_v63 = vadd.f32 %v5621_v50, %v2225_v26  ;;  %3890 = vmatprep.mubr.msk.f32.mxu0 %vm115_vm0, %v2318_v19  ;;  %v2321_v28 = vmax.f32 %v2231_v55, 0.0  ;;  %v4069_v26 = vld [vmem:[%s6269_s0 + $0x58] sm:$0xff] }
 0x378   :  { %v3778_v43 = vpop.f32.mrf.mxu1  ;;  %3891 = vmatmul.mubr.msk.f32.gmra.mxu0 %vm115_vm0, %v2319_v34 }
 0x379   :  { %v2320_v56 = vmax.f32 %v2226_v63, 0.0  ;;  %v2241_v62 = vadd.f32 %v3778_v43, %v5621_v50 }
 0x37a   :  { %v2235_v37 = vpop.f32.mrf.mxu1 }
 0x37b   :  { %v2236_v47 = vadd.f32 %v5621_v50, %v2235_v37  ;;  %3893 = vmatprep.mubr.msk.f32.mxu0 %vm115_vm0, %v2320_v56  ;;  %v2323_v30 = vmax.f32 %v2241_v62, 0.0 }
 0x37c   :  { %v3781_v10 = vpop.f32.mrf.mxu1  ;;  %3894 = vmatmul.mubr.msk.f32.gmra.mxu0 %vm115_vm0, %v2321_v28  ;;  %v4070_v28 = vld [vmem:[%s6269_s0 + $0x50] sm:$0xff] }
 0x37d   :  { %v2322_v17 = vmax.f32 %v2236_v47, 0.0  ;;  %v2251_v6 = vadd.f32 %v3781_v10, %v5621_v50  ;;  %v4071_v10 = vld [vmem:[%s6269_s0 + $0x68] sm:$0xff] }
 0x37e   :  { %v2245_v25 = vpop.f32.mrf.mxu1 }
 0x37f   :  { %v2246_v2 = vadd.f32 %v5621_v50, %v2245_v25  ;;  %3896 = vmatprep.mubr.msk.f32.mxu0 %vm115_vm0, %v2322_v17  ;;  %v2325_v0 = vmax.f32 %v2251_v6, 0.0  ;;  %v4072_v25 = vld [vmem:[%s6269_s0 + $0x60] sm:$0xff] }
 0x380   :  { %v3784_v31 = vpop.f32.mrf.mxu1  ;;  %3897 = vmatmul.mubr.msk.f32.gmra.mxu0 %vm115_vm0, %v2323_v30 }
 0x381   :  { %v2324_v61 = vmax.f32 %v2246_v2, 0.0  ;;  %v2261_v23 = vadd.f32 %v3784_v31, %v5621_v50 }
 0x382   :  { %v2255_v5 = vpop.f32.mrf.mxu1 }
 0x383   :  { %v2256_v40 = vadd.f32 %v5621_v50, %v2255_v5  ;;  %3899 = vmatprep.mubr.msk.f32.mxu0 %vm115_vm0, %v2324_v61  ;;  %v2327_v41 = vmax.f32 %v2261_v23, 0.0  ;;  %v4059_v50 = vld [vmem:[%s6269_s0 + $0x8] sm:$0xff] }
 0x384   :  { %3900 = vmatmul.mubr.msk.f32.gmra.mxu0 %vm115_vm0, %v2325_v0  ;;  %v4073_v0 = vld [vmem:[%s6269_s0 + $0x78] sm:$0xff] }
 0x385   :  { %v2326_v22 = vmax.f32 %v2256_v40, 0.0 }
 0x387   :  { %3902 = vmatprep.mubr.msk.f32.mxu0 %vm115_vm0, %v2326_v22  ;;  %v4074_v22 = vld [vmem:[%s6269_s0 + $0x70] sm:$0xff] }
 0x388   :  { %3903 = vmatmul.mubr.msk.f32.gmra.mxu0 %vm115_vm0, %v2327_v41 }
 0x39f   :  { %v3811_v59 = vpop.f32.mrf.mxu0 }
 0x3a0   :  { %v2918_v49 = vadd.f32 %v4059_v50, %v3811_v59 }
 0x3a1   :  { %v2598_v39 = vpop.f32.mrf.mxu0 }
 0x3a2   :  { %v2989_v9 = vadd.f32 %v5754_v35, %v2918_v49  ;;  %v2917_v11 = vadd.f32 %v4060_v13, %v2598_v39  ;;  %v4075_v49 = vld [vmem:[%s6269_s0 + $0x88] sm:$0xff] }
 0x3a4   :  { %3053 = vst.msk [vmem:[%s6277_s9 + $0x8] sm:$0xff] %vm115_vm0, %v2989_v9  ;;  %v2988_v15 = vadd.f32 %v5754_v35, %v2917_v11  ;;  %v4076_v11 = vld [vmem:[%s6269_s0 + $0x80] sm:$0xff] }
 0x3a6   :  { %3052 = vst.msk [vmem:[%s6277_s9] sm:$0xff] %vm115_vm0, %v2988_v15 }
 0x3a7   :  { %v3814_v27 = vpop.f32.mrf.mxu0 }
 0x3a8   :  { %v2920_v60 = vadd.f32 %v4061_v32, %v3814_v27 }
 0x3a9   :  { %v2608_v48 = vpop.f32.mrf.mxu0 }
 0x3aa   :  { %v2991_v58 = vadd.f32 %v5754_v35, %v2920_v60  ;;  %v2919_v45 = vadd.f32 %v4062_v21, %v2608_v48  ;;  %v4077_v60 = vld [vmem:[%s6269_s0 + $0x98] sm:$0xff] }
 0x3ac   :  { %3055 = vst.msk [vmem:[%s6277_s9 + $0x18] sm:$0xff] %vm115_vm0, %v2991_v58  ;;  %v2990_v36 = vadd.f32 %v5754_v35, %v2919_v45  ;;  %v3817_v29 = vpop.f32.mrf.mxu0  ;;  %v4078_v45 = vld [vmem:[%s6269_s0 + $0x90] sm:$0xff] }
 0x3ad   :  { %v2922_v12 = vadd.f32 %v4063_v38, %v3817_v29 }
 0x3ae   :  { %3054 = vst.msk [vmem:[%s6277_s9 + $0x10] sm:$0xff] %vm115_vm0, %v2990_v36  ;;  %v2618_v46 = vpop.f32.mrf.mxu0 }
 0x3af   :  { %v2993_v42 = vadd.f32 %v5754_v35, %v2922_v12  ;;  %v2921_v3 = vadd.f32 %v4064_v8, %v2618_v46  ;;  %v4079_v12 = vld [vmem:[%s6269_s0 + $0xa8] sm:$0xff] }
 0x3b1   :  { %3057 = vst.msk [vmem:[%s6277_s9 + $0x28] sm:$0xff] %vm115_vm0, %v2993_v42  ;;  %v2992_v4 = vadd.f32 %v5754_v35, %v2921_v3  ;;  %v4080_v3 = vld [vmem:[%s6269_s0 + $0xa0] sm:$0xff] }
 0x3b3   :  { %3056 = vst.msk [vmem:[%s6277_s9 + $0x20] sm:$0xff] %vm115_vm0, %v2992_v4 }
 0x3b4   :  { %v3820_v20 = vpop.f32.mrf.mxu0 }
 0x3b5   :  { %v2924_v14 = vadd.f32 %v4065_v24, %v3820_v20 }
 0x3b6   :  { %v2628_v52 = vpop.f32.mrf.mxu0 }
 0x3b7   :  { %v2995_v51 = vadd.f32 %v5754_v35, %v2924_v14  ;;  %v2923_v1 = vadd.f32 %v4066_v18, %v2628_v52  ;;  %v4081_v14 = vld [vmem:[%s6269_s0 + $0xb8] sm:$0xff] }
 0x3b9   :  { %3059 = vst.msk [vmem:[%s6277_s9 + $0x38] sm:$0xff] %vm115_vm0, %v2995_v51  ;;  %v2994_v44 = vadd.f32 %v5754_v35, %v2923_v1  ;;  %v4082_v1 = vld [vmem:[%s6269_s0 + $0xb0] sm:$0xff] }
 0x3bb   :  { %3058 = vst.msk [vmem:[%s6277_s9 + $0x30] sm:$0xff] %vm115_vm0, %v2994_v44 }
 0x3bc   :  { %v3823_v54 = vpop.f32.mrf.mxu0 }
 0x3bd   :  { %v2926_v33 = vadd.f32 %v4067_v7, %v3823_v54 }
 0x3be   :  { %v2638_v16 = vpop.f32.mrf.mxu0 }
 0x3bf   :  { %v2997_v53 = vadd.f32 %v5754_v35, %v2926_v33  ;;  %v2925_v19 = vadd.f32 %v4068_v57, %v2638_v16  ;;  %v4083_v33 = vld [vmem:[%s6269_s0 + $0xc8] sm:$0xff] }
 0x3c1   :  { %3061 = vst.msk [vmem:[%s6277_s9 + $0x48] sm:$0xff] %vm115_vm0, %v2997_v53  ;;  %v2996_v34 = vadd.f32 %v5754_v35, %v2925_v19  ;;  %v4084_v19 = vld [vmem:[%s6269_s0 + $0xc0] sm:$0xff] }
 0x3c3   :  { %3060 = vst.msk [vmem:[%s6277_s9 + $0x40] sm:$0xff] %vm115_vm0, %v2996_v34 }
 0x3c4   :  { %v3826_v55 = vpop.f32.mrf.mxu0 }
 0x3c5   :  { %v2928_v63 = vadd.f32 %v4069_v26, %v3826_v55 }
 0x3c6   :  { %v2648_v43 = vpop.f32.mrf.mxu0 }
 0x3c7   :  { %v2999_v56 = vadd.f32 %v5754_v35, %v2928_v63  ;;  %v2927_v62 = vadd.f32 %v4070_v28, %v2648_v43  ;;  %v4085_v63 = vld [vmem:[%s6269_s0 + $0xd8] sm:$0xff] }
 0x3c9   :  { %3063 = vst.msk [vmem:[%s6277_s9 + $0x58] sm:$0xff] %vm115_vm0, %v2999_v56  ;;  %v2998_v37 = vadd.f32 %v5754_v35, %v2927_v62  ;;  %v4086_v62 = vld [vmem:[%s6269_s0 + $0xd0] sm:$0xff] }
 0x3cb   :  { %3062 = vst.msk [vmem:[%s6277_s9 + $0x50] sm:$0xff] %vm115_vm0, %v2998_v37 }
 0x3cc   :  { %v3829_v47 = vpop.f32.mrf.mxu0 }
 0x3cd   :  { %v2930_v17 = vadd.f32 %v4071_v10, %v3829_v47 }
 0x3ce   :  { %v2658_v30 = vpop.f32.mrf.mxu0 }
 0x3cf   :  { %v3001_v6 = vadd.f32 %v5754_v35, %v2930_v17  ;;  %v2929_v2 = vadd.f32 %v4072_v25, %v2658_v30  ;;  %v4087_v17 = vld [vmem:[%s6269_s0 + $0xe8] sm:$0xff] }
 0x3d1   :  { %3065 = vst.msk [vmem:[%s6277_s9 + $0x68] sm:$0xff] %vm115_vm0, %v3001_v6  ;;  %v3000_v31 = vadd.f32 %v5754_v35, %v2929_v2  ;;  %v4088_v2 = vld [vmem:[%s6269_s0 + $0xe0] sm:$0xff] }
 0x3d3   :  { %3064 = vst.msk [vmem:[%s6277_s9 + $0x60] sm:$0xff] %vm115_vm0, %v3000_v31 }
 0x3d4   :  { %v3832_v61 = vpop.f32.mrf.mxu0 }
 0x3d5   :  { %v2932_v23 = vadd.f32 %v4073_v0, %v3832_v61 }
 0x3d6   :  { %v2668_v5 = vpop.f32.mrf.mxu0 }
 0x3d7   :  { %v3003_v40 = vadd.f32 %v5754_v35, %v2932_v23  ;;  %v2931_v41 = vadd.f32 %v4074_v22, %v2668_v5  ;;  %v4089_v23 = vld [vmem:[%s6269_s0 + $0xf8] sm:$0xff] }
 0x3d9   :  { %3067 = vst.msk [vmem:[%s6277_s9 + $0x78] sm:$0xff] %vm115_vm0, %v3003_v40  ;;  %v3002_v59 = vadd.f32 %v5754_v35, %v2931_v41  ;;  %v4090_v41 = vld [vmem:[%s6269_s0 + $0xf0] sm:$0xff] }
 0x3db   :  { %3066 = vst.msk [vmem:[%s6277_s9 + $0x70] sm:$0xff] %vm115_vm0, %v3002_v59 }
 0x3dc   :  { %v3835_v50 = vpop.f32.mrf.mxu0 }
 0x3dd   :  { %v2934_v39 = vadd.f32 %v4075_v49, %v3835_v50 }
 0x3de   :  { %v2678_v9 = vpop.f32.mrf.mxu0 }
 0x3df   :  { %v3005_v13 = vadd.f32 %v5754_v35, %v2934_v39  ;;  %v2933_v15 = vadd.f32 %v4076_v11, %v2678_v9  ;;  %v4091_v39 = vld [vmem:[%s6269_s0 + $0x108] sm:$0xff] }
 0x3e1   :  { %3069 = vst.msk [vmem:[%s6277_s9 + $0x88] sm:$0xff] %vm115_vm0, %v3005_v13  ;;  %v3004_v27 = vadd.f32 %v5754_v35, %v2933_v15  ;;  %v4092_v15 = vld [vmem:[%s6269_s0 + $0x100] sm:$0xff] }
 0x3e3   :  { %3068 = vst.msk [vmem:[%s6277_s9 + $0x80] sm:$0xff] %vm115_vm0, %v3004_v27 }
 0x3e4   :  { %v3838_v32 = vpop.f32.mrf.mxu0 }
 0x3e5   :  { %v2936_v48 = vadd.f32 %v4077_v60, %v3838_v32 }
 0x3e6   :  { %v2688_v58 = vpop.f32.mrf.mxu0 }
 0x3e7   :  { %v3007_v21 = vadd.f32 %v5754_v35, %v2936_v48  ;;  %v2935_v36 = vadd.f32 %v4078_v45, %v2688_v58  ;;  %v4093_v48 = vld [vmem:[%s6269_s0 + $0x118] sm:$0xff] }
 0x3e9   :  { %3071 = vst.msk [vmem:[%s6277_s9 + $0x98] sm:$0xff] %vm115_vm0, %v3007_v21  ;;  %v3006_v29 = vadd.f32 %v5754_v35, %v2935_v36  ;;  %v4094_v36 = vld [vmem:[%s6269_s0 + $0x110] sm:$0xff] }
 0x3eb   :  { %3070 = vst.msk [vmem:[%s6277_s9 + $0x90] sm:$0xff] %vm115_vm0, %v3006_v29 }
 0x3ec   :  { %v3841_v38 = vpop.f32.mrf.mxu0 }
 0x3ed   :  { %v2938_v46 = vadd.f32 %v4079_v12, %v3841_v38 }
 0x3ee   :  { %v2698_v42 = vpop.f32.mrf.mxu0 }
 0x3ef   :  { %v3009_v8 = vadd.f32 %v5754_v35, %v2938_v46  ;;  %v2937_v4 = vadd.f32 %v4080_v3, %v2698_v42  ;;  %v4095_v46 = vld [vmem:[%s6269_s0 + $0x128] sm:$0xff] }
 0x3f1   :  { %3073 = vst.msk [vmem:[%s6277_s9 + $0xa8] sm:$0xff] %vm115_vm0, %v3009_v8  ;;  %v3008_v20 = vadd.f32 %v5754_v35, %v2937_v4  ;;  %v4096_v4 = vld [vmem:[%s6269_s0 + $0x120] sm:$0xff] }
 0x3f3   :  { %3072 = vst.msk [vmem:[%s6277_s9 + $0xa0] sm:$0xff] %vm115_vm0, %v3008_v20 }
 0x3f4   :  { %v3844_v24 = vpop.f32.mrf.mxu0 }
 0x3f5   :  { %v2940_v52 = vadd.f32 %v4081_v14, %v3844_v24 }
 0x3f6   :  { %v2708_v51 = vpop.f32.mrf.mxu0 }
 0x3f7   :  { %v3011_v18 = vadd.f32 %v5754_v35, %v2940_v52  ;;  %v2939_v44 = vadd.f32 %v4082_v1, %v2708_v51  ;;  %v4097_v52 = vld [vmem:[%s6269_s0 + $0x138] sm:$0xff] }
 0x3f9   :  { %3075 = vst.msk [vmem:[%s6277_s9 + $0xb8] sm:$0xff] %vm115_vm0, %v3011_v18  ;;  %v3010_v54 = vadd.f32 %v5754_v35, %v2939_v44  ;;  %v4098_v44 = vld [vmem:[%s6269_s0 + $0x130] sm:$0xff] }
 0x3fb   :  { %3074 = vst.msk [vmem:[%s6277_s9 + $0xb0] sm:$0xff] %vm115_vm0, %v3010_v54 }
 0x3fc   :  { %v3847_v7 = vpop.f32.mrf.mxu0 }
 0x3fd   :  { %v2942_v16 = vadd.f32 %v4083_v33, %v3847_v7 }
 0x3fe   :  { %v2718_v53 = vpop.f32.mrf.mxu0 }
 0x3ff   :  { %v3013_v57 = vadd.f32 %v5754_v35, %v2942_v16  ;;  %v2941_v34 = vadd.f32 %v4084_v19, %v2718_v53  ;;  %v4099_v16 = vld [vmem:[%s6269_s0 + $0x148] sm:$0xff] }
 0x400   :  { %v3850_v55 = vpop.f32.mrf.mxu0 }
 0x401   :  { %3077 = vst.msk [vmem:[%s6277_s9 + $0xc8] sm:$0xff] %vm115_vm0, %v3013_v57  ;;  %v3012_v26 = vadd.f32 %v5754_v35, %v2941_v34  ;;  %v2944_v43 = vadd.f32 %v4085_v63, %v3850_v55  ;;  %v4100_v34 = vld [vmem:[%s6269_s0 + $0x140] sm:$0xff] }
 0x402   :  { %v2728_v56 = vpop.f32.mrf.mxu0 }
 0x403   :  { %3076 = vst.msk [vmem:[%s6277_s9 + $0xc0] sm:$0xff] %vm115_vm0, %v3012_v26  ;;  %v3015_v28 = vadd.f32 %v5754_v35, %v2944_v43  ;;  %v2943_v37 = vadd.f32 %v4086_v62, %v2728_v56  ;;  %v4101_v43 = vld [vmem:[%s6269_s0 + $0x158] sm:$0xff] }
 0x404   :  { %v3853_v47 = vpop.f32.mrf.mxu0 }
 0x405   :  { %3079 = vst.msk [vmem:[%s6277_s9 + $0xd8] sm:$0xff] %vm115_vm0, %v3015_v28  ;;  %v3014_v10 = vadd.f32 %v5754_v35, %v2943_v37  ;;  %v2946_v30 = vadd.f32 %v4087_v17, %v3853_v47  ;;  %v4102_v37 = vld [vmem:[%s6269_s0 + $0x150] sm:$0xff] }
 0x406   :  { %v2738_v6 = vpop.f32.mrf.mxu0 }
 0x407   :  { %3078 = vst.msk [vmem:[%s6277_s9 + $0xd0] sm:$0xff] %vm115_vm0, %v3014_v10  ;;  %v3017_v25 = vadd.f32 %v5754_v35, %v2946_v30  ;;  %v2945_v31 = vadd.f32 %v4088_v2, %v2738_v6  ;;  %v4103_v30 = vld [vmem:[%s6269_s0 + $0x168] sm:$0xff] }
 0x408   :  { %v3856_v61 = vpop.f32.mrf.mxu0 }
 0x409   :  { %3081 = vst.msk [vmem:[%s6277_s9 + $0xe8] sm:$0xff] %vm115_vm0, %v3017_v25  ;;  %v3016_v0 = vadd.f32 %v5754_v35, %v2945_v31  ;;  %v2948_v5 = vadd.f32 %v4089_v23, %v3856_v61  ;;  %v4104_v31 = vld [vmem:[%s6269_s0 + $0x160] sm:$0xff] }
 0x40a   :  { %v2748_v40 = vpop.f32.mrf.mxu0 }
 0x40b   :  { %3080 = vst.msk [vmem:[%s6277_s9 + $0xe0] sm:$0xff] %vm115_vm0, %v3016_v0  ;;  %v3019_v22 = vadd.f32 %v5754_v35, %v2948_v5  ;;  %v2947_v59 = vadd.f32 %v4090_v41, %v2748_v40  ;;  %v4105_v5 = vld [vmem:[%s6269_s0 + $0x178] sm:$0xff] }
 0x40c   :  { %v3859_v50 = vpop.f32.mrf.mxu0 }
 0x40d   :  { %3083 = vst.msk [vmem:[%s6277_s9 + $0xf8] sm:$0xff] %vm115_vm0, %v3019_v22  ;;  %v3018_v49 = vadd.f32 %v5754_v35, %v2947_v59  ;;  %v2950_v9 = vadd.f32 %v4091_v39, %v3859_v50  ;;  %v4106_v59 = vld [vmem:[%s6269_s0 + $0x170] sm:$0xff] }
 0x40e   :  { %v2758_v13 = vpop.f32.mrf.mxu0 }
 0x40f   :  { %3082 = vst.msk [vmem:[%s6277_s9 + $0xf0] sm:$0xff] %vm115_vm0, %v3018_v49  ;;  %v3021_v11 = vadd.f32 %v5754_v35, %v2950_v9  ;;  %v2949_v27 = vadd.f32 %v4092_v15, %v2758_v13  ;;  %v4107_v9 = vld [vmem:[%s6269_s0 + $0x188] sm:$0xff] }
 0x410   :  { %v3862_v32 = vpop.f32.mrf.mxu0 }
 0x411   :  { %3085 = vst.msk [vmem:[%s6277_s9 + $0x108] sm:$0xff] %vm115_vm0, %v3021_v11  ;;  %v3020_v60 = vadd.f32 %v5754_v35, %v2949_v27  ;;  %v2952_v58 = vadd.f32 %v4093_v48, %v3862_v32  ;;  %v4108_v27 = vld [vmem:[%s6269_s0 + $0x180] sm:$0xff] }
 0x412   :  { %v2768_v21 = vpop.f32.mrf.mxu0 }
 0x413   :  { %3084 = vst.msk [vmem:[%s6277_s9 + $0x100] sm:$0xff] %vm115_vm0, %v3020_v60  ;;  %v3023_v45 = vadd.f32 %v5754_v35, %v2952_v58  ;;  %v2951_v29 = vadd.f32 %v4094_v36, %v2768_v21  ;;  %v4109_v58 = vld [vmem:[%s6269_s0 + $0x198] sm:$0xff] }
 0x414   :  { %v3865_v38 = vpop.f32.mrf.mxu0 }
 0x415   :  { %3087 = vst.msk [vmem:[%s6277_s9 + $0x118] sm:$0xff] %vm115_vm0, %v3023_v45  ;;  %v3022_v12 = vadd.f32 %v5754_v35, %v2951_v29  ;;  %v2954_v42 = vadd.f32 %v4095_v46, %v3865_v38  ;;  %v4110_v29 = vld [vmem:[%s6269_s0 + $0x190] sm:$0xff] }
 0x416   :  { %v2778_v8 = vpop.f32.mrf.mxu0 }
 0x417   :  { %3086 = vst.msk [vmem:[%s6277_s9 + $0x110] sm:$0xff] %vm115_vm0, %v3022_v12  ;;  %v3025_v3 = vadd.f32 %v5754_v35, %v2954_v42  ;;  %v2953_v20 = vadd.f32 %v4096_v4, %v2778_v8  ;;  %v4111_v42 = vld [vmem:[%s6269_s0 + $0x1a8] sm:$0xff] }
 0x418   :  { %v3868_v24 = vpop.f32.mrf.mxu0 }
 0x419   :  { %3089 = vst.msk [vmem:[%s6277_s9 + $0x128] sm:$0xff] %vm115_vm0, %v3025_v3  ;;  %v3024_v14 = vadd.f32 %v5754_v35, %v2953_v20  ;;  %v2956_v51 = vadd.f32 %v4097_v52, %v3868_v24  ;;  %v4112_v20 = vld [vmem:[%s6269_s0 + $0x1a0] sm:$0xff] }
 0x41a   :  { %v2788_v18 = vpop.f32.mrf.mxu0 }
 0x41b   :  { %3088 = vst.msk [vmem:[%s6277_s9 + $0x120] sm:$0xff] %vm115_vm0, %v3024_v14  ;;  %v3027_v1 = vadd.f32 %v5754_v35, %v2956_v51  ;;  %v2955_v54 = vadd.f32 %v4098_v44, %v2788_v18  ;;  %v4113_v51 = vld [vmem:[%s6269_s0 + $0x1b8] sm:$0xff] }
 0x41c   :  { %v3871_v7 = vpop.f32.mrf.mxu0 }
 0x41d   :  { %3091 = vst.msk [vmem:[%s6277_s9 + $0x138] sm:$0xff] %vm115_vm0, %v3027_v1  ;;  %v3026_v33 = vadd.f32 %v5754_v35, %v2955_v54  ;;  %v2958_v53 = vadd.f32 %v4099_v16, %v3871_v7  ;;  %v4114_v54 = vld [vmem:[%s6269_s0 + $0x1b0] sm:$0xff] }
 0x41e   :  { %v2798_v57 = vpop.f32.mrf.mxu0 }
 0x41f   :  { %3090 = vst.msk [vmem:[%s6277_s9 + $0x130] sm:$0xff] %vm115_vm0, %v3026_v33  ;;  %v3029_v19 = vadd.f32 %v5754_v35, %v2958_v53  ;;  %v2957_v55 = vadd.f32 %v4100_v34, %v2798_v57  ;;  %v4115_v53 = vld [vmem:[%s6269_s0 + $0x1c8] sm:$0xff] }
 0x420   :  { %v3874_v26 = vpop.f32.mrf.mxu0 }
 0x421   :  { %3093 = vst.msk [vmem:[%s6277_s9 + $0x148] sm:$0xff] %vm115_vm0, %v3029_v19  ;;  %v3028_v63 = vadd.f32 %v5754_v35, %v2957_v55  ;;  %v2960_v56 = vadd.f32 %v4101_v43, %v3874_v26  ;;  %v4116_v55 = vld [vmem:[%s6269_s0 + $0x1c0] sm:$0xff] }
 0x422   :  { %v2808_v28 = vpop.f32.mrf.mxu0 }
 0x423   :  { %3092 = vst.msk [vmem:[%s6277_s9 + $0x140] sm:$0xff] %vm115_vm0, %v3028_v63  ;;  %v3031_v62 = vadd.f32 %v5754_v35, %v2960_v56  ;;  %v2959_v47 = vadd.f32 %v4102_v37, %v2808_v28  ;;  %v4117_v56 = vld [vmem:[%s6269_s0 + $0x1d8] sm:$0xff] }
 0x424   :  { %v3877_v10 = vpop.f32.mrf.mxu0 }
 0x425   :  { %3095 = vst.msk [vmem:[%s6277_s9 + $0x158] sm:$0xff] %vm115_vm0, %v3031_v62  ;;  %v3030_v17 = vadd.f32 %v5754_v35, %v2959_v47  ;;  %v2962_v6 = vadd.f32 %v4103_v30, %v3877_v10  ;;  %v4118_v47 = vld [vmem:[%s6269_s0 + $0x1d0] sm:$0xff] }
 0x426   :  { %v2818_v25 = vpop.f32.mrf.mxu0 }
 0x427   :  { %3094 = vst.msk [vmem:[%s6277_s9 + $0x150] sm:$0xff] %vm115_vm0, %v3030_v17  ;;  %v3033_v2 = vadd.f32 %v5754_v35, %v2962_v6  ;;  %v2961_v61 = vadd.f32 %v4104_v31, %v2818_v25  ;;  %v4119_v6 = vld [vmem:[%s6269_s0 + $0x1e8] sm:$0xff] }
 0x428   :  { %v3880_v0 = vpop.f32.mrf.mxu0 }
 0x429   :  { %3097 = vst.msk [vmem:[%s6277_s9 + $0x168] sm:$0xff] %vm115_vm0, %v3033_v2  ;;  %v3032_v23 = vadd.f32 %v5754_v35, %v2961_v61  ;;  %v2964_v40 = vadd.f32 %v4105_v5, %v3880_v0  ;;  %v4120_v61 = vld [vmem:[%s6269_s0 + $0x1e0] sm:$0xff] }
 0x42a   :  { %v2828_v22 = vpop.f32.mrf.mxu0 }
 0x42b   :  { %3096 = vst.msk [vmem:[%s6277_s9 + $0x160] sm:$0xff] %vm115_vm0, %v3032_v23  ;;  %v3035_v41 = vadd.f32 %v5754_v35, %v2964_v40  ;;  %v2963_v50 = vadd.f32 %v4106_v59, %v2828_v22  ;;  %v4121_v40 = vld [vmem:[%s6269_s0 + $0x1f8] sm:$0xff] }
 0x42c   :  { %v3883_v49 = vpop.f32.mrf.mxu0 }
 0x42d   :  { %3099 = vst.msk [vmem:[%s6277_s9 + $0x178] sm:$0xff] %vm115_vm0, %v3035_v41  ;;  %v3034_v39 = vadd.f32 %v5754_v35, %v2963_v50  ;;  %v2966_v13 = vadd.f32 %v4107_v9, %v3883_v49  ;;  %v4122_v50 = vld [vmem:[%s6269_s0 + $0x1f0] sm:$0xff] }
 0x42e   :  { %v2838_v11 = vpop.f32.mrf.mxu0 }
 0x42f   :  { %3098 = vst.msk [vmem:[%s6277_s9 + $0x170] sm:$0xff] %vm115_vm0, %v3034_v39  ;;  %v3037_v15 = vadd.f32 %v5754_v35, %v2966_v13  ;;  %v2965_v32 = vadd.f32 %v4108_v27, %v2838_v11 }
 0x430   :  { %v3886_v60 = vpop.f32.mrf.mxu0 }
 0x431   :  { %3101 = vst.msk [vmem:[%s6277_s9 + $0x188] sm:$0xff] %vm115_vm0, %v3037_v15  ;;  %v3036_v48 = vadd.f32 %v5754_v35, %v2965_v32  ;;  %v2968_v21 = vadd.f32 %v4109_v58, %v3886_v60 }
 0x432   :  { %v2848_v45 = vpop.f32.mrf.mxu0 }
 0x433   :  { %3100 = vst.msk [vmem:[%s6277_s9 + $0x180] sm:$0xff] %vm115_vm0, %v3036_v48  ;;  %v3039_v36 = vadd.f32 %v5754_v35, %v2968_v21  ;;  %v2967_v38 = vadd.f32 %v4110_v29, %v2848_v45 }
 0x434   :  { %v3889_v12 = vpop.f32.mrf.mxu0 }
 0x435   :  { %3103 = vst.msk [vmem:[%s6277_s9 + $0x198] sm:$0xff] %vm115_vm0, %v3039_v36  ;;  %v3038_v46 = vadd.f32 %v5754_v35, %v2967_v38  ;;  %v2970_v8 = vadd.f32 %v4111_v42, %v3889_v12 }
 0x436   :  { %v2858_v3 = vpop.f32.mrf.mxu0 }
 0x437   :  { %3102 = vst.msk [vmem:[%s6277_s9 + $0x190] sm:$0xff] %vm115_vm0, %v3038_v46  ;;  %v3041_v4 = vadd.f32 %v5754_v35, %v2970_v8  ;;  %v2969_v24 = vadd.f32 %v4112_v20, %v2858_v3 }
 0x438   :  { %v3892_v14 = vpop.f32.mrf.mxu0 }
 0x439   :  { %3105 = vst.msk [vmem:[%s6277_s9 + $0x1a8] sm:$0xff] %vm115_vm0, %v3041_v4  ;;  %v3040_v52 = vadd.f32 %v5754_v35, %v2969_v24  ;;  %v2972_v18 = vadd.f32 %v4113_v51, %v3892_v14 }
 0x43a   :  { %v2868_v1 = vpop.f32.mrf.mxu0 }
 0x43b   :  { %3104 = vst.msk [vmem:[%s6277_s9 + $0x1a0] sm:$0xff] %vm115_vm0, %v3040_v52  ;;  %v3043_v44 = vadd.f32 %v5754_v35, %v2972_v18  ;;  %v2971_v7 = vadd.f32 %v4114_v54, %v2868_v1 }
 0x43c   :  { %v3895_v33 = vpop.f32.mrf.mxu0 }
 0x43d   :  { %3107 = vst.msk [vmem:[%s6277_s9 + $0x1b8] sm:$0xff] %vm115_vm0, %v3043_v44  ;;  %v3042_v16 = vadd.f32 %v5754_v35, %v2971_v7  ;;  %v2974_v57 = vadd.f32 %v4115_v53, %v3895_v33 }
 0x43e   :  { %v2878_v19 = vpop.f32.mrf.mxu0 }
 0x43f   :  { %3106 = vst.msk [vmem:[%s6277_s9 + $0x1b0] sm:$0xff] %vm115_vm0, %v3042_v16  ;;  %v3045_v34 = vadd.f32 %v5754_v35, %v2974_v57  ;;  %v2973_v26 = vadd.f32 %v4116_v55, %v2878_v19 }
 0x440   :  { %v3898_v63 = vpop.f32.mrf.mxu0 }
 0x441   :  { %3109 = vst.msk [vmem:[%s6277_s9 + $0x1c8] sm:$0xff] %vm115_vm0, %v3045_v34  ;;  %v3044_v43 = vadd.f32 %v5754_v35, %v2973_v26  ;;  %v2976_v28 = vadd.f32 %v4117_v56, %v3898_v63 }
 0x442   :  { %v2888_v62 = vpop.f32.mrf.mxu0 }
 0x443   :  { %3108 = vst.msk [vmem:[%s6277_s9 + $0x1c0] sm:$0xff] %vm115_vm0, %v3044_v43  ;;  %v3047_v37 = vadd.f32 %v5754_v35, %v2976_v28  ;;  %v2975_v10 = vadd.f32 %v4118_v47, %v2888_v62 }
 0x444   :  { %v3901_v17 = vpop.f32.mrf.mxu0 }
 0x445   :  { %3111 = vst.msk [vmem:[%s6277_s9 + $0x1d8] sm:$0xff] %vm115_vm0, %v3047_v37  ;;  %v3046_v30 = vadd.f32 %v5754_v35, %v2975_v10  ;;  %v2978_v25 = vadd.f32 %v4119_v6, %v3901_v17 }
 0x446   :  { %v2898_v2 = vpop.f32.mrf.mxu0 }
 0x447   :  { %3110 = vst.msk [vmem:[%s6277_s9 + $0x1d0] sm:$0xff] %vm115_vm0, %v3046_v30  ;;  %v3049_v31 = vadd.f32 %v5754_v35, %v2978_v25  ;;  %v2977_v0 = vadd.f32 %v4120_v61, %v2898_v2 }
 0x448   :  { %v3904_v23 = vpop.f32.mrf.mxu0 }
 0x449   :  { %3113 = vst.msk [vmem:[%s6277_s9 + $0x1e8] sm:$0xff] %vm115_vm0, %v3049_v31  ;;  %v3048_v5 = vadd.f32 %v5754_v35, %v2977_v0  ;;  %v2980_v22 = vadd.f32 %v4121_v40, %v3904_v23 }
 0x44a   :  { %v2908_v41 = vpop.f32.mrf.mxu0 }
 0x44b   :  { %3112 = vst.msk [vmem:[%s6277_s9 + $0x1e0] sm:$0xff] %vm115_vm0, %v3048_v5  ;;  %v3051_v59 = vadd.f32 %v5754_v35, %v2980_v22  ;;  %v2979_v49 = vadd.f32 %v4122_v50, %v2908_v41 }
 0x44d   :  { %3115 = vst.msk [vmem:[%s6277_s9 + $0x1f8] sm:$0xff] %vm115_vm0, %v3051_v59  ;;  %v3050_v39 = vadd.f32 %v5754_v35, %v2979_v49 }
 0x44f   :  { %3114 = vst.msk [vmem:[%s6277_s9 + $0x1f0] sm:$0xff] %vm115_vm0, %v3050_v39 }

// kernel: fwd.4
= control target key start
LH: loop header
LB: loop body
LE: loop exit
PB: predicated region body
PF: predicated region fallthrough
CT: control target
= control target key end

     0   :  { %s4900_s0 = inlined_call_operand.hbm [shape: f32[2,16,16,96], index: 0, kind: input, shape index: {}]   ;;  %s4901_s1 = inlined_call_operand.hbm [shape: f32[96,96], index: 1, kind: input, shape index: {}]   ;;  %s4902_s2 = inlined_call_operand.vmem [shape: f32[1,96], index: 2, kind: input, shape index: {}]   ;;  %s4903_s3 = inlined_call_operand.vmem [shape: f32[1,96], index: 3, kind: input, shape index: {}]   ;;  %s4904_s4 = inlined_call_operand.vmem [shape: f32[1,96], index: 4, kind: input, shape index: {}]   ;;  %s4905_s5 = inlined_call_operand.hbm [shape: f32[96,288], index: 5, kind: input, shape index: {}]   ;;  %s4906_s6 = inlined_call_operand.vmem [shape: f32[1,288], index: 6, kind: input, shape index: {}]   ;;  %s4907_s7 = inlined_call_operand.hbm [shape: f32[96,96], index: 7, kind: input, shape index: {}]   ;;  %s4908_s8 = inlined_call_operand.vmem [shape: f32[1,96], index: 8, kind: input, shape index: {}]   ;;  %s4909_s9 = inlined_call_operand.vmem [shape: f32[2,16,16,96], index: 9, kind: output, shape index: {}]  }
   0x1   :  { %4919 = sst [smem:[#allocation21_spill]] %s4901_s1 }
   0x2   :  { %4920 = sst [smem:[#allocation22_spill]] %s4905_s5 }
   0x3   :  { %4921 = sst [smem:[#allocation23_spill]] %s4906_s6 }
   0x4   :  { %4922 = sst [smem:[#allocation24_spill]] %s4907_s7 }
   0x5   :  { %4923 = sst [smem:[#allocation25_spill]] %s4908_s8 }
   0x6   :  { %4924 = sst [smem:[#allocation26_spill]] %s4909_s9 }
   0x7   :  { %14 = vsyncpa [#allocation3], 0 }
   0x8   :  { %16 = vsyncpa [#allocation3 + $0x1], 0 }
   0x9   :  { %17 = vsyncpa [#allocation5], 0 }
   0xa   :  { %18 = vsyncpa [#allocation8], 0  ;;  %s4003_s30 = smov 0   ;;  %s4005_s10 = smov 0  }
   0xb   :  { %s4007_s11 = smov 0   ;;  %s4009_s12 = smov 0  }
   0xc   :  { %s4011_s13 = smov 0   ;;  %s4013_s14 = smov 0  }
   0xd   :  { %s4015_s15 = smov 0   ;;  %s4017_s16 = smov 0  }
   0xe   :  { %s4019_s17 = smov 0   ;;  %s4021_s18 = smov 0  }
   0xf LB: > { %4925 = sst [smem:[#allocation13_spill]] %s3914_s12  ;;  %s2856_s19 = sadd.s32 4294967295, %s3938_s18   ;;  %s3938_s18 = sphi %s4021_s18, %s24_s18   ;;  %s3934_s17 = sphi %s4019_s17, %s4964_s17   ;;  %s3930_s16 = sphi %s4017_s16, %s4963_s16   ;;  %s3926_s15 = sphi %s4015_s15, %s4956_s15   ;;  %s3922_s14 = sphi %s4013_s14, %s4962_s14   ;;  %s3918_s13 = sphi %s4011_s13, %s4961_s13   ;;  %s3914_s12 = sphi %s4009_s12, %s4955_s12   ;;  %s3910_s11 = sphi %s4007_s11, %s4960_s11   ;;  %s3906_s10 = sphi %s4005_s10, %s4959_s10   ;;  %s3902_s30 = sphi %s4003_s30, %s4958_s30  }
  0x10   : > { %4926 = sst [smem:[#allocation14_spill]] %s3918_s13  ;;  %p61_p0 = scmp.ne.s32.totalorder %s3910_s11, %s3906_s10 }
  0x11   : > { %4927 = sst [smem:[#allocation15_spill]] %s3922_s14  ;;  %p62_p1 = scmp.eq.s32.totalorder %s3938_s18, 0 }
  0x12   : > { %4928 = sst [smem:[#allocation16_spill]] %s3926_s15  ;;  %p67_p2 = scmp.ne.s32.totalorder %s3906_s10, %s3902_s30 }
  0x13   : > { %4929 = sst [smem:[#allocation17_spill]] %s3938_s18  ;;  %p4056_p3 = scmp.eq.s32.totalorder %s2856_s19, 0 }
  0x14   : > { %p4060_p4 = por %p62_p1, %p61_p0  ;;  %p263_p5 = scmp.eq.s32.totalorder %s2856_s19, 7 }
  0x15   : > { %s4930_s20 = scalar_select %p4056_p3, 1, 0 }
  0x16   : > { %p4066_p6 = por %p4056_p3, %p67_p2  ;;  %p2858_p7 = scmp.ge.s32.totalorder %s3938_s18, 1 }
  0x17   : > { %p4071_p8 = por %p263_p5, %p61_p0  ;;  %p276_p9 = scmp.lt.s32.totalorder %s3938_s18, 9 }
  0x18   : > { %s3940_s25 = smov [#allocation4]   ;;  %p3526_p12 = scmp.lt.s32.totalorder %s3938_s18, 8 }
  0x19   : > { %s4933_s23 = scalar_select %p4071_p8, 1, 0 }
  0x1a   : > { %p4076_p10 = pnand %p2858_p7, %p276_p9  ;;  %s288_s26 = sshll.u32 %s3940_s25, 4  ;;  %s289_s26 = int_to_ptr.vmem [resolvable:$true] %s288_s26 }
  0x1b   : > { %4934 = sst [smem:[#allocation18_spill]] %s4933_s23  ;;  %p4091_p0 = pnand %p3526_p12, %p4060_p4 }
  0x1c   : > { %p3509_p11 = pneg %p4076_p10  ;;  %s3941_s29 = smov [#allocation6]  }
  0x1d   : > { %s310_s30 = sshll.u32 %s3941_s29, 4  ;;  %s3753_s19 = scalar_lea.vmem %s289_s26, 1536  ;;  %s311_s30 = int_to_ptr.vmem [resolvable:$true] %s310_s30 }
  0x1e   : > { %p4085_p13 = pnand %p3509_p11, %p4056_p3  ;;  %p3754_p2 = scmp.ne.s32.totalorder %s289_s26, %s3753_s19 }
  0x1f   : > { %p3761_p9 = scmp.lt.s32.totalorder %s289_s26, %s289_s26  ;;  %p3762_p11 = scmp.lt.s32.totalorder %s3753_s19, %s3753_s19 }
  0x20   : > { %p3744_p1 = pneg %p4085_p13 }
  0x21   : > { %p3763_p8 = por %p3762_p11, %p3761_p9 }
  0x22   : > { %p3756_p5 = pnand %p3754_p2, %p3744_p1 }
  0x24   : > { %p3757_p7 = pneg %p3756_p5 }
  0x26   : > { %p3764_p3 = pnand %p3763_p8, %p3757_p7 }
  0x28   : > { %3767 = shalt.err (!%p3764_p3)
}
  0x29   : > { %s4913_s21 = smov 128   ;;  %s4914_s25 = smov 8  }
  0x2a   : > { %s4938_s1 = sld [smem:[#allocation21_spill]]  ;;  %s3779_s9 = scalar_lea.vmem %s311_s30, 4608 }
  0x2b   : > { %p3780_p4 = scmp.ne.s32.totalorder %s311_s30, %s3779_s9  ;;  %p3787_p8 = scmp.lt.s32.totalorder %s311_s30, %s311_s30 }
  0x2c   : > { %p3788_p3 = scmp.lt.s32.totalorder %s3779_s9, %s3779_s9 }
  0x2d   : > { %p3782_p12 = pnand %p3780_p4, %p3744_p1 }
  0x2e   : > { %p3789_p5 = por %p3788_p3, %p3787_p8 }
  0x2f   : > { %p3783_p2 = pneg %p3782_p12 }
  0x30   : > { %3512 = dma.hbm_to_vmem [thread:$0]  (!%p4085_p13), %s4938_s1, 1536, %s289_s26, [#allocation5], %s4913_s21, %s4913_s21, %s4914_s25  }
  0x31   : > { %p3790_p7 = pnand %p3789_p5, %p3783_p2 }
  0x33   : > { %3793 = shalt.err (!%p3790_p7)
}
  0x34   : > { %s3944_s19 = smov 384   ;;  %s3945_s12 = smov 24  }
  0x35   : > { %s4939_s5 = sld [smem:[#allocation22_spill]]  ;;  %s3946_s18 = smov [#allocation7]  }
  0x36   : > { %s326_s26 = sshll.u32 %s3946_s18, 4  ;;  %s327_s26 = int_to_ptr.vmem [resolvable:$true] %s326_s26 }
  0x37   : > { %s3805_s29 = scalar_lea.vmem %s327_s26, 1536  ;;  %p3813_p12 = scmp.lt.s32.totalorder %s327_s26, %s327_s26 }
  0x38   : > { %p3806_p9 = scmp.ne.s32.totalorder %s327_s26, %s3805_s29  ;;  %p3814_p2 = scmp.lt.s32.totalorder %s3805_s29, %s3805_s29 }
  0x3a   : > { %p3808_p11 = pnand %p3806_p9, %p3744_p1  ;;  %p3815_p8 = por %p3814_p2, %p3813_p12 }
  0x3b   : > { %3515 = dma.hbm_to_vmem [thread:$0]  (!%p4085_p13), %s4939_s5, 4608, %s311_s30, [#allocation5], %s3944_s19, %s3944_s19, %s3945_s12  }
  0x3c   : > { %p3809_p4 = pneg %p3808_p11 }
  0x3e   : > { %p3816_p3 = pnand %p3815_p8, %p3809_p4 }
  0x40   : > { %3819 = shalt.err (!%p3816_p3)
}
  0x41   : > { %s4940_s7 = sld [smem:[#allocation24_spill]]  ;;  %s36_s13 = sadd.s32 1, %s3926_s15 }
  0x42   : > { %p37_p1 = scmp.ge.s32.totalorder %s36_s13, 2  ;;  %s39_s14 = sadd.s32 1, %s3930_s16 }
  0x43   : > { %s343_s27 = sand.u32 1, %s3910_s11   ;;  %s3005_s30 = sshll.u32 %s3930_s16, 4 }
  0x44   : > { %s4966_s13 = smov (%p37_p1, %s36_s13), 0  ;;  %s4968_s14 = smov (!%p37_p1, %s39_s14), %s3930_s16 }
  0x45   : > { %4941 = sst [smem:[#allocation19_spill]] %s4966_s13  ;;  %s43_s19 = sadd.s32 1, %s3934_s17 }
  0x46   : > { %s50_s18 = ssub.s32 %s3926_s15, %s4966_s13  ;;  %p41_p5 = scmp.ge.s32.totalorder %s4968_s14, 2 }
  0x47   : > { %3518 = dma.hbm_to_vmem [thread:$0]  (!%p4085_p13), %s4940_s7, 1536, %s327_s26, [#allocation8], %s4913_s21, %s4913_s21, %s4914_s25  }
  0x48   : > { %s2863_s29 = sshll.u32 %s343_s27, 6  ;;  %s353_s9 = sadd.s32 %s3926_s15, %s3005_s30 }
  0x49   : > { %s4970_s14 = smov (%p41_p5, %s4968_s14), 0  ;;  %s4972_s19 = smov (!%p41_p5, %s43_s19), %s3934_s17 }
  0x4a   : > { %4942 = sst [smem:[#allocation20_spill]] %s4970_s14  ;;  %s48_s26 = ssub.s32 %s3930_s16, %s4970_s14 }
  0x4b   : > { %s2866_s12 = sshll.u32 %s3934_s17, 5  ;;  %p45_p13 = scmp.ge.s32.totalorder %s4972_s19, 2 }
  0x4c   : > { %s355_s21 = sadd.s32 %s2866_s12, %s353_s9  ;;  %s347_s1 = scalar_lea.vmem [#allocation2], %s2863_s29 }
  0x4d   : > { %s2867_s25 = sshll.u32 %s355_s21, 7  ;;  %s358_s5 = sshll.u32 %s347_s1, 4  ;;  %s359_s5 = int_to_ptr.vmem [resolvable:$true] %s358_s5 }
  0x4e   : > { %s4974_s19 = smov (%p45_p13, %s4972_s19), 0  ;;  %s357_s23 = scalar_lea.hbm %s4900_s0, %s2867_s25 }
  0x4f   : > { %s47_s30 = ssub.s32 %s3934_s17, %s4974_s19  ;;  %s54_s8 = sadd.s32 1, %s3910_s11 }
  0x50   : > { %s49_s15 = sor.u32 %s48_s26, %s47_s30  ;;  %s344_s14 = scalar_lea.sflag [#allocation3], %s343_s27 }
  0x51   : > { %s51_s6 = sor.u32 %s50_s18, %s49_s15  ;;  %p3822_p9 = pneg %p4091_p0 }
  0x52   : > { %p52_p7 = scmp.eq.s32.totalorder %s51_s6, 0  ;;  %s3833_s9 = scalar_lea.vmem %s359_s5, 1024 }
  0x53   : > { %p3834_p11 = scmp.ne.s32.totalorder %s359_s5, %s3833_s9  ;;  %s3947_s1 = smov [#allocation2]  }
  0x54   : > { %s3838_s21 = sshll.u32 %s3947_s1, 4  ;;  %s3839_s21 = int_to_ptr.vmem [resolvable:$false] %s3838_s21 }
  0x55   : > { %p3836_p4 = pnand %p3834_p11, %p3822_p9  ;;  %s3840_s29 = scalar_lea.vmem %s3839_s21, 2048 }
  0x56   : > { %p3841_p2 = scmp.lt.s32.totalorder %s359_s5, %s3839_s21  ;;  %p3842_p8 = scmp.lt.s32.totalorder %s3840_s29, %s3833_s9 }
  0x57   : > { %p3837_p12 = pneg %p3836_p4 }
  0x58   : > { %p3843_p3 = por %p3842_p8, %p3841_p2 }
  0x5a   : > { %p3844_p1 = pnand %p3843_p3, %p3837_p12 }
  0x5c   : > { %3847 = shalt.err (!%p3844_p1)
}
  0x5d   : > { %s3948_s7 = smov 256   ;;  %s4943_s15 = smov 8  }
  0x5e   : > { %s4944_s25 = smov 128   ;;  %370 = sbr.rel (%p4076_p10) target bundleno = 2733 (0xaad), region = 56 }
  0x5f   : > { %3522 = dma.hbm_to_vmem [thread:$0]  (!%p4091_p0), %s357_s23, 1024, %s359_s5, %s344_s14, %s3948_s7, %s4944_s25, %s4943_s15  }
  0x60   : > { %s4160_s13 = scalar_select %p52_p7, %s3910_s11, %s54_s8  }
  0x61   : > { %s372_s27 = sand.u32 (!%p4076_p10), 1, %s3906_s10  }
  0x62   : > { %s4165_s18 = sshll.u32 (!%p4076_p10), %s372_s27, 6  ;;  %s373_s26 = scalar_lea.sflag (!%p4076_p10), [#allocation3], %s372_s27 }
  0x63   : > { %s4168_s12 = scalar_lea.vmem [#allocation2], %s4165_s18 }
  0x64   : > { %3889 = dma.done.wait (%p4066_p6), %s373_s26, 1024  }
  0x65   : > { %3891 = vsyncadd (%p4066_p6), %s373_s26, 4294966272  ;;  %p4945_p0 = scmp.ne.s32.totalorder %s4930_s20, 0 }
  0x67   : > { %3893 = dma.done.wait (%p4945_p0), [#allocation5], 6144  }
  0x68   : > { %3895 = vsyncadd (%p4945_p0), [#allocation5], 4294961152 }
  0x69   : > { %3897 = dma.done.wait (%p4945_p0), [#allocation8], 1536  }
  0x6a   : > { %3899 = vsyncadd (%p4945_p0), [#allocation8], 4294965760  ;;  %v443_v0 = vld [vmem:[#allocation4 + $0x58] sm:$0xff]  ;;  %v442_v1 = vld [vmem:[#allocation4 + $0x50] sm:$0xff]  ;;  %vm451_vm0 = vcmask 785408   ;;  %s4946_s14 = sld [smem:[#allocation23_spill]] }
  0x6b   : > { %3179 = vmatprep.subr.mxu0 %v443_v0  ;;  %v441_v2 = vld [vmem:[#allocation4 + $0x48] sm:$0xff]  ;;  %v440_v3 = vld [vmem:[#allocation4 + $0x40] sm:$0xff]  ;;  %v439_v5 = vld [vmem:[#allocation4 + $0x38] sm:$0xff]  ;;  %vm1070_vm1 = vcmask 261120   ;;  %s3950_s30 = smov 32   ;;  %s3951_s9 = smov 64  }
  0x6c   : > { %3180 = vmatpush3.msra.mxu0 %v443_v0  ;;  %v424_v4 = vld [vmem:[%s4168_s12] sm:$0xff]  ;;  %v438_v6 = vld [vmem:[#allocation4 + $0x30] sm:$0xff]  ;;  %v437_v7 = vld [vmem:[#allocation4 + $0x28] sm:$0xff]  ;;  %vm1216_vm2 = vcmask 523264   ;;  %s3952_s1 = smov 96   ;;  %s4947_s7 = sld [smem:[#allocation25_spill]] }
  0x6d   : > { %3181 = vmatprep.subr.mxu0 %v442_v1  ;;  %3203 = vmatprep.mubr.msk.f32.mxu0 %vm451_vm0, %v424_v4  ;;  %v436_v8 = vld [vmem:[#allocation4 + $0x20] sm:$0xff]  ;;  %v435_v9 = vld [vmem:[#allocation4 + $0x18] sm:$0xff]  ;;  %v434_v10 = vld [vmem:[#allocation4 + $0x10] sm:$0xff]  ;;  %s4833_s15 = scalar_lea.vmem [#allocation9], %s4165_s18  ;;  %s4948_s25 = sld [smem:[#allocation18_spill]] }
  0x6e   : > { %3182 = vmatpush3.msra.mxu0 %v442_v1  ;;  %v433_v11 = vld [vmem:[#allocation4 + $0x8] sm:$0xff]  ;;  %v432_v12 = vld [vmem:[#allocation4] sm:$0xff]  ;;  %v426_v14 = vld [vmem:[%s4168_s12 + $0x10] sm:$0xff] }
  0x6f   : > { %3183 = vmatprep.subr.mxu0 %v441_v2  ;;  %v425_v13 = vld [vmem:[%s4168_s12 + $0x8] sm:$0xff]  ;;  %v427_v15 = vld [vmem:[%s4168_s12 + $0x18] sm:$0xff]  ;;  %v428_v16 = vld [vmem:[%s4168_s12 + $0x20] sm:$0xff] }
  0x70   : > { %3184 = vmatpush3.msra.mxu0 %v441_v2  ;;  %v429_v17 = vld [vmem:[%s4168_s12 + $0x28] sm:$0xff]  ;;  %v430_v18 = vld [vmem:[%s4168_s12 + $0x30] sm:$0xff]  ;;  %v431_v19 = vld [vmem:[%s4168_s12 + $0x38] sm:$0xff] }
  0x71   : > { %3185 = vmatprep.subr.mxu0 %v440_v3  ;;  %v2874_v21 = vld [vmem:[%s4902_s2] ss:$0 sm:$0xff] }
  0x72   : > { %3186 = vmatpush3.msra.mxu0 %v440_v3 }
  0x73   : > { %3187 = vmatprep.subr.mxu0 %v439_v5  ;;  %p4949_p6 = scmp.ne.s32.totalorder %s4948_s25, 0 }
  0x74   : > { %3188 = vmatpush3.msra.mxu0 %v439_v5  ;;  %s4950_s27 = sld [smem:[#allocation14_spill]] (%p4949_p6) }
  0x75   : > { %3189 = vmatprep.subr.mxu0 %v438_v6  ;;  %s4951_s18 = sld [smem:[#allocation15_spill]] (%p4949_p6) }
  0x76   : > { %3190 = vmatpush3.msra.mxu0 %v438_v6  ;;  %s4952_s26 = sld [smem:[#allocation13_spill]] (%p4949_p6) }
  0x77   : > { %3191 = vmatprep.subr.mxu0 %v437_v7  ;;  %s4953_s24 = sld [smem:[#allocation26_spill]] (%p4949_p6) }
  0x78   : > { %3192 = vmatpush3.msra.mxu0 %v437_v7 }
  0x79   : > { %3193 = vmatprep.subr.mxu0 %v436_v8 }
  0x7a   : > { %3194 = vmatpush3.msra.mxu0 %v436_v8 }
  0x7b   : > { %3195 = vmatprep.subr.mxu0 %v435_v9  ;;  %s3001_s5 = sshll.u32 (%p4949_p6), %s4951_s18, 5 }
  0x7c   : > { %3196 = vmatpush3.msra.mxu0 %v435_v9 }
  0x7d   : > { %3197 = vmatprep.subr.mxu0 %v434_v10 }
  0x7e   : > { %3198 = vmatpush3.msra.mxu0 %v434_v10 }
  0x7f   : > { %3199 = vmatprep.subr.mxu0 %v433_v11 }
  0x80   : > { %3200 = vmatpush3.msra.mxu0 %v433_v11 }
  0x81   : > { %3201 = vmatprep.subr.mxu0 %v432_v12 }
  0x82   : > { %3202 = vmatpush3.msra.mxu0 %v432_v12 }
  0x83   : > { %3204 = vmatmul.mubr.msk.f32.vlgmr.msra.gmra.mxu0 %vm451_vm0, %v425_v13 }
  0x84   : > { %3206 = vmatprep.mubr.msk.f32.mxu0 %vm451_vm0, %v426_v14 }
  0x87   : > { %3207 = vmatmul.mubr.msk.f32.gmra.mxu0 %vm451_vm0, %v427_v15 }
  0x88   : > { %3209 = vmatprep.mubr.msk.f32.mxu0 %vm451_vm0, %v428_v16  ;;  %v750_v16 = vld [vmem:[#allocation6 + $0x110] sm:$0xff] }
  0x89   : > { %801 = vmatprep.subr.mxu1 %v750_v16 }
  0x8b   : > { %3210 = vmatmul.mubr.msk.f32.gmra.mxu0 %vm451_vm0, %v429_v17  ;;  %v749_v17 = vld [vmem:[#allocation6 + $0x108] sm:$0xff] }
  0x8c   : > { %3212 = vmatprep.mubr.msk.f32.mxu0 %vm451_vm0, %v430_v18  ;;  %802 = vmatpush1.msra.mxu1 %v749_v17 }
  0x8f   : > { %3213 = vmatmul.mubr.msk.f32.gmra.mxu0 %vm451_vm0, %v431_v19 }
 0x143   : > { %v3205_v20 = vpop.f32.mrf.mxu0 }
 0x144   : > { %v548_v25 = vadd.f32 %v3205_v20, %v2874_v21 }
 0x145   : > { %v542_v22 = vpop.f32.mrf.mxu0 }
 0x146   : > { %v543_v23 = vadd.f32 %v2874_v21, %v542_v22  ;;  %v586_v32 = vsel %vm451_vm0, %v548_v25, 0.0  ;;  %v746_v22 = vld [vmem:[#allocation6 + $0xf0] sm:$0xff] }
 0x147   : > { %v3208_v24 = vpop.f32.mrf.mxu0 }
 0x148   : > { %v583_v26 = vsel %vm451_vm0, %v543_v23, 0.0  ;;  %v558_v30 = vadd.f32 %v3208_v24, %v2874_v21  ;;  %v744_v24 = vld [vmem:[#allocation6 + $0xe0] sm:$0xff] }
 0x149   : > { %v552_v27 = vpop.f32.mrf.mxu0  ;;  %584 = vadd.xlane.f32.xlu0 %v583_v26 }
 0x14a   : > { %v553_v28 = vadd.f32 %v2874_v21, %v552_v27  ;;  %v592_v37 = vsel %vm451_vm0, %v558_v30, 0.0  ;;  %v743_v27 = vld [vmem:[#allocation6 + $0xd8] sm:$0xff] }
 0x14b   : > { %v3211_v29 = vpop.f32.mrf.mxu0 }
 0x14c   : > { %v589_v31 = vsel %vm451_vm0, %v553_v28, 0.0  ;;  %v568_v34 = vadd.f32 %v3211_v29, %v2874_v21  ;;  %v748_v29 = vld [vmem:[#allocation6 + $0x100] sm:$0xff] }
 0x14d   : > { %v562_v33 = vpop.f32.mrf.mxu0  ;;  %590 = vadd.xlane.f32.xlu1 %v589_v31  ;;  %587 = vadd.xlane.f32.xlu0 %v586_v32  ;;  %v738_v31 = vld [vmem:[#allocation6 + $0xb0] sm:$0xff]  ;;  %v745_v32 = vld [vmem:[#allocation6 + $0xe8] sm:$0xff] }
 0x14e   : > { %v563_v35 = vadd.f32 %v2874_v21, %v562_v33  ;;  %v598_v42 = vsel %vm451_vm0, %v568_v34, 0.0  ;;  %v737_v33 = vld [vmem:[#allocation6 + $0xa8] sm:$0xff] }
 0x14f   : > { %v3214_v36 = vpop.f32.mrf.mxu0 }
 0x150   : > { %v595_v38 = vsel %vm451_vm0, %v563_v35, 0.0  ;;  %v578_v40 = vadd.f32 %v3214_v36, %v2874_v21  ;;  %v734_v36 = vld [vmem:[#allocation6 + $0x90] sm:$0xff] }
 0x151   : > { %v572_v39 = vpop.f32.mrf.mxu0  ;;  %593 = vadd.xlane.f32.xlu1 %v592_v37  ;;  %596 = vadd.xlane.f32.xlu0 %v595_v38  ;;  %v732_v37 = vld [vmem:[#allocation6 + $0x80] sm:$0xff]  ;;  %v739_v38 = vld [vmem:[#allocation6 + $0xb8] sm:$0xff] }
 0x152   : > { %v573_v41 = vadd.f32 %v2874_v21, %v572_v39  ;;  %v604_v44 = vsel %vm451_vm0, %v578_v40, 0.0  ;;  %v747_v21 = vld [vmem:[#allocation6 + $0xf8] sm:$0xff] }
 0x153   : > { %803 = vmatprep.subr.mxu1 %v747_v21  ;;  %v731_v39 = vld [vmem:[#allocation6 + $0x78] sm:$0xff] }
 0x154   : > { %v601_v43 = vsel %vm451_vm0, %v573_v41, 0.0  ;;  %804 = vmatpush1.msra.mxu1 %v746_v22 }
 0x155   : > { %599 = vadd.xlane.f32.xlu1 %v598_v42  ;;  %602 = vadd.xlane.f32.xlu0 %v601_v43  ;;  %v728_v42 = vld [vmem:[#allocation6 + $0x60] sm:$0xff]  ;;  %v726_v43 = vld [vmem:[#allocation6 + $0x50] sm:$0xff] }
 0x156   : > { %805 = vmatprep.subr.mxu1 %v744_v24 }
 0x157   : > { %806 = vmatpush1.msra.mxu1 %v743_v27 }
 0x159   : > { %605 = vadd.xlane.f32.xlu1 %v604_v44  ;;  %v733_v44 = vld [vmem:[#allocation6 + $0x88] sm:$0xff] }
 0x1d2   : > { %v585_v45 = vpop.xlane.xlu0 %584 }
 0x1d3   : > { %v608_v46 = vmul.f32 0.010416667, %v585_v45  ;;  %v725_v45 = vld [vmem:[#allocation6 + $0x48] sm:$0xff] }
 0x1d5   : > { %v4209_v47 = vsub.f32 %v543_v23, %v608_v46  ;;  %v723_v46 = vld [vmem:[#allocation6 + $0x38] sm:$0xff] }
 0x1d6   : > { %v591_v48 = vpop.xlane.xlu1 %590  ;;  %v588_v49 = vpop.xlane.xlu0 %587 }
 0x1d7   : > { %v610_v50 = vmul.f32 0.010416667, %v591_v48  ;;  %v609_v51 = vmul.f32 0.010416667, %v588_v49  ;;  %v624_v52 = vmul.f32 %v4209_v47, %v4209_v47  ;;  %v730_v48 = vld [vmem:[#allocation6 + $0x70] sm:$0xff] }
 0x1d8   : > { %v722_v49 = vld [vmem:[#allocation6 + $0x30] sm:$0xff] }
 0x1d9   : > { %v4213_v53 = vsub.f32 %v553_v28, %v610_v50  ;;  %v4215_v54 = vsub.f32 %v548_v25, %v609_v51  ;;  %v632_v55 = vsel %vm451_vm0, %v624_v52, 0.0  ;;  %v751_v25 = vld [vmem:[#allocation6 + $0x118] sm:$0xff]  ;;  %v741_v28 = vld [vmem:[#allocation6 + $0xc8] sm:$0xff]  ;;  %v720_v50 = vld [vmem:[#allocation6 + $0x20] sm:$0xff] }
 0x1da   : > { %v594_v56 = vpop.xlane.xlu1 %593  ;;  %633 = vadd.xlane.f32.xlu0 %v632_v55  ;;  %v597_v57 = vpop.xlane.xlu0 %596  ;;  %3215 = vmatprep.subr.mxu0 %v751_v25  ;;  %v727_v51 = vld [vmem:[#allocation6 + $0x58] sm:$0xff]  ;;  %v717_v55 = vld [vmem:[#allocation6 + $0x8] sm:$0xff] }
 0x1db   : > { %v611_v58 = vmul.f32 0.010416667, %v594_v56  ;;  %v612_v59 = vmul.f32 0.010416667, %v597_v57  ;;  %v626_v60 = vmul.f32 %v4213_v53, %v4213_v53  ;;  %v625_v61 = vmul.f32 %v4215_v54, %v4215_v54  ;;  %3216 = vmatpush3.msra.mxu0 %v751_v25  ;;  %807 = vmatprep.subr.mxu1 %v741_v28  ;;  %v719_v52 = vld [vmem:[#allocation6 + $0x18] sm:$0xff]  ;;  %v724_v56 = vld [vmem:[#allocation6 + $0x40] sm:$0xff] }
 0x1dc   : > { %3217 = vmatprep.subr.mxu0 %v748_v29  ;;  %v716_v57 = vld [vmem:[#allocation6] sm:$0xff] }
 0x1dd   : > { %v4222_v62 = vsub.f32 %v558_v30, %v611_v58  ;;  %v4224_v63 = vsub.f32 %v563_v35, %v612_v59  ;;  %v638_v0 = vsel %vm451_vm0, %v626_v60, 0.0  ;;  %v635_v1 = vsel %vm451_vm0, %v625_v61, 0.0  ;;  %v740_v30 = vld [vmem:[#allocation6 + $0xc0] sm:$0xff]  ;;  %3218 = vmatpush3.msra.mxu0 %v748_v29  ;;  %v742_v35 = vld [vmem:[#allocation6 + $0xd0] sm:$0xff]  ;;  %v721_v58 = vld [vmem:[#allocation6 + $0x28] sm:$0xff] }
 0x1de   : > { %v600_v2 = vpop.xlane.xlu1 %599  ;;  %639 = vadd.xlane.f32.xlu0 %v638_v0  ;;  %636 = vadd.xlane.f32.xlu1 %v635_v1  ;;  %v603_v3 = vpop.xlane.xlu0 %602  ;;  %v3949_v59 = vmov 0.0   ;;  %v718_v60 = vld [vmem:[#allocation6 + $0x10] sm:$0xff]  ;;  %v2884_v29 = vld [vmem:[%s4904_s4] ss:$0 sm:$0xff] }
 0x1df   : > { %v613_v4 = vmul.f32 0.010416667, %v600_v2  ;;  %v614_v5 = vmul.f32 0.010416667, %v603_v3  ;;  %v627_v6 = vmul.f32 %v4222_v62, %v4222_v62  ;;  %v628_v7 = vmul.f32 %v4224_v63, %v4224_v63  ;;  %808 = vmatpush1.msra.mxu1 %v740_v30  ;;  %3219 = vmatprep.subr.mxu0 %v745_v32 }
 0x1e0   : > { %809 = vmatprep.subr.mxu1 %v738_v31  ;;  %3220 = vmatpush3.msra.mxu0 %v745_v32 }
 0x1e1   : > { %v4232_v8 = vsub.f32 %v568_v34, %v613_v4  ;;  %v4234_v9 = vsub.f32 %v573_v41, %v614_v5  ;;  %v641_v10 = vsel %vm451_vm0, %v627_v6, 0.0  ;;  %v644_v11 = vsel %vm451_vm0, %v628_v7, 0.0  ;;  %810 = vmatpush1.msra.mxu1 %v737_v33  ;;  %v735_v34 = vld [vmem:[#allocation6 + $0x98] sm:$0xff]  ;;  %3221 = vmatprep.subr.mxu0 %v742_v35  ;;  %v736_v41 = vld [vmem:[#allocation6 + $0xa0] sm:$0xff] }
 0x1e2   : > { %v606_v12 = vpop.xlane.xlu1 %605  ;;  %642 = vadd.xlane.f32.xlu1 %v641_v10  ;;  %645 = vadd.xlane.f32.xlu0 %v644_v11 }
 0x1e3   : > { %v615_v13 = vmul.f32 0.010416667, %v606_v12  ;;  %v629_v14 = vmul.f32 %v4232_v8, %v4232_v8  ;;  %v630_v15 = vmul.f32 %v4234_v9, %v4234_v9  ;;  %811 = vmatprep.subr.mxu1 %v735_v34  ;;  %3222 = vmatpush3.msra.mxu0 %v742_v35 }
 0x1e4   : > { %812 = vmatpush1.msra.mxu1 %v734_v36  ;;  %3223 = vmatprep.subr.mxu0 %v739_v38 }
 0x1e5   : > { %v4242_v18 = vsub.f32 %v578_v40, %v615_v13  ;;  %v647_v19 = vsel %vm451_vm0, %v629_v14, 0.0  ;;  %v650_v20 = vsel %vm451_vm0, %v630_v15, 0.0  ;;  %813 = vmatprep.subr.mxu1 %v732_v37  ;;  %v729_v40 = vld [vmem:[#allocation6 + $0x68] sm:$0xff]  ;;  %3224 = vmatpush3.msra.mxu0 %v739_v38 }
 0x1e6   : > { %648 = vadd.xlane.f32.xlu1 %v647_v19  ;;  %651 = vadd.xlane.f32.xlu0 %v650_v20 }
 0x1e7   : > { %v631_v23 = vmul.f32 %v4242_v18, %v4242_v18  ;;  %814 = vmatpush1.msra.mxu1 %v731_v39  ;;  %3225 = vmatprep.subr.mxu0 %v736_v41 }
 0x1e8   : > { %815 = vmatprep.subr.mxu1 %v729_v40  ;;  %3226 = vmatpush3.msra.mxu0 %v736_v41 }
 0x1e9   : > { %v653_v26 = vsel %vm451_vm0, %v631_v23, 0.0  ;;  %816 = vmatpush1.msra.mxu1 %v728_v42  ;;  %3227 = vmatprep.subr.mxu0 %v733_v44 }
 0x1ea   : > { %654 = vadd.xlane.f32.xlu1 %v653_v26  ;;  %817 = vmatprep.subr.mxu1 %v726_v43  ;;  %v2883_v26 = vld [vmem:[%s4903_s3] ss:$0 sm:$0xff] }
 0x1eb   : > { %818 = vmatpush1.msra.mxu1 %v725_v45  ;;  %3228 = vmatpush3.msra.mxu0 %v733_v44 }
 0x1ec   : > { %819 = vmatprep.subr.mxu1 %v723_v46  ;;  %3229 = vmatprep.subr.mxu0 %v730_v48 }
 0x1ed   : > { %820 = vmatpush1.msra.mxu1 %v722_v49  ;;  %3230 = vmatpush3.msra.mxu0 %v730_v48 }
 0x1ee   : > { %821 = vmatprep.subr.mxu1 %v720_v50  ;;  %3231 = vmatprep.subr.mxu0 %v727_v51 }
 0x1ef   : > { %822 = vmatpush1.msra.mxu1 %v719_v52  ;;  %3232 = vmatpush3.msra.mxu0 %v727_v51 }
 0x1f0   : > { %823 = vmatprep.subr.mxu1 %v717_v55  ;;  %3233 = vmatprep.subr.mxu0 %v724_v56 }
 0x1f1   : > { %824 = vmatpush1.msra.mxu1 %v716_v57  ;;  %857 = vmatprep.mubr.f32.mxu1 %v3949_v59 }
 0x1f2   : > { %3234 = vmatpush3.msra.mxu0 %v724_v56 }
 0x1f3   : > { %3235 = vmatprep.subr.mxu0 %v721_v58 }
 0x1f4   : > { %3236 = vmatpush3.msra.mxu0 %v721_v58  ;;  %v4293_v58 = vld [vmem:[%s4946_s14] sm:$0x7] }
 0x1f5   : > { %3237 = vmatprep.subr.mxu0 %v718_v60 }
 0x1f6   : > { %3238 = vmatpush3.msra.mxu0 %v718_v60 }
 0x263   : > { %v634_v61 = vpop.xlane.xlu0 %633 }
 0x264   : > { %v656_v0 = vmul.f32 0.010416667, %v634_v61 }
 0x266   : > { %v664_v1 = vadd.f32 1e-05, %v656_v0 }
 0x267   : > { %v637_v2 = vpop.xlane.xlu1 %636  ;;  %v640_v3 = vpop.xlane.xlu0 %639 }
 0x268   : > { %3622 = vrsqrt.f32 %v664_v1  ;;  %v657_v4 = vmul.f32 0.010416667, %v637_v2  ;;  %v658_v5 = vmul.f32 0.010416667, %v640_v3 }
 0x26a   : > { %v665_v6 = vadd.f32 1e-05, %v657_v4  ;;  %v666_v7 = vadd.f32 1e-05, %v658_v5 }
 0x26b   : > { %v643_v10 = vpop.xlane.xlu1 %642  ;;  %v646_v11 = vpop.xlane.xlu0 %645 }
 0x26c   : > { %3624 = vrsqrt.f32 %v665_v6  ;;  %v659_v12 = vmul.f32 0.010416667, %v643_v10  ;;  %v660_v13 = vmul.f32 0.010416667, %v646_v11 }
 0x26d   : > { %3626 = vrsqrt.f32 %v666_v7 }
 0x26e   : > { %v667_v14 = vadd.f32 1e-05, %v659_v12  ;;  %v668_v15 = vadd.f32 1e-05, %v660_v13 }
 0x26f   : > { %v649_v16 = vpop.xlane.xlu1 %648  ;;  %v652_v17 = vpop.xlane.xlu0 %651 }
 0x270   : > { %3628 = vrsqrt.f32 %v667_v14  ;;  %v661_v19 = vmul.f32 0.010416667, %v649_v16  ;;  %v662_v20 = vmul.f32 0.010416667, %v652_v17 }
 0x271   : > { %3630 = vrsqrt.f32 %v668_v15 }
 0x272   : > { %v669_v21 = vadd.f32 1e-05, %v661_v19  ;;  %v670_v22 = vadd.f32 1e-05, %v662_v20 }
 0x273   : > { %v655_v23 = vpop.xlane.xlu1 %654 }
 0x274   : > { %3632 = vrsqrt.f32 %v669_v21  ;;  %v663_v24 = vmul.f32 0.010416667, %v655_v23 }
 0x275   : > { %v3623_v25 = vpop.eup %3622  ;;  %3634 = vrsqrt.f32 %v670_v22 }
 0x276   : > { %v671_v27 = vadd.f32 1e-05, %v663_v24  ;;  %v680_v28 = vmul.f32 %v3623_v25, %v4209_v47 }
 0x278   : > { %3636 = vrsqrt.f32 %v671_v27  ;;  %v694_v30 = vmul.f32 %v2883_v26, %v680_v28 }
 0x279   : > { %v3625_v31 = vpop.eup %3624 }
 0x27a   : > { %v3627_v32 = vpop.eup %3626  ;;  %v708_v33 = vadd.f32 %v2884_v29, %v694_v30  ;;  %v681_v34 = vmul.f32 %v3625_v31, %v4215_v54 }
 0x27b   : > { %v682_v35 = vmul.f32 %v3627_v32, %v4213_v53 }
 0x27c   : > { %2885 = vmatmul.mubr.msk.f32.vlgmr.msra.gmra.mxu1 %vm451_vm0, %v708_v33  ;;  %3239 = vmatprep.mubr.msk.f32.mxu0 %vm451_vm0, %v708_v33  ;;  %v695_v36 = vmul.f32 %v2883_v26, %v681_v34 }
 0x27d   : > { %v3629_v37 = vpop.eup %3628  ;;  %863 = vmatprep.mubr.f32.mxu1 %v3949_v59  ;;  %v696_v47 = vmul.f32 %v2883_v26, %v682_v35 }
 0x27e   : > { %v3631_v38 = vpop.eup %3630  ;;  %v709_v39 = vadd.f32 %v2884_v29, %v695_v36  ;;  %v683_v40 = vmul.f32 %v3629_v37, %v4222_v62 }
 0x27f   : > { %v710_v41 = vadd.f32 %v2884_v29, %v696_v47  ;;  %v684_v42 = vmul.f32 %v3631_v38, %v4224_v63 }
 0x280   : > { %2886 = vmatmul.mubr.msk.f32.gmra.mxu1 %vm451_vm0, %v709_v39  ;;  %3240 = vmatmul.mubr.msk.f32.vlgmr.msra.gmra.mxu0 %vm451_vm0, %v709_v39  ;;  %v697_v53 = vmul.f32 %v2883_v26, %v683_v40 }
 0x281   : > { %v3633_v54 = vpop.eup %3632  ;;  %3242 = vmatprep.mubr.msk.f32.mxu0 %vm451_vm0, %v710_v41  ;;  %869 = vmatprep.mubr.f32.mxu1 %v3949_v59  ;;  %v698_v43 = vmul.f32 %v2883_v26, %v684_v42 }
 0x282   : > { %v3635_v44 = vpop.eup %3634  ;;  %v711_v45 = vadd.f32 %v2884_v29, %v697_v53  ;;  %v685_v46 = vmul.f32 %v3633_v54, %v4232_v8 }
 0x283   : > { %v712_v48 = vadd.f32 %v2884_v29, %v698_v43  ;;  %v686_v62 = vmul.f32 %v3635_v44, %v4234_v9 }
 0x284   : > { %2887 = vmatmul.mubr.msk.f32.gmra.mxu1 %vm451_vm0, %v710_v41  ;;  %3243 = vmatmul.mubr.msk.f32.gmra.mxu0 %vm451_vm0, %v711_v45  ;;  %v699_v63 = vmul.f32 %v2883_v26, %v685_v46 }
 0x285   : > { %v3637_v49 = vpop.eup %3636  ;;  %3245 = vmatprep.mubr.msk.f32.mxu0 %vm451_vm0, %v712_v48  ;;  %875 = vmatprep.mubr.f32.mxu1 %v3949_v59  ;;  %v700_v50 = vmul.f32 %v2883_v26, %v686_v62 }
 0x286   : > { %v713_v51 = vadd.f32 %v2884_v29, %v699_v63  ;;  %v687_v52 = vmul.f32 %v3637_v49, %v4242_v18  ;;  %v754_v18 = vlaneseq }
 0x287   : > { %v714_v55 = vadd.f32 %v2884_v29, %v700_v50 }
 0x288   : > { %2888 = vmatmul.mubr.msk.f32.gmra.mxu1 %vm451_vm0, %v711_v45  ;;  %3246 = vmatmul.mubr.msk.f32.gmra.mxu0 %vm451_vm0, %v713_v51  ;;  %v701_v8 = vmul.f32 %v2883_v26, %v687_v52  ;;  %v4287_v56 = vshrl.u32 %v754_v18, 7 }
 0x289   : > { %3248 = vmatprep.mubr.msk.f32.mxu0 %vm451_vm0, %v714_v55  ;;  %881 = vmatprep.mubr.f32.mxu1 %v3949_v59 }
 0x28a   : > { %v715_v9 = vadd.f32 %v2884_v29, %v701_v8  ;;  %v756_v57 = vsub.s32 0, %v4287_v56  ;;  %v760_v60 = vsub.s32 1, %v4287_v56 }
 0x28c   : > { %2889 = vmatmul.mubr.msk.f32.gmra.mxu1 %vm451_vm0, %v712_v48  ;;  %3249 = vmatmul.mubr.msk.f32.gmra.mxu0 %vm451_vm0, %v715_v9  ;;  %v757_v61 = vrot.slane %v4293_v58, %v756_v57  ;;  %v761_v0 = vrot.slane %v4293_v58, %v760_v60 }
 0x28d   : > { %887 = vmatprep.mubr.f32.mxu1 %v3949_v59 }
 0x290   : > { %2890 = vmatmul.mubr.msk.f32.gmra.mxu1 %vm451_vm0, %v713_v51 }
 0x291   : > { %893 = vmatprep.mubr.f32.mxu1 %v3949_v59 }
 0x294   : > { %2891 = vmatmul.mubr.msk.f32.gmra.mxu1 %vm451_vm0, %v714_v55 }
 0x295   : > { %899 = vmatprep.mubr.f32.mxu1 %v3949_v59 }
 0x298   : > { %2892 = vmatmul.mubr.msk.f32.gmra.mxu1 %vm451_vm0, %v715_v9 }
 0x33c   : > { %v859_v1 = vpop.f32.mrf.mxu1 }
 0x33d   : > { %v860_v59 = vadd.f32 %v859_v1, %v757_v61 }
 0x33e   : > { %v861_v2 = vpop.f32.mrf.mxu1 }
 0x33f   : > { %v4298_v3 = vmul.f32 0.17677669, %v860_v59  ;;  %v4300_v4 = vadd.f32 %v861_v2, %v761_v0 }
 0x340   : > { %v865_v5 = vpop.f32.mrf.mxu1 }
 0x341   : > { %3267 = vmatprep.mubr.msk.f32.mxu1 %vm1070_vm1, %v4298_v3  ;;  %v866_v29 = vadd.f32 %v865_v5, %v757_v61 }
 0x342   : > { %v867_v6 = vpop.f32.mrf.mxu1 }
 0x343   : > { %v4304_v7 = vadd.f32 %v867_v6, %v761_v0  ;;  %v4359_v45 = vmul.f32 0.17677669, %v866_v29 }
 0x344   : > { %v871_v10 = vpop.f32.mrf.mxu1 }
 0x345   : > { %v872_v30 = vadd.f32 %v871_v10, %v757_v61 }
 0x346   : > { %v873_v11 = vpop.f32.mrf.mxu1 }
 0x347   : > { %v4306_v12 = vadd.f32 %v873_v11, %v761_v0  ;;  %v4361_v46 = vmul.f32 0.17677669, %v872_v30 }
 0x348   : > { %v877_v13 = vpop.f32.mrf.mxu1 }
 0x349   : > { %v878_v27 = vadd.f32 %v877_v13, %v757_v61 }
 0x34a   : > { %v879_v14 = vpop.f32.mrf.mxu1 }
 0x34b   : > { %v4308_v15 = vadd.f32 %v879_v14, %v761_v0  ;;  %v4367_v48 = vmul.f32 0.17677669, %v878_v27 }
 0x34c   : > { %v883_v16 = vpop.f32.mrf.mxu1 }
 0x34d   : > { %v884_v28 = vadd.f32 %v883_v16, %v757_v61 }
 0x34e   : > { %v885_v17 = vpop.f32.mrf.mxu1 }
 0x34f   : > { %v4339_v35 = vadd.f32 %v885_v17, %v761_v0  ;;  %v4369_v62 = vmul.f32 0.17677669, %v884_v28 }
 0x350   : > { %v889_v19 = vpop.f32.mrf.mxu1 }
 0x351   : > { %v4314_v25 = vadd.f32 %v889_v19, %v757_v61 }
 0x352   : > { %v891_v20 = vpop.f32.mrf.mxu1 }
 0x353   : > { %v4335_v34 = vadd.f32 %v891_v20, %v761_v0  ;;  %v4376_v63 = vmul.f32 0.17677669, %v4314_v25 }
 0x354   : > { %v895_v21 = vpop.f32.mrf.mxu1 }
 0x355   : > { %v4310_v22 = vadd.f32 %v895_v21, %v757_v61 }
 0x356   : > { %v897_v23 = vpop.f32.mrf.mxu1 }
 0x357   : > { %1066 = vrot.lane.b32.xlu1 %v4310_v22, %s3950_s30  ;;  %v4331_v33 = vadd.f32 %v897_v23, %v761_v0  ;;  %v4379_v49 = vmul.f32 0.17677669, %v4310_v22 }
 0x358   : > { %v901_v24 = vpop.f32.mrf.mxu1 }
 0x359   : > { %v4316_v26 = vadd.f32 %v901_v24, %v757_v61 }
 0x35a   : > { %v903_v31 = vpop.f32.mrf.mxu1 }
 0x35b   : > { %1068 = vrot.lane.b32.xlu0 %v4316_v26, %s3950_s30  ;;  %1064 = vrot.lane.b32.xlu1 %v4314_v25, %s3950_s30  ;;  %v4326_v32 = vadd.f32 %v903_v31, %v761_v0  ;;  %v4386_v50 = vmul.f32 0.17677669, %v4316_v26 }
 0x35f   : > { %1060 = vrot.lane.b32.xlu0 %v878_v27, %s3950_s30  ;;  %1062 = vrot.lane.b32.xlu1 %v884_v28, %s3950_s30 }
 0x363   : > { %1056 = vrot.lane.b32.xlu0 %v866_v29, %s3950_s30  ;;  %1058 = vrot.lane.b32.xlu1 %v872_v30, %s3950_s30 }
 0x367   : > { %1327 = vrot.lane.b32.xlu0 %v4326_v32, %s3951_s9  ;;  %1054 = vrot.lane.b32.xlu1 %v860_v59, %s3950_s30 }
 0x36b   : > { %1325 = vrot.lane.b32.xlu1 %v4331_v33, %s3951_s9 }
 0x36f   : > { %1323 = vrot.lane.b32.xlu1 %v4335_v34, %s3951_s9 }
 0x373   : > { %1321 = vrot.lane.b32.xlu1 %v4339_v35, %s3951_s9 }
 0x3c9   : > { %v1067_v36 = vpop.permute.xlu1 %1066 }
 0x3cd   : > { %v1069_v37 = vpop.permute.xlu0 %1068  ;;  %v1065_v47 = vpop.permute.xlu1 %1064 }
 0x3ce   : > { %3251 = vmatprep.subr.msk.mxu1 %vm1070_vm1, %v1069_v37 }
 0x3cf   : > { %3252 = vmatpush3.xpose.msk.msra.mxu1 %vm1070_vm1, %v1069_v37 }
 0x3d0   : > { %3253 = vmatprep.subr.msk.mxu1 %vm1070_vm1, %v1067_v36 }
 0x3d1   : > { %v1061_v38 = vpop.permute.xlu0 %1060  ;;  %v1063_v39 = vpop.permute.xlu1 %1062 }
 0x3d3   : > { %3254 = vmatpush3.xpose.msk.msra.mxu1 %vm1070_vm1, %v1067_v36 }
 0x3d4   : > { %3255 = vmatprep.subr.msk.mxu1 %vm1070_vm1, %v1065_v47 }
 0x3d5   : > { %v1057_v40 = vpop.permute.xlu0 %1056  ;;  %v1059_v41 = vpop.permute.xlu1 %1058 }
 0x3d7   : > { %3256 = vmatpush3.xpose.msk.msra.mxu1 %vm1070_vm1, %v1065_v47 }
 0x3d8   : > { %3257 = vmatprep.subr.msk.mxu1 %vm1070_vm1, %v1063_v39 }
 0x3d9   : > { %v1328_v42 = vpop.permute.xlu0 %1327  ;;  %v1055_v53 = vpop.permute.xlu1 %1054 }
 0x3da   : > { %3279 = vmatprep.subr.mxu0 %v1328_v42 }
 0x3db   : > { %3258 = vmatpush3.xpose.msk.msra.mxu1 %vm1070_vm1, %v1063_v39  ;;  %3280 = vmatpush3.msra.mxu0 %v1328_v42 }
 0x3dc   : > { %3259 = vmatprep.subr.msk.mxu1 %vm1070_vm1, %v1061_v38 }
 0x3dd   : > { %v1326_v54 = vpop.permute.xlu1 %1325 }
 0x3de   : > { %3281 = vmatprep.subr.mxu0 %v1326_v54 }
 0x3df   : > { %3260 = vmatpush3.xpose.msk.msra.mxu1 %vm1070_vm1, %v1061_v38  ;;  %3282 = vmatpush3.msra.mxu0 %v1326_v54 }
 0x3e0   : > { %3261 = vmatprep.subr.msk.mxu1 %vm1070_vm1, %v1059_v41 }
 0x3e1   : > { %v1324_v43 = vpop.permute.xlu1 %1323 }
 0x3e2   : > { %3283 = vmatprep.subr.mxu0 %v1324_v43 }
 0x3e3   : > { %3262 = vmatpush3.xpose.msk.msra.mxu1 %vm1070_vm1, %v1059_v41  ;;  %3284 = vmatpush3.msra.mxu0 %v1324_v43 }
 0x3e4   : > { %3263 = vmatprep.subr.msk.mxu1 %vm1070_vm1, %v1057_v40 }
 0x3e5   : > { %v1322_v44 = vpop.permute.xlu1 %1321 }
 0x3e6   : > { %3285 = vmatprep.subr.mxu0 %v1322_v44 }
 0x3e7   : > { %3264 = vmatpush3.xpose.msk.msra.mxu1 %vm1070_vm1, %v1057_v40  ;;  %3286 = vmatpush3.msra.mxu0 %v1322_v44 }
 0x3e8   : > { %3265 = vmatprep.subr.msk.mxu1 %vm1070_vm1, %v1055_v53 }
 0x3eb   : > { %3266 = vmatpush3.xpose.msk.msra.mxu1 %vm1070_vm1, %v1055_v53 }
 0x3ee   : > { %3268 = vmatmul.mubr.msk.f32.vlgmr.msra.gmra.mxu1 %vm1070_vm1, %v4359_v45 }
 0x3ef   : > { %3270 = vmatprep.mubr.msk.f32.mxu1 %vm1070_vm1, %v4361_v46 }
 0x3f2   : > { %3271 = vmatmul.mubr.msk.f32.gmra.mxu1 %vm1070_vm1, %v4367_v48 }
 0x3f3   : > { %3273 = vmatprep.mubr.msk.f32.mxu1 %vm1070_vm1, %v4369_v62 }
 0x3f6   : > { %3274 = vmatmul.mubr.msk.f32.gmra.mxu1 %vm1070_vm1, %v4376_v63 }
 0x3f7   : > { %3276 = vmatprep.mubr.msk.f32.mxu1 %vm1070_vm1, %v4379_v49 }
 0x3fa   : > { %3277 = vmatmul.mubr.msk.f32.gmra.mxu1 %vm1070_vm1, %v4386_v50 }
 0x4ae   : > { %v3269_v51 = vpop.f32.mrf.mxu1 }
 0x4af   : > { %v1220_v52 = vsel %vm1216_vm2, %v3269_v51, -inf }
 0x4b0   : > { %1221 = vmax.xlane.f32.xlu1 %v1220_v52  ;;  %v1177_v55 = vpop.f32.mrf.mxu1 }
 0x4b1   : > { %v1217_v8 = vsel %vm1216_vm2, %v1177_v55, -inf }
 0x4b2   : > { %1218 = vmax.xlane.f32.xlu0 %v1217_v8  ;;  %v3272_v9 = vpop.f32.mrf.mxu1 }
 0x4b3   : > { %v1226_v57 = vsel %vm1216_vm2, %v3272_v9, -inf }
 0x4b4   : > { %v1187_v18 = vpop.f32.mrf.mxu1 }
 0x4b5   : > { %v1223_v1 = vsel %vm1216_vm2, %v1187_v18, -inf }
 0x4b6   : > { %1227 = vmax.xlane.f32.xlu0 %v1226_v57  ;;  %v3275_v60 = vpop.f32.mrf.mxu1 }
 0x4b7   : > { %v1232_v61 = vsel %vm1216_vm2, %v3275_v60, -inf }
 0x4b8   : > { %1233 = vmax.xlane.f32.xlu1 %v1232_v61  ;;  %v1197_v0 = vpop.f32.mrf.mxu1 }
 0x4b9   : > { %v1229_v5 = vsel %vm1216_vm2, %v1197_v0, -inf }
 0x4ba   : > { %1224 = vmax.xlane.f32.xlu0 %v1223_v1  ;;  %v3278_v59 = vpop.f32.mrf.mxu1 }
 0x4bb   : > { %v1238_v2 = vsel %vm1216_vm2, %v3278_v59, -inf }
 0x4bc   : > { %1239 = vmax.xlane.f32.xlu1 %v1238_v2  ;;  %v1207_v6 = vpop.f32.mrf.mxu1  ;;  %v1013_v2 = vld [vmem:[#allocation7 + $0x10] sm:$0xff] }
 0x4bd   : > { %v1235_v10 = vsel %vm1216_vm2, %v1207_v6, -inf }
 0x4be   : > { %1230 = vmax.xlane.f32.xlu0 %v1229_v5 }
 0x4c2   : > { %1236 = vmax.xlane.f32.xlu0 %v1235_v10 }
 0x4cd   : > { %1317 = vrot.lane.b32.xlu1 %v4306_v12, %s3951_s9 }
 0x4d8   : > { %1319 = vrot.lane.b32.xlu0 %v4308_v15, %s3951_s9 }
 0x539   : > { %v1222_v11 = vpop.xlane.xlu1 %1221 }
 0x53a   : > { %v1242_v13 = vsub.f32 %v3269_v51, %v1222_v11 }
 0x53b   : > { %v1219_v14 = vpop.xlane.xlu0 %1218 }
 0x53c   : > { %v1251_v16 = vmul.f32 1.442695, %v1242_v13  ;;  %v1241_v17 = vsub.f32 %v1177_v55, %v1219_v14 }
 0x53e   : > { %3638 = vpow2.f32 %v1251_v16  ;;  %v1249_v19 = vmul.f32 1.442695, %v1241_v17 }
 0x53f   : > { %v1228_v20 = vpop.xlane.xlu0 %1227 }
 0x540   : > { %3640 = vpow2.f32 %v1249_v19  ;;  %v1244_v36 = vsub.f32 %v3272_v9, %v1228_v20 }
 0x541   : > { %v1234_v22 = vpop.xlane.xlu1 %1233 }
 0x542   : > { %v1255_v47 = vmul.f32 1.442695, %v1244_v36  ;;  %v1246_v38 = vsub.f32 %v3275_v60, %v1234_v22 }
 0x543   : > { %v1225_v21 = vpop.xlane.xlu0 %1224 }
 0x544   : > { %v1243_v37 = vsub.f32 %v1187_v18, %v1225_v21  ;;  %3642 = vpow2.f32 %v1255_v47  ;;  %v1259_v41 = vmul.f32 1.442695, %v1246_v38 }
 0x545   : > { %v1240_v25 = vpop.xlane.xlu1 %1239 }
 0x546   : > { %v1253_v39 = vmul.f32 1.442695, %v1243_v37  ;;  %v1248_v42 = vsub.f32 %v3278_v59, %v1240_v25 }
 0x547   : > { %v1231_v23 = vpop.xlane.xlu0 %1230 }
 0x548   : > { %v1245_v40 = vsub.f32 %v1197_v0, %v1231_v23  ;;  %3644 = vpow2.f32 %v1253_v39  ;;  %v1263_v43 = vmul.f32 1.442695, %v1248_v42  ;;  %v1012_v42 = vld [vmem:[#allocation7 + $0x8] sm:$0xff] }
 0x549   : > { %v1318_v31 = vpop.permute.xlu1 %1317  ;;  %3646 = vpow2.f32 %v1259_v41 }
 0x54a   : > { %v1257_v53 = vmul.f32 1.442695, %v1245_v40 }
 0x54b   : > { %v4402_v24 = vpop.eup %3638  ;;  %v1237_v26 = vpop.xlane.xlu0 %1236 }
 0x54c   : > { %v1268_v27 = vsel %vm1216_vm2, %v4402_v24, 0.0  ;;  %v1247_v54 = vsub.f32 %v1207_v6, %v1237_v26  ;;  %3648 = vpow2.f32 %v1257_v53  ;;  %v4521_v53 = vpop.f32.mrf.mxu0 }
 0x54d   : > { %v4406_v28 = vpop.eup %3640  ;;  %1269 = vadd.xlane.f32.xlu1 %v1268_v27  ;;  %3650 = vpow2.f32 %v1263_v43  ;;  %v1011_v43 = vld [vmem:[#allocation7] sm:$0xff] }
 0x54e   : > { %v1265_v29 = vsel %vm1216_vm2, %v4406_v28, 0.0  ;;  %v1261_v44 = vmul.f32 1.442695, %v1247_v54 }
 0x54f   : > { %1266 = vadd.xlane.f32.xlu0 %v1265_v29  ;;  %v1320_v30 = vpop.permute.xlu0 %1319 }
 0x550   : > { %3287 = vmatprep.subr.mxu0 %v1320_v30  ;;  %3652 = vpow2.f32 %v1261_v44 }
 0x551   : > { %3288 = vmatpush3.msra.mxu0 %v1320_v30  ;;  %v4414_v51 = vpop.eup %3642 }
 0x552   : > { %3289 = vmatprep.subr.mxu0 %v1318_v31  ;;  %v1274_v55 = vsel %vm1216_vm2, %v4414_v51, 0.0 }
 0x553   : > { %3290 = vmatpush3.msra.mxu0 %v1318_v31 }
 0x555   : > { %v4416_v52 = vpop.eup %3644 }
 0x556   : > { %v4420_v8 = vpop.eup %3646  ;;  %v1271_v9 = vsel %vm1216_vm2, %v4416_v52, 0.0 }
 0x557   : > { %v1280_v57 = vsel %vm1216_vm2, %v4420_v8, 0.0 }
 0x559   : > { %v4424_v18 = vpop.eup %3648 }
 0x55a   : > { %v4428_v60 = vpop.eup %3650  ;;  %v1277_v61 = vsel %vm1216_vm2, %v4424_v18, 0.0 }
 0x55b   : > { %v1286_v1 = vsel %vm1216_vm2, %v4428_v60, 0.0 }
 0x55d   : > { %v4432_v0 = vpop.eup %3652 }
 0x55e   : > { %1313 = vrot.lane.b32.xlu1 %v4300_v4, %s3951_s9  ;;  %v1283_v59 = vsel %vm1216_vm2, %v4432_v0, 0.0 }
 0x565   : > { %1315 = vrot.lane.b32.xlu0 %v4304_v7, %s3951_s9 }
 0x582   : > { %1275 = vadd.xlane.f32.xlu1 %v1274_v55 }
 0x584   : > { %1272 = vadd.xlane.f32.xlu0 %v1271_v9 }
 0x586   : > { %1281 = vadd.xlane.f32.xlu1 %v1280_v57 }
 0x588   : > { %1278 = vadd.xlane.f32.xlu0 %v1277_v61 }
 0x58a   : > { %1287 = vadd.xlane.f32.xlu1 %v1286_v1 }
 0x58c   : > { %1284 = vadd.xlane.f32.xlu0 %v1283_v59  ;;  %v764_v59 = vsub.s32 2, %v4287_v56 }
 0x59b   : > { %1605 = vrot.lane.b32.xlu1 %v4359_v45, %s3952_s1 }
 0x59f   : > { %1609 = vrot.lane.b32.xlu1 %v4367_v48, %s3952_s1 }
 0x5a2   : > { %1603 = vrot.lane.b32.xlu0 %v4298_v3, %s3952_s1 }
 0x5a3   : > { %1613 = vrot.lane.b32.xlu1 %v4376_v63, %s3952_s1 }
 0x5a6   : > { %1607 = vrot.lane.b32.xlu0 %v4361_v46, %s3952_s1 }
 0x5a7   : > { %1617 = vrot.lane.b32.xlu1 %v4386_v50, %s3952_s1 }
 0x5aa   : > { %1611 = vrot.lane.b32.xlu0 %v4369_v62, %s3952_s1 }
 0x5ab   : > { %2162 = vrot.lane.b32.xlu1 %v4331_v33, %s3952_s1 }
 0x5ae   : > { %1615 = vrot.lane.b32.xlu0 %v4379_v49, %s3952_s1 }
 0x5af   : > { %2158 = vrot.lane.b32.xlu1 %v4339_v35, %s3952_s1 }
 0x5b2   : > { %2164 = vrot.lane.b32.xlu0 %v4326_v32, %s3952_s1 }
 0x5b3   : > { %2154 = vrot.lane.b32.xlu1 %v4306_v12, %s3952_s1 }
 0x5b6   : > { %2160 = vrot.lane.b32.xlu0 %v4335_v34, %s3952_s1 }
 0x5b7   : > { %2150 = vrot.lane.b32.xlu1 %v4300_v4, %s3952_s1 }
 0x5ba   : > { %2156 = vrot.lane.b32.xlu0 %v4308_v15, %s3952_s1 }
 0x5bb   : > { %2136 = vrot.lane.b32.xlu1 %v4359_v45, %s3951_s9 }
 0x5be   : > { %2152 = vrot.lane.b32.xlu0 %v4304_v7, %s3952_s1 }
 0x5bf   : > { %2140 = vrot.lane.b32.xlu1 %v4367_v48, %s3951_s9 }
 0x5c2   : > { %2134 = vrot.lane.b32.xlu0 %v4298_v3, %s3951_s9  ;;  %v1014_v3 = vld [vmem:[#allocation7 + $0x18] sm:$0xff] }
 0x5c3   : > { %2144 = vrot.lane.b32.xlu1 %v4376_v63, %s3951_s9  ;;  %3307 = vmatprep.subr.mxu1 %v1014_v3 }
 0x5c4   : > { %3308 = vmatpush3.msra.mxu1 %v1014_v3  ;;  %v765_v3 = vrot.slane %v4293_v58, %v764_v59 }
 0x5c5   : > { %3309 = vmatprep.subr.mxu1 %v1013_v2 }
 0x5c6   : > { %2138 = vrot.lane.b32.xlu0 %v4361_v46, %s3951_s9  ;;  %3310 = vmatpush3.msra.mxu1 %v1013_v2 }
 0x5c7   : > { %2148 = vrot.lane.b32.xlu1 %v4386_v50, %s3951_s9  ;;  %3311 = vmatprep.subr.mxu1 %v1012_v42 }
 0x5c8   : > { %3312 = vmatpush3.msra.mxu1 %v1012_v42 }
 0x5c9   : > { %3313 = vmatprep.subr.mxu1 %v1011_v43 }
 0x5ca   : > { %2142 = vrot.lane.b32.xlu0 %v4369_v62, %s3951_s9  ;;  %3314 = vmatpush3.msra.mxu1 %v1011_v43  ;;  %v4621_v43 = vld [vmem:[%s4947_s7] ss:$0 sm:$0xff] }
 0x5ce   : > { %2146 = vrot.lane.b32.xlu0 %v4379_v49, %s3951_s9 }
 0x5d6   : > { %v1270_v45 = vpop.xlane.xlu1 %1269 }
 0x5d7   : > { %3654 = vrcp.f32 %v1270_v45 }
 0x5d8   : > { %v1267_v48 = vpop.xlane.xlu0 %1266 }
 0x5d9   : > { %3656 = vrcp.f32 %v1267_v48 }
 0x5da   : > { %v1314_v46 = vpop.permute.xlu1 %1313 }
 0x5dc   : > { %v1316_v63 = vpop.permute.xlu0 %1315 }
 0x5dd   : > { %3291 = vmatprep.subr.mxu0 %v1316_v63 }
 0x5de   : > { %3292 = vmatpush3.msra.mxu0 %v1316_v63 }
 0x5df   : > { %3293 = vmatprep.subr.mxu0 %v1314_v46 }
 0x5e0   : > { %3294 = vmatpush3.msra.mxu0 %v1314_v46 }
 0x5e1   : > { %3327 = vmatprep.subr.msk.mxu0 %vm1070_vm1, %v4326_v32 }
 0x5e4   : > { %v3655_v62 = vpop.eup %3654 }
 0x5e5   : > { %v1298_v5 = vmul.f32 %v3655_v62, %v4402_v24 }
 0x5e6   : > { %v3657_v49 = vpop.eup %3656 }
 0x5e7   : > { %v1297_v50 = vmul.f32 %v3657_v49, %v4406_v28 }
 0x5e9   : > { %3295 = vmatprep.mubr.msk.f32.mxu0 %vm1216_vm2, %v1297_v50 }
 0x5ea   : > { %3296 = vmatmul.mubr.msk.f32.vlgmr.msra.gmra.mxu0 %vm1216_vm2, %v1298_v5 }
 0x5eb   : > { %3328 = vmatpush3.xpose.msk.msra.mxu0 %vm1070_vm1, %v4326_v32 }
 0x5ec   : > { %3329 = vmatprep.subr.msk.mxu0 %vm1070_vm1, %v4331_v33 }
 0x5ef   : > { %3330 = vmatpush3.xpose.msk.msra.mxu0 %vm1070_vm1, %v4331_v33 }
 0x5f0   : > { %3331 = vmatprep.subr.msk.mxu0 %vm1070_vm1, %v4335_v34 }
 0x5f3   : > { %3332 = vmatpush3.xpose.msk.msra.mxu0 %vm1070_vm1, %v4335_v34 }
 0x5f4   : > { %3333 = vmatprep.subr.msk.mxu0 %vm1070_vm1, %v4339_v35 }
 0x5f7   : > { %3334 = vmatpush3.xpose.msk.msra.mxu0 %vm1070_vm1, %v4339_v35 }
 0x5f8   : > { %3335 = vmatprep.subr.msk.mxu0 %vm1070_vm1, %v4308_v15 }
 0x5fb   : > { %3336 = vmatpush3.xpose.msk.msra.mxu0 %vm1070_vm1, %v4308_v15 }
 0x5fc   : > { %3337 = vmatprep.subr.msk.mxu0 %vm1070_vm1, %v4306_v12 }
 0x5ff   : > { %3338 = vmatpush3.xpose.msk.msra.mxu0 %vm1070_vm1, %v4306_v12 }
 0x600   : > { %3339 = vmatprep.subr.msk.mxu0 %vm1070_vm1, %v4304_v7 }
 0x603   : > { %3340 = vmatpush3.xpose.msk.msra.mxu0 %vm1070_vm1, %v4304_v7 }
 0x604   : > { %3341 = vmatprep.subr.msk.mxu0 %vm1070_vm1, %v4300_v4 }
 0x607   : > { %3342 = vmatpush3.xpose.msk.msra.mxu0 %vm1070_vm1, %v4300_v4 }
 0x60b   : > { %v1276_v6 = vpop.xlane.xlu1 %1275 }
 0x60c   : > { %3658 = vrcp.f32 %v1276_v6 }
 0x60d   : > { %v1273_v10 = vpop.xlane.xlu0 %1272 }
 0x60e   : > { %3660 = vrcp.f32 %v1273_v10 }
 0x60f   : > { %v1282_v11 = vpop.xlane.xlu1 %1281 }
 0x610   : > { %3662 = vrcp.f32 %v1282_v11 }
 0x611   : > { %v1279_v13 = vpop.xlane.xlu0 %1278 }
 0x612   : > { %3664 = vrcp.f32 %v1279_v13  ;;  %v4578_v13 = vadd.f32 %v4521_v53, %v765_v3 }
 0x613   : > { %v1288_v14 = vpop.xlane.xlu1 %1287 }
 0x614   : > { %3666 = vrcp.f32 %v1288_v14 }
 0x615   : > { %v1285_v16 = vpop.xlane.xlu0 %1284 }
 0x616   : > { %3668 = vrcp.f32 %v1285_v16 }
 0x617   : > { %v1606_v17 = vpop.permute.xlu1 %1605 }
 0x619   : > { %v1604_v19 = vpop.permute.xlu0 %1603  ;;  %v3659_v20 = vpop.eup %3658 }
 0x61a   : > { %v1300_v25 = vmul.f32 %v3659_v20, %v4414_v51  ;;  %v4527_v51 = vpop.f32.mrf.mxu0 }
 0x61b   : > { %v3661_v21 = vpop.eup %3660  ;;  %v1610_v22 = vpop.permute.xlu1 %1609  ;;  %v4583_v16 = vadd.f32 %v4527_v51, %v765_v3 }
 0x61c   : > { %v1299_v23 = vmul.f32 %v3661_v21, %v4416_v52 }
 0x61d   : > { %v1608_v24 = vpop.permute.xlu0 %1607  ;;  %v3663_v26 = vpop.eup %3662 }
 0x61e   : > { %3298 = vmatprep.mubr.msk.f32.mxu0 %vm1216_vm2, %v1299_v23  ;;  %v1302_v31 = vmul.f32 %v3663_v26, %v4420_v8  ;;  %v3244_v8 = vpop.f32.mrf.mxu0 }
 0x61f   : > { %v3665_v27 = vpop.eup %3664  ;;  %3299 = vmatmul.mubr.msk.f32.gmra.mxu0 %vm1216_vm2, %v1300_v25  ;;  %v1614_v28 = vpop.permute.xlu1 %1613  ;;  %v4567_v6 = vadd.f32 %v3244_v8, %v765_v3 }
 0x620   : > { %v1301_v29 = vmul.f32 %v3665_v27, %v4424_v18  ;;  %v982_v18 = vpop.f32.mrf.mxu0 }
 0x621   : > { %v1612_v30 = vpop.permute.xlu0 %1611  ;;  %v3667_v36 = vpop.eup %3666  ;;  %v4571_v10 = vadd.f32 %v982_v18, %v765_v3 }
 0x622   : > { %3301 = vmatprep.mubr.msk.f32.mxu0 %vm1216_vm2, %v1301_v29  ;;  %v1304_v39 = vmul.f32 %v3667_v36, %v4428_v60  ;;  %v3247_v61 = vpop.f32.mrf.mxu0 }
 0x623   : > { %v3669_v37 = vpop.eup %3668  ;;  %3302 = vmatmul.mubr.msk.f32.gmra.mxu0 %vm1216_vm2, %v1302_v31  ;;  %v1618_v40 = vpop.permute.xlu1 %1617  ;;  %v4557_v58 = vadd.f32 %v3247_v61, %v765_v3 }
 0x624   : > { %v1303_v47 = vmul.f32 %v3669_v37, %v4432_v0  ;;  %v992_v1 = vpop.f32.mrf.mxu0 }
 0x625   : > { %v1616_v38 = vpop.permute.xlu0 %1615  ;;  %v4561_v50 = vadd.f32 %v992_v1, %v765_v3 }
 0x626   : > { %3304 = vmatprep.mubr.msk.f32.mxu0 %vm1216_vm2, %v1303_v47  ;;  %v3250_v45 = vpop.f32.mrf.mxu0 }
 0x627   : > { %3305 = vmatmul.mubr.msk.f32.gmra.mxu0 %vm1216_vm2, %v1304_v39  ;;  %v2163_v54 = vpop.permute.xlu1 %2162  ;;  %v4548_v2 = vadd.f32 %v3250_v45, %v765_v3 }
 0x628   : > { %3343 = vmatprep.mubr.msk.f32.mxu0 %vm1070_vm1, %v1604_v19  ;;  %v1002_v46 = vpop.f32.mrf.mxu0 }
 0x629   : > { %v2165_v41 = vpop.permute.xlu0 %2164  ;;  %v4552_v56 = vadd.f32 %v1002_v46, %v765_v3 }
 0x62a   : > { %3403 = vmatprep.subr.msk.mxu0 %vm1070_vm1, %v2165_v41 }
 0x62b   : > { %3344 = vmatmul.mubr.msk.f32.vlgmr.msra.gmra.mxu0 %vm1070_vm1, %v1606_v17  ;;  %v2159_v55 = vpop.permute.xlu1 %2158 }
 0x62c   : > { %3404 = vmatpush3.xpose.msk.msra.mxu0 %vm1070_vm1, %v2165_v41  ;;  %3346 = vmatprep.mubr.msk.f32.mxu0 %vm1070_vm1, %v1608_v24 }
 0x62d   : > { %3405 = vmatprep.subr.msk.mxu0 %vm1070_vm1, %v2163_v54  ;;  %v2161_v44 = vpop.permute.xlu0 %2160 }
 0x62f   : > { %3347 = vmatmul.mubr.msk.f32.gmra.mxu0 %vm1070_vm1, %v1610_v22  ;;  %v2155_v57 = vpop.permute.xlu1 %2154 }
 0x630   : > { %3406 = vmatpush3.xpose.msk.msra.mxu0 %vm1070_vm1, %v2163_v54  ;;  %3349 = vmatprep.mubr.msk.f32.mxu0 %vm1070_vm1, %v1612_v30 }
 0x631   : > { %3407 = vmatprep.subr.msk.mxu0 %vm1070_vm1, %v2161_v44  ;;  %v2157_v52 = vpop.permute.xlu0 %2156 }
 0x633   : > { %3350 = vmatmul.mubr.msk.f32.gmra.mxu0 %vm1070_vm1, %v1614_v28  ;;  %v2151_v0 = vpop.permute.xlu1 %2150 }
 0x634   : > { %3408 = vmatpush3.xpose.msk.msra.mxu0 %vm1070_vm1, %v2161_v44  ;;  %3352 = vmatprep.mubr.msk.f32.mxu0 %vm1070_vm1, %v1616_v38 }
 0x635   : > { %3409 = vmatprep.subr.msk.mxu0 %vm1070_vm1, %v2159_v55  ;;  %v2153_v9 = vpop.permute.xlu0 %2152 }
 0x637   : > { %3353 = vmatmul.mubr.msk.f32.gmra.mxu0 %vm1070_vm1, %v1618_v40  ;;  %v2137_v48 = vpop.permute.xlu1 %2136 }
 0x638   : > { %3410 = vmatpush3.xpose.msk.msra.mxu0 %vm1070_vm1, %v2159_v55 }
 0x639   : > { %3411 = vmatprep.subr.msk.mxu0 %vm1070_vm1, %v2157_v52  ;;  %v2135_v60 = vpop.permute.xlu0 %2134 }
 0x63a   : > { %3419 = vmatprep.mubr.msk.f32.mxu0 %vm1070_vm1, %v2135_v60 }
 0x63b   : > { %v2141_v62 = vpop.permute.xlu1 %2140 }
 0x63c   : > { %3412 = vmatpush3.xpose.msk.msra.mxu0 %vm1070_vm1, %v2157_v52 }
 0x63d   : > { %3413 = vmatprep.subr.msk.mxu0 %vm1070_vm1, %v2155_v57  ;;  %v2139_v63 = vpop.permute.xlu0 %2138 }
 0x63f   : > { %v2145_v5 = vpop.permute.xlu1 %2144 }
 0x640   : > { %3414 = vmatpush3.xpose.msk.msra.mxu0 %vm1070_vm1, %v2155_v57 }
 0x641   : > { %3415 = vmatprep.subr.msk.mxu0 %vm1070_vm1, %v2153_v9  ;;  %v2143_v49 = vpop.permute.xlu0 %2142 }
 0x643   : > { %v2149_v14 = vpop.permute.xlu1 %2148 }
 0x644   : > { %3416 = vmatpush3.xpose.msk.msra.mxu0 %vm1070_vm1, %v2153_v9 }
 0x645   : > { %3417 = vmatprep.subr.msk.mxu0 %vm1070_vm1, %v2151_v0  ;;  %v2147_v11 = vpop.permute.xlu0 %2146 }
 0x648   : > { %3418 = vmatpush3.xpose.msk.msra.mxu0 %vm1070_vm1, %v2151_v0 }
 0x649   : > { %3431 = vmatprep.subr.mxu0 %v4548_v2 }
 0x64b   : > { %3420 = vmatmul.mubr.msk.f32.vlgmr.msra.gmra.mxu0 %vm1070_vm1, %v2137_v48 }
 0x64c   : > { %3422 = vmatprep.mubr.msk.f32.mxu0 %vm1070_vm1, %v2139_v63  ;;  %3432 = vmatpush3.msra.mxu0 %v4548_v2 }
 0x64d   : > { %3433 = vmatprep.subr.mxu0 %v4552_v56 }
 0x64e   : > { %3434 = vmatpush3.msra.mxu0 %v4552_v56 }
 0x64f   : > { %3423 = vmatmul.mubr.msk.f32.gmra.mxu0 %vm1070_vm1, %v2141_v62  ;;  %3435 = vmatprep.subr.mxu0 %v4557_v58 }
 0x650   : > { %3425 = vmatprep.mubr.msk.f32.mxu0 %vm1070_vm1, %v2143_v49  ;;  %3436 = vmatpush3.msra.mxu0 %v4557_v58 }
 0x651   : > { %3437 = vmatprep.subr.mxu0 %v4561_v50 }
 0x652   : > { %3438 = vmatpush3.msra.mxu0 %v4561_v50 }
 0x653   : > { %3426 = vmatmul.mubr.msk.f32.gmra.mxu0 %vm1070_vm1, %v2145_v5  ;;  %3439 = vmatprep.subr.mxu0 %v4567_v6 }
 0x654   : > { %3428 = vmatprep.mubr.msk.f32.mxu0 %vm1070_vm1, %v2147_v11  ;;  %3440 = vmatpush3.msra.mxu0 %v4567_v6 }
 0x655   : > { %3441 = vmatprep.subr.mxu0 %v4571_v10 }
 0x656   : > { %3442 = vmatpush3.msra.mxu0 %v4571_v10 }
 0x657   : > { %3429 = vmatmul.mubr.msk.f32.gmra.mxu0 %vm1070_vm1, %v2149_v14  ;;  %3443 = vmatprep.subr.mxu0 %v4578_v13 }
 0x658   : > { %3444 = vmatpush3.msra.mxu0 %v4578_v13 }
 0x659   : > { %3445 = vmatprep.subr.mxu0 %v4583_v16 }
 0x65a   : > { %3446 = vmatpush3.msra.mxu0 %v4583_v16 }
 0x6aa   : > { %v3297_v17 = vpop.f32.mrf.mxu0 }
 0x6ac   : > { %v1427_v19 = vpop.f32.mrf.mxu0 }
 0x6ad   : > { %3315 = vmatprep.mubr.msk.f32.mxu1 %vm1070_vm1, %v1427_v19 }
 0x6ae   : > { %3316 = vmatmul.mubr.msk.f32.vlgmr.msra.gmra.mxu1 %vm1070_vm1, %v3297_v17 }
 0x6df   : > { %v3300_v20 = vpop.f32.mrf.mxu0 }
 0x6e1   : > { %v1437_v21 = vpop.f32.mrf.mxu0 }
 0x6e2   : > { %3318 = vmatprep.mubr.msk.f32.mxu1 %vm1070_vm1, %v1437_v21 }
 0x6e3   : > { %v3303_v22 = vpop.f32.mrf.mxu0  ;;  %3319 = vmatmul.mubr.msk.f32.gmra.mxu1 %vm1070_vm1, %v3300_v20 }
 0x6e5   : > { %v1447_v23 = vpop.f32.mrf.mxu0 }
 0x6e6   : > { %3321 = vmatprep.mubr.msk.f32.mxu1 %vm1070_vm1, %v1447_v23 }
 0x6e7   : > { %v3306_v24 = vpop.f32.mrf.mxu0  ;;  %3322 = vmatmul.mubr.msk.f32.gmra.mxu1 %vm1070_vm1, %v3303_v22 }
 0x6e9   : > { %v1457_v25 = vpop.f32.mrf.mxu0 }
 0x6ea   : > { %3324 = vmatprep.mubr.msk.f32.mxu1 %vm1070_vm1, %v1457_v25 }
 0x6eb   : > { %3325 = vmatmul.mubr.msk.f32.gmra.mxu1 %vm1070_vm1, %v3306_v24  ;;  %v3345_v26 = vpop.f32.mrf.mxu0 }
 0x6ec   : > { %v1759_v27 = vsel %vm1216_vm2, %v3345_v26, -inf }
 0x6ed   : > { %1760 = vmax.xlane.f32.xlu1 %v1759_v27  ;;  %v1717_v28 = vpop.f32.mrf.mxu0 }
 0x6ee   : > { %v1756_v29 = vsel %vm1216_vm2, %v1717_v28, -inf }
 0x6ef   : > { %1757 = vmax.xlane.f32.xlu0 %v1756_v29  ;;  %v3348_v30 = vpop.f32.mrf.mxu0 }
 0x6f0   : > { %v1765_v36 = vsel %vm1216_vm2, %v3348_v30, -inf }
 0x6f1   : > { %v1727_v31 = vpop.f32.mrf.mxu0 }
 0x6f2   : > { %v1762_v39 = vsel %vm1216_vm2, %v1727_v31, -inf }
 0x6f3   : > { %1766 = vmax.xlane.f32.xlu0 %v1765_v36  ;;  %v3351_v37 = vpop.f32.mrf.mxu0 }
 0x6f4   : > { %v1771_v47 = vsel %vm1216_vm2, %v3351_v37, -inf }
 0x6f5   : > { %1772 = vmax.xlane.f32.xlu1 %v1771_v47  ;;  %v1737_v38 = vpop.f32.mrf.mxu0 }
 0x6f6   : > { %v1768_v42 = vsel %vm1216_vm2, %v1737_v38, -inf }
 0x6f7   : > { %1763 = vmax.xlane.f32.xlu0 %v1762_v39  ;;  %v3354_v40 = vpop.f32.mrf.mxu0 }
 0x6f8   : > { %v1777_v41 = vsel %vm1216_vm2, %v3354_v40, -inf }
 0x6f9   : > { %1778 = vmax.xlane.f32.xlu1 %v1777_v41  ;;  %v1747_v53 = vpop.f32.mrf.mxu0 }
 0x6fa   : > { %v1774_v54 = vsel %vm1216_vm2, %v1747_v53, -inf }
 0x6fb   : > { %1769 = vmax.xlane.f32.xlu0 %v1768_v42 }
 0x6ff   : > { %1775 = vmax.xlane.f32.xlu0 %v1774_v54 }
 0x70a   : > { %1856 = vrot.lane.b32.xlu1 %v4331_v33, %s3950_s30  ;;  %v3734_v33 = vld [vmem:[%s4168_s12] sm:$0xff] }
 0x70e   : > { %1854 = vrot.lane.b32.xlu1 %v4335_v34, %s3950_s30  ;;  %v1030_v34 = vadd.f32 %v3734_v33, %v4621_v43 }
 0x712   : > { %1852 = vrot.lane.b32.xlu1 %v4339_v35, %s3950_s30 }
 0x715   : > { %1858 = vrot.lane.b32.xlu0 %v4326_v32, %s3950_s30 }
 0x716   : > { %1848 = vrot.lane.b32.xlu1 %v4306_v12, %s3950_s30 }
 0x719   : > { %1850 = vrot.lane.b32.xlu0 %v4308_v15, %s3950_s30 }
 0x76e   : > { %v4625_v44 = vpop.f32.mrf.mxu1 }
 0x770   : > { %v1556_v35 = vpop.f32.mrf.mxu1 }
 0x771   : > { %v4627_v51 = vadd.f32 %v1556_v35, %v1030_v34 }
 0x776   : > { %v1761_v32 = vpop.xlane.xlu1 %1760 }
 0x777   : > { %v1781_v52 = vsub.f32 %v3345_v26, %v1761_v32 }
 0x778   : > { %v1758_v55 = vpop.xlane.xlu0 %1757 }
 0x779   : > { %v1790_v12 = vmul.f32 1.442695, %v1781_v52  ;;  %v1780_v8 = vsub.f32 %v1717_v28, %v1758_v55 }
 0x77b   : > { %3670 = vpow2.f32 %v1790_v12  ;;  %v1788_v15 = vmul.f32 1.442695, %v1780_v8 }
 0x77c   : > { %v1767_v9 = vpop.xlane.xlu0 %1766 }
 0x77d   : > { %3672 = vpow2.f32 %v1788_v15  ;;  %v1783_v18 = vsub.f32 %v3348_v30, %v1767_v9 }
 0x77e   : > { %v1773_v57 = vpop.xlane.xlu1 %1772 }
 0x77f   : > { %v1794_v60 = vmul.f32 1.442695, %v1783_v18  ;;  %v1785_v61 = vsub.f32 %v3351_v37, %v1773_v57 }
 0x780   : > { %v1764_v0 = vpop.xlane.xlu0 %1763 }
 0x781   : > { %3674 = vpow2.f32 %v1794_v60  ;;  %v1798_v1 = vmul.f32 1.442695, %v1785_v61  ;;  %v1782_v59 = vsub.f32 %v1727_v31, %v1764_v0 }
 0x782   : > { %v1779_v45 = vpop.xlane.xlu1 %1778 }
 0x783   : > { %3676 = vpow2.f32 %v1798_v1  ;;  %v1792_v48 = vmul.f32 1.442695, %v1782_v59  ;;  %v1787_v3 = vsub.f32 %v3354_v40, %v1779_v45 }
 0x784   : > { %v1770_v63 = vpop.xlane.xlu0 %1769 }
 0x785   : > { %3678 = vpow2.f32 %v1792_v48  ;;  %v1802_v46 = vmul.f32 1.442695, %v1787_v3  ;;  %v1784_v62 = vsub.f32 %v1737_v38, %v1770_v63 }
 0x786   : > { %v1857_v49 = vpop.permute.xlu1 %1856 }
 0x787   : > { %3680 = vpow2.f32 %v1802_v46  ;;  %v1796_v5 = vmul.f32 1.442695, %v1784_v62 }
 0x788   : > { %v4629_v11 = vpop.eup %3670  ;;  %v1776_v14 = vpop.xlane.xlu0 %1775 }
 0x789   : > { %3682 = vpow2.f32 %v1796_v5  ;;  %v1786_v17 = vsub.f32 %v1747_v53, %v1776_v14  ;;  %v1807_v19 = vsel %vm1216_vm2, %v4629_v11, 0.0  ;;  %v4665_v53 = vpop.f32.mrf.mxu0 }
 0x78a   : > { %v4633_v20 = vpop.eup %3672  ;;  %1808 = vadd.xlane.f32.xlu1 %v1807_v19  ;;  %v1855_v22 = vpop.permute.xlu1 %1854  ;;  %v2306_v32 = vsel %vm1216_vm2, %v4665_v53, -inf }
 0x78b   : > { %v1800_v21 = vmul.f32 1.442695, %v1786_v17  ;;  %v1804_v23 = vsel %vm1216_vm2, %v4633_v20, 0.0  ;;  %v4667_v54 = vpop.f32.mrf.mxu0  ;;  %v1018_v17 = vld [vmem:[#allocation7 + $0x38] sm:$0xff] }
 0x78c   : > { %1805 = vadd.xlane.f32.xlu0 %v1804_v23  ;;  %v1859_v24 = vpop.permute.xlu0 %1858  ;;  %v2303_v55 = vsel %vm1216_vm2, %v4667_v54, -inf }
 0x78d   : > { %3684 = vpow2.f32 %v1800_v21  ;;  %3355 = vmatprep.subr.mxu1 %v1859_v24  ;;  %v4669_v33 = vpop.f32.mrf.mxu0 }
 0x78e   : > { %v4637_v25 = vpop.eup %3674  ;;  %3356 = vmatpush3.msra.mxu1 %v1859_v24  ;;  %v1853_v28 = vpop.permute.xlu1 %1852  ;;  %v2312_v15 = vsel %vm1216_vm2, %v4669_v33, -inf  ;;  %v1016_v24 = vld [vmem:[#allocation7 + $0x28] sm:$0xff] }
 0x78f   : > { %3357 = vmatprep.subr.mxu1 %v1857_v49  ;;  %v1813_v26 = vsel %vm1216_vm2, %v4637_v25, 0.0  ;;  %v4671_v34 = vpop.f32.mrf.mxu0 }
 0x790   : > { %v4641_v27 = vpop.eup %3676  ;;  %1814 = vadd.xlane.f32.xlu1 %v1813_v26  ;;  %3358 = vmatpush3.msra.mxu1 %v1857_v49  ;;  %v1851_v37 = vpop.permute.xlu0 %1850  ;;  %v2309_v8 = vsel %vm1216_vm2, %v4671_v34, -inf }
 0x791   : > { %3359 = vmatprep.subr.mxu1 %v1855_v22  ;;  %v1819_v30 = vsel %vm1216_vm2, %v4641_v27, 0.0  ;;  %v4673_v35 = vpop.f32.mrf.mxu0 }
 0x792   : > { %v4643_v29 = vpop.eup %3678  ;;  %3360 = vmatpush3.msra.mxu1 %v1855_v22  ;;  %v1849_v38 = vpop.permute.xlu1 %1848  ;;  %v1017_v22 = vld [vmem:[#allocation7 + $0x30] sm:$0xff] }
 0x793   : > { %3361 = vmatprep.subr.mxu1 %v1853_v28  ;;  %v1810_v31 = vsel %vm1216_vm2, %v4643_v29, 0.0  ;;  %v4677_v52 = vpop.f32.mrf.mxu0 }
 0x794   : > { %v4649_v36 = vpop.eup %3680  ;;  %1820 = vadd.xlane.f32.xlu1 %v1819_v30  ;;  %1811 = vadd.xlane.f32.xlu0 %v1810_v31  ;;  %v2315_v9 = vsel %vm1216_vm2, %v4677_v52, -inf  ;;  %v1015_v30 = vld [vmem:[#allocation7 + $0x20] sm:$0xff] }
 0x795   : > { %3362 = vmatpush3.msra.mxu1 %v1853_v28  ;;  %v1825_v39 = vsel %vm1216_vm2, %v4649_v36, 0.0 }
 0x796   : > { %v4651_v47 = vpop.eup %3682  ;;  %3363 = vmatprep.subr.mxu1 %v1851_v37 }
 0x797   : > { %3364 = vmatpush3.msra.mxu1 %v1851_v37  ;;  %v1816_v40 = vsel %vm1216_vm2, %v4651_v47, 0.0 }
 0x798   : > { %3365 = vmatprep.subr.mxu1 %v1849_v38  ;;  %1826 = vadd.xlane.f32.xlu1 %v1825_v39 }
 0x799   : > { %1817 = vadd.xlane.f32.xlu0 %v1816_v40  ;;  %3366 = vmatpush3.msra.mxu1 %v1849_v38 }
 0x79a   : > { %v4657_v41 = vpop.eup %3684 }
 0x79b   : > { %v1822_v42 = vsel %vm1216_vm2, %v4657_v41, 0.0 }
 0x79d   : > { %1823 = vadd.xlane.f32.xlu0 %v1822_v42 }
 0x7a9   : > { %1844 = vrot.lane.b32.xlu1 %v4300_v4, %s3950_s30  ;;  %v2318_v4 = vsel %vm1216_vm2, %v4673_v35, -inf }
 0x7b3   : > { %1846 = vrot.lane.b32.xlu0 %v4304_v7, %s3950_s30  ;;  %v4681_v7 = vpop.f32.mrf.mxu0 }
 0x7b4   : > { %v2324_v12 = vsel %vm1216_vm2, %v4681_v7, -inf }
 0x7b5   : > { %v4693_v18 = vpop.f32.mrf.mxu0 }
 0x7b6   : > { %v2321_v57 = vsel %vm1216_vm2, %v4693_v18, -inf }
 0x7cd   : > { %2307 = vmax.xlane.f32.xlu1 %v2306_v32 }
 0x7d1   : > { %2319 = vmax.xlane.f32.xlu1 %v2318_v4 }
 0x7d2   : > { %2304 = vmax.xlane.f32.xlu0 %v2303_v55 }
 0x7d5   : > { %2325 = vmax.xlane.f32.xlu1 %v2324_v12 }
 0x7d6   : > { %2310 = vmax.xlane.f32.xlu0 %v2309_v8 }
 0x7da   : > { %2313 = vmax.xlane.f32.xlu0 %v2312_v15 }
 0x7de   : > { %2316 = vmax.xlane.f32.xlu0 %v2315_v9 }
 0x7e2   : > { %2322 = vmax.xlane.f32.xlu0 %v2321_v57 }
 0x813   : > { %v1809_v61 = vpop.xlane.xlu1 %1808 }
 0x815   : > { %v1806_v60 = vpop.xlane.xlu0 %1805 }
 0x816   : > { %3686 = vrcp.f32 %v1806_v60 }
 0x817   : > { %3688 = vrcp.f32 %v1809_v61 }
 0x819   : > { %v1815_v0 = vpop.xlane.xlu1 %1814 }
 0x81d   : > { %v1812_v1 = vpop.xlane.xlu0 %1811  ;;  %v1821_v59 = vpop.xlane.xlu1 %1820 }
 0x81e   : > { %3690 = vrcp.f32 %v1812_v1 }
 0x81f   : > { %3692 = vrcp.f32 %v1815_v0 }
 0x821   : > { %v1827_v63 = vpop.xlane.xlu1 %1826 }
 0x822   : > { %v1818_v45 = vpop.xlane.xlu0 %1817 }
 0x823   : > { %v3687_v48 = vpop.eup %3686  ;;  %3694 = vrcp.f32 %v1818_v45 }
 0x824   : > { %v1836_v3 = vmul.f32 %v3687_v48, %v4633_v20  ;;  %3696 = vrcp.f32 %v1821_v59  ;;  %v3689_v62 = vpop.eup %3688 }
 0x825   : > { %v1845_v14 = vpop.permute.xlu1 %1844  ;;  %v1837_v19 = vmul.f32 %v3689_v62, %v4629_v11 }
 0x826   : > { %v1824_v46 = vpop.xlane.xlu0 %1823  ;;  %3371 = vmatprep.mubr.msk.f32.mxu1 %vm1216_vm2, %v1836_v3 }
 0x827   : > { %3698 = vrcp.f32 %v1824_v46 }
 0x828   : > { %3700 = vrcp.f32 %v1827_v63 }
 0x82a   : > { %v1847_v49 = vpop.permute.xlu0 %1846 }
 0x82b   : > { %3367 = vmatprep.subr.mxu1 %v1847_v49  ;;  %v3691_v5 = vpop.eup %3690 }
 0x82c   : > { %3368 = vmatpush3.msra.mxu1 %v1847_v49  ;;  %v1838_v21 = vmul.f32 %v3691_v5, %v4643_v29  ;;  %v3693_v20 = vpop.eup %3692 }
 0x82d   : > { %3369 = vmatprep.subr.mxu1 %v1845_v14  ;;  %v1839_v26 = vmul.f32 %v3693_v20, %v4637_v25  ;;  %v4754_v20 = vpop.f32.mrf.mxu1 }
 0x82e   : > { %3370 = vmatpush3.msra.mxu1 %v1845_v14 }
 0x82f   : > { %3372 = vmatmul.mubr.msk.f32.vlgmr.msra.gmra.mxu1 %vm1216_vm2, %v1837_v19  ;;  %3383 = vmatprep.subr.mxu1 %v1018_v17 }
 0x830   : > { %v3695_v23 = vpop.eup %3694  ;;  %3374 = vmatprep.mubr.msk.f32.mxu1 %vm1216_vm2, %v1838_v21  ;;  %3384 = vmatpush3.msra.mxu1 %v1018_v17 }
 0x831   : > { %3385 = vmatprep.subr.mxu1 %v1017_v22  ;;  %v1840_v28 = vmul.f32 %v3695_v23, %v4651_v47  ;;  %v3697_v11 = vpop.eup %3696 }
 0x832   : > { %3386 = vmatpush3.msra.mxu1 %v1017_v22  ;;  %v1841_v31 = vmul.f32 %v3697_v11, %v4641_v27  ;;  %v4756_v22 = vpop.f32.mrf.mxu1 }
 0x833   : > { %3375 = vmatmul.mubr.msk.f32.gmra.mxu1 %vm1216_vm2, %v1839_v26  ;;  %3387 = vmatprep.subr.mxu1 %v1016_v24 }
 0x834   : > { %v3699_v29 = vpop.eup %3698  ;;  %3377 = vmatprep.mubr.msk.f32.mxu1 %vm1216_vm2, %v1840_v28  ;;  %3388 = vmatpush3.msra.mxu1 %v1016_v24  ;;  %v4758_v23 = vpop.f32.mrf.mxu1 }
 0x835   : > { %3389 = vmatprep.subr.mxu1 %v1015_v30  ;;  %v1842_v37 = vmul.f32 %v3699_v29, %v4657_v41  ;;  %v3701_v38 = vpop.eup %3700 }
 0x836   : > { %3390 = vmatpush3.msra.mxu1 %v1015_v30  ;;  %v1843_v25 = vmul.f32 %v3701_v38, %v4649_v36  ;;  %v4760_v24 = vpop.f32.mrf.mxu1 }
 0x837   : > { %3378 = vmatmul.mubr.msk.f32.gmra.mxu1 %vm1216_vm2, %v1841_v31  ;;  %3479 = vmatprep.subr.mxu1 %v4548_v2 }
 0x838   : > { %3380 = vmatprep.mubr.msk.f32.mxu1 %vm1216_vm2, %v1842_v37  ;;  %v4762_v26 = vpop.f32.mrf.mxu1 }
 0x83a   : > { %v4764_v28 = vpop.f32.mrf.mxu1 }
 0x83b   : > { %3381 = vmatmul.mubr.msk.f32.gmra.mxu1 %vm1216_vm2, %v1843_v25 }
 0x856   : > { %v2308_v47 = vpop.xlane.xlu1 %2307 }
 0x857   : > { %v2328_v39 = vsub.f32 %v4665_v53, %v2308_v47 }
 0x859   : > { %v2337_v40 = vmul.f32 1.442695, %v2328_v39 }
 0x85a   : > { %v2320_v42 = vpop.xlane.xlu1 %2319 }
 0x85b   : > { %3702 = vpow2.f32 %v2337_v40  ;;  %v2305_v27 = vpop.xlane.xlu0 %2304  ;;  %v2332_v12 = vsub.f32 %v4673_v35, %v2320_v42 }
 0x85c   : > { %v2327_v41 = vsub.f32 %v4667_v54, %v2305_v27 }
 0x85d   : > { %v2345_v53 = vmul.f32 1.442695, %v2332_v12 }
 0x85e   : > { %v2335_v32 = vmul.f32 1.442695, %v2327_v41  ;;  %v2326_v36 = vpop.xlane.xlu1 %2325 }
 0x85f   : > { %v2311_v4 = vpop.xlane.xlu0 %2310  ;;  %v2334_v57 = vsub.f32 %v4681_v7, %v2326_v36 }
 0x860   : > { %3704 = vpow2.f32 %v2335_v32  ;;  %v2329_v55 = vsub.f32 %v4671_v34, %v2311_v4 }
 0x861   : > { %v2349_v35 = vmul.f32 1.442695, %v2334_v57 }
 0x862   : > { %v2339_v8 = vmul.f32 1.442695, %v2329_v55 }
 0x863   : > { %v2314_v15 = vpop.xlane.xlu0 %2313 }
 0x864   : > { %3706 = vpow2.f32 %v2339_v8  ;;  %v2330_v9 = vsub.f32 %v4669_v33, %v2314_v15 }
 0x866   : > { %v2341_v60 = vmul.f32 1.442695, %v2330_v9 }
 0x867   : > { %v2317_v61 = vpop.xlane.xlu0 %2316 }
 0x868   : > { %v4720_v54 = vpop.eup %3702  ;;  %3708 = vpow2.f32 %v2341_v60  ;;  %v2331_v0 = vsub.f32 %v4677_v52, %v2317_v61  ;;  %v1022_v61 = vld [vmem:[#allocation7 + $0x58] sm:$0xff] }
 0x869   : > { %v2354_v34 = vsel %vm1216_vm2, %v4720_v54, 0.0  ;;  %3710 = vpow2.f32 %v2345_v53 }
 0x86a   : > { %v2343_v1 = vmul.f32 1.442695, %v2331_v0  ;;  %2355 = vadd.xlane.f32.xlu1 %v2354_v34  ;;  %v1020_v0 = vld [vmem:[#allocation7 + $0x48] sm:$0xff]  ;;  %v1019_v34 = vld [vmem:[#allocation7 + $0x40] sm:$0xff] }
 0x86b   : > { %v2323_v59 = vpop.xlane.xlu0 %2322 }
 0x86c   : > { %3712 = vpow2.f32 %v2343_v1  ;;  %v2333_v33 = vsub.f32 %v4693_v18, %v2323_v59 }
 0x86d   : > { %v4726_v45 = vpop.eup %3704  ;;  %3714 = vpow2.f32 %v2349_v35  ;;  %v3735_v35 = vld [vmem:[%s4168_s12 + $0x8] sm:$0xff] }
 0x86e   : > { %v2347_v7 = vmul.f32 1.442695, %v2333_v33  ;;  %v2351_v48 = vsel %vm1216_vm2, %v4726_v45, 0.0  ;;  %v1031_v1 = vadd.f32 %v3735_v35, %v4621_v43  ;;  %v3736_v33 = vld [vmem:[%s4168_s12 + $0x18] sm:$0xff] }
 0x86f   : > { %2352 = vadd.xlane.f32.xlu0 %v2351_v48  ;;  %v3737_v48 = vld [vmem:[%s4168_s12 + $0x10] sm:$0xff] }
 0x870   : > { %3716 = vpow2.f32 %v2347_v7  ;;  %v1596_v59 = vadd.f32 %v4625_v44, %v1031_v1 }
 0x871   : > { %v4730_v52 = vpop.eup %3706 }
 0x872   : > { %v2357_v3 = vsel %vm1216_vm2, %v4730_v52, 0.0 }
 0x873   : > { %2358 = vadd.xlane.f32.xlu0 %v2357_v3 }
 0x875   : > { %v4734_v63 = vpop.eup %3708 }
 0x876   : > { %v2360_v18 = vsel %vm1216_vm2, %v4734_v63, 0.0  ;;  %v4738_v46 = vpop.eup %3710 }
 0x877   : > { %2361 = vadd.xlane.f32.xlu1 %v2360_v18  ;;  %v2366_v49 = vsel %vm1216_vm2, %v4738_v46, 0.0 }
 0x879   : > { %v4740_v62 = vpop.eup %3712 }
 0x87a   : > { %v2363_v5 = vsel %vm1216_vm2, %v4740_v62, 0.0  ;;  %v4746_v14 = vpop.eup %3714 }
 0x87b   : > { %2367 = vadd.xlane.f32.xlu1 %v2366_v49  ;;  %2364 = vadd.xlane.f32.xlu0 %v2363_v5  ;;  %v2372_v19 = vsel %vm1216_vm2, %v4746_v14, 0.0 }
 0x87d   : > { %v4748_v17 = vpop.eup %3716 }
 0x87e   : > { %v2369_v21 = vsel %vm1216_vm2, %v4748_v17, 0.0 }
 0x87f   : > { %2373 = vadd.xlane.f32.xlu1 %v2372_v19  ;;  %2370 = vadd.xlane.f32.xlu0 %v2369_v21 }
 0x8ef   : > { %v3373_v11 = vpop.f32.mrf.mxu1 }
 0x8f1   : > { %v1958_v30 = vpop.f32.mrf.mxu1 }
 0x8f2   : > { %3391 = vmatprep.mubr.msk.f32.mxu1 %vm1070_vm1, %v1958_v30  ;;  %v3740_v30 = vld [vmem:[%s4168_s12 + $0x38] sm:$0xff] }
 0x8f3   : > { %v3376_v29 = vpop.f32.mrf.mxu1  ;;  %3392 = vmatmul.mubr.msk.f32.vlgmr.msra.gmra.mxu1 %vm1070_vm1, %v3373_v11  ;;  %v2356_v31 = vpop.xlane.xlu1 %2355 }
 0x8f4   : > { %3487 = vmatpush3.msra.mxu1 %v4548_v2  ;;  %3718 = vrcp.f32 %v2356_v31 }
 0x8f5   : > { %3480 = vmatprep.subr.mxu1 %v4552_v56  ;;  %v1968_v37 = vpop.f32.mrf.mxu1 }
 0x8f6   : > { %3488 = vmatpush3.msra.mxu1 %v4552_v56  ;;  %3394 = vmatprep.mubr.msk.f32.mxu1 %vm1070_vm1, %v1968_v37 }
 0x8f7   : > { %3481 = vmatprep.subr.mxu1 %v4557_v58  ;;  %v3379_v38 = vpop.f32.mrf.mxu1  ;;  %3395 = vmatmul.mubr.msk.f32.gmra.mxu1 %vm1070_vm1, %v3376_v29  ;;  %v1037_v29 = vadd.f32 %v3740_v30, %v4621_v43 }
 0x8f8   : > { %3489 = vmatpush3.msra.mxu1 %v4557_v58  ;;  %v2353_v25 = vpop.xlane.xlu0 %2352 }
 0x8f9   : > { %3482 = vmatprep.subr.mxu1 %v4561_v50  ;;  %3720 = vrcp.f32 %v2353_v25  ;;  %v1978_v2 = vpop.f32.mrf.mxu1 }
 0x8fa   : > { %3490 = vmatpush3.msra.mxu1 %v4561_v50  ;;  %3397 = vmatprep.mubr.msk.f32.mxu1 %vm1070_vm1, %v1978_v2 }
 0x8fb   : > { %3483 = vmatprep.subr.mxu1 %v4567_v6  ;;  %v3382_v56 = vpop.f32.mrf.mxu1  ;;  %3398 = vmatmul.mubr.msk.f32.gmra.mxu1 %vm1070_vm1, %v3379_v38 }
 0x8fc   : > { %3491 = vmatpush3.msra.mxu1 %v4567_v6  ;;  %v2359_v47 = vpop.xlane.xlu0 %2358 }
 0x8fd   : > { %3484 = vmatprep.subr.mxu1 %v4571_v10  ;;  %3722 = vrcp.f32 %v2359_v47  ;;  %v1988_v58 = vpop.f32.mrf.mxu1 }
 0x8fe   : > { %3492 = vmatpush3.msra.mxu1 %v4571_v10  ;;  %3400 = vmatprep.mubr.msk.f32.mxu1 %vm1070_vm1, %v1988_v58 }
 0x8ff   : > { %3485 = vmatprep.subr.mxu1 %v4578_v13  ;;  %3401 = vmatmul.mubr.msk.f32.gmra.mxu1 %vm1070_vm1, %v3382_v56 }
 0x900   : > { %3493 = vmatpush3.msra.mxu1 %v4578_v13  ;;  %v2362_v50 = vpop.xlane.xlu1 %2361 }
 0x901   : > { %3486 = vmatprep.subr.mxu1 %v4583_v16  ;;  %3724 = vrcp.f32 %v2362_v50  ;;  %v3719_v40 = vpop.eup %3718 }
 0x902   : > { %3494 = vmatpush3.msra.mxu1 %v4583_v16  ;;  %v2384_v41 = vmul.f32 %v3719_v40, %v4720_v54  ;;  %v1021_v54 = vld [vmem:[#allocation7 + $0x50] sm:$0xff] }
 0x903   : > { %3459 = vmatprep.subr.mxu1 %v1022_v61 }
 0x904   : > { %v2368_v6 = vpop.xlane.xlu1 %2367  ;;  %v2365_v39 = vpop.xlane.xlu0 %2364 }
 0x905   : > { %3726 = vrcp.f32 %v2368_v6 }
 0x906   : > { %v3721_v27 = vpop.eup %3720  ;;  %3728 = vrcp.f32 %v2365_v39 }
 0x907   : > { %v2383_v10 = vmul.f32 %v3721_v27, %v4726_v45  ;;  %v1033_v45 = vadd.f32 %v3736_v33, %v4621_v43 }
 0x908   : > { %v2374_v42 = vpop.xlane.xlu1 %2373  ;;  %v2371_v32 = vpop.xlane.xlu0 %2370 }
 0x909   : > { %3730 = vrcp.f32 %v2374_v42  ;;  %3447 = vmatprep.mubr.msk.f32.mxu0 %vm1216_vm2, %v2383_v10  ;;  %v1598_v18 = vadd.f32 %v4754_v20, %v1033_v45 }
 0x90a   : > { %v3723_v13 = vpop.eup %3722  ;;  %3732 = vrcp.f32 %v2371_v32  ;;  %3448 = vmatmul.mubr.msk.f32.vlgmr.msra.gmra.mxu0 %vm1216_vm2, %v2384_v41 }
 0x90b   : > { %v2385_v16 = vmul.f32 %v3723_v13, %v4730_v52  ;;  %v1032_v52 = vadd.f32 %v3737_v48, %v4621_v43 }
 0x90d   : > { %3450 = vmatprep.mubr.msk.f32.mxu1 %vm1216_vm2, %v2385_v16  ;;  %v1597_v44 = vadd.f32 %v4756_v22, %v1032_v52 }
 0x90e   : > { %v3725_v4 = vpop.eup %3724 }
 0x90f   : > { %v2386_v55 = vmul.f32 %v3725_v4, %v4734_v63 }
 0x911   : > { %3451 = vmatmul.mubr.msk.f32.vlgmr.msra.gmra.mxu1 %vm1216_vm2, %v2386_v55  ;;  %v3741_v55 = vld [vmem:[%s4168_s12 + $0x30] sm:$0xff] }
 0x912   : > { %v3727_v12 = vpop.eup %3726  ;;  %3460 = vmatpush3.msra.mxu1 %v1022_v61 }
 0x913   : > { %v3729_v8 = vpop.eup %3728  ;;  %v2388_v36 = vmul.f32 %v3727_v12, %v4738_v46  ;;  %3461 = vmatprep.subr.mxu1 %v1021_v54  ;;  %v3738_v46 = vld [vmem:[%s4168_s12 + $0x28] sm:$0xff]  ;;  %v1036_v12 = vadd.f32 %v3741_v55, %v4621_v43 }
 0x914   : > { %v2387_v15 = vmul.f32 %v3729_v8, %v4740_v62  ;;  %3462 = vmatpush3.msra.mxu1 %v1021_v54  ;;  %v1035_v62 = vadd.f32 %v3738_v46, %v4621_v43 }
 0x915   : > { %3463 = vmatprep.subr.mxu1 %v1020_v0 }
 0x916   : > { %v3731_v9 = vpop.eup %3730  ;;  %3453 = vmatprep.mubr.msk.f32.mxu1 %vm1216_vm2, %v2387_v15  ;;  %3464 = vmatpush3.msra.mxu1 %v1020_v0  ;;  %v1600_v11 = vadd.f32 %v4758_v23, %v1035_v62 }
 0x917   : > { %v3733_v53 = vpop.eup %3732  ;;  %3454 = vmatmul.mubr.msk.f32.gmra.mxu1 %vm1216_vm2, %v2388_v36  ;;  %v2390_v57 = vmul.f32 %v3731_v9, %v4746_v14  ;;  %3465 = vmatprep.subr.mxu1 %v1019_v34  ;;  %v3739_v14 = vld [vmem:[%s4168_s12 + $0x20] sm:$0xff]  ;;  %v1601_v9 = vadd.f32 %v4764_v28, %v1036_v12  ;;  %s3006_s12 = sshll.u32 (%p4949_p6), %s4950_s27, 4 }
 0x918   : > { %v2389_v60 = vmul.f32 %v3733_v53, %v4748_v17  ;;  %3466 = vmatpush3.msra.mxu1 %v1019_v34  ;;  %v1034_v17 = vadd.f32 %v3739_v14, %v4621_v43  ;;  %s2674_s6 = sadd.s32 (%p4949_p6), %s4952_s26, %s3006_s12 }
 0x919   : > { %s2676_s8 = sadd.s32 (%p4949_p6), %s3001_s5, %s2674_s6 }
 0x91a   : > { %3456 = vmatprep.mubr.msk.f32.mxu1 %vm1216_vm2, %v2389_v60  ;;  %v1599_v37 = vadd.f32 %v4760_v24, %v1034_v17  ;;  %s3002_s20 = sshll.u32 (%p4949_p6), %s2676_s8, 3 }
 0x91b   : > { %3457 = vmatmul.mubr.msk.f32.gmra.mxu1 %vm1216_vm2, %v2390_v57  ;;  %s2678_s28 = scalar_lea.vmem (%p4949_p6), %s4953_s24, %s3002_s20 }
 0x9b3   : > { %v3393_v7 = vpop.f32.mrf.mxu1 }
 0x9b4   : > { %v2127_v3 = vadd.f32 %v3393_v7, %v1596_v59 }
 0x9b5   : > { %v2087_v63 = vpop.f32.mrf.mxu1 }
 0x9b6   : > { %v2126_v49 = vadd.f32 %v2087_v63, %v4627_v51  ;;  %v1602_v51 = vadd.f32 %v4762_v26, %v1037_v29 }
 0x9b7   : > { %v3396_v5 = vpop.f32.mrf.mxu1 }
 0x9b8   : > { %v2129_v19 = vadd.f32 %v3396_v5, %v1598_v18 }
 0x9b9   : > { %v2097_v21 = vpop.f32.mrf.mxu1 }
 0x9ba   : > { %v2128_v31 = vadd.f32 %v2097_v21, %v1597_v44 }
 0x9bb   : > { %v3399_v20 = vpop.f32.mrf.mxu1 }
 0x9bc   : > { %v2131_v38 = vadd.f32 %v3399_v20, %v1600_v11 }
 0x9bd   : > { %v2107_v25 = vpop.f32.mrf.mxu1 }
 0x9be   : > { %v2130_v2 = vadd.f32 %v2107_v25, %v1599_v37 }
 0x9bf   : > { %v3402_v22 = vpop.f32.mrf.mxu1 }
 0x9c0   : > { %v2133_v56 = vadd.f32 %v3402_v22, %v1602_v51 }
 0x9c1   : > { %v2117_v23 = vpop.f32.mrf.mxu1 }
 0x9c2   : > { %v2132_v60 = vadd.f32 %v2117_v23, %v1601_v9 }
 0x9ca   : > { %v3449_v47 = vpop.f32.mrf.mxu0 }
 0x9cc   : > { %v2481_v58 = vpop.f32.mrf.mxu0 }
 0x9cd   : > { %3467 = vmatprep.mubr.msk.f32.mxu1 %vm1070_vm1, %v2481_v58 }
 0x9ce   : > { %3468 = vmatmul.mubr.msk.f32.vlgmr.msra.gmra.mxu1 %vm1070_vm1, %v3449_v47 }
 0x9d1   : > { %v3452_v50 = vpop.f32.mrf.mxu1 }
 0x9d3   : > { %v2491_v6 = vpop.f32.mrf.mxu1 }
 0x9d4   : > { %3470 = vmatprep.mubr.msk.f32.mxu1 %vm1070_vm1, %v2491_v6 }
 0x9d5   : > { %3471 = vmatmul.mubr.msk.f32.gmra.mxu1 %vm1070_vm1, %v3452_v50 }
 0x9d7   : > { %v3455_v24 = vpop.f32.mrf.mxu1 }
 0x9d9   : > { %v2501_v39 = vpop.f32.mrf.mxu1 }
 0x9da   : > { %3473 = vmatprep.mubr.msk.f32.mxu1 %vm1070_vm1, %v2501_v39 }
 0x9db   : > { %v3458_v26 = vpop.f32.mrf.mxu1  ;;  %3474 = vmatmul.mubr.msk.f32.gmra.mxu1 %vm1070_vm1, %v3455_v24 }
 0x9dd   : > { %v2511_v40 = vpop.f32.mrf.mxu1 }
 0x9de   : > { %3476 = vmatprep.mubr.msk.f32.mxu1 %vm1070_vm1, %v2511_v40 }
 0x9df   : > { %3477 = vmatmul.mubr.msk.f32.gmra.mxu1 %vm1070_vm1, %v3458_v26 }
 0xa8e   : > { %v3469_v27 = vpop.f32.mrf.mxu1 }
 0xa8f   : > { %v2650_v10 = vadd.f32 %v3469_v27, %v2127_v3 }
 0xa90   : > { %v2610_v41 = vpop.f32.mrf.mxu1 }
 0xa91   : > { %2658 = vst.msk [vmem:[%s4833_s15 + $0x8] sm:$0xff] %vm451_vm0, %v2650_v10  ;;  %v2649_v42 = vadd.f32 %v2610_v41, %v2126_v49 }
 0xa93   : > { %2657 = vst.msk [vmem:[%s4833_s15] sm:$0xff] %vm451_vm0, %v2649_v42 }
 0xa95   : > { %v3472_v32 = vpop.f32.mrf.mxu1 }
 0xa96   : > { %v2652_v13 = vadd.f32 %v3472_v32, %v2129_v19 }
 0xa97   : > { %v2620_v16 = vpop.f32.mrf.mxu1 }
 0xa98   : > { %2660 = vst.msk [vmem:[%s4833_s15 + $0x18] sm:$0xff] %vm451_vm0, %v2652_v13  ;;  %v2651_v4 = vadd.f32 %v2620_v16, %v2128_v31  ;;  %v2723_v28 = vld [vmem:[%s4833_s15 + $0x8] sm:$0xff] (%p4949_p6) }
 0xa99   : > { %2724 = vst [vmem:[%s2678_s28 + $0x10] sm:$0xff] (%p4949_p6), %v2723_v28 }
 0xa9a   : > { %2659 = vst.msk [vmem:[%s4833_s15 + $0x10] sm:$0xff] %vm451_vm0, %v2651_v4  ;;  %v2721_v43 = vld [vmem:[%s4833_s15] sm:$0xff] (%p4949_p6) }
 0xa9b   : > { %v3475_v8 = vpop.f32.mrf.mxu1  ;;  %2722 = vst [vmem:[%s2678_s28] sm:$0xff] (%p4949_p6), %v2721_v43 }
 0xa9c   : > { %v2654_v36 = vadd.f32 %v3475_v8, %v2131_v38 }
 0xa9d   : > { %v2630_v15 = vpop.f32.mrf.mxu1 }
 0xa9e   : > { %2662 = vst.msk [vmem:[%s4833_s15 + $0x28] sm:$0xff] %vm451_vm0, %v2654_v36  ;;  %v2653_v53 = vadd.f32 %v2630_v15, %v2130_v2 }
 0xa9f   : > { %v3478_v57 = vpop.f32.mrf.mxu1  ;;  %v2727_v35 = vld [vmem:[%s4833_s15 + $0x18] sm:$0xff] (%p4949_p6) }
 0xaa0   : > { %2661 = vst.msk [vmem:[%s4833_s15 + $0x20] sm:$0xff] %vm451_vm0, %v2653_v53  ;;  %v2656_v61 = vadd.f32 %v3478_v57, %v2133_v56  ;;  %2671 = sbr.rel (!%p4949_p6) target bundleno = 2733 (0xaad), region = 76  ;;  %2728 = vst [vmem:[%s2678_s28 + $0x30] sm:$0xff] (%p4949_p6), %v2727_v35 }
 0xaa1   : > { %v2640_v54 = vpop.f32.mrf.mxu1  ;;  %v2725_v34 = vld [vmem:[%s4833_s15 + $0x10] sm:$0xff] (%p4949_p6) }
 0xaa2   : > { %2664 = vst.msk [vmem:[%s4833_s15 + $0x38] sm:$0xff] %vm451_vm0, %v2656_v61  ;;  %v2655_v0 = vadd.f32 %v2640_v54, %v2132_v60  ;;  %2726 = vst [vmem:[%s2678_s28 + $0x20] sm:$0xff] (%p4949_p6), %v2725_v34 }
 0xaa4   : > { %2663 = vst.msk [vmem:[%s4833_s15 + $0x30] sm:$0xff] %vm451_vm0, %v2655_v0 }
 0xaa5   : > { %v2731_v59 = vld [vmem:[%s4833_s15 + $0x28] sm:$0xff] }
 0xaa6   : > { %2732 = vst [vmem:[%s2678_s28 + $0x50] sm:$0xff] %v2731_v59 }
 0xaa7   : > { %v2729_v1 = vld [vmem:[%s4833_s15 + $0x20] sm:$0xff] }
 0xaa8   : > { %2730 = vst [vmem:[%s2678_s28 + $0x40] sm:$0xff] %v2729_v1 }
 0xaa9   : > { %v2735_v45 = vld [vmem:[%s4833_s15 + $0x38] sm:$0xff] }
 0xaaa   : > { %2736 = vst [vmem:[%s2678_s28 + $0x70] sm:$0xff] %v2735_v45 }
 0xaab   : > { %v2733_v33 = vld [vmem:[%s4833_s15 + $0x30] sm:$0xff] }
 0xaac   : > { %2734 = vst [vmem:[%s2678_s28 + $0x60] sm:$0xff] %v2733_v33 }
 0xaad PF: > { %s4954_s14 = sld [smem:[#allocation17_spill]]  ;;  %s4958_s30 = smov %s3906_s10 }
 0xaae   : > { %s4955_s12 = sld [smem:[#allocation16_spill]]  ;;  %s4959_s10 = smov %s3910_s11 }
 0xaaf   : > { %s4956_s15 = sld [smem:[#allocation19_spill]]  ;;  %s4960_s11 = smov %s4160_s13 }
 0xab0   : > { %s4957_s9 = sld [smem:[#allocation20_spill]]  ;;  %s4961_s13 = smov %s3930_s16 }
 0xab3   : > { %s24_s18 = sadd.s32 1, %s4954_s14   ;;  %s4962_s14 = smov %s3934_s17 }
 0xab4   : > { %p21_p10 = scmp.ge.s32.totalorder %s24_s18, 10   ;;  %s4964_s17 = smov %s4974_s19 }
 0xab6   : > { %s4963_s16 = smov %s4957_s9  ;;  %23 = sbr.rel (!%p21_p10) target bundleno = 15 (0xf), region = 146 }
 0xabb   :  { %2752 = vsyncpa [#allocation3], 1 }
 0xabc   :  { %2754 = vsyncpa [#allocation3 + $0x1], 1 }
 0xabd   :  { %2755 = vsyncpa [#allocation5], 1 }
 0xabe   :  { %2756 = vsyncpa [#allocation8], 1 }

// kernel: fwd.6
= control target key start
LH: loop header
LB: loop body
LE: loop exit
PB: predicated region body
PF: predicated region fallthrough
CT: control target
= control target key end

     0   :  { %s4768_s0 = inlined_call_operand.vmem [shape: f32[2,16,16,96], index: 0, kind: input, shape index: {}]   ;;  %s4769_s1 = inlined_call_operand.vmem [shape: f32[96,96], index: 1, kind: input, shape index: {}]   ;;  %s4770_s2 = inlined_call_operand.vmem [shape: f32[1,96], index: 2, kind: input, shape index: {}]   ;;  %s4771_s3 = inlined_call_operand.vmem [shape: f32[1,96], index: 3, kind: input, shape index: {}]   ;;  %s4772_s4 = inlined_call_operand.vmem [shape: f32[1,96], index: 4, kind: input, shape index: {}]   ;;  %s4773_s5 = inlined_call_operand.vmem [shape: f32[96,288], index: 5, kind: input, shape index: {}]   ;;  %s4774_s6 = inlined_call_operand.vmem [shape: f32[1,288], index: 6, kind: input, shape index: {}]   ;;  %s4775_s7 = inlined_call_operand.vmem [shape: f32[96,96], index: 7, kind: input, shape index: {}]   ;;  %s4776_s8 = inlined_call_operand.vmem [shape: f32[1,96], index: 8, kind: input, shape index: {}]   ;;  %s4777_s9 = inlined_call_operand.vmem [shape: f32[2,16,16,96], index: 9, kind: output, shape index: {}]  }
   0x1   :  { %4781 = sst [smem:[#allocation7_spill]] %s4777_s9 }
   0x2   :  { %s3777_s30 = smov 0   ;;  %s3779_s10 = smov 0  }
   0x3   :  { %s3781_s11 = smov 0   ;;  %s3783_s12 = smov 0  }
   0x4   :  { %s3785_s13 = smov 0   ;;  %s3787_s14 = smov 0  }
   0x5   :  { %s3789_s15 = smov 0   ;;  %s3791_s16 = smov 0  }
   0x6   :  { %s3793_s17 = smov 0  }
   0x7 LB: > { %s31_s18 = sadd.s32 1, %s3709_s14  ;;  %s34_s19 = sadd.s32 1, %s3713_s15  ;;  %s3721_s17 = sphi %s3793_s17, %s19_s17   ;;  %s3717_s16 = sphi %s3791_s16, %s4798_s16   ;;  %s3713_s15 = sphi %s3789_s15, %s4797_s15   ;;  %s3709_s14 = sphi %s3787_s14, %s4796_s14   ;;  %s3705_s13 = sphi %s3785_s13, %s4795_s13   ;;  %s3701_s12 = sphi %s3783_s12, %s4794_s12   ;;  %s3697_s11 = sphi %s3781_s11, %s4793_s11   ;;  %s3693_s10 = sphi %s3779_s10, %s4792_s10   ;;  %s3689_s30 = sphi %s3777_s30, %s4791_s30  }
   0x8   : > { %p32_p0 = scmp.ge.s32.totalorder %s31_s18, 2  ;;  %s2822_s20 = sadd.s32 4294967295, %s3721_s17  }
   0x9   : > { %s38_s21 = sadd.s32 1, %s3717_s16  ;;  %p56_p1 = scmp.ne.s32.totalorder %s3693_s10, %s3689_s30 }
   0xa   : > { %s4800_s18 = smov (%p32_p0, %s31_s18), 0  ;;  %s4802_s19 = smov (!%p32_p0, %s34_s19), %s3713_s15 }
   0xb   : > { %4782 = sst [smem:[#allocation4_spill]] %s4800_s18  ;;  %p36_p2 = scmp.ge.s32.totalorder %s4802_s19, 2 }
   0xc   : > { %p57_p3 = scmp.eq.s32.totalorder %s3721_s17, 0  ;;  %p258_p4 = scmp.eq.s32.totalorder %s2822_s20, 7 }
   0xd   : > { %s4804_s19 = smov (%p36_p2, %s4802_s19), 0  ;;  %s4806_s21 = smov (!%p36_p2, %s38_s21), %s3717_s16 }
   0xe   : > { %4783 = sst [smem:[#allocation5_spill]] %s4804_s19  ;;  %p3835_p5 = por %p57_p3, %p56_p1 }
   0xf   : > { %p40_p6 = scmp.ge.s32.totalorder %s4806_s21, 2  ;;  %p3839_p7 = por %p258_p4, %p56_p1 }
  0x10   : > { %s43_s24 = ssub.s32 %s3713_s15, %s4804_s19  ;;  %s45_s25 = ssub.s32 %s3709_s14, %s4800_s18 }
  0x11   : > { %s4808_s21 = smov (%p40_p6, %s4806_s21), 0  ;;  %s49_s29 = sadd.s32 1, %s3693_s10 }
  0x12   : > { %4786 = sst [smem:[#allocation6_spill]] %s4808_s21  ;;  %s42_s26 = ssub.s32 %s3717_s16, %s4808_s21 }
  0x13   : > { %s44_s27 = sor.u32 %s43_s24, %s42_s26  ;;  %p2825_p9 = scmp.ge.s32.totalorder %s3721_s17, 8 }
  0x14   : > { %s46_s28 = sor.u32 %s45_s25, %s44_s27 }
  0x15   : > { %p47_p8 = scmp.eq.s32.totalorder %s46_s28, 0  ;;  %304 = sbr.rel (%p2825_p9) target bundleno = 37 (0x25), region = 48 }
  0x17   : > { %s3853_s20 = scalar_select %p47_p8, %s3693_s10, %s49_s29  }
  0x1a   : > { %307 = sbr.rel (!%p3835_p5) target bundleno = 37 (0x25), region = 52  ;;  %s309_s19 = sand.u32 (%p3835_p5), 1, %s3693_s10  }
  0x1b   : > { %s2965_s9 = sshll.u32 (%p3835_p5), %s3713_s15, 4  ;;  %s2826_s18 = sshll.u32 (%p3835_p5), %s309_s19, 6 }
  0x1c   : > { %s314_s21 = sadd.s32 (%p3835_p5), %s3709_s14, %s2965_s9  ;;  %s2829_s24 = sshll.u32 (%p3835_p5), %s3717_s16, 5 }
  0x1d   : > { %s316_s25 = sadd.s32 (%p3835_p5), %s2829_s24, %s314_s21  ;;  %s311_s22 = scalar_lea.vmem (%p3835_p5), [#allocation2], %s2826_s18 }
  0x1e   : > { %s2830_s26 = sshll.u32 (%p3835_p5), %s316_s25, 3 }
  0x1f   : > { %s318_s29 = scalar_lea.vmem %s4768_s0, %s2830_s26 }
  0x20   : > { %v361_v0 = vld [vmem:[%s318_s29] sm:$0xff]  ;;  %v363_v1 = vld [vmem:[%s318_s29 + $0x10] sm:$0xff] }
  0x21   : > { %v365_v2 = vld [vmem:[%s318_s29 + $0x20] sm:$0xff]  ;;  %362 = vst [vmem:[%s311_s22] sm:$0xff] %v361_v0  ;;  %364 = vst [vmem:[%s311_s22 + $0x8] sm:$0xff] %v363_v1  ;;  %v367_v3 = vld [vmem:[%s318_s29 + $0x30] sm:$0xff] }
  0x22   : > { %366 = vst [vmem:[%s311_s22 + $0x10] sm:$0xff] %v365_v2  ;;  %v369_v4 = vld [vmem:[%s318_s29 + $0x40] sm:$0xff]  ;;  %v371_v5 = vld [vmem:[%s318_s29 + $0x50] sm:$0xff]  ;;  %368 = vst [vmem:[%s311_s22 + $0x18] sm:$0xff] %v367_v3 }
  0x23   : > { %370 = vst [vmem:[%s311_s22 + $0x20] sm:$0xff] %v369_v4  ;;  %372 = vst [vmem:[%s311_s22 + $0x28] sm:$0xff] %v371_v5  ;;  %v373_v6 = vld [vmem:[%s318_s29 + $0x60] sm:$0xff]  ;;  %v375_v7 = vld [vmem:[%s318_s29 + $0x70] sm:$0xff] }
  0x24   : > { %374 = vst [vmem:[%s311_s22 + $0x30] sm:$0xff] %v373_v6  ;;  %376 = vst [vmem:[%s311_s22 + $0x38] sm:$0xff] %v375_v7 }
  0x25 PF: > { %p2831_p10 = scmp.ge.s32.totalorder %s3721_s17, 1  ;;  %p381_p11 = scmp.lt.s32.totalorder %s3721_s17, 9 }
  0x27   : > { %p382_p12 = pnand %p2831_p10, %p381_p11 }
  0x28   : > { %s388_s24 = sand.u32 (!%p382_p12), 1, %s3689_s30   ;;  %s3724_s26 = smov (!%p382_p12), 32  }
  0x29   : > { %385 = sbr.rel (%p382_p12) target bundleno = 2673 (0xa71), region = 90  ;;  %s3874_s25 = sshll.u32 (!%p382_p12), %s388_s24, 6 }
  0x2a   : > { %s3883_s22 = scalar_lea.vmem (!%p382_p12), [#allocation2], %s3874_s25  ;;  %s3725_s27 = smov (!%p382_p12), 64  }
  0x2b   : > { %s3726_s28 = smov (!%p382_p12), 96   ;;  %s4704_s24 = scalar_lea.vmem (!%p382_p12), [#allocation3], %s3874_s25 }
  0x2e   : > { %v443_v8 = vld [vmem:[%s4769_s1 + $0x58] sm:$0xff]  ;;  %v442_v9 = vld [vmem:[%s4769_s1 + $0x50] sm:$0xff]  ;;  %v441_v10 = vld [vmem:[%s4769_s1 + $0x48] sm:$0xff]  ;;  %vm451_vm0 = vcmask 785408   ;;  %vm1070_vm1 = vcmask 261120   ;;  %vm1216_vm2 = vcmask 523264  }
  0x2f   : > { %3139 = vmatprep.subr.mxu0 %v443_v8  ;;  %v440_v11 = vld [vmem:[%s4769_s1 + $0x40] sm:$0xff]  ;;  %v439_v13 = vld [vmem:[%s4769_s1 + $0x38] sm:$0xff]  ;;  %v438_v14 = vld [vmem:[%s4769_s1 + $0x30] sm:$0xff]  ;;  %s2966_s25 = sshll.u32 (%p3839_p7), %s3701_s12, 4  ;;  %s4787_s30 = sld [smem:[#allocation7_spill]] (%p3839_p7) }
  0x30   : > { %3140 = vmatpush3.msra.mxu0 %v443_v8  ;;  %v424_v12 = vld [vmem:[%s3883_s22] sm:$0xff]  ;;  %v437_v15 = vld [vmem:[%s4769_s1 + $0x28] sm:$0xff]  ;;  %v435_v17 = vld [vmem:[%s4769_s1 + $0x18] sm:$0xff] }
  0x31   : > { %3141 = vmatprep.subr.mxu0 %v442_v9  ;;  %3163 = vmatprep.mubr.msk.f32.mxu0 %vm451_vm0, %v424_v12  ;;  %v436_v16 = vld [vmem:[%s4769_s1 + $0x20] sm:$0xff]  ;;  %v434_v18 = vld [vmem:[%s4769_s1 + $0x10] sm:$0xff]  ;;  %v433_v19 = vld [vmem:[%s4769_s1 + $0x8] sm:$0xff] }
  0x32   : > { %3142 = vmatpush3.msra.mxu0 %v442_v9  ;;  %v432_v20 = vld [vmem:[%s4769_s1] sm:$0xff]  ;;  %v425_v21 = vld [vmem:[%s3883_s22 + $0x8] sm:$0xff]  ;;  %v426_v22 = vld [vmem:[%s3883_s22 + $0x10] sm:$0xff] }
  0x33   : > { %3143 = vmatprep.subr.mxu0 %v441_v10  ;;  %v427_v23 = vld [vmem:[%s3883_s22 + $0x18] sm:$0xff]  ;;  %v428_v24 = vld [vmem:[%s3883_s22 + $0x20] sm:$0xff]  ;;  %v429_v25 = vld [vmem:[%s3883_s22 + $0x28] sm:$0xff] }
  0x34   : > { %3144 = vmatpush3.msra.mxu0 %v441_v10  ;;  %v430_v26 = vld [vmem:[%s3883_s22 + $0x30] sm:$0xff]  ;;  %v431_v27 = vld [vmem:[%s3883_s22 + $0x38] sm:$0xff]  ;;  %v2834_v29 = vld [vmem:[%s4770_s2] ss:$0 sm:$0xff] }
  0x35   : > { %3145 = vmatprep.subr.mxu0 %v440_v11 }
  0x36   : > { %3146 = vmatpush3.msra.mxu0 %v440_v11 }
  0x37   : > { %3147 = vmatprep.subr.mxu0 %v439_v13 }
  0x38   : > { %3148 = vmatpush3.msra.mxu0 %v439_v13 }
  0x39   : > { %3149 = vmatprep.subr.mxu0 %v438_v14 }
  0x3a   : > { %3150 = vmatpush3.msra.mxu0 %v438_v14 }
  0x3b   : > { %3151 = vmatprep.subr.mxu0 %v437_v15 }
  0x3c   : > { %3152 = vmatpush3.msra.mxu0 %v437_v15 }
  0x3d   : > { %3153 = vmatprep.subr.mxu0 %v436_v16 }
  0x3e   : > { %3154 = vmatpush3.msra.mxu0 %v436_v16 }
  0x3f   : > { %3155 = vmatprep.subr.mxu0 %v435_v17 }
  0x40   : > { %3156 = vmatpush3.msra.mxu0 %v435_v17 }
  0x41   : > { %3157 = vmatprep.subr.mxu0 %v434_v18 }
  0x42   : > { %3158 = vmatpush3.msra.mxu0 %v434_v18 }
  0x43   : > { %3159 = vmatprep.subr.mxu0 %v433_v19 }
  0x44   : > { %3160 = vmatpush3.msra.mxu0 %v433_v19 }
  0x45   : > { %3161 = vmatprep.subr.mxu0 %v432_v20 }
  0x46   : > { %3162 = vmatpush3.msra.mxu0 %v432_v20 }
  0x47   : > { %3164 = vmatmul.mubr.msk.f32.vlgmr.msra.gmra.mxu0 %vm451_vm0, %v425_v21 }
  0x48   : > { %3166 = vmatprep.mubr.msk.f32.mxu0 %vm451_vm0, %v426_v22 }
  0x4b   : > { %3167 = vmatmul.mubr.msk.f32.gmra.mxu0 %vm451_vm0, %v427_v23 }
  0x4c   : > { %3169 = vmatprep.mubr.msk.f32.mxu0 %vm451_vm0, %v428_v24  ;;  %v750_v24 = vld [vmem:[%s4773_s5 + $0x110] sm:$0xff] }
  0x4d   : > { %801 = vmatprep.subr.mxu1 %v750_v24 }
  0x4f   : > { %3170 = vmatmul.mubr.msk.f32.gmra.mxu0 %vm451_vm0, %v429_v25  ;;  %v749_v25 = vld [vmem:[%s4773_s5 + $0x108] sm:$0xff] }
  0x50   : > { %3172 = vmatprep.mubr.msk.f32.mxu0 %vm451_vm0, %v430_v26  ;;  %802 = vmatpush1.msra.mxu1 %v749_v25 }
  0x53   : > { %3173 = vmatmul.mubr.msk.f32.gmra.mxu0 %vm451_vm0, %v431_v27 }
 0x107   : > { %v3165_v28 = vpop.f32.mrf.mxu0 }
 0x108   : > { %v548_v33 = vadd.f32 %v3165_v28, %v2834_v29 }
 0x109   : > { %v542_v30 = vpop.f32.mrf.mxu0 }
 0x10a   : > { %v543_v31 = vadd.f32 %v2834_v29, %v542_v30  ;;  %v586_v40 = vsel %vm451_vm0, %v548_v33, 0.0  ;;  %v746_v30 = vld [vmem:[%s4773_s5 + $0xf0] sm:$0xff] }
 0x10b   : > { %v3168_v32 = vpop.f32.mrf.mxu0 }
 0x10c   : > { %v583_v34 = vsel %vm451_vm0, %v543_v31, 0.0  ;;  %v558_v38 = vadd.f32 %v3168_v32, %v2834_v29  ;;  %v744_v32 = vld [vmem:[%s4773_s5 + $0xe0] sm:$0xff] }
 0x10d   : > { %v552_v35 = vpop.f32.mrf.mxu0  ;;  %584 = vadd.xlane.f32.xlu0 %v583_v34 }
 0x10e   : > { %v553_v36 = vadd.f32 %v2834_v29, %v552_v35  ;;  %v592_v45 = vsel %vm451_vm0, %v558_v38, 0.0  ;;  %v743_v35 = vld [vmem:[%s4773_s5 + $0xd8] sm:$0xff] }
 0x10f   : > { %v3171_v37 = vpop.f32.mrf.mxu0 }
 0x110   : > { %v589_v39 = vsel %vm451_vm0, %v553_v36, 0.0  ;;  %v568_v42 = vadd.f32 %v3171_v37, %v2834_v29  ;;  %v748_v37 = vld [vmem:[%s4773_s5 + $0x100] sm:$0xff] }
 0x111   : > { %v562_v41 = vpop.f32.mrf.mxu0  ;;  %590 = vadd.xlane.f32.xlu1 %v589_v39  ;;  %587 = vadd.xlane.f32.xlu0 %v586_v40  ;;  %v738_v39 = vld [vmem:[%s4773_s5 + $0xb0] sm:$0xff]  ;;  %v745_v40 = vld [vmem:[%s4773_s5 + $0xe8] sm:$0xff] }
 0x112   : > { %v563_v43 = vadd.f32 %v2834_v29, %v562_v41  ;;  %v598_v50 = vsel %vm451_vm0, %v568_v42, 0.0  ;;  %v737_v41 = vld [vmem:[%s4773_s5 + $0xa8] sm:$0xff] }
 0x113   : > { %v3174_v44 = vpop.f32.mrf.mxu0 }
 0x114   : > { %v595_v46 = vsel %vm451_vm0, %v563_v43, 0.0  ;;  %v578_v48 = vadd.f32 %v3174_v44, %v2834_v29  ;;  %v734_v44 = vld [vmem:[%s4773_s5 + $0x90] sm:$0xff] }
 0x115   : > { %v572_v47 = vpop.f32.mrf.mxu0  ;;  %593 = vadd.xlane.f32.xlu1 %v592_v45  ;;  %596 = vadd.xlane.f32.xlu0 %v595_v46  ;;  %v732_v45 = vld [vmem:[%s4773_s5 + $0x80] sm:$0xff]  ;;  %v739_v46 = vld [vmem:[%s4773_s5 + $0xb8] sm:$0xff] }
 0x116   : > { %v573_v49 = vadd.f32 %v2834_v29, %v572_v47  ;;  %v604_v52 = vsel %vm451_vm0, %v578_v48, 0.0  ;;  %v747_v29 = vld [vmem:[%s4773_s5 + $0xf8] sm:$0xff] }
 0x117   : > { %803 = vmatprep.subr.mxu1 %v747_v29  ;;  %v731_v47 = vld [vmem:[%s4773_s5 + $0x78] sm:$0xff] }
 0x118   : > { %v601_v51 = vsel %vm451_vm0, %v573_v49, 0.0  ;;  %804 = vmatpush1.msra.mxu1 %v746_v30 }
 0x119   : > { %599 = vadd.xlane.f32.xlu1 %v598_v50  ;;  %602 = vadd.xlane.f32.xlu0 %v601_v51  ;;  %v728_v50 = vld [vmem:[%s4773_s5 + $0x60] sm:$0xff]  ;;  %v726_v51 = vld [vmem:[%s4773_s5 + $0x50] sm:$0xff] }
 0x11a   : > { %805 = vmatprep.subr.mxu1 %v744_v32 }
 0x11b   : > { %806 = vmatpush1.msra.mxu1 %v743_v35 }
 0x11d   : > { %605 = vadd.xlane.f32.xlu1 %v604_v52  ;;  %v733_v52 = vld [vmem:[%s4773_s5 + $0x88] sm:$0xff] }
 0x196   : > { %v585_v53 = vpop.xlane.xlu0 %584 }
 0x197   : > { %v608_v54 = vmul.f32 0.010416667, %v585_v53  ;;  %v725_v53 = vld [vmem:[%s4773_s5 + $0x48] sm:$0xff] }
 0x199   : > { %v3936_v55 = vsub.f32 %v543_v31, %v608_v54  ;;  %v723_v54 = vld [vmem:[%s4773_s5 + $0x38] sm:$0xff] }
 0x19a   : > { %v591_v56 = vpop.xlane.xlu1 %590  ;;  %v588_v57 = vpop.xlane.xlu0 %587 }
 0x19b   : > { %v610_v58 = vmul.f32 0.010416667, %v591_v56  ;;  %v609_v59 = vmul.f32 0.010416667, %v588_v57  ;;  %v624_v60 = vmul.f32 %v3936_v55, %v3936_v55  ;;  %v730_v56 = vld [vmem:[%s4773_s5 + $0x70] sm:$0xff] }
 0x19c   : > { %v722_v57 = vld [vmem:[%s4773_s5 + $0x30] sm:$0xff] }
 0x19d   : > { %v3940_v61 = vsub.f32 %v553_v36, %v610_v58  ;;  %v3942_v62 = vsub.f32 %v548_v33, %v609_v59  ;;  %v632_v63 = vsel %vm451_vm0, %v624_v60, 0.0  ;;  %v751_v33 = vld [vmem:[%s4773_s5 + $0x118] sm:$0xff]  ;;  %v741_v36 = vld [vmem:[%s4773_s5 + $0xc8] sm:$0xff]  ;;  %v720_v58 = vld [vmem:[%s4773_s5 + $0x20] sm:$0xff] }
 0x19e   : > { %v594_v0 = vpop.xlane.xlu1 %593  ;;  %633 = vadd.xlane.f32.xlu0 %v632_v63  ;;  %v597_v1 = vpop.xlane.xlu0 %596  ;;  %3175 = vmatprep.subr.mxu0 %v751_v33  ;;  %v727_v59 = vld [vmem:[%s4773_s5 + $0x58] sm:$0xff]  ;;  %v717_v63 = vld [vmem:[%s4773_s5 + $0x8] sm:$0xff] }
 0x19f   : > { %v611_v2 = vmul.f32 0.010416667, %v594_v0  ;;  %v612_v3 = vmul.f32 0.010416667, %v597_v1  ;;  %v626_v4 = vmul.f32 %v3940_v61, %v3940_v61  ;;  %v625_v5 = vmul.f32 %v3942_v62, %v3942_v62  ;;  %3176 = vmatpush3.msra.mxu0 %v751_v33  ;;  %807 = vmatprep.subr.mxu1 %v741_v36  ;;  %v719_v60 = vld [vmem:[%s4773_s5 + $0x18] sm:$0xff]  ;;  %v724_v0 = vld [vmem:[%s4773_s5 + $0x40] sm:$0xff] }
 0x1a0   : > { %3177 = vmatprep.subr.mxu0 %v748_v37  ;;  %v716_v1 = vld [vmem:[%s4773_s5] sm:$0xff] }
 0x1a1   : > { %v3949_v6 = vsub.f32 %v558_v38, %v611_v2  ;;  %v3951_v7 = vsub.f32 %v563_v43, %v612_v3  ;;  %v638_v8 = vsel %vm451_vm0, %v626_v4, 0.0  ;;  %v635_v9 = vsel %vm451_vm0, %v625_v5, 0.0  ;;  %v740_v38 = vld [vmem:[%s4773_s5 + $0xc0] sm:$0xff]  ;;  %3178 = vmatpush3.msra.mxu0 %v748_v37  ;;  %v742_v43 = vld [vmem:[%s4773_s5 + $0xd0] sm:$0xff]  ;;  %v721_v2 = vld [vmem:[%s4773_s5 + $0x28] sm:$0xff] }
 0x1a2   : > { %v600_v10 = vpop.xlane.xlu1 %599  ;;  %639 = vadd.xlane.f32.xlu0 %v638_v8  ;;  %636 = vadd.xlane.f32.xlu1 %v635_v9  ;;  %v603_v11 = vpop.xlane.xlu0 %602  ;;  %v3723_v3 = vmov 0.0   ;;  %v718_v4 = vld [vmem:[%s4773_s5 + $0x10] sm:$0xff]  ;;  %v2844_v37 = vld [vmem:[%s4772_s4] ss:$0 sm:$0xff] }
 0x1a3   : > { %v613_v12 = vmul.f32 0.010416667, %v600_v10  ;;  %v614_v13 = vmul.f32 0.010416667, %v603_v11  ;;  %v627_v14 = vmul.f32 %v3949_v6, %v3949_v6  ;;  %v628_v15 = vmul.f32 %v3951_v7, %v3951_v7  ;;  %808 = vmatpush1.msra.mxu1 %v740_v38  ;;  %3179 = vmatprep.subr.mxu0 %v745_v40 }
 0x1a4   : > { %809 = vmatprep.subr.mxu1 %v738_v39  ;;  %3180 = vmatpush3.msra.mxu0 %v745_v40 }
 0x1a5   : > { %v3959_v16 = vsub.f32 %v568_v42, %v613_v12  ;;  %v3961_v17 = vsub.f32 %v573_v49, %v614_v13  ;;  %v641_v18 = vsel %vm451_vm0, %v627_v14, 0.0  ;;  %v644_v19 = vsel %vm451_vm0, %v628_v15, 0.0  ;;  %810 = vmatpush1.msra.mxu1 %v737_v41  ;;  %v735_v42 = vld [vmem:[%s4773_s5 + $0x98] sm:$0xff]  ;;  %3181 = vmatprep.subr.mxu0 %v742_v43  ;;  %v736_v49 = vld [vmem:[%s4773_s5 + $0xa0] sm:$0xff] }
 0x1a6   : > { %v606_v20 = vpop.xlane.xlu1 %605  ;;  %642 = vadd.xlane.f32.xlu1 %v641_v18  ;;  %645 = vadd.xlane.f32.xlu0 %v644_v19 }
 0x1a7   : > { %v615_v21 = vmul.f32 0.010416667, %v606_v20  ;;  %v629_v22 = vmul.f32 %v3959_v16, %v3959_v16  ;;  %v630_v23 = vmul.f32 %v3961_v17, %v3961_v17  ;;  %811 = vmatprep.subr.mxu1 %v735_v42  ;;  %3182 = vmatpush3.msra.mxu0 %v742_v43 }
 0x1a8   : > { %812 = vmatpush1.msra.mxu1 %v734_v44  ;;  %3183 = vmatprep.subr.mxu0 %v739_v46 }
 0x1a9   : > { %v3975_v26 = vsub.f32 %v578_v48, %v615_v21  ;;  %v647_v27 = vsel %vm451_vm0, %v629_v22, 0.0  ;;  %v650_v28 = vsel %vm451_vm0, %v630_v23, 0.0  ;;  %813 = vmatprep.subr.mxu1 %v732_v45  ;;  %v729_v48 = vld [vmem:[%s4773_s5 + $0x68] sm:$0xff]  ;;  %3184 = vmatpush3.msra.mxu0 %v739_v46 }
 0x1aa   : > { %648 = vadd.xlane.f32.xlu1 %v647_v27  ;;  %651 = vadd.xlane.f32.xlu0 %v650_v28 }
 0x1ab   : > { %v631_v31 = vmul.f32 %v3975_v26, %v3975_v26  ;;  %814 = vmatpush1.msra.mxu1 %v731_v47  ;;  %3185 = vmatprep.subr.mxu0 %v736_v49 }
 0x1ac   : > { %815 = vmatprep.subr.mxu1 %v729_v48  ;;  %3186 = vmatpush3.msra.mxu0 %v736_v49 }
 0x1ad   : > { %v653_v34 = vsel %vm451_vm0, %v631_v31, 0.0  ;;  %816 = vmatpush1.msra.mxu1 %v728_v50  ;;  %3187 = vmatprep.subr.mxu0 %v733_v52 }
 0x1ae   : > { %654 = vadd.xlane.f32.xlu1 %v653_v34  ;;  %817 = vmatprep.subr.mxu1 %v726_v51  ;;  %v2843_v34 = vld [vmem:[%s4771_s3] ss:$0 sm:$0xff] }
 0x1af   : > { %818 = vmatpush1.msra.mxu1 %v725_v53  ;;  %3188 = vmatpush3.msra.mxu0 %v733_v52 }
 0x1b0   : > { %819 = vmatprep.subr.mxu1 %v723_v54  ;;  %3189 = vmatprep.subr.mxu0 %v730_v56 }
 0x1b1   : > { %820 = vmatpush1.msra.mxu1 %v722_v57  ;;  %3190 = vmatpush3.msra.mxu0 %v730_v56 }
 0x1b2   : > { %821 = vmatprep.subr.mxu1 %v720_v58  ;;  %3191 = vmatprep.subr.mxu0 %v727_v59 }
 0x1b3   : > { %822 = vmatpush1.msra.mxu1 %v719_v60  ;;  %3192 = vmatpush3.msra.mxu0 %v727_v59 }
 0x1b4   : > { %823 = vmatprep.subr.mxu1 %v717_v63  ;;  %3193 = vmatprep.subr.mxu0 %v724_v0 }
 0x1b5   : > { %824 = vmatpush1.msra.mxu1 %v716_v1  ;;  %857 = vmatprep.mubr.f32.mxu1 %v3723_v3 }
 0x1b6   : > { %3194 = vmatpush3.msra.mxu0 %v724_v0 }
 0x1b7   : > { %3195 = vmatprep.subr.mxu0 %v721_v2 }
 0x1b8   : > { %3196 = vmatpush3.msra.mxu0 %v721_v2  ;;  %v4128_v2 = vld [vmem:[%s4774_s6] sm:$0x7] }
 0x1b9   : > { %3197 = vmatprep.subr.mxu0 %v718_v4 }
 0x1ba   : > { %3198 = vmatpush3.msra.mxu0 %v718_v4 }
 0x227   : > { %v634_v5 = vpop.xlane.xlu0 %633 }
 0x228   : > { %v656_v8 = vmul.f32 0.010416667, %v634_v5 }
 0x22a   : > { %v664_v9 = vadd.f32 1e-05, %v656_v8 }
 0x22b   : > { %v637_v10 = vpop.xlane.xlu1 %636  ;;  %v640_v11 = vpop.xlane.xlu0 %639 }
 0x22c   : > { %3531 = vrsqrt.f32 %v664_v9  ;;  %v657_v12 = vmul.f32 0.010416667, %v637_v10  ;;  %v658_v13 = vmul.f32 0.010416667, %v640_v11 }
 0x22e   : > { %v665_v14 = vadd.f32 1e-05, %v657_v12  ;;  %v666_v15 = vadd.f32 1e-05, %v658_v13 }
 0x22f   : > { %v643_v18 = vpop.xlane.xlu1 %642  ;;  %v646_v19 = vpop.xlane.xlu0 %645 }
 0x230   : > { %3533 = vrsqrt.f32 %v665_v14  ;;  %v659_v20 = vmul.f32 0.010416667, %v643_v18  ;;  %v660_v21 = vmul.f32 0.010416667, %v646_v19 }
 0x231   : > { %3535 = vrsqrt.f32 %v666_v15 }
 0x232   : > { %v667_v22 = vadd.f32 1e-05, %v659_v20  ;;  %v668_v23 = vadd.f32 1e-05, %v660_v21 }
 0x233   : > { %v649_v24 = vpop.xlane.xlu1 %648  ;;  %v652_v25 = vpop.xlane.xlu0 %651 }
 0x234   : > { %3537 = vrsqrt.f32 %v667_v22  ;;  %v661_v27 = vmul.f32 0.010416667, %v649_v24  ;;  %v662_v28 = vmul.f32 0.010416667, %v652_v25 }
 0x235   : > { %3539 = vrsqrt.f32 %v668_v23 }
 0x236   : > { %v669_v29 = vadd.f32 1e-05, %v661_v27  ;;  %v670_v30 = vadd.f32 1e-05, %v662_v28 }
 0x237   : > { %v655_v31 = vpop.xlane.xlu1 %654 }
 0x238   : > { %3541 = vrsqrt.f32 %v669_v29  ;;  %v663_v32 = vmul.f32 0.010416667, %v655_v31 }
 0x239   : > { %v3532_v33 = vpop.eup %3531  ;;  %3543 = vrsqrt.f32 %v670_v30 }
 0x23a   : > { %v671_v35 = vadd.f32 1e-05, %v663_v32  ;;  %v680_v36 = vmul.f32 %v3532_v33, %v3936_v55 }
 0x23c   : > { %3545 = vrsqrt.f32 %v671_v35  ;;  %v694_v38 = vmul.f32 %v2843_v34, %v680_v36 }
 0x23d   : > { %v3534_v39 = vpop.eup %3533 }
 0x23e   : > { %v3536_v40 = vpop.eup %3535  ;;  %v708_v41 = vadd.f32 %v2844_v37, %v694_v38  ;;  %v681_v42 = vmul.f32 %v3534_v39, %v3942_v62 }
 0x23f   : > { %v682_v43 = vmul.f32 %v3536_v40, %v3940_v61 }
 0x240   : > { %2845 = vmatmul.mubr.msk.f32.vlgmr.msra.gmra.mxu1 %vm451_vm0, %v708_v41  ;;  %3199 = vmatprep.mubr.msk.f32.mxu0 %vm451_vm0, %v708_v41  ;;  %v695_v44 = vmul.f32 %v2843_v34, %v681_v42 }
 0x241   : > { %v3538_v45 = vpop.eup %3537  ;;  %863 = vmatprep.mubr.f32.mxu1 %v3723_v3  ;;  %v696_v55 = vmul.f32 %v2843_v34, %v682_v43 }
 0x242   : > { %v3540_v46 = vpop.eup %3539  ;;  %v709_v47 = vadd.f32 %v2844_v37, %v695_v44  ;;  %v683_v48 = vmul.f32 %v3538_v45, %v3949_v6 }
 0x243   : > { %v710_v49 = vadd.f32 %v2844_v37, %v696_v55  ;;  %v684_v50 = vmul.f32 %v3540_v46, %v3951_v7 }
 0x244   : > { %2846 = vmatmul.mubr.msk.f32.gmra.mxu1 %vm451_vm0, %v709_v47  ;;  %3200 = vmatmul.mubr.msk.f32.vlgmr.msra.gmra.mxu0 %vm451_vm0, %v709_v47  ;;  %v697_v61 = vmul.f32 %v2843_v34, %v683_v48 }
 0x245   : > { %v3542_v62 = vpop.eup %3541  ;;  %3202 = vmatprep.mubr.msk.f32.mxu0 %vm451_vm0, %v710_v49  ;;  %869 = vmatprep.mubr.f32.mxu1 %v3723_v3  ;;  %v698_v51 = vmul.f32 %v2843_v34, %v684_v50 }
 0x246   : > { %v3544_v52 = vpop.eup %3543  ;;  %v711_v53 = vadd.f32 %v2844_v37, %v697_v61  ;;  %v685_v54 = vmul.f32 %v3542_v62, %v3959_v16 }
 0x247   : > { %v712_v56 = vadd.f32 %v2844_v37, %v698_v51  ;;  %v686_v6 = vmul.f32 %v3544_v52, %v3961_v17 }
 0x248   : > { %2847 = vmatmul.mubr.msk.f32.gmra.mxu1 %vm451_vm0, %v710_v49  ;;  %3203 = vmatmul.mubr.msk.f32.gmra.mxu0 %vm451_vm0, %v711_v53  ;;  %v699_v7 = vmul.f32 %v2843_v34, %v685_v54 }
 0x249   : > { %v3546_v57 = vpop.eup %3545  ;;  %3205 = vmatprep.mubr.msk.f32.mxu0 %vm451_vm0, %v712_v56  ;;  %875 = vmatprep.mubr.f32.mxu1 %v3723_v3  ;;  %v700_v58 = vmul.f32 %v2843_v34, %v686_v6 }
 0x24a   : > { %v713_v59 = vadd.f32 %v2844_v37, %v699_v7  ;;  %v687_v60 = vmul.f32 %v3546_v57, %v3975_v26  ;;  %v754_v26 = vlaneseq }
 0x24b   : > { %v714_v63 = vadd.f32 %v2844_v37, %v700_v58 }
 0x24c   : > { %2848 = vmatmul.mubr.msk.f32.gmra.mxu1 %vm451_vm0, %v711_v53  ;;  %3206 = vmatmul.mubr.msk.f32.gmra.mxu0 %vm451_vm0, %v713_v59  ;;  %v701_v16 = vmul.f32 %v2843_v34, %v687_v60  ;;  %v4122_v0 = vshrl.u32 %v754_v26, 7 }
 0x24d   : > { %3208 = vmatprep.mubr.msk.f32.mxu0 %vm451_vm0, %v714_v63  ;;  %881 = vmatprep.mubr.f32.mxu1 %v3723_v3 }
 0x24e   : > { %v715_v17 = vadd.f32 %v2844_v37, %v701_v16  ;;  %v756_v1 = vsub.s32 0, %v4122_v0  ;;  %v760_v4 = vsub.s32 1, %v4122_v0 }
 0x250   : > { %2849 = vmatmul.mubr.msk.f32.gmra.mxu1 %vm451_vm0, %v712_v56  ;;  %3209 = vmatmul.mubr.msk.f32.gmra.mxu0 %vm451_vm0, %v715_v17  ;;  %v757_v5 = vrot.slane %v4128_v2, %v756_v1  ;;  %v761_v8 = vrot.slane %v4128_v2, %v760_v4 }
 0x251   : > { %887 = vmatprep.mubr.f32.mxu1 %v3723_v3 }
 0x254   : > { %2850 = vmatmul.mubr.msk.f32.gmra.mxu1 %vm451_vm0, %v713_v59 }
 0x255   : > { %893 = vmatprep.mubr.f32.mxu1 %v3723_v3 }
 0x258   : > { %2851 = vmatmul.mubr.msk.f32.gmra.mxu1 %vm451_vm0, %v714_v63 }
 0x259   : > { %899 = vmatprep.mubr.f32.mxu1 %v3723_v3 }
 0x25c   : > { %2852 = vmatmul.mubr.msk.f32.gmra.mxu1 %vm451_vm0, %v715_v17 }
 0x300   : > { %v859_v9 = vpop.f32.mrf.mxu1 }
 0x301   : > { %v860_v3 = vadd.f32 %v859_v9, %v757_v5 }
 0x302   : > { %v861_v10 = vpop.f32.mrf.mxu1 }
 0x303   : > { %v4133_v11 = vmul.f32 0.17677669, %v860_v3  ;;  %v4135_v12 = vadd.f32 %v861_v10, %v761_v8 }
 0x304   : > { %v865_v13 = vpop.f32.mrf.mxu1 }
 0x305   : > { %3227 = vmatprep.mubr.msk.f32.mxu1 %vm1070_vm1, %v4133_v11  ;;  %v866_v37 = vadd.f32 %v865_v13, %v757_v5 }
 0x306   : > { %v867_v14 = vpop.f32.mrf.mxu1 }
 0x307   : > { %v4139_v15 = vadd.f32 %v867_v14, %v761_v8  ;;  %v4194_v53 = vmul.f32 0.17677669, %v866_v37 }
 0x308   : > { %v871_v18 = vpop.f32.mrf.mxu1 }
 0x309   : > { %v872_v38 = vadd.f32 %v871_v18, %v757_v5 }
 0x30a   : > { %v873_v19 = vpop.f32.mrf.mxu1 }
 0x30b   : > { %v4141_v20 = vadd.f32 %v873_v19, %v761_v8  ;;  %v4196_v54 = vmul.f32 0.17677669, %v872_v38 }
 0x30c   : > { %v877_v21 = vpop.f32.mrf.mxu1 }
 0x30d   : > { %v878_v35 = vadd.f32 %v877_v21, %v757_v5 }
 0x30e   : > { %v879_v22 = vpop.f32.mrf.mxu1 }
 0x30f   : > { %v4143_v23 = vadd.f32 %v879_v22, %v761_v8  ;;  %v4202_v56 = vmul.f32 0.17677669, %v878_v35 }
 0x310   : > { %v883_v24 = vpop.f32.mrf.mxu1 }
 0x311   : > { %v884_v36 = vadd.f32 %v883_v24, %v757_v5 }
 0x312   : > { %v885_v25 = vpop.f32.mrf.mxu1 }
 0x313   : > { %v4174_v43 = vadd.f32 %v885_v25, %v761_v8  ;;  %v4204_v6 = vmul.f32 0.17677669, %v884_v36 }
 0x314   : > { %v889_v27 = vpop.f32.mrf.mxu1 }
 0x315   : > { %v4149_v33 = vadd.f32 %v889_v27, %v757_v5 }
 0x316   : > { %v891_v28 = vpop.f32.mrf.mxu1 }
 0x317   : > { %v4170_v42 = vadd.f32 %v891_v28, %v761_v8  ;;  %v4211_v7 = vmul.f32 0.17677669, %v4149_v33 }
 0x318   : > { %v895_v29 = vpop.f32.mrf.mxu1 }
 0x319   : > { %v4145_v30 = vadd.f32 %v895_v29, %v757_v5 }
 0x31a   : > { %v897_v31 = vpop.f32.mrf.mxu1 }
 0x31b   : > { %1066 = vrot.lane.b32.xlu1 %v4145_v30, %s3724_s26  ;;  %v4166_v41 = vadd.f32 %v897_v31, %v761_v8  ;;  %v4214_v57 = vmul.f32 0.17677669, %v4145_v30 }
 0x31c   : > { %v901_v32 = vpop.f32.mrf.mxu1 }
 0x31d   : > { %v4151_v34 = vadd.f32 %v901_v32, %v757_v5 }
 0x31e   : > { %v903_v39 = vpop.f32.mrf.mxu1 }
 0x31f   : > { %1068 = vrot.lane.b32.xlu0 %v4151_v34, %s3724_s26  ;;  %1064 = vrot.lane.b32.xlu1 %v4149_v33, %s3724_s26  ;;  %v4161_v40 = vadd.f32 %v903_v39, %v761_v8  ;;  %v4221_v58 = vmul.f32 0.17677669, %v4151_v34 }
 0x323   : > { %1060 = vrot.lane.b32.xlu0 %v878_v35, %s3724_s26  ;;  %1062 = vrot.lane.b32.xlu1 %v884_v36, %s3724_s26 }
 0x327   : > { %1056 = vrot.lane.b32.xlu0 %v866_v37, %s3724_s26  ;;  %1058 = vrot.lane.b32.xlu1 %v872_v38, %s3724_s26 }
 0x32b   : > { %1327 = vrot.lane.b32.xlu0 %v4161_v40, %s3725_s27  ;;  %1054 = vrot.lane.b32.xlu1 %v860_v3, %s3724_s26 }
 0x32f   : > { %1325 = vrot.lane.b32.xlu1 %v4166_v41, %s3725_s27 }
 0x333   : > { %1323 = vrot.lane.b32.xlu1 %v4170_v42, %s3725_s27 }
 0x337   : > { %1321 = vrot.lane.b32.xlu1 %v4174_v43, %s3725_s27 }
 0x38d   : > { %v1067_v44 = vpop.permute.xlu1 %1066 }
 0x391   : > { %v1069_v45 = vpop.permute.xlu0 %1068  ;;  %v1065_v55 = vpop.permute.xlu1 %1064 }
 0x392   : > { %3211 = vmatprep.subr.msk.mxu1 %vm1070_vm1, %v1069_v45 }
 0x393   : > { %3212 = vmatpush3.xpose.msk.msra.mxu1 %vm1070_vm1, %v1069_v45 }
 0x394   : > { %3213 = vmatprep.subr.msk.mxu1 %vm1070_vm1, %v1067_v44 }
 0x395   : > { %v1061_v46 = vpop.permute.xlu0 %1060  ;;  %v1063_v47 = vpop.permute.xlu1 %1062 }
 0x397   : > { %3214 = vmatpush3.xpose.msk.msra.mxu1 %vm1070_vm1, %v1067_v44 }
 0x398   : > { %3215 = vmatprep.subr.msk.mxu1 %vm1070_vm1, %v1065_v55 }
 0x399   : > { %v1057_v48 = vpop.permute.xlu0 %1056  ;;  %v1059_v49 = vpop.permute.xlu1 %1058 }
 0x39b   : > { %3216 = vmatpush3.xpose.msk.msra.mxu1 %vm1070_vm1, %v1065_v55 }
 0x39c   : > { %3217 = vmatprep.subr.msk.mxu1 %vm1070_vm1, %v1063_v47 }
 0x39d   : > { %v1328_v50 = vpop.permute.xlu0 %1327  ;;  %v1055_v61 = vpop.permute.xlu1 %1054 }
 0x39e   : > { %3239 = vmatprep.subr.mxu0 %v1328_v50 }
 0x39f   : > { %3218 = vmatpush3.xpose.msk.msra.mxu1 %vm1070_vm1, %v1063_v47  ;;  %3240 = vmatpush3.msra.mxu0 %v1328_v50 }
 0x3a0   : > { %3219 = vmatprep.subr.msk.mxu1 %vm1070_vm1, %v1061_v46 }
 0x3a1   : > { %v1326_v62 = vpop.permute.xlu1 %1325 }
 0x3a2   : > { %3241 = vmatprep.subr.mxu0 %v1326_v62 }
 0x3a3   : > { %3220 = vmatpush3.xpose.msk.msra.mxu1 %vm1070_vm1, %v1061_v46  ;;  %3242 = vmatpush3.msra.mxu0 %v1326_v62 }
 0x3a4   : > { %3221 = vmatprep.subr.msk.mxu1 %vm1070_vm1, %v1059_v49 }
 0x3a5   : > { %v1324_v51 = vpop.permute.xlu1 %1323 }
 0x3a6   : > { %3243 = vmatprep.subr.mxu0 %v1324_v51 }
 0x3a7   : > { %3222 = vmatpush3.xpose.msk.msra.mxu1 %vm1070_vm1, %v1059_v49  ;;  %3244 = vmatpush3.msra.mxu0 %v1324_v51 }
 0x3a8   : > { %3223 = vmatprep.subr.msk.mxu1 %vm1070_vm1, %v1057_v48 }
 0x3a9   : > { %v1322_v52 = vpop.permute.xlu1 %1321 }
 0x3aa   : > { %3245 = vmatprep.subr.mxu0 %v1322_v52 }
 0x3ab   : > { %3224 = vmatpush3.xpose.msk.msra.mxu1 %vm1070_vm1, %v1057_v48  ;;  %3246 = vmatpush3.msra.mxu0 %v1322_v52 }
 0x3ac   : > { %3225 = vmatprep.subr.msk.mxu1 %vm1070_vm1, %v1055_v61 }
 0x3af   : > { %3226 = vmatpush3.xpose.msk.msra.mxu1 %vm1070_vm1, %v1055_v61 }
 0x3b2   : > { %3228 = vmatmul.mubr.msk.f32.vlgmr.msra.gmra.mxu1 %vm1070_vm1, %v4194_v53 }
 0x3b3   : > { %3230 = vmatprep.mubr.msk.f32.mxu1 %vm1070_vm1, %v4196_v54 }
 0x3b6   : > { %3231 = vmatmul.mubr.msk.f32.gmra.mxu1 %vm1070_vm1, %v4202_v56 }
 0x3b7   : > { %3233 = vmatprep.mubr.msk.f32.mxu1 %vm1070_vm1, %v4204_v6 }
 0x3ba   : > { %3234 = vmatmul.mubr.msk.f32.gmra.mxu1 %vm1070_vm1, %v4211_v7 }
 0x3bb   : > { %3236 = vmatprep.mubr.msk.f32.mxu1 %vm1070_vm1, %v4214_v57 }
 0x3be   : > { %3237 = vmatmul.mubr.msk.f32.gmra.mxu1 %vm1070_vm1, %v4221_v58 }
 0x472   : > { %v3229_v59 = vpop.f32.mrf.mxu1 }
 0x473   : > { %v1220_v60 = vsel %vm1216_vm2, %v3229_v59, -inf }
 0x474   : > { %1221 = vmax.xlane.f32.xlu1 %v1220_v60  ;;  %v1177_v63 = vpop.f32.mrf.mxu1 }
 0x475   : > { %v1217_v16 = vsel %vm1216_vm2, %v1177_v63, -inf }
 0x476   : > { %1218 = vmax.xlane.f32.xlu0 %v1217_v16  ;;  %v3232_v17 = vpop.f32.mrf.mxu1 }
 0x477   : > { %v1226_v1 = vsel %vm1216_vm2, %v3232_v17, -inf }
 0x478   : > { %v1187_v26 = vpop.f32.mrf.mxu1 }
 0x479   : > { %v1223_v9 = vsel %vm1216_vm2, %v1187_v26, -inf }
 0x47a   : > { %1227 = vmax.xlane.f32.xlu0 %v1226_v1  ;;  %v3235_v4 = vpop.f32.mrf.mxu1 }
 0x47b   : > { %v1232_v5 = vsel %vm1216_vm2, %v3235_v4, -inf }
 0x47c   : > { %1233 = vmax.xlane.f32.xlu1 %v1232_v5  ;;  %v1197_v8 = vpop.f32.mrf.mxu1 }
 0x47d   : > { %v1229_v13 = vsel %vm1216_vm2, %v1197_v8, -inf }
 0x47e   : > { %1224 = vmax.xlane.f32.xlu0 %v1223_v9  ;;  %v3238_v3 = vpop.f32.mrf.mxu1 }
 0x47f   : > { %v1238_v10 = vsel %vm1216_vm2, %v3238_v3, -inf }
 0x480   : > { %1239 = vmax.xlane.f32.xlu1 %v1238_v10  ;;  %v1207_v14 = vpop.f32.mrf.mxu1 }
 0x481   : > { %v1235_v18 = vsel %vm1216_vm2, %v1207_v14, -inf }
 0x482   : > { %1230 = vmax.xlane.f32.xlu0 %v1229_v13 }
 0x486   : > { %1236 = vmax.xlane.f32.xlu0 %v1235_v18 }
 0x491   : > { %1317 = vrot.lane.b32.xlu1 %v4141_v20, %s3725_s27 }
 0x49c   : > { %1319 = vrot.lane.b32.xlu0 %v4143_v23, %s3725_s27 }
 0x4fd   : > { %v1222_v19 = vpop.xlane.xlu1 %1221 }
 0x4fe   : > { %v1242_v21 = vsub.f32 %v3229_v59, %v1222_v19 }
 0x4ff   : > { %v1219_v22 = vpop.xlane.xlu0 %1218 }
 0x500   : > { %v1251_v24 = vmul.f32 1.442695, %v1242_v21  ;;  %v1241_v25 = vsub.f32 %v1177_v63, %v1219_v22 }
 0x502   : > { %3547 = vpow2.f32 %v1251_v24  ;;  %v1249_v27 = vmul.f32 1.442695, %v1241_v25 }
 0x503   : > { %v1228_v28 = vpop.xlane.xlu0 %1227 }
 0x504   : > { %3549 = vpow2.f32 %v1249_v27  ;;  %v1244_v44 = vsub.f32 %v3232_v17, %v1228_v28 }
 0x505   : > { %v1234_v30 = vpop.xlane.xlu1 %1233 }
 0x506   : > { %v1255_v55 = vmul.f32 1.442695, %v1244_v44  ;;  %v1246_v46 = vsub.f32 %v3235_v4, %v1234_v30 }
 0x507   : > { %v1225_v29 = vpop.xlane.xlu0 %1224 }
 0x508   : > { %v1243_v45 = vsub.f32 %v1187_v26, %v1225_v29  ;;  %3551 = vpow2.f32 %v1255_v55  ;;  %v1259_v49 = vmul.f32 1.442695, %v1246_v46 }
 0x509   : > { %v1240_v33 = vpop.xlane.xlu1 %1239 }
 0x50a   : > { %v1253_v47 = vmul.f32 1.442695, %v1243_v45  ;;  %v1248_v50 = vsub.f32 %v3238_v3, %v1240_v33 }
 0x50b   : > { %v1231_v31 = vpop.xlane.xlu0 %1230 }
 0x50c   : > { %v1245_v48 = vsub.f32 %v1197_v8, %v1231_v31  ;;  %3553 = vpow2.f32 %v1253_v47  ;;  %v1263_v51 = vmul.f32 1.442695, %v1248_v50  ;;  %v1012_v50 = vld [vmem:[%s4775_s7 + $0x8] sm:$0xff] }
 0x50d   : > { %v1318_v39 = vpop.permute.xlu1 %1317  ;;  %3555 = vpow2.f32 %v1259_v49 }
 0x50e   : > { %v1257_v61 = vmul.f32 1.442695, %v1245_v48 }
 0x50f   : > { %v4237_v32 = vpop.eup %3547  ;;  %v1237_v34 = vpop.xlane.xlu0 %1236 }
 0x510   : > { %v1268_v35 = vsel %vm1216_vm2, %v4237_v32, 0.0  ;;  %v1247_v62 = vsub.f32 %v1207_v14, %v1237_v34  ;;  %3557 = vpow2.f32 %v1257_v61  ;;  %v4365_v61 = vpop.f32.mrf.mxu0 }
 0x511   : > { %v4241_v36 = vpop.eup %3549  ;;  %1269 = vadd.xlane.f32.xlu1 %v1268_v35  ;;  %3559 = vpow2.f32 %v1263_v51  ;;  %v1011_v51 = vld [vmem:[%s4775_s7] sm:$0xff] }
 0x512   : > { %v1265_v37 = vsel %vm1216_vm2, %v4241_v36, 0.0  ;;  %v1261_v52 = vmul.f32 1.442695, %v1247_v62 }
 0x513   : > { %1266 = vadd.xlane.f32.xlu0 %v1265_v37  ;;  %v1320_v38 = vpop.permute.xlu0 %1319 }
 0x514   : > { %3247 = vmatprep.subr.mxu0 %v1320_v38  ;;  %3561 = vpow2.f32 %v1261_v52 }
 0x515   : > { %3248 = vmatpush3.msra.mxu0 %v1320_v38  ;;  %v4249_v59 = vpop.eup %3551 }
 0x516   : > { %3249 = vmatprep.subr.mxu0 %v1318_v39  ;;  %v1274_v63 = vsel %vm1216_vm2, %v4249_v59, 0.0 }
 0x517   : > { %3250 = vmatpush3.msra.mxu0 %v1318_v39 }
 0x519   : > { %v4251_v60 = vpop.eup %3553 }
 0x51a   : > { %v4255_v16 = vpop.eup %3555  ;;  %v1271_v17 = vsel %vm1216_vm2, %v4251_v60, 0.0 }
 0x51b   : > { %v1280_v1 = vsel %vm1216_vm2, %v4255_v16, 0.0 }
 0x51d   : > { %v4259_v26 = vpop.eup %3557 }
 0x51e   : > { %v4263_v4 = vpop.eup %3559  ;;  %v1277_v5 = vsel %vm1216_vm2, %v4259_v26, 0.0 }
 0x51f   : > { %v1286_v9 = vsel %vm1216_vm2, %v4263_v4, 0.0 }
 0x521   : > { %v4267_v8 = vpop.eup %3561 }
 0x522   : > { %1313 = vrot.lane.b32.xlu1 %v4135_v12, %s3725_s27  ;;  %v1283_v3 = vsel %vm1216_vm2, %v4267_v8, 0.0 }
 0x529   : > { %1315 = vrot.lane.b32.xlu0 %v4139_v15, %s3725_s27 }
 0x546   : > { %1275 = vadd.xlane.f32.xlu1 %v1274_v63 }
 0x548   : > { %1272 = vadd.xlane.f32.xlu0 %v1271_v17 }
 0x54a   : > { %1281 = vadd.xlane.f32.xlu1 %v1280_v1 }
 0x54c   : > { %1278 = vadd.xlane.f32.xlu0 %v1277_v5 }
 0x54e   : > { %1287 = vadd.xlane.f32.xlu1 %v1286_v9 }
 0x550   : > { %1284 = vadd.xlane.f32.xlu0 %v1283_v3  ;;  %v764_v3 = vsub.s32 2, %v4122_v0 }
 0x55f   : > { %1605 = vrot.lane.b32.xlu1 %v4194_v53, %s3726_s28 }
 0x563   : > { %1609 = vrot.lane.b32.xlu1 %v4202_v56, %s3726_s28 }
 0x566   : > { %1603 = vrot.lane.b32.xlu0 %v4133_v11, %s3726_s28 }
 0x567   : > { %1613 = vrot.lane.b32.xlu1 %v4211_v7, %s3726_s28 }
 0x56a   : > { %1607 = vrot.lane.b32.xlu0 %v4196_v54, %s3726_s28 }
 0x56b   : > { %1617 = vrot.lane.b32.xlu1 %v4221_v58, %s3726_s28 }
 0x56e   : > { %1611 = vrot.lane.b32.xlu0 %v4204_v6, %s3726_s28 }
 0x56f   : > { %2162 = vrot.lane.b32.xlu1 %v4166_v41, %s3726_s28 }
 0x572   : > { %1615 = vrot.lane.b32.xlu0 %v4214_v57, %s3726_s28 }
 0x573   : > { %2158 = vrot.lane.b32.xlu1 %v4174_v43, %s3726_s28 }
 0x576   : > { %2164 = vrot.lane.b32.xlu0 %v4161_v40, %s3726_s28 }
 0x577   : > { %2154 = vrot.lane.b32.xlu1 %v4141_v20, %s3726_s28 }
 0x57a   : > { %2160 = vrot.lane.b32.xlu0 %v4170_v42, %s3726_s28 }
 0x57b   : > { %2150 = vrot.lane.b32.xlu1 %v4135_v12, %s3726_s28 }
 0x57e   : > { %2156 = vrot.lane.b32.xlu0 %v4143_v23, %s3726_s28 }
 0x57f   : > { %2136 = vrot.lane.b32.xlu1 %v4194_v53, %s3725_s27 }
 0x582   : > { %2152 = vrot.lane.b32.xlu0 %v4139_v15, %s3726_s28 }
 0x583   : > { %2140 = vrot.lane.b32.xlu1 %v4202_v56, %s3725_s27 }
 0x586   : > { %2134 = vrot.lane.b32.xlu0 %v4133_v11, %s3725_s27  ;;  %v1014_v11 = vld [vmem:[%s4775_s7 + $0x18] sm:$0xff] }
 0x587   : > { %2144 = vrot.lane.b32.xlu1 %v4211_v7, %s3725_s27  ;;  %3267 = vmatprep.subr.mxu1 %v1014_v11 }
 0x588   : > { %3268 = vmatpush3.msra.mxu1 %v1014_v11  ;;  %v765_v11 = vrot.slane %v4128_v2, %v764_v3 }
 0x58a   : > { %2138 = vrot.lane.b32.xlu0 %v4196_v54, %s3725_s27  ;;  %v1013_v54 = vld [vmem:[%s4775_s7 + $0x10] sm:$0xff] }
 0x58b   : > { %2148 = vrot.lane.b32.xlu1 %v4221_v58, %s3725_s27  ;;  %3269 = vmatprep.subr.mxu1 %v1013_v54 }
 0x58c   : > { %3270 = vmatpush3.msra.mxu1 %v1013_v54 }
 0x58d   : > { %3271 = vmatprep.subr.mxu1 %v1012_v50 }
 0x58e   : > { %2142 = vrot.lane.b32.xlu0 %v4204_v6, %s3725_s27  ;;  %3272 = vmatpush3.msra.mxu1 %v1012_v50 }
 0x58f   : > { %3273 = vmatprep.subr.mxu1 %v1011_v51 }
 0x590   : > { %3274 = vmatpush3.msra.mxu1 %v1011_v51  ;;  %v4468_v51 = vld [vmem:[%s4776_s8] ss:$0 sm:$0xff] }
 0x592   : > { %2146 = vrot.lane.b32.xlu0 %v4214_v57, %s3725_s27  ;;  %s2674_s27 = sadd.s32 (%p3839_p7), %s3697_s11, %s2966_s25 }
 0x59a   : > { %v1270_v53 = vpop.xlane.xlu1 %1269 }
 0x59b   : > { %3563 = vrcp.f32 %v1270_v53 }
 0x59c   : > { %v1267_v56 = vpop.xlane.xlu0 %1266 }
 0x59d   : > { %3565 = vrcp.f32 %v1267_v56 }
 0x59e   : > { %v1314_v6 = vpop.permute.xlu1 %1313 }
 0x5a0   : > { %v1316_v7 = vpop.permute.xlu0 %1315 }
 0x5a1   : > { %3251 = vmatprep.subr.mxu0 %v1316_v7 }
 0x5a2   : > { %3252 = vmatpush3.msra.mxu0 %v1316_v7 }
 0x5a3   : > { %3253 = vmatprep.subr.mxu0 %v1314_v6 }
 0x5a4   : > { %3254 = vmatpush3.msra.mxu0 %v1314_v6 }
 0x5a5   : > { %3287 = vmatprep.subr.msk.mxu0 %vm1070_vm1, %v4161_v40 }
 0x5a8   : > { %v3564_v57 = vpop.eup %3563 }
 0x5a9   : > { %v1298_v13 = vmul.f32 %v3564_v57, %v4237_v32 }
 0x5aa   : > { %v3566_v58 = vpop.eup %3565 }
 0x5ab   : > { %v1297_v10 = vmul.f32 %v3566_v58, %v4241_v36 }
 0x5ad   : > { %3255 = vmatprep.mubr.msk.f32.mxu0 %vm1216_vm2, %v1297_v10 }
 0x5ae   : > { %3256 = vmatmul.mubr.msk.f32.vlgmr.msra.gmra.mxu0 %vm1216_vm2, %v1298_v13 }
 0x5af   : > { %3288 = vmatpush3.xpose.msk.msra.mxu0 %vm1070_vm1, %v4161_v40 }
 0x5b0   : > { %3289 = vmatprep.subr.msk.mxu0 %vm1070_vm1, %v4166_v41 }
 0x5b3   : > { %3290 = vmatpush3.xpose.msk.msra.mxu0 %vm1070_vm1, %v4166_v41 }
 0x5b4   : > { %3291 = vmatprep.subr.msk.mxu0 %vm1070_vm1, %v4170_v42 }
 0x5b7   : > { %3292 = vmatpush3.xpose.msk.msra.mxu0 %vm1070_vm1, %v4170_v42 }
 0x5b8   : > { %3293 = vmatprep.subr.msk.mxu0 %vm1070_vm1, %v4174_v43 }
 0x5bb   : > { %3294 = vmatpush3.xpose.msk.msra.mxu0 %vm1070_vm1, %v4174_v43 }
 0x5bc   : > { %3295 = vmatprep.subr.msk.mxu0 %vm1070_vm1, %v4143_v23 }
 0x5bf   : > { %3296 = vmatpush3.xpose.msk.msra.mxu0 %vm1070_vm1, %v4143_v23 }
 0x5c0   : > { %3297 = vmatprep.subr.msk.mxu0 %vm1070_vm1, %v4141_v20 }
 0x5c3   : > { %3298 = vmatpush3.xpose.msk.msra.mxu0 %vm1070_vm1, %v4141_v20 }
 0x5c4   : > { %3299 = vmatprep.subr.msk.mxu0 %vm1070_vm1, %v4139_v15 }
 0x5c7   : > { %3300 = vmatpush3.xpose.msk.msra.mxu0 %vm1070_vm1, %v4139_v15 }
 0x5c8   : > { %3301 = vmatprep.subr.msk.mxu0 %vm1070_vm1, %v4135_v12 }
 0x5cb   : > { %3302 = vmatpush3.xpose.msk.msra.mxu0 %vm1070_vm1, %v4135_v12 }
 0x5cf   : > { %v1276_v14 = vpop.xlane.xlu1 %1275 }
 0x5d0   : > { %3567 = vrcp.f32 %v1276_v14 }
 0x5d1   : > { %v1273_v18 = vpop.xlane.xlu0 %1272 }
 0x5d2   : > { %3569 = vrcp.f32 %v1273_v18 }
 0x5d3   : > { %v1282_v19 = vpop.xlane.xlu1 %1281 }
 0x5d4   : > { %3571 = vrcp.f32 %v1282_v19 }
 0x5d5   : > { %v1279_v21 = vpop.xlane.xlu0 %1278 }
 0x5d6   : > { %3573 = vrcp.f32 %v1279_v21  ;;  %v4425_v21 = vadd.f32 %v4365_v61, %v765_v11 }
 0x5d7   : > { %v1288_v22 = vpop.xlane.xlu1 %1287 }
 0x5d8   : > { %3575 = vrcp.f32 %v1288_v22 }
 0x5d9   : > { %v1285_v24 = vpop.xlane.xlu0 %1284 }
 0x5da   : > { %3577 = vrcp.f32 %v1285_v24 }
 0x5db   : > { %v1606_v25 = vpop.permute.xlu1 %1605 }
 0x5dd   : > { %v1604_v27 = vpop.permute.xlu0 %1603  ;;  %v3568_v28 = vpop.eup %3567 }
 0x5de   : > { %v1300_v33 = vmul.f32 %v3568_v28, %v4249_v59  ;;  %v4374_v59 = vpop.f32.mrf.mxu0 }
 0x5df   : > { %v3570_v29 = vpop.eup %3569  ;;  %v1610_v30 = vpop.permute.xlu1 %1609  ;;  %v4430_v24 = vadd.f32 %v4374_v59, %v765_v11 }
 0x5e0   : > { %v1299_v31 = vmul.f32 %v3570_v29, %v4251_v60 }
 0x5e1   : > { %v1608_v32 = vpop.permute.xlu0 %1607  ;;  %v3572_v34 = vpop.eup %3571 }
 0x5e2   : > { %3258 = vmatprep.mubr.msk.f32.mxu0 %vm1216_vm2, %v1299_v31  ;;  %v1302_v39 = vmul.f32 %v3572_v34, %v4255_v16  ;;  %v3204_v16 = vpop.f32.mrf.mxu0 }
 0x5e3   : > { %v3574_v35 = vpop.eup %3573  ;;  %3259 = vmatmul.mubr.msk.f32.gmra.mxu0 %vm1216_vm2, %v1300_v33  ;;  %v1614_v36 = vpop.permute.xlu1 %1613  ;;  %v4414_v14 = vadd.f32 %v3204_v16, %v765_v11 }
 0x5e4   : > { %v1301_v37 = vmul.f32 %v3574_v35, %v4259_v26  ;;  %v982_v26 = vpop.f32.mrf.mxu0 }
 0x5e5   : > { %v1612_v38 = vpop.permute.xlu0 %1611  ;;  %v3576_v44 = vpop.eup %3575  ;;  %v4418_v18 = vadd.f32 %v982_v26, %v765_v11 }
 0x5e6   : > { %3261 = vmatprep.mubr.msk.f32.mxu0 %vm1216_vm2, %v1301_v37  ;;  %v1304_v47 = vmul.f32 %v3576_v44, %v4263_v4  ;;  %v3207_v5 = vpop.f32.mrf.mxu0 }
 0x5e7   : > { %v3578_v45 = vpop.eup %3577  ;;  %3262 = vmatmul.mubr.msk.f32.gmra.mxu0 %vm1216_vm2, %v1302_v39  ;;  %v1618_v48 = vpop.permute.xlu1 %1617  ;;  %v4404_v2 = vadd.f32 %v3207_v5, %v765_v11 }
 0x5e8   : > { %v1303_v55 = vmul.f32 %v3578_v45, %v4267_v8  ;;  %v992_v9 = vpop.f32.mrf.mxu0 }
 0x5e9   : > { %v1616_v46 = vpop.permute.xlu0 %1615  ;;  %v4408_v10 = vadd.f32 %v992_v9, %v765_v11 }
 0x5ea   : > { %3264 = vmatprep.mubr.msk.f32.mxu0 %vm1216_vm2, %v1303_v55  ;;  %v3210_v53 = vpop.f32.mrf.mxu0 }
 0x5eb   : > { %3265 = vmatmul.mubr.msk.f32.gmra.mxu0 %vm1216_vm2, %v1304_v47  ;;  %v2163_v62 = vpop.permute.xlu1 %2162  ;;  %v4395_v54 = vadd.f32 %v3210_v53, %v765_v11 }
 0x5ec   : > { %3303 = vmatprep.mubr.msk.f32.mxu0 %vm1070_vm1, %v1604_v27  ;;  %v1002_v6 = vpop.f32.mrf.mxu0 }
 0x5ed   : > { %v2165_v49 = vpop.permute.xlu0 %2164  ;;  %v4399_v0 = vadd.f32 %v1002_v6, %v765_v11 }
 0x5ee   : > { %3363 = vmatprep.subr.msk.mxu0 %vm1070_vm1, %v2165_v49 }
 0x5ef   : > { %3304 = vmatmul.mubr.msk.f32.vlgmr.msra.gmra.mxu0 %vm1070_vm1, %v1606_v25  ;;  %v2159_v63 = vpop.permute.xlu1 %2158 }
 0x5f0   : > { %3364 = vmatpush3.xpose.msk.msra.mxu0 %vm1070_vm1, %v2165_v49  ;;  %3306 = vmatprep.mubr.msk.f32.mxu0 %vm1070_vm1, %v1608_v32 }
 0x5f1   : > { %3365 = vmatprep.subr.msk.mxu0 %vm1070_vm1, %v2163_v62  ;;  %v2161_v52 = vpop.permute.xlu0 %2160 }
 0x5f3   : > { %3307 = vmatmul.mubr.msk.f32.gmra.mxu0 %vm1070_vm1, %v1610_v30  ;;  %v2155_v1 = vpop.permute.xlu1 %2154 }
 0x5f4   : > { %3366 = vmatpush3.xpose.msk.msra.mxu0 %vm1070_vm1, %v2163_v62  ;;  %3309 = vmatprep.mubr.msk.f32.mxu0 %vm1070_vm1, %v1612_v38 }
 0x5f5   : > { %3367 = vmatprep.subr.msk.mxu0 %vm1070_vm1, %v2161_v52  ;;  %v2157_v60 = vpop.permute.xlu0 %2156 }
 0x5f7   : > { %3310 = vmatmul.mubr.msk.f32.gmra.mxu0 %vm1070_vm1, %v1614_v36  ;;  %v2151_v8 = vpop.permute.xlu1 %2150 }
 0x5f8   : > { %3368 = vmatpush3.xpose.msk.msra.mxu0 %vm1070_vm1, %v2161_v52  ;;  %3312 = vmatprep.mubr.msk.f32.mxu0 %vm1070_vm1, %v1616_v46 }
 0x5f9   : > { %3369 = vmatprep.subr.msk.mxu0 %vm1070_vm1, %v2159_v63  ;;  %v2153_v17 = vpop.permute.xlu0 %2152 }
 0x5fb   : > { %3313 = vmatmul.mubr.msk.f32.gmra.mxu0 %vm1070_vm1, %v1618_v48  ;;  %v2137_v56 = vpop.permute.xlu1 %2136 }
 0x5fc   : > { %3370 = vmatpush3.xpose.msk.msra.mxu0 %vm1070_vm1, %v2159_v63 }
 0x5fd   : > { %3371 = vmatprep.subr.msk.mxu0 %vm1070_vm1, %v2157_v60  ;;  %v2135_v4 = vpop.permute.xlu0 %2134 }
 0x5fe   : > { %3379 = vmatprep.mubr.msk.f32.mxu0 %vm1070_vm1, %v2135_v4 }
 0x5ff   : > { %v2141_v57 = vpop.permute.xlu1 %2140 }
 0x600   : > { %3372 = vmatpush3.xpose.msk.msra.mxu0 %vm1070_vm1, %v2157_v60 }
 0x601   : > { %3373 = vmatprep.subr.msk.mxu0 %vm1070_vm1, %v2155_v1  ;;  %v2139_v7 = vpop.permute.xlu0 %2138 }
 0x603   : > { %v2145_v13 = vpop.permute.xlu1 %2144 }
 0x604   : > { %3374 = vmatpush3.xpose.msk.msra.mxu0 %vm1070_vm1, %v2155_v1 }
 0x605   : > { %3375 = vmatprep.subr.msk.mxu0 %vm1070_vm1, %v2153_v17  ;;  %v2143_v58 = vpop.permute.xlu0 %2142 }
 0x607   : > { %v2149_v22 = vpop.permute.xlu1 %2148 }
 0x608   : > { %3376 = vmatpush3.xpose.msk.msra.mxu0 %vm1070_vm1, %v2153_v17 }
 0x609   : > { %3377 = vmatprep.subr.msk.mxu0 %vm1070_vm1, %v2151_v8  ;;  %v2147_v19 = vpop.permute.xlu0 %2146 }
 0x60c   : > { %3378 = vmatpush3.xpose.msk.msra.mxu0 %vm1070_vm1, %v2151_v8 }
 0x60d   : > { %3391 = vmatprep.subr.mxu0 %v4395_v54 }
 0x60f   : > { %3380 = vmatmul.mubr.msk.f32.vlgmr.msra.gmra.mxu0 %vm1070_vm1, %v2137_v56 }
 0x610   : > { %3382 = vmatprep.mubr.msk.f32.mxu0 %vm1070_vm1, %v2139_v7  ;;  %3392 = vmatpush3.msra.mxu0 %v4395_v54 }
 0x611   : > { %3393 = vmatprep.subr.mxu0 %v4399_v0 }
 0x612   : > { %3394 = vmatpush3.msra.mxu0 %v4399_v0 }
 0x613   : > { %3383 = vmatmul.mubr.msk.f32.gmra.mxu0 %vm1070_vm1, %v2141_v57  ;;  %3395 = vmatprep.subr.mxu0 %v4404_v2 }
 0x614   : > { %3385 = vmatprep.mubr.msk.f32.mxu0 %vm1070_vm1, %v2143_v58  ;;  %3396 = vmatpush3.msra.mxu0 %v4404_v2 }
 0x615   : > { %3397 = vmatprep.subr.mxu0 %v4408_v10 }
 0x616   : > { %3398 = vmatpush3.msra.mxu0 %v4408_v10 }
 0x617   : > { %3386 = vmatmul.mubr.msk.f32.gmra.mxu0 %vm1070_vm1, %v2145_v13  ;;  %3399 = vmatprep.subr.mxu0 %v4414_v14 }
 0x618   : > { %3388 = vmatprep.mubr.msk.f32.mxu0 %vm1070_vm1, %v2147_v19  ;;  %3400 = vmatpush3.msra.mxu0 %v4414_v14 }
 0x619   : > { %3401 = vmatprep.subr.mxu0 %v4418_v18 }
 0x61a   : > { %3402 = vmatpush3.msra.mxu0 %v4418_v18 }
 0x61b   : > { %3389 = vmatmul.mubr.msk.f32.gmra.mxu0 %vm1070_vm1, %v2149_v22  ;;  %3403 = vmatprep.subr.mxu0 %v4425_v21 }
 0x61c   : > { %3404 = vmatpush3.msra.mxu0 %v4425_v21 }
 0x61d   : > { %3405 = vmatprep.subr.mxu0 %v4430_v24 }
 0x61e   : > { %3406 = vmatpush3.msra.mxu0 %v4430_v24 }
 0x66e   : > { %v3257_v25 = vpop.f32.mrf.mxu0 }
 0x670   : > { %v1427_v27 = vpop.f32.mrf.mxu0 }
 0x671   : > { %3275 = vmatprep.mubr.msk.f32.mxu1 %vm1070_vm1, %v1427_v27 }
 0x672   : > { %3276 = vmatmul.mubr.msk.f32.vlgmr.msra.gmra.mxu1 %vm1070_vm1, %v3257_v25 }
 0x6a3   : > { %v3260_v28 = vpop.f32.mrf.mxu0 }
 0x6a5   : > { %v1437_v29 = vpop.f32.mrf.mxu0 }
 0x6a6   : > { %3278 = vmatprep.mubr.msk.f32.mxu1 %vm1070_vm1, %v1437_v29 }
 0x6a7   : > { %v3263_v30 = vpop.f32.mrf.mxu0  ;;  %3279 = vmatmul.mubr.msk.f32.gmra.mxu1 %vm1070_vm1, %v3260_v28 }
 0x6a9   : > { %v1447_v31 = vpop.f32.mrf.mxu0 }
 0x6aa   : > { %3281 = vmatprep.mubr.msk.f32.mxu1 %vm1070_vm1, %v1447_v31 }
 0x6ab   : > { %v3266_v32 = vpop.f32.mrf.mxu0  ;;  %3282 = vmatmul.mubr.msk.f32.gmra.mxu1 %vm1070_vm1, %v3263_v30 }
 0x6ad   : > { %v1457_v33 = vpop.f32.mrf.mxu0 }
 0x6ae   : > { %3284 = vmatprep.mubr.msk.f32.mxu1 %vm1070_vm1, %v1457_v33 }
 0x6af   : > { %3285 = vmatmul.mubr.msk.f32.gmra.mxu1 %vm1070_vm1, %v3266_v32  ;;  %v3305_v34 = vpop.f32.mrf.mxu0 }
 0x6b0   : > { %v1759_v35 = vsel %vm1216_vm2, %v3305_v34, -inf }
 0x6b1   : > { %1760 = vmax.xlane.f32.xlu1 %v1759_v35  ;;  %v1717_v36 = vpop.f32.mrf.mxu0 }
 0x6b2   : > { %v1756_v37 = vsel %vm1216_vm2, %v1717_v36, -inf }
 0x6b3   : > { %1757 = vmax.xlane.f32.xlu0 %v1756_v37  ;;  %v3308_v38 = vpop.f32.mrf.mxu0 }
 0x6b4   : > { %v1765_v44 = vsel %vm1216_vm2, %v3308_v38, -inf }
 0x6b5   : > { %v1727_v39 = vpop.f32.mrf.mxu0 }
 0x6b6   : > { %v1762_v47 = vsel %vm1216_vm2, %v1727_v39, -inf }
 0x6b7   : > { %1766 = vmax.xlane.f32.xlu0 %v1765_v44  ;;  %v3311_v45 = vpop.f32.mrf.mxu0 }
 0x6b8   : > { %v1771_v55 = vsel %vm1216_vm2, %v3311_v45, -inf }
 0x6b9   : > { %1772 = vmax.xlane.f32.xlu1 %v1771_v55  ;;  %v1737_v46 = vpop.f32.mrf.mxu0 }
 0x6ba   : > { %v1768_v50 = vsel %vm1216_vm2, %v1737_v46, -inf }
 0x6bb   : > { %1763 = vmax.xlane.f32.xlu0 %v1762_v47  ;;  %v3314_v48 = vpop.f32.mrf.mxu0 }
 0x6bc   : > { %v1777_v49 = vsel %vm1216_vm2, %v3314_v48, -inf }
 0x6bd   : > { %1778 = vmax.xlane.f32.xlu1 %v1777_v49  ;;  %v1747_v61 = vpop.f32.mrf.mxu0 }
 0x6be   : > { %v1774_v62 = vsel %vm1216_vm2, %v1747_v61, -inf }
 0x6bf   : > { %1769 = vmax.xlane.f32.xlu0 %v1768_v50 }
 0x6c3   : > { %1775 = vmax.xlane.f32.xlu0 %v1774_v62 }
 0x6ce   : > { %1856 = vrot.lane.b32.xlu1 %v4166_v41, %s3724_s26  ;;  %v3643_v41 = vld [vmem:[%s3883_s22] sm:$0xff] }
 0x6d2   : > { %1854 = vrot.lane.b32.xlu1 %v4170_v42, %s3724_s26  ;;  %v1030_v42 = vadd.f32 %v3643_v41, %v4468_v51 }
 0x6d6   : > { %1852 = vrot.lane.b32.xlu1 %v4174_v43, %s3724_s26 }
 0x6d9   : > { %1858 = vrot.lane.b32.xlu0 %v4161_v40, %s3724_s26 }
 0x6da   : > { %1848 = vrot.lane.b32.xlu1 %v4141_v20, %s3724_s26 }
 0x6dd   : > { %1850 = vrot.lane.b32.xlu0 %v4143_v23, %s3724_s26 }
 0x732   : > { %v4472_v52 = vpop.f32.mrf.mxu1 }
 0x734   : > { %v1556_v43 = vpop.f32.mrf.mxu1 }
 0x735   : > { %v4474_v59 = vadd.f32 %v1556_v43, %v1030_v42 }
 0x73a   : > { %v1761_v40 = vpop.xlane.xlu1 %1760 }
 0x73b   : > { %v1781_v60 = vsub.f32 %v3305_v34, %v1761_v40 }
 0x73c   : > { %v1758_v63 = vpop.xlane.xlu0 %1757 }
 0x73d   : > { %v1790_v20 = vmul.f32 1.442695, %v1781_v60  ;;  %v1780_v16 = vsub.f32 %v1717_v36, %v1758_v63 }
 0x73f   : > { %3579 = vpow2.f32 %v1790_v20  ;;  %v1788_v23 = vmul.f32 1.442695, %v1780_v16 }
 0x740   : > { %v1767_v17 = vpop.xlane.xlu0 %1766 }
 0x741   : > { %3581 = vpow2.f32 %v1788_v23  ;;  %v1783_v26 = vsub.f32 %v3308_v38, %v1767_v17 }
 0x742   : > { %v1773_v1 = vpop.xlane.xlu1 %1772 }
 0x743   : > { %v1794_v4 = vmul.f32 1.442695, %v1783_v26  ;;  %v1785_v5 = vsub.f32 %v3311_v45, %v1773_v1 }
 0x744   : > { %v1764_v8 = vpop.xlane.xlu0 %1763 }
 0x745   : > { %3583 = vpow2.f32 %v1794_v4  ;;  %v1798_v9 = vmul.f32 1.442695, %v1785_v5  ;;  %v1782_v3 = vsub.f32 %v1727_v39, %v1764_v8 }
 0x746   : > { %v1779_v53 = vpop.xlane.xlu1 %1778 }
 0x747   : > { %3585 = vpow2.f32 %v1798_v9  ;;  %v1792_v56 = vmul.f32 1.442695, %v1782_v3  ;;  %v1787_v11 = vsub.f32 %v3314_v48, %v1779_v53 }
 0x748   : > { %v1770_v7 = vpop.xlane.xlu0 %1769 }
 0x749   : > { %3587 = vpow2.f32 %v1792_v56  ;;  %v1802_v6 = vmul.f32 1.442695, %v1787_v11  ;;  %v1784_v57 = vsub.f32 %v1737_v46, %v1770_v7 }
 0x74a   : > { %v1857_v58 = vpop.permute.xlu1 %1856 }
 0x74b   : > { %3589 = vpow2.f32 %v1802_v6  ;;  %v1796_v13 = vmul.f32 1.442695, %v1784_v57 }
 0x74c   : > { %v4476_v19 = vpop.eup %3579  ;;  %v1776_v22 = vpop.xlane.xlu0 %1775 }
 0x74d   : > { %3591 = vpow2.f32 %v1796_v13  ;;  %v1786_v25 = vsub.f32 %v1747_v61, %v1776_v22  ;;  %v1807_v27 = vsel %vm1216_vm2, %v4476_v19, 0.0  ;;  %v4512_v61 = vpop.f32.mrf.mxu0 }
 0x74e   : > { %v4480_v28 = vpop.eup %3581  ;;  %1808 = vadd.xlane.f32.xlu1 %v1807_v27  ;;  %v1855_v30 = vpop.permute.xlu1 %1854  ;;  %v2306_v40 = vsel %vm1216_vm2, %v4512_v61, -inf }
 0x74f   : > { %v1800_v29 = vmul.f32 1.442695, %v1786_v25  ;;  %v1804_v31 = vsel %vm1216_vm2, %v4480_v28, 0.0  ;;  %v4514_v62 = vpop.f32.mrf.mxu0  ;;  %v1018_v25 = vld [vmem:[%s4775_s7 + $0x38] sm:$0xff] }
 0x750   : > { %1805 = vadd.xlane.f32.xlu0 %v1804_v31  ;;  %v1859_v32 = vpop.permute.xlu0 %1858  ;;  %v2303_v63 = vsel %vm1216_vm2, %v4514_v62, -inf }
 0x751   : > { %3593 = vpow2.f32 %v1800_v29  ;;  %3315 = vmatprep.subr.mxu1 %v1859_v32  ;;  %v4516_v41 = vpop.f32.mrf.mxu0 }
 0x752   : > { %v4484_v33 = vpop.eup %3583  ;;  %3316 = vmatpush3.msra.mxu1 %v1859_v32  ;;  %v1853_v36 = vpop.permute.xlu1 %1852  ;;  %v2312_v23 = vsel %vm1216_vm2, %v4516_v41, -inf }
 0x753   : > { %3317 = vmatprep.subr.mxu1 %v1857_v58  ;;  %v1813_v34 = vsel %vm1216_vm2, %v4484_v33, 0.0  ;;  %v4518_v42 = vpop.f32.mrf.mxu0 }
 0x754   : > { %v4488_v35 = vpop.eup %3585  ;;  %1814 = vadd.xlane.f32.xlu1 %v1813_v34  ;;  %3318 = vmatpush3.msra.mxu1 %v1857_v58  ;;  %v1851_v45 = vpop.permute.xlu0 %1850  ;;  %v2309_v16 = vsel %vm1216_vm2, %v4518_v42, -inf }
 0x755   : > { %3319 = vmatprep.subr.mxu1 %v1855_v30  ;;  %v1819_v38 = vsel %vm1216_vm2, %v4488_v35, 0.0  ;;  %v4520_v43 = vpop.f32.mrf.mxu0 }
 0x756   : > { %v4490_v37 = vpop.eup %3587  ;;  %3320 = vmatpush3.msra.mxu1 %v1855_v30  ;;  %v1849_v46 = vpop.permute.xlu1 %1848  ;;  %v1017_v30 = vld [vmem:[%s4775_s7 + $0x30] sm:$0xff] }
 0x757   : > { %3321 = vmatprep.subr.mxu1 %v1853_v36  ;;  %v1810_v39 = vsel %vm1216_vm2, %v4490_v37, 0.0  ;;  %v4524_v60 = vpop.f32.mrf.mxu0 }
 0x758   : > { %v4496_v44 = vpop.eup %3589  ;;  %1820 = vadd.xlane.f32.xlu1 %v1819_v38  ;;  %1811 = vadd.xlane.f32.xlu0 %v1810_v39  ;;  %v2315_v17 = vsel %vm1216_vm2, %v4524_v60, -inf }
 0x759   : > { %3322 = vmatpush3.msra.mxu1 %v1853_v36  ;;  %v1825_v47 = vsel %vm1216_vm2, %v4496_v44, 0.0 }
 0x75a   : > { %v4498_v55 = vpop.eup %3591  ;;  %3323 = vmatprep.subr.mxu1 %v1851_v45 }
 0x75b   : > { %3324 = vmatpush3.msra.mxu1 %v1851_v45  ;;  %v1816_v48 = vsel %vm1216_vm2, %v4498_v55, 0.0 }
 0x75c   : > { %3325 = vmatprep.subr.mxu1 %v1849_v46  ;;  %1826 = vadd.xlane.f32.xlu1 %v1825_v47 }
 0x75d   : > { %1817 = vadd.xlane.f32.xlu0 %v1816_v48  ;;  %3326 = vmatpush3.msra.mxu1 %v1849_v46 }
 0x75e   : > { %v4504_v49 = vpop.eup %3593 }
 0x75f   : > { %v1822_v50 = vsel %vm1216_vm2, %v4504_v49, 0.0 }
 0x761   : > { %1823 = vadd.xlane.f32.xlu0 %v1822_v50 }
 0x76d   : > { %1844 = vrot.lane.b32.xlu1 %v4135_v12, %s3724_s26  ;;  %v2318_v12 = vsel %vm1216_vm2, %v4520_v43, -inf }
 0x777   : > { %1846 = vrot.lane.b32.xlu0 %v4139_v15, %s3724_s26  ;;  %v4528_v15 = vpop.f32.mrf.mxu0 }
 0x778   : > { %v2324_v20 = vsel %vm1216_vm2, %v4528_v15, -inf }
 0x779   : > { %v4540_v26 = vpop.f32.mrf.mxu0 }
 0x77a   : > { %v2321_v1 = vsel %vm1216_vm2, %v4540_v26, -inf }
 0x791   : > { %2307 = vmax.xlane.f32.xlu1 %v2306_v40 }
 0x795   : > { %2319 = vmax.xlane.f32.xlu1 %v2318_v12 }
 0x796   : > { %2304 = vmax.xlane.f32.xlu0 %v2303_v63 }
 0x799   : > { %2325 = vmax.xlane.f32.xlu1 %v2324_v20 }
 0x79a   : > { %2310 = vmax.xlane.f32.xlu0 %v2309_v16 }
 0x79e   : > { %2313 = vmax.xlane.f32.xlu0 %v2312_v23 }
 0x7a2   : > { %2316 = vmax.xlane.f32.xlu0 %v2315_v17 }
 0x7a6   : > { %2322 = vmax.xlane.f32.xlu0 %v2321_v1 }
 0x7d7   : > { %v1809_v5 = vpop.xlane.xlu1 %1808 }
 0x7d9   : > { %v1806_v4 = vpop.xlane.xlu0 %1805 }
 0x7da   : > { %3595 = vrcp.f32 %v1806_v4 }
 0x7db   : > { %3597 = vrcp.f32 %v1809_v5 }
 0x7dd   : > { %v1815_v8 = vpop.xlane.xlu1 %1814 }
 0x7e1   : > { %v1812_v9 = vpop.xlane.xlu0 %1811  ;;  %v1821_v3 = vpop.xlane.xlu1 %1820 }
 0x7e2   : > { %3599 = vrcp.f32 %v1812_v9 }
 0x7e3   : > { %3601 = vrcp.f32 %v1815_v8 }
 0x7e5   : > { %v1827_v7 = vpop.xlane.xlu1 %1826 }
 0x7e6   : > { %v1818_v53 = vpop.xlane.xlu0 %1817 }
 0x7e7   : > { %v3596_v56 = vpop.eup %3595  ;;  %3603 = vrcp.f32 %v1818_v53 }
 0x7e8   : > { %v1836_v11 = vmul.f32 %v3596_v56, %v4480_v28  ;;  %3605 = vrcp.f32 %v1821_v3  ;;  %v3598_v57 = vpop.eup %3597 }
 0x7e9   : > { %v1845_v22 = vpop.permute.xlu1 %1844  ;;  %v1837_v27 = vmul.f32 %v3598_v57, %v4476_v19  ;;  %v1016_v19 = vld [vmem:[%s4775_s7 + $0x28] sm:$0xff] }
 0x7ea   : > { %v1824_v6 = vpop.xlane.xlu0 %1823  ;;  %3331 = vmatprep.mubr.msk.f32.mxu1 %vm1216_vm2, %v1836_v11 }
 0x7eb   : > { %3607 = vrcp.f32 %v1824_v6 }
 0x7ec   : > { %3609 = vrcp.f32 %v1827_v7 }
 0x7ee   : > { %v1847_v58 = vpop.permute.xlu0 %1846 }
 0x7ef   : > { %3327 = vmatprep.subr.mxu1 %v1847_v58  ;;  %v3600_v13 = vpop.eup %3599 }
 0x7f0   : > { %3328 = vmatpush3.msra.mxu1 %v1847_v58  ;;  %v1838_v28 = vmul.f32 %v3600_v13, %v4490_v37  ;;  %v3602_v29 = vpop.eup %3601  ;;  %v1015_v37 = vld [vmem:[%s4775_s7 + $0x20] sm:$0xff] }
 0x7f1   : > { %3329 = vmatprep.subr.mxu1 %v1845_v22  ;;  %v1839_v32 = vmul.f32 %v3602_v29, %v4484_v33  ;;  %v4613_v29 = vpop.f32.mrf.mxu1 }
 0x7f2   : > { %3330 = vmatpush3.msra.mxu1 %v1845_v22 }
 0x7f3   : > { %3332 = vmatmul.mubr.msk.f32.vlgmr.msra.gmra.mxu1 %vm1216_vm2, %v1837_v27  ;;  %3343 = vmatprep.subr.mxu1 %v1018_v25 }
 0x7f4   : > { %v3604_v31 = vpop.eup %3603  ;;  %3334 = vmatprep.mubr.msk.f32.mxu1 %vm1216_vm2, %v1838_v28  ;;  %3344 = vmatpush3.msra.mxu1 %v1018_v25 }
 0x7f5   : > { %3345 = vmatprep.subr.mxu1 %v1017_v30  ;;  %v1840_v34 = vmul.f32 %v3604_v31, %v4498_v55  ;;  %v3606_v36 = vpop.eup %3605 }
 0x7f6   : > { %3346 = vmatpush3.msra.mxu1 %v1017_v30  ;;  %v1841_v39 = vmul.f32 %v3606_v36, %v4488_v35  ;;  %v4615_v30 = vpop.f32.mrf.mxu1 }
 0x7f7   : > { %3335 = vmatmul.mubr.msk.f32.gmra.mxu1 %vm1216_vm2, %v1839_v32  ;;  %3347 = vmatprep.subr.mxu1 %v1016_v19 }
 0x7f8   : > { %v3608_v38 = vpop.eup %3607  ;;  %3337 = vmatprep.mubr.msk.f32.mxu1 %vm1216_vm2, %v1840_v34  ;;  %3348 = vmatpush3.msra.mxu1 %v1016_v19  ;;  %v4617_v31 = vpop.f32.mrf.mxu1 }
 0x7f9   : > { %3349 = vmatprep.subr.mxu1 %v1015_v37  ;;  %v1842_v33 = vmul.f32 %v3608_v38, %v4504_v49  ;;  %v3610_v45 = vpop.eup %3609 }
 0x7fa   : > { %3350 = vmatpush3.msra.mxu1 %v1015_v37  ;;  %v1843_v55 = vmul.f32 %v3610_v45, %v4496_v44  ;;  %v4619_v19 = vpop.f32.mrf.mxu1 }
 0x7fb   : > { %3338 = vmatmul.mubr.msk.f32.gmra.mxu1 %vm1216_vm2, %v1841_v39  ;;  %3439 = vmatprep.subr.mxu1 %v4395_v54 }
 0x7fc   : > { %3340 = vmatprep.mubr.msk.f32.mxu1 %vm1216_vm2, %v1842_v33  ;;  %v4621_v32 = vpop.f32.mrf.mxu1 }
 0x7fe   : > { %v4623_v34 = vpop.f32.mrf.mxu1 }
 0x7ff   : > { %3341 = vmatmul.mubr.msk.f32.gmra.mxu1 %vm1216_vm2, %v1843_v55 }
 0x81a   : > { %v2308_v46 = vpop.xlane.xlu1 %2307 }
 0x81b   : > { %v2328_v47 = vsub.f32 %v4512_v61, %v2308_v46 }
 0x81d   : > { %v2337_v48 = vmul.f32 1.442695, %v2328_v47 }
 0x81e   : > { %v2320_v50 = vpop.xlane.xlu1 %2319 }
 0x81f   : > { %3611 = vpow2.f32 %v2337_v48  ;;  %v2305_v35 = vpop.xlane.xlu0 %2304  ;;  %v2332_v20 = vsub.f32 %v4520_v43, %v2320_v50 }
 0x820   : > { %v2327_v49 = vsub.f32 %v4514_v62, %v2305_v35 }
 0x821   : > { %v2345_v61 = vmul.f32 1.442695, %v2332_v20 }
 0x822   : > { %v2335_v40 = vmul.f32 1.442695, %v2327_v49  ;;  %v2326_v44 = vpop.xlane.xlu1 %2325 }
 0x823   : > { %v2311_v12 = vpop.xlane.xlu0 %2310  ;;  %v2334_v1 = vsub.f32 %v4528_v15, %v2326_v44 }
 0x824   : > { %3613 = vpow2.f32 %v2335_v40  ;;  %v2329_v63 = vsub.f32 %v4518_v42, %v2311_v12 }
 0x825   : > { %v2349_v43 = vmul.f32 1.442695, %v2334_v1 }
 0x826   : > { %v2339_v16 = vmul.f32 1.442695, %v2329_v63 }
 0x827   : > { %v2314_v23 = vpop.xlane.xlu0 %2313 }
 0x828   : > { %3615 = vpow2.f32 %v2339_v16  ;;  %v2330_v17 = vsub.f32 %v4516_v41, %v2314_v23 }
 0x82a   : > { %v2341_v4 = vmul.f32 1.442695, %v2330_v17 }
 0x82b   : > { %v2317_v5 = vpop.xlane.xlu0 %2316 }
 0x82c   : > { %v4579_v62 = vpop.eup %3611  ;;  %3617 = vpow2.f32 %v2341_v4  ;;  %v2331_v8 = vsub.f32 %v4524_v60, %v2317_v5  ;;  %v1022_v5 = vld [vmem:[%s4775_s7 + $0x58] sm:$0xff] }
 0x82d   : > { %v2354_v42 = vsel %vm1216_vm2, %v4579_v62, 0.0  ;;  %3619 = vpow2.f32 %v2345_v61 }
 0x82e   : > { %v2343_v9 = vmul.f32 1.442695, %v2331_v8  ;;  %2355 = vadd.xlane.f32.xlu1 %v2354_v42  ;;  %v1020_v8 = vld [vmem:[%s4775_s7 + $0x48] sm:$0xff]  ;;  %v1019_v42 = vld [vmem:[%s4775_s7 + $0x40] sm:$0xff] }
 0x82f   : > { %v2323_v3 = vpop.xlane.xlu0 %2322 }
 0x830   : > { %3621 = vpow2.f32 %v2343_v9  ;;  %v2333_v41 = vsub.f32 %v4540_v26, %v2323_v3 }
 0x831   : > { %v4585_v53 = vpop.eup %3613  ;;  %3623 = vpow2.f32 %v2349_v43  ;;  %v3644_v43 = vld [vmem:[%s3883_s22 + $0x8] sm:$0xff] }
 0x832   : > { %v2347_v15 = vmul.f32 1.442695, %v2333_v41  ;;  %v2351_v56 = vsel %vm1216_vm2, %v4585_v53, 0.0  ;;  %v1031_v9 = vadd.f32 %v3644_v43, %v4468_v51  ;;  %v3645_v41 = vld [vmem:[%s3883_s22 + $0x18] sm:$0xff] }
 0x833   : > { %2352 = vadd.xlane.f32.xlu0 %v2351_v56  ;;  %v3646_v56 = vld [vmem:[%s3883_s22 + $0x10] sm:$0xff] }
 0x834   : > { %3625 = vpow2.f32 %v2347_v15  ;;  %v1596_v3 = vadd.f32 %v4472_v52, %v1031_v9 }
 0x835   : > { %v4589_v60 = vpop.eup %3615 }
 0x836   : > { %v2357_v11 = vsel %vm1216_vm2, %v4589_v60, 0.0 }
 0x837   : > { %2358 = vadd.xlane.f32.xlu0 %v2357_v11 }
 0x839   : > { %v4593_v7 = vpop.eup %3617 }
 0x83a   : > { %v2360_v26 = vsel %vm1216_vm2, %v4593_v7, 0.0  ;;  %v4597_v6 = vpop.eup %3619 }
 0x83b   : > { %2361 = vadd.xlane.f32.xlu1 %v2360_v26  ;;  %v2366_v58 = vsel %vm1216_vm2, %v4597_v6, 0.0 }
 0x83d   : > { %v4599_v57 = vpop.eup %3621 }
 0x83e   : > { %v2363_v13 = vsel %vm1216_vm2, %v4599_v57, 0.0  ;;  %v4605_v22 = vpop.eup %3623 }
 0x83f   : > { %2367 = vadd.xlane.f32.xlu1 %v2366_v58  ;;  %2364 = vadd.xlane.f32.xlu0 %v2363_v13  ;;  %v2372_v27 = vsel %vm1216_vm2, %v4605_v22, 0.0 }
 0x841   : > { %v4607_v25 = vpop.eup %3625 }
 0x842   : > { %v2369_v28 = vsel %vm1216_vm2, %v4607_v25, 0.0 }
 0x843   : > { %2373 = vadd.xlane.f32.xlu1 %v2372_v27  ;;  %2370 = vadd.xlane.f32.xlu0 %v2369_v28 }
 0x8b3   : > { %v3333_v36 = vpop.f32.mrf.mxu1 }
 0x8b5   : > { %v1958_v37 = vpop.f32.mrf.mxu1 }
 0x8b6   : > { %3351 = vmatprep.mubr.msk.f32.mxu1 %vm1070_vm1, %v1958_v37  ;;  %v3649_v37 = vld [vmem:[%s3883_s22 + $0x38] sm:$0xff] }
 0x8b7   : > { %v3336_v38 = vpop.f32.mrf.mxu1  ;;  %3352 = vmatmul.mubr.msk.f32.vlgmr.msra.gmra.mxu1 %vm1070_vm1, %v3333_v36  ;;  %v2356_v39 = vpop.xlane.xlu1 %2355 }
 0x8b8   : > { %3447 = vmatpush3.msra.mxu1 %v4395_v54  ;;  %3627 = vrcp.f32 %v2356_v39 }
 0x8b9   : > { %3440 = vmatprep.subr.mxu1 %v4399_v0  ;;  %v1968_v33 = vpop.f32.mrf.mxu1 }
 0x8ba   : > { %3448 = vmatpush3.msra.mxu1 %v4399_v0  ;;  %3354 = vmatprep.mubr.msk.f32.mxu1 %vm1070_vm1, %v1968_v33 }
 0x8bb   : > { %3441 = vmatprep.subr.mxu1 %v4404_v2  ;;  %v3339_v45 = vpop.f32.mrf.mxu1  ;;  %3355 = vmatmul.mubr.msk.f32.gmra.mxu1 %vm1070_vm1, %v3336_v38  ;;  %v1037_v38 = vadd.f32 %v3649_v37, %v4468_v51 }
 0x8bc   : > { %3449 = vmatpush3.msra.mxu1 %v4404_v2  ;;  %v2353_v55 = vpop.xlane.xlu0 %2352 }
 0x8bd   : > { %3442 = vmatprep.subr.mxu1 %v4408_v10  ;;  %3629 = vrcp.f32 %v2353_v55  ;;  %v1978_v54 = vpop.f32.mrf.mxu1 }
 0x8be   : > { %3450 = vmatpush3.msra.mxu1 %v4408_v10  ;;  %3357 = vmatprep.mubr.msk.f32.mxu1 %vm1070_vm1, %v1978_v54 }
 0x8bf   : > { %3443 = vmatprep.subr.mxu1 %v4414_v14  ;;  %v3342_v0 = vpop.f32.mrf.mxu1  ;;  %3358 = vmatmul.mubr.msk.f32.gmra.mxu1 %vm1070_vm1, %v3339_v45 }
 0x8c0   : > { %3451 = vmatpush3.msra.mxu1 %v4414_v14  ;;  %v2359_v46 = vpop.xlane.xlu0 %2358 }
 0x8c1   : > { %3444 = vmatprep.subr.mxu1 %v4418_v18  ;;  %3631 = vrcp.f32 %v2359_v46  ;;  %v1988_v2 = vpop.f32.mrf.mxu1 }
 0x8c2   : > { %3452 = vmatpush3.msra.mxu1 %v4418_v18  ;;  %3360 = vmatprep.mubr.msk.f32.mxu1 %vm1070_vm1, %v1988_v2 }
 0x8c3   : > { %3445 = vmatprep.subr.mxu1 %v4425_v21  ;;  %3361 = vmatmul.mubr.msk.f32.gmra.mxu1 %vm1070_vm1, %v3342_v0 }
 0x8c4   : > { %3453 = vmatpush3.msra.mxu1 %v4425_v21  ;;  %v2362_v10 = vpop.xlane.xlu1 %2361 }
 0x8c5   : > { %3446 = vmatprep.subr.mxu1 %v4430_v24  ;;  %3633 = vrcp.f32 %v2362_v10  ;;  %v3628_v48 = vpop.eup %3627 }
 0x8c6   : > { %3454 = vmatpush3.msra.mxu1 %v4430_v24  ;;  %v2384_v49 = vmul.f32 %v3628_v48, %v4579_v62  ;;  %v1021_v62 = vld [vmem:[%s4775_s7 + $0x50] sm:$0xff] }
 0x8c7   : > { %3419 = vmatprep.subr.mxu1 %v1022_v5 }
 0x8c8   : > { %v2368_v14 = vpop.xlane.xlu1 %2367  ;;  %v2365_v47 = vpop.xlane.xlu0 %2364 }
 0x8c9   : > { %3635 = vrcp.f32 %v2368_v14 }
 0x8ca   : > { %v3630_v35 = vpop.eup %3629  ;;  %3637 = vrcp.f32 %v2365_v47 }
 0x8cb   : > { %v2383_v18 = vmul.f32 %v3630_v35, %v4585_v53  ;;  %v1033_v53 = vadd.f32 %v3645_v41, %v4468_v51 }
 0x8cc   : > { %v2374_v50 = vpop.xlane.xlu1 %2373  ;;  %v2371_v40 = vpop.xlane.xlu0 %2370 }
 0x8cd   : > { %3639 = vrcp.f32 %v2374_v50  ;;  %3407 = vmatprep.mubr.msk.f32.mxu0 %vm1216_vm2, %v2383_v18  ;;  %v1598_v26 = vadd.f32 %v4613_v29, %v1033_v53 }
 0x8ce   : > { %v3632_v21 = vpop.eup %3631  ;;  %3641 = vrcp.f32 %v2371_v40  ;;  %3408 = vmatmul.mubr.msk.f32.vlgmr.msra.gmra.mxu0 %vm1216_vm2, %v2384_v49 }
 0x8cf   : > { %v2385_v24 = vmul.f32 %v3632_v21, %v4589_v60  ;;  %v1032_v60 = vadd.f32 %v3646_v56, %v4468_v51 }
 0x8d1   : > { %3410 = vmatprep.mubr.msk.f32.mxu1 %vm1216_vm2, %v2385_v24  ;;  %v1597_v52 = vadd.f32 %v4615_v30, %v1032_v60 }
 0x8d2   : > { %v3634_v12 = vpop.eup %3633 }
 0x8d3   : > { %v2386_v63 = vmul.f32 %v3634_v12, %v4593_v7 }
 0x8d5   : > { %3411 = vmatmul.mubr.msk.f32.vlgmr.msra.gmra.mxu1 %vm1216_vm2, %v2386_v63  ;;  %v3650_v63 = vld [vmem:[%s3883_s22 + $0x30] sm:$0xff] }
 0x8d6   : > { %v3636_v20 = vpop.eup %3635  ;;  %3420 = vmatpush3.msra.mxu1 %v1022_v5 }
 0x8d7   : > { %v3638_v16 = vpop.eup %3637  ;;  %v2388_v44 = vmul.f32 %v3636_v20, %v4597_v6  ;;  %3421 = vmatprep.subr.mxu1 %v1021_v62  ;;  %v3647_v6 = vld [vmem:[%s3883_s22 + $0x28] sm:$0xff]  ;;  %v1036_v20 = vadd.f32 %v3650_v63, %v4468_v51 }
 0x8d8   : > { %v2387_v23 = vmul.f32 %v3638_v16, %v4599_v57  ;;  %3422 = vmatpush3.msra.mxu1 %v1021_v62  ;;  %v1035_v57 = vadd.f32 %v3647_v6, %v4468_v51 }
 0x8d9   : > { %3423 = vmatprep.subr.mxu1 %v1020_v8 }
 0x8da   : > { %v3640_v17 = vpop.eup %3639  ;;  %3413 = vmatprep.mubr.msk.f32.mxu1 %vm1216_vm2, %v2387_v23  ;;  %3424 = vmatpush3.msra.mxu1 %v1020_v8  ;;  %v1600_v36 = vadd.f32 %v4617_v31, %v1035_v57 }
 0x8db   : > { %v3642_v61 = vpop.eup %3641  ;;  %3414 = vmatmul.mubr.msk.f32.gmra.mxu1 %vm1216_vm2, %v2388_v44  ;;  %v2390_v1 = vmul.f32 %v3640_v17, %v4605_v22  ;;  %3425 = vmatprep.subr.mxu1 %v1019_v42  ;;  %v3648_v22 = vld [vmem:[%s3883_s22 + $0x20] sm:$0xff]  ;;  %v1601_v17 = vadd.f32 %v4623_v34, %v1036_v20  ;;  %s2961_s22 = sshll.u32 (%p3839_p7), %s3705_s13, 5 }
 0x8dc   : > { %v2389_v4 = vmul.f32 %v3642_v61, %v4607_v25  ;;  %3426 = vmatpush3.msra.mxu1 %v1019_v42  ;;  %v1034_v25 = vadd.f32 %v3648_v22, %v4468_v51  ;;  %s2676_s23 = sadd.s32 (%p3839_p7), %s2961_s22, %s2674_s27 }
 0x8dd   : > { %s2962_s28 = sshll.u32 (%p3839_p7), %s2676_s23, 3 }
 0x8de   : > { %3416 = vmatprep.mubr.msk.f32.mxu1 %vm1216_vm2, %v2389_v4  ;;  %v1599_v33 = vadd.f32 %v4619_v19, %v1034_v25  ;;  %s2678_s9 = scalar_lea.vmem (%p3839_p7), %s4787_s30, %s2962_s28 }
 0x8df   : > { %3417 = vmatmul.mubr.msk.f32.gmra.mxu1 %vm1216_vm2, %v2390_v1 }
 0x977   : > { %v3353_v15 = vpop.f32.mrf.mxu1 }
 0x978   : > { %v2127_v11 = vadd.f32 %v3353_v15, %v1596_v3 }
 0x979   : > { %v2087_v7 = vpop.f32.mrf.mxu1 }
 0x97a   : > { %v2126_v58 = vadd.f32 %v2087_v7, %v4474_v59  ;;  %v1602_v59 = vadd.f32 %v4621_v32, %v1037_v38 }
 0x97b   : > { %v3356_v13 = vpop.f32.mrf.mxu1 }
 0x97c   : > { %v2129_v27 = vadd.f32 %v3356_v13, %v1598_v26 }
 0x97d   : > { %v2097_v28 = vpop.f32.mrf.mxu1 }
 0x97e   : > { %v2128_v39 = vadd.f32 %v2097_v28, %v1597_v52 }
 0x97f   : > { %v3359_v29 = vpop.f32.mrf.mxu1 }
 0x980   : > { %v2131_v45 = vadd.f32 %v3359_v29, %v1600_v36 }
 0x981   : > { %v2107_v55 = vpop.f32.mrf.mxu1 }
 0x982   : > { %v2130_v54 = vadd.f32 %v2107_v55, %v1599_v33 }
 0x983   : > { %v3362_v30 = vpop.f32.mrf.mxu1 }
 0x984   : > { %v2133_v0 = vadd.f32 %v3362_v30, %v1602_v59 }
 0x985   : > { %v2117_v31 = vpop.f32.mrf.mxu1 }
 0x986   : > { %v2132_v4 = vadd.f32 %v2117_v31, %v1601_v17 }
 0x98e   : > { %v3409_v46 = vpop.f32.mrf.mxu0 }
 0x990   : > { %v2481_v2 = vpop.f32.mrf.mxu0 }
 0x991   : > { %3427 = vmatprep.mubr.msk.f32.mxu1 %vm1070_vm1, %v2481_v2 }
 0x992   : > { %3428 = vmatmul.mubr.msk.f32.vlgmr.msra.gmra.mxu1 %vm1070_vm1, %v3409_v46 }
 0x995   : > { %v3412_v10 = vpop.f32.mrf.mxu1 }
 0x997   : > { %v2491_v14 = vpop.f32.mrf.mxu1 }
 0x998   : > { %3430 = vmatprep.mubr.msk.f32.mxu1 %vm1070_vm1, %v2491_v14 }
 0x999   : > { %3431 = vmatmul.mubr.msk.f32.gmra.mxu1 %vm1070_vm1, %v3412_v10 }
 0x99b   : > { %v3415_v19 = vpop.f32.mrf.mxu1 }
 0x99d   : > { %v2501_v47 = vpop.f32.mrf.mxu1 }
 0x99e   : > { %3433 = vmatprep.mubr.msk.f32.mxu1 %vm1070_vm1, %v2501_v47 }
 0x99f   : > { %v3418_v32 = vpop.f32.mrf.mxu1  ;;  %3434 = vmatmul.mubr.msk.f32.gmra.mxu1 %vm1070_vm1, %v3415_v19 }
 0x9a1   : > { %v2511_v48 = vpop.f32.mrf.mxu1 }
 0x9a2   : > { %3436 = vmatprep.mubr.msk.f32.mxu1 %vm1070_vm1, %v2511_v48 }
 0x9a3   : > { %3437 = vmatmul.mubr.msk.f32.gmra.mxu1 %vm1070_vm1, %v3418_v32 }
 0xa52   : > { %v3429_v35 = vpop.f32.mrf.mxu1 }
 0xa53   : > { %v2650_v18 = vadd.f32 %v3429_v35, %v2127_v11 }
 0xa54   : > { %v2610_v49 = vpop.f32.mrf.mxu1 }
 0xa55   : > { %2658 = vst.msk [vmem:[%s4704_s24 + $0x8] sm:$0xff] %vm451_vm0, %v2650_v18  ;;  %v2649_v50 = vadd.f32 %v2610_v49, %v2126_v58 }
 0xa57   : > { %2657 = vst.msk [vmem:[%s4704_s24] sm:$0xff] %vm451_vm0, %v2649_v50 }
 0xa59   : > { %v3432_v40 = vpop.f32.mrf.mxu1 }
 0xa5a   : > { %v2652_v21 = vadd.f32 %v3432_v40, %v2129_v27 }
 0xa5b   : > { %v2620_v24 = vpop.f32.mrf.mxu1 }
 0xa5c   : > { %2660 = vst.msk [vmem:[%s4704_s24 + $0x18] sm:$0xff] %vm451_vm0, %v2652_v21  ;;  %v2651_v12 = vadd.f32 %v2620_v24, %v2128_v39  ;;  %v2723_v34 = vld [vmem:[%s4704_s24 + $0x8] sm:$0xff] (%p3839_p7) }
 0xa5d   : > { %2724 = vst [vmem:[%s2678_s9 + $0x10] sm:$0xff] (%p3839_p7), %v2723_v34 }
 0xa5e   : > { %2659 = vst.msk [vmem:[%s4704_s24 + $0x10] sm:$0xff] %vm451_vm0, %v2651_v12  ;;  %v2721_v51 = vld [vmem:[%s4704_s24] sm:$0xff] (%p3839_p7) }
 0xa5f   : > { %v3435_v16 = vpop.f32.mrf.mxu1  ;;  %2722 = vst [vmem:[%s2678_s9] sm:$0xff] (%p3839_p7), %v2721_v51 }
 0xa60   : > { %v2654_v44 = vadd.f32 %v3435_v16, %v2131_v45 }
 0xa61   : > { %v2630_v23 = vpop.f32.mrf.mxu1 }
 0xa62   : > { %2662 = vst.msk [vmem:[%s4704_s24 + $0x28] sm:$0xff] %vm451_vm0, %v2654_v44  ;;  %v2653_v61 = vadd.f32 %v2630_v23, %v2130_v54 }
 0xa63   : > { %v3438_v1 = vpop.f32.mrf.mxu1  ;;  %v2727_v43 = vld [vmem:[%s4704_s24 + $0x18] sm:$0xff] (%p3839_p7) }
 0xa64   : > { %2661 = vst.msk [vmem:[%s4704_s24 + $0x20] sm:$0xff] %vm451_vm0, %v2653_v61  ;;  %v2656_v5 = vadd.f32 %v3438_v1, %v2133_v0  ;;  %2671 = sbr.rel (!%p3839_p7) target bundleno = 2673 (0xa71), region = 98  ;;  %2728 = vst [vmem:[%s2678_s9 + $0x30] sm:$0xff] (%p3839_p7), %v2727_v43 }
 0xa65   : > { %v2640_v62 = vpop.f32.mrf.mxu1  ;;  %v2725_v42 = vld [vmem:[%s4704_s24 + $0x10] sm:$0xff] (%p3839_p7) }
 0xa66   : > { %2664 = vst.msk [vmem:[%s4704_s24 + $0x38] sm:$0xff] %vm451_vm0, %v2656_v5  ;;  %v2655_v8 = vadd.f32 %v2640_v62, %v2132_v4  ;;  %2726 = vst [vmem:[%s2678_s9 + $0x20] sm:$0xff] (%p3839_p7), %v2725_v42 }
 0xa68   : > { %2663 = vst.msk [vmem:[%s4704_s24 + $0x30] sm:$0xff] %vm451_vm0, %v2655_v8 }
 0xa69   : > { %v2731_v3 = vld [vmem:[%s4704_s24 + $0x28] sm:$0xff] }
 0xa6a   : > { %2732 = vst [vmem:[%s2678_s9 + $0x50] sm:$0xff] %v2731_v3 }
 0xa6b   : > { %v2729_v9 = vld [vmem:[%s4704_s24 + $0x20] sm:$0xff] }
 0xa6c   : > { %2730 = vst [vmem:[%s2678_s9 + $0x40] sm:$0xff] %v2729_v9 }
 0xa6d   : > { %v2735_v53 = vld [vmem:[%s4704_s24 + $0x38] sm:$0xff] }
 0xa6e   : > { %2736 = vst [vmem:[%s2678_s9 + $0x70] sm:$0xff] %v2735_v53 }
 0xa6f   : > { %v2733_v41 = vld [vmem:[%s4704_s24 + $0x30] sm:$0xff] }
 0xa70   : > { %2734 = vst [vmem:[%s2678_s9 + $0x60] sm:$0xff] %v2733_v41 }
 0xa71 PF: > { %s19_s17 = sadd.s32 1, %s3721_s17   ;;  %s4788_s18 = sld [smem:[#allocation4_spill]] }
 0xa72   : > { %p16_p13 = scmp.ge.s32.totalorder %s19_s17, 10   ;;  %s4789_s19 = sld [smem:[#allocation5_spill]] }
 0xa73   : > { %s4790_s21 = sld [smem:[#allocation6_spill]]  ;;  %s4791_s30 = smov %s3693_s10 }
 0xa74   : > { %s4792_s10 = smov %s3853_s20  ;;  %s4793_s11 = smov %s3709_s14 }
 0xa75   : > { %s4794_s12 = smov %s3713_s15  ;;  %s4795_s13 = smov %s3717_s16 }
 0xa76   :  { %18 = sbr.rel (!%p16_p13) target bundleno = 7 (0x7), region = 167 }
 0xa77   : > { %s4796_s14 = smov %s4788_s18 }
 0xa78   : > { %s4797_s15 = smov %s4789_s19 }
 0xa79   : > { %s4798_s16 = smov %s4790_s21 }

// kernel: fwd.7
= control target key start
LH: loop header
LB: loop body
LE: loop exit
PB: predicated region body
PF: predicated region fallthrough
CT: control target
= control target key end

     0   :  { %vm116_vm0 = vcmask 785408   ;;  %s6120_s0 = inlined_call_operand.vmem [shape: f32[512,96], index: 0, kind: input, shape index: {}]   ;;  %s6121_s1 = inlined_call_operand.vmem [shape: f32[96,96], index: 1, kind: input, shape index: {}]   ;;  %s6122_s2 = inlined_call_operand.vmem [shape: f32[1,96], index: 2, kind: input, shape index: {}]   ;;  %s6123_s3 = inlined_call_operand.vmem [shape: f32[1,96], index: 3, kind: input, shape index: {}]   ;;  %s6124_s4 = inlined_call_operand.vmem [shape: f32[1,96], index: 4, kind: input, shape index: {}]   ;;  %s6125_s5 = inlined_call_operand.vmem [shape: f32[96,96], index: 5, kind: input, shape index: {}]   ;;  %s6126_s6 = inlined_call_operand.vmem [shape: f32[1,96], index: 6, kind: input, shape index: {}]   ;;  %s6127_s7 = inlined_call_operand.vmem [shape: f32[96,96], index: 7, kind: input, shape index: {}]   ;;  %s6128_s8 = inlined_call_operand.vmem [shape: f32[1,96], index: 8, kind: input, shape index: {}]   ;;  %s6129_s9 = inlined_call_operand.hbm [shape: f32[512,96], index: 9, kind: output, shape index: {}]  }
   0x1   :  { %v108_v0 = vld [vmem:[%s6121_s1 + $0x58] sm:$0xff]  ;;  %v107_v1 = vld [vmem:[%s6121_s1 + $0x50] sm:$0xff]  ;;  %v106_v2 = vld [vmem:[%s6121_s1 + $0x48] sm:$0xff] }
   0x2   :  { %3558 = vmatprep.subr.mxu0 %v108_v0  ;;  %3918 = vmatprep.subr.mxu1 %v108_v0  ;;  %v105_v3 = vld [vmem:[%s6121_s1 + $0x40] sm:$0xff]  ;;  %v104_v4 = vld [vmem:[%s6121_s1 + $0x38] sm:$0xff]  ;;  %v103_v5 = vld [vmem:[%s6121_s1 + $0x30] sm:$0xff] }
   0x3   :  { %3559 = vmatpush3.msra.mxu0 %v108_v0  ;;  %3930 = vmatpush3.msra.mxu1 %v108_v0  ;;  %v102_v6 = vld [vmem:[%s6121_s1 + $0x28] sm:$0xff]  ;;  %v101_v7 = vld [vmem:[%s6121_s1 + $0x20] sm:$0xff]  ;;  %v100_v8 = vld [vmem:[%s6121_s1 + $0x18] sm:$0xff] }
   0x4   :  { %3560 = vmatprep.subr.mxu0 %v107_v1  ;;  %3919 = vmatprep.subr.mxu1 %v107_v1  ;;  %v99_v9 = vld [vmem:[%s6121_s1 + $0x10] sm:$0xff]  ;;  %v98_v10 = vld [vmem:[%s6121_s1 + $0x8] sm:$0xff]  ;;  %v97_v11 = vld [vmem:[%s6121_s1] sm:$0xff] }
   0x5   :  { %3561 = vmatpush3.msra.mxu0 %v107_v1  ;;  %3931 = vmatpush3.msra.mxu1 %v107_v1  ;;  %v33_v12 = vld [vmem:[%s6120_s0] sm:$0xff]  ;;  %v34_v14 = vld [vmem:[%s6120_s0 + $0x8] sm:$0xff]  ;;  %v35_v16 = vld [vmem:[%s6120_s0 + $0x10] sm:$0xff] }
   0x6   :  { %3562 = vmatprep.subr.mxu0 %v106_v2  ;;  %3920 = vmatprep.subr.mxu1 %v106_v2  ;;  %v65_v13 = vld [vmem:[%s6120_s0 + $0x100] sm:$0xff]  ;;  %v66_v15 = vld [vmem:[%s6120_s0 + $0x108] sm:$0xff]  ;;  %v67_v17 = vld [vmem:[%s6120_s0 + $0x110] sm:$0xff] }
   0x7   :  { %3563 = vmatpush3.msra.mxu0 %v106_v2  ;;  %3932 = vmatpush3.msra.mxu1 %v106_v2 }
   0x8   :  { %3564 = vmatprep.subr.mxu0 %v105_v3  ;;  %3921 = vmatprep.subr.mxu1 %v105_v3 }
   0x9   :  { %3565 = vmatpush3.msra.mxu0 %v105_v3  ;;  %3933 = vmatpush3.msra.mxu1 %v105_v3 }
   0xa   :  { %3566 = vmatprep.subr.mxu0 %v104_v4  ;;  %3922 = vmatprep.subr.mxu1 %v104_v4 }
   0xb   :  { %3567 = vmatpush3.msra.mxu0 %v104_v4  ;;  %3934 = vmatpush3.msra.mxu1 %v104_v4 }
   0xc   :  { %3568 = vmatprep.subr.mxu0 %v103_v5  ;;  %3923 = vmatprep.subr.mxu1 %v103_v5 }
   0xd   :  { %3569 = vmatpush3.msra.mxu0 %v103_v5  ;;  %3935 = vmatpush3.msra.mxu1 %v103_v5 }
   0xe   :  { %3570 = vmatprep.subr.mxu0 %v102_v6  ;;  %3924 = vmatprep.subr.mxu1 %v102_v6 }
   0xf   :  { %3571 = vmatpush3.msra.mxu0 %v102_v6  ;;  %3936 = vmatpush3.msra.mxu1 %v102_v6 }
  0x10   :  { %3572 = vmatprep.subr.mxu0 %v101_v7  ;;  %3925 = vmatprep.subr.mxu1 %v101_v7 }
  0x11   :  { %3573 = vmatpush3.msra.mxu0 %v101_v7  ;;  %3937 = vmatpush3.msra.mxu1 %v101_v7 }
  0x12   :  { %3574 = vmatprep.subr.mxu0 %v100_v8  ;;  %3926 = vmatprep.subr.mxu1 %v100_v8 }
  0x13   :  { %3575 = vmatpush3.msra.mxu0 %v100_v8  ;;  %3938 = vmatpush3.msra.mxu1 %v100_v8 }
  0x14   :  { %3576 = vmatprep.subr.mxu0 %v99_v9  ;;  %3927 = vmatprep.subr.mxu1 %v99_v9 }
  0x15   :  { %3577 = vmatpush3.msra.mxu0 %v99_v9  ;;  %3939 = vmatpush3.msra.mxu1 %v99_v9 }
  0x16   :  { %3578 = vmatprep.subr.mxu0 %v98_v10  ;;  %3928 = vmatprep.subr.mxu1 %v98_v10 }
  0x17   :  { %3579 = vmatpush3.msra.mxu0 %v98_v10  ;;  %3940 = vmatpush3.msra.mxu1 %v98_v10 }
  0x18   :  { %3580 = vmatprep.subr.mxu0 %v97_v11  ;;  %3929 = vmatprep.subr.mxu1 %v97_v11 }
  0x19   :  { %3581 = vmatpush3.msra.mxu0 %v97_v11  ;;  %3941 = vmatpush3.msra.mxu1 %v97_v11 }
  0x1a   :  { %3582 = vmatprep.mubr.msk.f32.mxu0 %vm116_vm0, %v33_v12  ;;  %3630 = vmatprep.mubr.msk.f32.mxu1 %vm116_vm0, %v65_v13 }
  0x1b   :  { %14 = vsyncpa [#allocation3], 0  ;;  %3583 = vmatmul.mubr.msk.f32.vlgmr.msra.gmra.mxu0 %vm116_vm0, %v34_v14  ;;  %3631 = vmatmul.mubr.msk.f32.vlgmr.msra.gmra.mxu1 %vm116_vm0, %v66_v15  ;;  %v36_v18 = vld [vmem:[%s6120_s0 + $0x18] sm:$0xff]  ;;  %v37_v20 = vld [vmem:[%s6120_s0 + $0x20] sm:$0xff]  ;;  %s4161_s25 = smov [#allocation2]  }
  0x1c   :  { %3585 = vmatprep.mubr.msk.f32.mxu0 %vm116_vm0, %v35_v16  ;;  %3633 = vmatprep.mubr.msk.f32.mxu1 %vm116_vm0, %v67_v17  ;;  %v68_v19 = vld [vmem:[%s6120_s0 + $0x118] sm:$0xff]  ;;  %v69_v21 = vld [vmem:[%s6120_s0 + $0x120] sm:$0xff]  ;;  %v38_v22 = vld [vmem:[%s6120_s0 + $0x28] sm:$0xff]  ;;  %s3122_s26 = sshll.u32 %s4161_s25, 4  ;;  %s3123_s26 = int_to_ptr.vmem [resolvable:$true] %s3122_s26 }
  0x1d   :  { %v70_v23 = vld [vmem:[%s6120_s0 + $0x128] sm:$0xff]  ;;  %v39_v24 = vld [vmem:[%s6120_s0 + $0x30] sm:$0xff]  ;;  %v40_v26 = vld [vmem:[%s6120_s0 + $0x38] sm:$0xff]  ;;  %s4139_s29 = scalar_lea.vmem %s3123_s26, 8192  ;;  %p4144_p1 = scmp.lt.s32.totalorder %s3123_s26, %s3123_s26 }
  0x1e   :  { %v71_v25 = vld [vmem:[%s6120_s0 + $0x130] sm:$0xff]  ;;  %v72_v27 = vld [vmem:[%s6120_s0 + $0x138] sm:$0xff]  ;;  %v41_v28 = vld [vmem:[%s6120_s0 + $0x40] sm:$0xff]  ;;  %p4140_p0 = scmp.ne.s32.totalorder %s3123_s26, %s4139_s29  ;;  %p4145_p2 = scmp.lt.s32.totalorder %s4139_s29, %s4139_s29 }
  0x1f   :  { %3586 = vmatmul.mubr.msk.f32.gmra.mxu0 %vm116_vm0, %v36_v18  ;;  %3634 = vmatmul.mubr.msk.f32.gmra.mxu1 %vm116_vm0, %v68_v19  ;;  %v73_v29 = vld [vmem:[%s6120_s0 + $0x140] sm:$0xff]  ;;  %v42_v30 = vld [vmem:[%s6120_s0 + $0x48] sm:$0xff]  ;;  %v43_v32 = vld [vmem:[%s6120_s0 + $0x50] sm:$0xff] }
  0x20   :  { %3588 = vmatprep.mubr.msk.f32.mxu0 %vm116_vm0, %v37_v20  ;;  %3636 = vmatprep.mubr.msk.f32.mxu1 %vm116_vm0, %v69_v21  ;;  %v74_v31 = vld [vmem:[%s6120_s0 + $0x148] sm:$0xff]  ;;  %v75_v33 = vld [vmem:[%s6120_s0 + $0x150] sm:$0xff]  ;;  %v44_v34 = vld [vmem:[%s6120_s0 + $0x58] sm:$0xff]  ;;  %p4146_p3 = por %p4145_p2, %p4144_p1 }
  0x21   :  { %v76_v35 = vld [vmem:[%s6120_s0 + $0x158] sm:$0xff]  ;;  %v45_v36 = vld [vmem:[%s6120_s0 + $0x60] sm:$0xff]  ;;  %v46_v38 = vld [vmem:[%s6120_s0 + $0x68] sm:$0xff] }
  0x22   :  { %v77_v37 = vld [vmem:[%s6120_s0 + $0x160] sm:$0xff]  ;;  %v78_v39 = vld [vmem:[%s6120_s0 + $0x168] sm:$0xff]  ;;  %v47_v40 = vld [vmem:[%s6120_s0 + $0x70] sm:$0xff]  ;;  %p4147_p4 = pnand %p4146_p3, %p4140_p0 }
  0x23   :  { %3589 = vmatmul.mubr.msk.f32.gmra.mxu0 %vm116_vm0, %v38_v22  ;;  %3637 = vmatmul.mubr.msk.f32.gmra.mxu1 %vm116_vm0, %v70_v23  ;;  %v79_v41 = vld [vmem:[%s6120_s0 + $0x170] sm:$0xff]  ;;  %v48_v42 = vld [vmem:[%s6120_s0 + $0x78] sm:$0xff]  ;;  %v49_v44 = vld [vmem:[%s6120_s0 + $0x80] sm:$0xff] }
  0x24   :  { %3591 = vmatprep.mubr.msk.f32.mxu0 %vm116_vm0, %v39_v24  ;;  %3639 = vmatprep.mubr.msk.f32.mxu1 %vm116_vm0, %v71_v25  ;;  %v80_v43 = vld [vmem:[%s6120_s0 + $0x178] sm:$0xff]  ;;  %v81_v45 = vld [vmem:[%s6120_s0 + $0x180] sm:$0xff]  ;;  %v50_v46 = vld [vmem:[%s6120_s0 + $0x88] sm:$0xff] }
  0x25   :  { %v82_v47 = vld [vmem:[%s6120_s0 + $0x188] sm:$0xff]  ;;  %v51_v48 = vld [vmem:[%s6120_s0 + $0x90] sm:$0xff]  ;;  %v52_v50 = vld [vmem:[%s6120_s0 + $0x98] sm:$0xff] }
  0x26   :  { %v83_v49 = vld [vmem:[%s6120_s0 + $0x190] sm:$0xff]  ;;  %v84_v51 = vld [vmem:[%s6120_s0 + $0x198] sm:$0xff]  ;;  %v53_v52 = vld [vmem:[%s6120_s0 + $0xa0] sm:$0xff] }
  0x27   :  { %3592 = vmatmul.mubr.msk.f32.gmra.mxu0 %vm116_vm0, %v40_v26  ;;  %3640 = vmatmul.mubr.msk.f32.gmra.mxu1 %vm116_vm0, %v72_v27  ;;  %v85_v53 = vld [vmem:[%s6120_s0 + $0x1a0] sm:$0xff]  ;;  %v54_v54 = vld [vmem:[%s6120_s0 + $0xa8] sm:$0xff]  ;;  %v55_v56 = vld [vmem:[%s6120_s0 + $0xb0] sm:$0xff] }
  0x28   :  { %3594 = vmatprep.mubr.msk.f32.mxu0 %vm116_vm0, %v41_v28  ;;  %3642 = vmatprep.mubr.msk.f32.mxu1 %vm116_vm0, %v73_v29  ;;  %v86_v55 = vld [vmem:[%s6120_s0 + $0x1a8] sm:$0xff]  ;;  %v87_v57 = vld [vmem:[%s6120_s0 + $0x1b0] sm:$0xff]  ;;  %v56_v58 = vld [vmem:[%s6120_s0 + $0xb8] sm:$0xff] }
  0x29   :  { %v88_v59 = vld [vmem:[%s6120_s0 + $0x1b8] sm:$0xff]  ;;  %v57_v60 = vld [vmem:[%s6120_s0 + $0xc0] sm:$0xff]  ;;  %v58_v62 = vld [vmem:[%s6120_s0 + $0xc8] sm:$0xff] }
  0x2a   :  { %v89_v61 = vld [vmem:[%s6120_s0 + $0x1c0] sm:$0xff]  ;;  %v90_v63 = vld [vmem:[%s6120_s0 + $0x1c8] sm:$0xff]  ;;  %v59_v0 = vld [vmem:[%s6120_s0 + $0xd0] sm:$0xff] }
  0x2b   :  { %3595 = vmatmul.mubr.msk.f32.gmra.mxu0 %vm116_vm0, %v42_v30  ;;  %3643 = vmatmul.mubr.msk.f32.gmra.mxu1 %vm116_vm0, %v74_v31  ;;  %v91_v1 = vld [vmem:[%s6120_s0 + $0x1d0] sm:$0xff]  ;;  %v60_v2 = vld [vmem:[%s6120_s0 + $0xd8] sm:$0xff]  ;;  %v61_v4 = vld [vmem:[%s6120_s0 + $0xe0] sm:$0xff] }
  0x2c   :  { %3597 = vmatprep.mubr.msk.f32.mxu0 %vm116_vm0, %v43_v32  ;;  %3645 = vmatprep.mubr.msk.f32.mxu1 %vm116_vm0, %v75_v33  ;;  %v92_v3 = vld [vmem:[%s6120_s0 + $0x1d8] sm:$0xff]  ;;  %v93_v5 = vld [vmem:[%s6120_s0 + $0x1e0] sm:$0xff]  ;;  %v62_v6 = vld [vmem:[%s6120_s0 + $0xe8] sm:$0xff] }
  0x2d   :  { %v94_v7 = vld [vmem:[%s6120_s0 + $0x1e8] sm:$0xff]  ;;  %v63_v8 = vld [vmem:[%s6120_s0 + $0xf0] sm:$0xff]  ;;  %v64_v10 = vld [vmem:[%s6120_s0 + $0xf8] sm:$0xff] }
  0x2e   :  { %v95_v9 = vld [vmem:[%s6120_s0 + $0x1f0] sm:$0xff]  ;;  %v96_v11 = vld [vmem:[%s6120_s0 + $0x1f8] sm:$0xff]  ;;  %v4509_v12 = vld [vmem:[%s6122_s2] ss:$0 sm:$0xff] }
  0x2f   :  { %3598 = vmatmul.mubr.msk.f32.gmra.mxu0 %vm116_vm0, %v44_v34  ;;  %3646 = vmatmul.mubr.msk.f32.gmra.mxu1 %vm116_vm0, %v76_v35 }
  0x30   :  { %3600 = vmatprep.mubr.msk.f32.mxu0 %vm116_vm0, %v45_v36  ;;  %3648 = vmatprep.mubr.msk.f32.mxu1 %vm116_vm0, %v77_v37 }
  0x33   :  { %3601 = vmatmul.mubr.msk.f32.gmra.mxu0 %vm116_vm0, %v46_v38  ;;  %3649 = vmatmul.mubr.msk.f32.gmra.mxu1 %vm116_vm0, %v78_v39 }
  0x34   :  { %3603 = vmatprep.mubr.msk.f32.mxu0 %vm116_vm0, %v47_v40  ;;  %3651 = vmatprep.mubr.msk.f32.mxu1 %vm116_vm0, %v79_v41 }
  0x37   :  { %3604 = vmatmul.mubr.msk.f32.gmra.mxu0 %vm116_vm0, %v48_v42  ;;  %3652 = vmatmul.mubr.msk.f32.gmra.mxu1 %vm116_vm0, %v80_v43 }
  0x38   :  { %3606 = vmatprep.mubr.msk.f32.mxu0 %vm116_vm0, %v49_v44  ;;  %3654 = vmatprep.mubr.msk.f32.mxu1 %vm116_vm0, %v81_v45 }
  0x3b   :  { %3607 = vmatmul.mubr.msk.f32.gmra.mxu0 %vm116_vm0, %v50_v46  ;;  %3655 = vmatmul.mubr.msk.f32.gmra.mxu1 %vm116_vm0, %v82_v47 }
  0x3c   :  { %3609 = vmatprep.mubr.msk.f32.mxu0 %vm116_vm0, %v51_v48  ;;  %3657 = vmatprep.mubr.msk.f32.mxu1 %vm116_vm0, %v83_v49 }
  0x3f   :  { %3610 = vmatmul.mubr.msk.f32.gmra.mxu0 %vm116_vm0, %v52_v50  ;;  %3658 = vmatmul.mubr.msk.f32.gmra.mxu1 %vm116_vm0, %v84_v51 }
  0x40   :  { %3612 = vmatprep.mubr.msk.f32.mxu0 %vm116_vm0, %v53_v52  ;;  %3660 = vmatprep.mubr.msk.f32.mxu1 %vm116_vm0, %v85_v53 }
  0x43   :  { %3613 = vmatmul.mubr.msk.f32.gmra.mxu0 %vm116_vm0, %v54_v54  ;;  %3661 = vmatmul.mubr.msk.f32.gmra.mxu1 %vm116_vm0, %v86_v55 }
  0x44   :  { %3615 = vmatprep.mubr.msk.f32.mxu0 %vm116_vm0, %v55_v56  ;;  %3663 = vmatprep.mubr.msk.f32.mxu1 %vm116_vm0, %v87_v57 }
  0x47   :  { %3616 = vmatmul.mubr.msk.f32.gmra.mxu0 %vm116_vm0, %v56_v58  ;;  %3664 = vmatmul.mubr.msk.f32.gmra.mxu1 %vm116_vm0, %v88_v59 }
  0x48   :  { %3618 = vmatprep.mubr.msk.f32.mxu0 %vm116_vm0, %v57_v60  ;;  %3666 = vmatprep.mubr.msk.f32.mxu1 %vm116_vm0, %v89_v61 }
  0x4b   :  { %3619 = vmatmul.mubr.msk.f32.gmra.mxu0 %vm116_vm0, %v58_v62  ;;  %3667 = vmatmul.mubr.msk.f32.gmra.mxu1 %vm116_vm0, %v90_v63 }
  0x4c   :  { %3621 = vmatprep.mubr.msk.f32.mxu0 %vm116_vm0, %v59_v0  ;;  %3669 = vmatprep.mubr.msk.f32.mxu1 %vm116_vm0, %v91_v1 }
  0x4f   :  { %3622 = vmatmul.mubr.msk.f32.gmra.mxu0 %vm116_vm0, %v60_v2  ;;  %3670 = vmatmul.mubr.msk.f32.gmra.mxu1 %vm116_vm0, %v92_v3 }
  0x50   :  { %3624 = vmatprep.mubr.msk.f32.mxu0 %vm116_vm0, %v61_v4  ;;  %3672 = vmatprep.mubr.msk.f32.mxu1 %vm116_vm0, %v93_v5 }
  0x53   :  { %3625 = vmatmul.mubr.msk.f32.gmra.mxu0 %vm116_vm0, %v62_v6  ;;  %3673 = vmatmul.mubr.msk.f32.gmra.mxu1 %vm116_vm0, %v94_v7 }
  0x54   :  { %3627 = vmatprep.mubr.msk.f32.mxu0 %vm116_vm0, %v63_v8  ;;  %3675 = vmatprep.mubr.msk.f32.mxu1 %vm116_vm0, %v95_v9 }
  0x57   :  { %3628 = vmatmul.mubr.msk.f32.gmra.mxu0 %vm116_vm0, %v64_v10  ;;  %3676 = vmatmul.mubr.msk.f32.gmra.mxu1 %vm116_vm0, %v96_v11 }
  0xdb   :  { %v3584_v13 = vpop.f32.mrf.mxu0  ;;  %v3632_v14 = vpop.f32.mrf.mxu1 }
  0xdc   :  { %v4512_v15 = vadd.f32 %v3584_v13, %v4509_v12  ;;  %v4515_v16 = vadd.f32 %v3632_v14, %v4509_v12 }
  0xdd   :  { %v375_v17 = vpop.f32.mrf.mxu0  ;;  %v535_v18 = vpop.f32.mrf.mxu1 }
  0xde   :  { %v4518_v19 = vadd.f32 %v4509_v12, %v375_v17  ;;  %v795_v20 = vsel %vm116_vm0, %v4515_v16, 0.0  ;;  %v699_v21 = vsel %vm116_vm0, %v4512_v15, 0.0  ;;  %v4531_v27 = vadd.f32 %v4509_v12, %v535_v18 }
  0xdf   :  { %796 = vadd.xlane.f32.xlu1 %v795_v20  ;;  %700 = vadd.xlane.f32.xlu0 %v699_v21  ;;  %v3587_v22 = vpop.f32.mrf.mxu0  ;;  %v3635_v23 = vpop.f32.mrf.mxu1 }
  0xe0   :  { %v4525_v24 = vadd.f32 %v3587_v22, %v4509_v12  ;;  %v4528_v25 = vadd.f32 %v3635_v23, %v4509_v12  ;;  %v696_v29 = vsel %vm116_vm0, %v4518_v19, 0.0  ;;  %v792_v35 = vsel %vm116_vm0, %v4531_v27, 0.0 }
  0xe1   :  { %v385_v26 = vpop.f32.mrf.mxu0  ;;  %v545_v30 = vpop.f32.mrf.mxu1 }
  0xe2   :  { %v705_v28 = vsel %vm116_vm0, %v4525_v24, 0.0  ;;  %v801_v32 = vsel %vm116_vm0, %v4528_v25, 0.0  ;;  %v4540_v33 = vadd.f32 %v4509_v12, %v385_v26  ;;  %v4543_v34 = vadd.f32 %v4509_v12, %v545_v30 }
  0xe3   :  { %706 = vadd.xlane.f32.xlu1 %v705_v28  ;;  %697 = vadd.xlane.f32.xlu0 %v696_v29  ;;  %v3590_v31 = vpop.f32.mrf.mxu0  ;;  %v3638_v37 = vpop.f32.mrf.mxu1 }
  0xe4   :  { %v4548_v38 = vadd.f32 %v3590_v31, %v4509_v12  ;;  %v702_v40 = vsel %vm116_vm0, %v4540_v33, 0.0  ;;  %v798_v41 = vsel %vm116_vm0, %v4543_v34, 0.0  ;;  %v4558_v44 = vadd.f32 %v3638_v37, %v4509_v12 }
  0xe5   :  { %v395_v36 = vpop.f32.mrf.mxu0  ;;  %v555_v42 = vpop.f32.mrf.mxu1 }
  0xe6   :  { %v4551_v39 = vadd.f32 %v4509_v12, %v395_v36  ;;  %v4561_v45 = vadd.f32 %v4509_v12, %v555_v42  ;;  %v711_v46 = vsel %vm116_vm0, %v4548_v38, 0.0  ;;  %v807_v52 = vsel %vm116_vm0, %v4558_v44, 0.0 }
  0xe7   :  { %802 = vadd.xlane.f32.xlu1 %v801_v32  ;;  %793 = vadd.xlane.f32.xlu0 %v792_v35  ;;  %v3593_v43 = vpop.f32.mrf.mxu0  ;;  %v3641_v49 = vpop.f32.mrf.mxu1 }
  0xe8   :  { %v708_v47 = vsel %vm116_vm0, %v4551_v39, 0.0  ;;  %v4568_v50 = vadd.f32 %v3593_v43, %v4509_v12  ;;  %v804_v53 = vsel %vm116_vm0, %v4561_v45, 0.0  ;;  %v4578_v56 = vadd.f32 %v3641_v49, %v4509_v12 }
  0xe9   :  { %v405_v48 = vpop.f32.mrf.mxu0  ;;  %v565_v54 = vpop.f32.mrf.mxu1 }
  0xea   :  { %v4571_v51 = vadd.f32 %v4509_v12, %v405_v48  ;;  %v4581_v57 = vadd.f32 %v4509_v12, %v565_v54  ;;  %v717_v58 = vsel %vm116_vm0, %v4568_v50, 0.0  ;;  %v813_v0 = vsel %vm116_vm0, %v4578_v56, 0.0 }
  0xeb   :  { %703 = vadd.xlane.f32.xlu1 %v702_v40  ;;  %799 = vadd.xlane.f32.xlu0 %v798_v41  ;;  %v3596_v55 = vpop.f32.mrf.mxu0  ;;  %v3644_v61 = vpop.f32.mrf.mxu1 }
  0xec   :  { %v714_v59 = vsel %vm116_vm0, %v4571_v51, 0.0  ;;  %v4588_v62 = vadd.f32 %v3596_v55, %v4509_v12  ;;  %v810_v1 = vsel %vm116_vm0, %v4581_v57, 0.0  ;;  %v4598_v4 = vadd.f32 %v3644_v61, %v4509_v12 }
  0xed   :  { %v415_v60 = vpop.f32.mrf.mxu0  ;;  %v575_v2 = vpop.f32.mrf.mxu1 }
  0xee   :  { %v4591_v63 = vadd.f32 %v4509_v12, %v415_v60  ;;  %v4601_v5 = vadd.f32 %v4509_v12, %v575_v2  ;;  %v723_v6 = vsel %vm116_vm0, %v4588_v62, 0.0  ;;  %v819_v13 = vsel %vm116_vm0, %v4598_v4, 0.0 }
  0xef   :  { %712 = vadd.xlane.f32.xlu1 %v711_v46  ;;  %709 = vadd.xlane.f32.xlu0 %v708_v47  ;;  %v3599_v3 = vpop.f32.mrf.mxu0  ;;  %v3647_v9 = vpop.f32.mrf.mxu1 }
  0xf0   :  { %v720_v7 = vsel %vm116_vm0, %v4591_v63, 0.0  ;;  %v4608_v10 = vadd.f32 %v3599_v3, %v4509_v12  ;;  %v816_v14 = vsel %vm116_vm0, %v4601_v5, 0.0  ;;  %v4618_v20 = vadd.f32 %v3647_v9, %v4509_v12 }
  0xf1   :  { %v425_v8 = vpop.f32.mrf.mxu0  ;;  %v585_v17 = vpop.f32.mrf.mxu1 }
  0xf2   :  { %v4611_v11 = vadd.f32 %v4509_v12, %v425_v8  ;;  %v4621_v21 = vadd.f32 %v4509_v12, %v585_v17  ;;  %v729_v22 = vsel %vm116_vm0, %v4608_v10, 0.0  ;;  %v825_v32 = vsel %vm116_vm0, %v4618_v20, 0.0 }
  0xf3   :  { %808 = vadd.xlane.f32.xlu1 %v807_v52  ;;  %805 = vadd.xlane.f32.xlu0 %v804_v53  ;;  %v3602_v18 = vpop.f32.mrf.mxu0  ;;  %v3650_v28 = vpop.f32.mrf.mxu1 }
  0xf4   :  { %v726_v23 = vsel %vm116_vm0, %v4611_v11, 0.0  ;;  %v4628_v30 = vadd.f32 %v3602_v18, %v4509_v12  ;;  %v822_v35 = vsel %vm116_vm0, %v4621_v21, 0.0  ;;  %v4638_v40 = vadd.f32 %v3650_v28, %v4509_v12 }
  0xf5   :  { %v435_v26 = vpop.f32.mrf.mxu0  ;;  %v595_v36 = vpop.f32.mrf.mxu1 }
  0xf6   :  { %v4631_v31 = vadd.f32 %v4509_v12, %v435_v26  ;;  %v4641_v41 = vadd.f32 %v4509_v12, %v595_v36  ;;  %v735_v42 = vsel %vm116_vm0, %v4628_v30, 0.0  ;;  %v831_v52 = vsel %vm116_vm0, %v4638_v40, 0.0 }
  0xf7   :  { %718 = vadd.xlane.f32.xlu1 %v717_v58  ;;  %715 = vadd.xlane.f32.xlu0 %v714_v59  ;;  %v3605_v29 = vpop.f32.mrf.mxu0  ;;  %v3653_v46 = vpop.f32.mrf.mxu1 }
  0xf8   :  { %v732_v43 = vsel %vm116_vm0, %v4631_v31, 0.0  ;;  %v4648_v48 = vadd.f32 %v3605_v29, %v4509_v12  ;;  %v828_v53 = vsel %vm116_vm0, %v4641_v41, 0.0  ;;  %v4658_v59 = vadd.f32 %v3653_v46, %v4509_v12 }
  0xf9   :  { %v445_v37 = vpop.f32.mrf.mxu0  ;;  %v605_v54 = vpop.f32.mrf.mxu1 }
  0xfa   :  { %v4651_v49 = vadd.f32 %v4509_v12, %v445_v37  ;;  %v4661_v60 = vadd.f32 %v4509_v12, %v605_v54  ;;  %v741_v61 = vsel %vm116_vm0, %v4648_v48, 0.0 }
  0xfb   :  { %814 = vadd.xlane.f32.xlu1 %v813_v0  ;;  %811 = vadd.xlane.f32.xlu0 %v810_v1  ;;  %v3608_v47 = vpop.f32.mrf.mxu0  ;;  %v3656_v1 = vpop.f32.mrf.mxu1 }
  0xfc   :  { %v738_v0 = vsel %vm116_vm0, %v4651_v49, 0.0  ;;  %v4668_v3 = vadd.f32 %v3608_v47, %v4509_v12  ;;  %v834_v8 = vsel %vm116_vm0, %v4661_v60, 0.0 }
  0xfd   :  { %v455_v55 = vpop.f32.mrf.mxu0  ;;  %v615_v9 = vpop.f32.mrf.mxu1 }
  0xfe   :  { %v4681_v17 = vadd.f32 %v4509_v12, %v615_v9  ;;  %v747_v18 = vsel %vm116_vm0, %v4668_v3, 0.0 }
  0xff   :  { %724 = vadd.xlane.f32.xlu1 %v723_v6  ;;  %721 = vadd.xlane.f32.xlu0 %v720_v7  ;;  %v3611_v58 = vpop.f32.mrf.mxu0  ;;  %v4671_v6 = vadd.f32 %v4509_v12, %v455_v55  ;;  %v837_v7 = vsel %vm116_vm0, %v4658_v59, 0.0 }
 0x100   :  { %6168 = vst [vmem:[#allocation5_spill] sm:$0xff] %v4681_v17  ;;  %v4688_v29 = vadd.f32 %v3611_v58, %v4509_v12  ;;  %v840_v36 = vsel %vm116_vm0, %v4681_v17, 0.0 }
 0x101   :  { %v465_v2 = vpop.f32.mrf.mxu0 }
 0x102   :  { %v753_v47 = vsel %vm116_vm0, %v4688_v29, 0.0 }
 0x103   :  { %820 = vadd.xlane.f32.xlu1 %v819_v13  ;;  %817 = vadd.xlane.f32.xlu0 %v816_v14  ;;  %v3614_v13 = vpop.f32.mrf.mxu0  ;;  %v4678_v14 = vadd.f32 %v3656_v1, %v4509_v12 }
 0x104   :  { %v4708_v55 = vadd.f32 %v3614_v13, %v4509_v12 }
 0x105   :  { %v475_v26 = vpop.f32.mrf.mxu0 }
 0x106   :  { %v4711_v58 = vadd.f32 %v4509_v12, %v475_v26  ;;  %v759_v9 = vsel %vm116_vm0, %v4708_v55, 0.0 }
 0x107   :  { %730 = vadd.xlane.f32.xlu1 %v729_v22  ;;  %727 = vadd.xlane.f32.xlu0 %v726_v23  ;;  %v744_v22 = vsel %vm116_vm0, %v4671_v6, 0.0  ;;  %v3659_v23 = vpop.f32.mrf.mxu1  ;;  %v3617_v28 = vpop.f32.mrf.mxu0 }
 0x108   :  { %v756_v13 = vsel %vm116_vm0, %v4711_v58, 0.0 }
 0x109   :  { %v625_v37 = vpop.f32.mrf.mxu1 }
 0x10a   :  { %v4701_v46 = vadd.f32 %v4509_v12, %v625_v37 }
 0x10b   :  { %826 = vadd.xlane.f32.xlu1 %v825_v32  ;;  %823 = vadd.xlane.f32.xlu0 %v822_v35  ;;  %v4691_v32 = vadd.f32 %v4509_v12, %v465_v2  ;;  %v843_v35 = vsel %vm116_vm0, %v4678_v14, 0.0 }
 0x10c   :  { %6170 = vst [vmem:[#allocation7_spill] sm:$0xff] %v4701_v46 }
 0x10f   :  { %736 = vadd.xlane.f32.xlu1 %v735_v42  ;;  %733 = vadd.xlane.f32.xlu0 %v732_v43  ;;  %v485_v42 = vpop.f32.mrf.mxu0  ;;  %v4698_v43 = vadd.f32 %v3659_v23, %v4509_v12  ;;  %v4728_v23 = vadd.f32 %v3617_v28, %v4509_v12 }
 0x110   :  { %v4731_v26 = vadd.f32 %v4509_v12, %v485_v42 }
 0x111   :  { %6169 = vst [vmem:[#allocation6_spill] sm:$0xff] %v4698_v43  ;;  %v3620_v54 = vpop.f32.mrf.mxu0  ;;  %v765_v42 = vsel %vm116_vm0, %v4728_v23, 0.0 }
 0x113   :  { %832 = vadd.xlane.f32.xlu1 %v831_v52  ;;  %829 = vadd.xlane.f32.xlu0 %v828_v53  ;;  %v750_v52 = vsel %vm116_vm0, %v4691_v32, 0.0  ;;  %v3662_v53 = vpop.f32.mrf.mxu1  ;;  %v495_v2 = vpop.f32.mrf.mxu0 }
 0x115   :  { %v635_v1 = vpop.f32.mrf.mxu1 }
 0x117   :  { %742 = vadd.xlane.f32.xlu1 %v741_v61  ;;  %739 = vadd.xlane.f32.xlu0 %v738_v0  ;;  %v849_v61 = vsel %vm116_vm0, %v4698_v43, 0.0  ;;  %v846_v0 = vsel %vm116_vm0, %v4701_v46, 0.0 }
 0x11b   :  { %838 = vadd.xlane.f32.xlu1 %v837_v7  ;;  %835 = vadd.xlane.f32.xlu0 %v834_v8  ;;  %v4718_v7 = vadd.f32 %v3662_v53, %v4509_v12  ;;  %v4721_v8 = vadd.f32 %v4509_v12, %v635_v1 }
 0x11d   :  { %6171 = vst [vmem:[#allocation8_spill] sm:$0xff] %v4718_v7  ;;  %6172 = vst [vmem:[#allocation9_spill] sm:$0xff] %v4721_v8 }
 0x11f   :  { %748 = vadd.xlane.f32.xlu1 %v747_v18  ;;  %745 = vadd.xlane.f32.xlu0 %v744_v22  ;;  %v3665_v18 = vpop.f32.mrf.mxu1  ;;  %v3623_v22 = vpop.f32.mrf.mxu0 }
 0x120   :  { %v4738_v53 = vadd.f32 %v3665_v18, %v4509_v12 }
 0x121   :  { %v645_v37 = vpop.f32.mrf.mxu1 }
 0x122   :  { %6173 = vst [vmem:[#allocation10_spill] sm:$0xff] %v4738_v53  ;;  %v4741_v28 = vadd.f32 %v4509_v12, %v645_v37  ;;  %v861_v18 = vsel %vm116_vm0, %v4738_v53, 0.0 }
 0x123   :  { %844 = vadd.xlane.f32.xlu1 %v843_v35  ;;  %841 = vadd.xlane.f32.xlu0 %v840_v36  ;;  %v855_v35 = vsel %vm116_vm0, %v4718_v7, 0.0  ;;  %v852_v36 = vsel %vm116_vm0, %v4721_v8, 0.0 }
 0x124   :  { %6174 = vst [vmem:[#allocation11_spill] sm:$0xff] %v4741_v28 }
 0x127   :  { %754 = vadd.xlane.f32.xlu1 %v753_v47  ;;  %751 = vadd.xlane.f32.xlu0 %v750_v52  ;;  %v505_v47 = vpop.f32.mrf.mxu0  ;;  %v3668_v52 = vpop.f32.mrf.mxu1 }
 0x128   :  { %v4788_v46 = vadd.f32 %v3668_v52, %v4509_v12 }
 0x129   :  { %v655_v1 = vpop.f32.mrf.mxu1 }
 0x12a   :  { %v867_v52 = vsel %vm116_vm0, %v4788_v46, 0.0 }
 0x12b   :  { %850 = vadd.xlane.f32.xlu1 %v849_v61  ;;  %847 = vadd.xlane.f32.xlu0 %v846_v0  ;;  %v762_v61 = vsel %vm116_vm0, %v4731_v26, 0.0  ;;  %v3626_v0 = vpop.f32.mrf.mxu0  ;;  %v3671_v37 = vpop.f32.mrf.mxu1 }
 0x12c   :  { %v4798_v43 = vadd.f32 %v3671_v37, %v4509_v12 }
 0x12e   :  { %6176 = vst [vmem:[#allocation13_spill] sm:$0xff] %v4798_v43  ;;  %v873_v37 = vsel %vm116_vm0, %v4798_v43, 0.0 }
 0x12f   :  { %760 = vadd.xlane.f32.xlu1 %v759_v9  ;;  %757 = vadd.xlane.f32.xlu0 %v756_v13  ;;  %v4748_v9 = vadd.f32 %v3620_v54, %v4509_v12  ;;  %v4751_v13 = vadd.f32 %v4509_v12, %v495_v2 }
 0x131   :  { %v771_v54 = vsel %vm116_vm0, %v4748_v9, 0.0  ;;  %v768_v2 = vsel %vm116_vm0, %v4751_v13, 0.0 }
 0x133   :  { %856 = vadd.xlane.f32.xlu1 %v855_v35  ;;  %853 = vadd.xlane.f32.xlu0 %v852_v36  ;;  %v858_v35 = vsel %vm116_vm0, %v4741_v28, 0.0  ;;  %v515_v36 = vpop.f32.mrf.mxu0  ;;  %v665_v28 = vpop.f32.mrf.mxu1 }
 0x135   :  { %v3629_v53 = vpop.f32.mrf.mxu0  ;;  %v3674_v7 = vpop.f32.mrf.mxu1 }
 0x136   :  { %v4808_v17 = vadd.f32 %v3674_v7, %v4509_v12 }
 0x137   :  { %766 = vadd.xlane.f32.xlu1 %v765_v42  ;;  %763 = vadd.xlane.f32.xlu0 %v762_v61  ;;  %v4758_v42 = vadd.f32 %v3623_v22, %v4509_v12  ;;  %v4761_v61 = vadd.f32 %v4509_v12, %v505_v47  ;;  %v525_v8 = vpop.f32.mrf.mxu0 }
 0x138   :  { %6178 = vst [vmem:[#allocation15_spill] sm:$0xff] %v4808_v17  ;;  %v879_v7 = vsel %vm116_vm0, %v4808_v17, 0.0 }
 0x139   :  { %v777_v22 = vsel %vm116_vm0, %v4758_v42, 0.0  ;;  %v774_v47 = vsel %vm116_vm0, %v4761_v61, 0.0 }
 0x13b   :  { %862 = vadd.xlane.f32.xlu1 %v861_v18  ;;  %859 = vadd.xlane.f32.xlu0 %v858_v35  ;;  %v4768_v18 = vadd.f32 %v3626_v0, %v4509_v12  ;;  %v4771_v35 = vadd.f32 %v4509_v12, %v515_v36 }
 0x13d   :  { %v783_v0 = vsel %vm116_vm0, %v4768_v18, 0.0  ;;  %v780_v36 = vsel %vm116_vm0, %v4771_v35, 0.0 }
 0x13f   :  { %772 = vadd.xlane.f32.xlu1 %v771_v54  ;;  %769 = vadd.xlane.f32.xlu0 %v768_v2  ;;  %v4778_v54 = vadd.f32 %v3629_v53, %v4509_v12  ;;  %v4781_v2 = vadd.f32 %v4509_v12, %v525_v8 }
 0x141   :  { %v789_v53 = vsel %vm116_vm0, %v4778_v54, 0.0  ;;  %v786_v8 = vsel %vm116_vm0, %v4781_v2, 0.0 }
 0x143   :  { %778 = vadd.xlane.f32.xlu1 %v777_v22  ;;  %775 = vadd.xlane.f32.xlu0 %v774_v47  ;;  %v4791_v22 = vadd.f32 %v4509_v12, %v655_v1  ;;  %v675_v47 = vpop.f32.mrf.mxu1 }
 0x145   :  { %6175 = vst [vmem:[#allocation12_spill] sm:$0xff] %v4791_v22  ;;  %v864_v1 = vsel %vm116_vm0, %v4791_v22, 0.0 }
 0x147   :  { %784 = vadd.xlane.f32.xlu1 %v783_v0  ;;  %781 = vadd.xlane.f32.xlu0 %v780_v36  ;;  %v4801_v0 = vadd.f32 %v4509_v12, %v665_v28  ;;  %v3677_v36 = vpop.f32.mrf.mxu1 }
 0x148   :  { %v4818_v22 = vadd.f32 %v3677_v36, %v4509_v12 }
 0x149   :  { %6177 = vst [vmem:[#allocation14_spill] sm:$0xff] %v4801_v0  ;;  %v870_v28 = vsel %vm116_vm0, %v4801_v0, 0.0 }
 0x14a   :  { %6180 = vst [vmem:[#allocation17_spill] sm:$0xff] %v4818_v22 }
 0x14b   :  { %790 = vadd.xlane.f32.xlu1 %v789_v53  ;;  %787 = vadd.xlane.f32.xlu0 %v786_v8  ;;  %v4811_v53 = vadd.f32 %v4509_v12, %v675_v47  ;;  %v685_v8 = vpop.f32.mrf.mxu1 }
 0x14d   :  { %6179 = vst [vmem:[#allocation16_spill] sm:$0xff] %v4811_v53  ;;  %v876_v47 = vsel %vm116_vm0, %v4811_v53, 0.0 }
 0x14f   :  { %868 = vadd.xlane.f32.xlu1 %v867_v52  ;;  %865 = vadd.xlane.f32.xlu0 %v864_v1  ;;  %v4821_v52 = vadd.f32 %v4509_v12, %v685_v8  ;;  %v885_v1 = vsel %vm116_vm0, %v4818_v22, 0.0 }
 0x151   :  { %6181 = vst [vmem:[#allocation18_spill] sm:$0xff] %v4821_v52 }
 0x153   :  { %874 = vadd.xlane.f32.xlu1 %v873_v37  ;;  %871 = vadd.xlane.f32.xlu0 %v870_v28  ;;  %v882_v37 = vsel %vm116_vm0, %v4821_v52, 0.0 }
 0x157   :  { %880 = vadd.xlane.f32.xlu1 %v879_v7  ;;  %877 = vadd.xlane.f32.xlu0 %v876_v47 }
 0x15b   :  { %886 = vadd.xlane.f32.xlu1 %v885_v1  ;;  %883 = vadd.xlane.f32.xlu0 %v882_v37 }
 0x168   :  { %v4831_v36 = vpop.xlane.xlu1 %796  ;;  %v701_v12 = vpop.xlane.xlu0 %700 }
 0x169   :  { %v890_v28 = vmul.f32 0.010416667, %v701_v12 }
 0x16b   :  { %v4834_v8 = vsub.f32 %v4512_v15, %v890_v28 }
 0x16c   :  { %v707_v17 = vpop.xlane.xlu1 %706  ;;  %v698_v0 = vpop.xlane.xlu0 %697 }
 0x16d   :  { %6182 = vst [vmem:[#allocation19_spill] sm:$0xff] %v4834_v8  ;;  %v892_v53 = vmul.f32 0.010416667, %v707_v17  ;;  %v889_v7 = vmul.f32 0.010416667, %v698_v0  ;;  %v1018_v47 = vmul.f32 %v4834_v8, %v4834_v8 }
 0x16f   :  { %v4839_v22 = vsub.f32 %v4525_v24, %v892_v53  ;;  %v4842_v1 = vsub.f32 %v4518_v19, %v889_v7  ;;  %v1084_v37 = vsel %vm116_vm0, %v1018_v47, 0.0 }
 0x170   :  { %v4845_v52 = vpop.xlane.xlu1 %802  ;;  %1085 = vadd.xlane.f32.xlu1 %v1084_v37  ;;  %v4847_v15 = vpop.xlane.xlu0 %793 }
 0x171   :  { %6183 = vst [vmem:[#allocation20_spill] sm:$0xff] %v4839_v22  ;;  %6184 = vst [vmem:[#allocation21_spill] sm:$0xff] %v4842_v1  ;;  %v1020_v17 = vmul.f32 %v4839_v22, %v4839_v22  ;;  %v1017_v0 = vmul.f32 %v4842_v1, %v4842_v1 }
 0x173   :  { %v1090_v12 = vsel %vm116_vm0, %v1020_v17, 0.0  ;;  %v1081_v24 = vsel %vm116_vm0, %v1017_v0, 0.0 }
 0x174   :  { %1091 = vadd.xlane.f32.xlu1 %v1090_v12  ;;  %v704_v19 = vpop.xlane.xlu1 %703  ;;  %1082 = vadd.xlane.f32.xlu0 %v1081_v24  ;;  %v4855_v53 = vpop.xlane.xlu0 %799 }
 0x175   :  { %v891_v28 = vmul.f32 0.010416667, %v704_v19 }
 0x177   :  { %v4858_v7 = vsub.f32 %v4540_v33, %v891_v28 }
 0x178   :  { %v713_v47 = vpop.xlane.xlu1 %712  ;;  %v710_v37 = vpop.xlane.xlu0 %709 }
 0x179   :  { %6185 = vst [vmem:[#allocation22_spill] sm:$0xff] %v4858_v7  ;;  %v894_v8 = vmul.f32 0.010416667, %v713_v47  ;;  %v893_v22 = vmul.f32 0.010416667, %v710_v37  ;;  %v1019_v1 = vmul.f32 %v4858_v7, %v4858_v7 }
 0x17b   :  { %v4863_v17 = vsub.f32 %v4548_v38, %v894_v8  ;;  %v4866_v0 = vsub.f32 %v4551_v39, %v893_v22  ;;  %v1087_v12 = vsel %vm116_vm0, %v1019_v1, 0.0  ;;  %v1680_v39 = vld [vmem:[%s6125_s5 + $0x58] sm:$0xff] }
 0x17c   :  { %v4869_v24 = vpop.xlane.xlu1 %808  ;;  %1088 = vadd.xlane.f32.xlu0 %v1087_v12  ;;  %v4871_v33 = vpop.xlane.xlu0 %805  ;;  %3678 = vmatprep.subr.mxu1 %v1680_v39  ;;  %v1679_v12 = vld [vmem:[%s6125_s5 + $0x50] sm:$0xff] }
 0x17d   :  { %6186 = vst [vmem:[#allocation23_spill] sm:$0xff] %v4863_v17  ;;  %6187 = vst [vmem:[#allocation24_spill] sm:$0xff] %v4866_v0  ;;  %v1022_v19 = vmul.f32 %v4863_v17, %v4863_v17  ;;  %v1021_v28 = vmul.f32 %v4866_v0, %v4866_v0  ;;  %3679 = vmatpush3.msra.mxu1 %v1680_v39  ;;  %v1671_v17 = vld [vmem:[%s6125_s5 + $0x10] sm:$0xff] }
 0x17e   :  { %3680 = vmatprep.subr.mxu1 %v1679_v12 }
 0x17f   :  { %v1096_v47 = vsel %vm116_vm0, %v1022_v19, 0.0  ;;  %v1093_v38 = vsel %vm116_vm0, %v1021_v28, 0.0  ;;  %3681 = vmatpush3.msra.mxu1 %v1679_v12 }
 0x180   :  { %1097 = vadd.xlane.f32.xlu1 %v1096_v47  ;;  %v719_v22 = vpop.xlane.xlu1 %718  ;;  %1094 = vadd.xlane.f32.xlu0 %v1093_v38  ;;  %v716_v8 = vpop.xlane.xlu0 %715  ;;  %v1678_v47 = vld [vmem:[%s6125_s5 + $0x48] sm:$0xff] }
 0x181   :  { %v896_v1 = vmul.f32 0.010416667, %v719_v22  ;;  %v895_v37 = vmul.f32 0.010416667, %v716_v8  ;;  %3682 = vmatprep.subr.mxu1 %v1678_v47 }
 0x182   :  { %3683 = vmatpush3.msra.mxu1 %v1678_v47  ;;  %v1675_v47 = vld [vmem:[%s6125_s5 + $0x30] sm:$0xff] }
 0x183   :  { %v4886_v19 = vsub.f32 %v4568_v50, %v896_v1  ;;  %v4889_v28 = vsub.f32 %v4571_v51, %v895_v37  ;;  %v1677_v51 = vld [vmem:[%s6125_s5 + $0x40] sm:$0xff]  ;;  %v1676_v37 = vld [vmem:[%s6125_s5 + $0x38] sm:$0xff] }
 0x184   :  { %v4894_v38 = vpop.xlane.xlu1 %814  ;;  %v4896_v22 = vpop.xlane.xlu0 %811  ;;  %3684 = vmatprep.subr.mxu1 %v1677_v51 }
 0x185   :  { %6188 = vst [vmem:[#allocation25_spill] sm:$0xff] %v4886_v19  ;;  %6189 = vst [vmem:[#allocation26_spill] sm:$0xff] %v4889_v28  ;;  %v1024_v8 = vmul.f32 %v4886_v19, %v4886_v19  ;;  %v1023_v50 = vmul.f32 %v4889_v28, %v4889_v28  ;;  %3685 = vmatpush3.msra.mxu1 %v1677_v51 }
 0x186   :  { %3686 = vmatprep.subr.mxu1 %v1676_v37 }
 0x187   :  { %v1102_v39 = vsel %vm116_vm0, %v1024_v8, 0.0  ;;  %v1099_v1 = vsel %vm116_vm0, %v1023_v50, 0.0  ;;  %3687 = vmatpush3.msra.mxu1 %v1676_v37 }
 0x188   :  { %1103 = vadd.xlane.f32.xlu1 %v1102_v39  ;;  %v725_v12 = vpop.xlane.xlu1 %724  ;;  %1100 = vadd.xlane.f32.xlu0 %v1099_v1  ;;  %v722_v19 = vpop.xlane.xlu0 %721  ;;  %v1674_v39 = vld [vmem:[%s6125_s5 + $0x28] sm:$0xff] }
 0x189   :  { %v898_v28 = vmul.f32 0.010416667, %v725_v12  ;;  %v897_v0 = vmul.f32 0.010416667, %v722_v19  ;;  %3688 = vmatprep.subr.mxu1 %v1675_v47 }
 0x18a   :  { %3689 = vmatpush3.msra.mxu1 %v1675_v47 }
 0x18b   :  { %v4914_v8 = vsub.f32 %v4588_v62, %v898_v28  ;;  %v4917_v50 = vsub.f32 %v4591_v63, %v897_v0  ;;  %3690 = vmatprep.subr.mxu1 %v1674_v39  ;;  %v1673_v63 = vld [vmem:[%s6125_s5 + $0x20] sm:$0xff] }
 0x18c   :  { %v4922_v1 = vpop.xlane.xlu1 %820  ;;  %v4924_v19 = vpop.xlane.xlu0 %817  ;;  %3691 = vmatpush3.msra.mxu1 %v1674_v39 }
 0x18d   :  { %6190 = vst [vmem:[#allocation27_spill] sm:$0xff] %v4914_v8  ;;  %6191 = vst [vmem:[#allocation28_spill] sm:$0xff] %v4917_v50  ;;  %v1026_v51 = vmul.f32 %v4914_v8, %v4914_v8  ;;  %v1025_v62 = vmul.f32 %v4917_v50, %v4917_v50  ;;  %v1672_v8 = vld [vmem:[%s6125_s5 + $0x18] sm:$0xff]  ;;  %3692 = vmatprep.subr.mxu1 %v1673_v63 }
 0x18e   :  { %3693 = vmatpush3.msra.mxu1 %v1673_v63  ;;  %v1670_v63 = vld [vmem:[%s6125_s5 + $0x8] sm:$0xff] }
 0x18f   :  { %v1108_v0 = vsel %vm116_vm0, %v1026_v51, 0.0  ;;  %v1105_v28 = vsel %vm116_vm0, %v1025_v62, 0.0  ;;  %3694 = vmatprep.subr.mxu1 %v1672_v8 }
 0x190   :  { %1109 = vadd.xlane.f32.xlu1 %v1108_v0  ;;  %v731_v37 = vpop.xlane.xlu1 %730  ;;  %1106 = vadd.xlane.f32.xlu0 %v1105_v28  ;;  %v728_v12 = vpop.xlane.xlu0 %727 }
 0x191   :  { %v900_v50 = vmul.f32 0.010416667, %v731_v37  ;;  %v899_v47 = vmul.f32 0.010416667, %v728_v12  ;;  %3695 = vmatpush3.msra.mxu1 %v1672_v8  ;;  %v1669_v8 = vld [vmem:[%s6125_s5] sm:$0xff] }
 0x192   :  { %3696 = vmatprep.subr.mxu1 %v1671_v17 }
 0x193   :  { %v4942_v51 = vsub.f32 %v4608_v10, %v900_v50  ;;  %v4945_v39 = vsub.f32 %v4611_v11, %v899_v47  ;;  %3697 = vmatpush3.msra.mxu1 %v1671_v17 }
 0x194   :  { %v4947_v62 = vpop.xlane.xlu1 %826  ;;  %v4949_v0 = vpop.xlane.xlu0 %823  ;;  %3698 = vmatprep.subr.mxu1 %v1670_v63 }
 0x195   :  { %6192 = vst [vmem:[#allocation29_spill] sm:$0xff] %v4942_v51  ;;  %6193 = vst [vmem:[#allocation30_spill] sm:$0xff] %v4945_v39  ;;  %v1028_v28 = vmul.f32 %v4942_v51, %v4942_v51  ;;  %v1027_v10 = vmul.f32 %v4945_v39, %v4945_v39  ;;  %3699 = vmatpush3.msra.mxu1 %v1670_v63 }
 0x196   :  { %3700 = vmatprep.subr.mxu1 %v1669_v8 }
 0x197   :  { %v1114_v11 = vsel %vm116_vm0, %v1028_v28, 0.0  ;;  %v1111_v50 = vsel %vm116_vm0, %v1027_v10, 0.0  ;;  %3701 = vmatpush3.msra.mxu1 %v1669_v8 }
 0x198   :  { %1115 = vadd.xlane.f32.xlu1 %v1114_v11  ;;  %v737_v37 = vpop.xlane.xlu1 %736  ;;  %1112 = vadd.xlane.f32.xlu0 %v1111_v50  ;;  %v734_v12 = vpop.xlane.xlu0 %733 }
 0x199   :  { %v902_v47 = vmul.f32 0.010416667, %v737_v37  ;;  %v901_v51 = vmul.f32 0.010416667, %v734_v12 }
 0x19b   :  { %v4964_v39 = vsub.f32 %v4628_v30, %v902_v47  ;;  %v4967_v17 = vsub.f32 %v4631_v31, %v901_v51 }
 0x19c   :  { %v4969_v28 = vpop.xlane.xlu1 %832  ;;  %v4971_v10 = vpop.xlane.xlu0 %829 }
 0x19d   :  { %6194 = vst [vmem:[#allocation31_spill] sm:$0xff] %v4964_v39  ;;  %6195 = vst [vmem:[#allocation32_spill] sm:$0xff] %v4967_v17  ;;  %v1030_v11 = vmul.f32 %v4964_v39, %v4964_v39  ;;  %v1029_v50 = vmul.f32 %v4967_v17, %v4967_v17 }
 0x19f   :  { %v1120_v63 = vsel %vm116_vm0, %v1030_v11, 0.0  ;;  %v1117_v37 = vsel %vm116_vm0, %v1029_v50, 0.0 }
 0x1a0   :  { %1121 = vadd.xlane.f32.xlu1 %v1120_v63  ;;  %v743_v30 = vpop.xlane.xlu1 %742  ;;  %1118 = vadd.xlane.f32.xlu0 %v1117_v37  ;;  %v740_v31 = vpop.xlane.xlu0 %739 }
 0x1a1   :  { %v904_v51 = vmul.f32 0.010416667, %v743_v30  ;;  %v903_v8 = vmul.f32 0.010416667, %v740_v31 }
 0x1a3   :  { %v4980_v12 = vsub.f32 %v4648_v48, %v904_v51  ;;  %v4983_v47 = vsub.f32 %v4651_v49, %v903_v8 }
 0x1a4   :  { %v4985_v39 = vpop.xlane.xlu1 %838  ;;  %v4987_v7 = vpop.xlane.xlu0 %835 }
 0x1a5   :  { %6196 = vst [vmem:[#allocation33_spill] sm:$0xff] %v4980_v12  ;;  %6197 = vst [vmem:[#allocation34_spill] sm:$0xff] %v4983_v47  ;;  %v1032_v11 = vmul.f32 %v4980_v12, %v4980_v12  ;;  %v1031_v50 = vmul.f32 %v4983_v47, %v4983_v47 }
 0x1a7   :  { %v1126_v63 = vsel %vm116_vm0, %v1032_v11, 0.0  ;;  %v1123_v37 = vsel %vm116_vm0, %v1031_v50, 0.0 }
 0x1a8   :  { %1127 = vadd.xlane.f32.xlu1 %v1126_v63  ;;  %v749_v48 = vpop.xlane.xlu1 %748  ;;  %1124 = vadd.xlane.f32.xlu0 %v1123_v37  ;;  %v746_v30 = vpop.xlane.xlu0 %745 }
 0x1a9   :  { %v906_v49 = vmul.f32 0.010416667, %v749_v48  ;;  %v905_v31 = vmul.f32 0.010416667, %v746_v30 }
 0x1ab   :  { %v4996_v51 = vsub.f32 %v4668_v3, %v906_v49  ;;  %v4999_v8 = vsub.f32 %v4671_v6, %v905_v31 }
 0x1ac   :  { %v5001_v12 = vpop.xlane.xlu1 %844  ;;  %v5003_v17 = vpop.xlane.xlu0 %841 }
 0x1ad   :  { %6198 = vst [vmem:[#allocation35_spill] sm:$0xff] %v4996_v51  ;;  %6199 = vst [vmem:[#allocation36_spill] sm:$0xff] %v4999_v8  ;;  %v1034_v11 = vmul.f32 %v4996_v51, %v4996_v51  ;;  %v1033_v50 = vmul.f32 %v4999_v8, %v4999_v8 }
 0x1af   :  { %v1132_v63 = vsel %vm116_vm0, %v1034_v11, 0.0  ;;  %v1129_v37 = vsel %vm116_vm0, %v1033_v50, 0.0 }
 0x1b0   :  { %1133 = vadd.xlane.f32.xlu1 %v1132_v63  ;;  %v755_v3 = vpop.xlane.xlu1 %754  ;;  %1130 = vadd.xlane.f32.xlu0 %v1129_v37  ;;  %v752_v48 = vpop.xlane.xlu0 %751 }
 0x1b1   :  { %v908_v6 = vmul.f32 0.010416667, %v755_v3  ;;  %v907_v30 = vmul.f32 0.010416667, %v752_v48 }
 0x1b3   :  { %v5012_v49 = vsub.f32 %v4688_v29, %v908_v6  ;;  %v5015_v31 = vsub.f32 %v4691_v32, %v907_v30 }
 0x1b4   :  { %v5017_v51 = vpop.xlane.xlu1 %850  ;;  %v5019_v47 = vpop.xlane.xlu0 %847 }
 0x1b5   :  { %6200 = vst [vmem:[#allocation37_spill] sm:$0xff] %v5012_v49  ;;  %6201 = vst [vmem:[#allocation38_spill] sm:$0xff] %v5015_v31  ;;  %v1036_v11 = vmul.f32 %v5012_v49, %v5012_v49  ;;  %v1035_v50 = vmul.f32 %v5015_v31, %v5015_v31 }
 0x1b7   :  { %v1138_v63 = vsel %vm116_vm0, %v1036_v11, 0.0  ;;  %v1135_v37 = vsel %vm116_vm0, %v1035_v50, 0.0 }
 0x1b8   :  { %1139 = vadd.xlane.f32.xlu1 %v1138_v63  ;;  %v761_v29 = vpop.xlane.xlu1 %760  ;;  %1136 = vadd.xlane.f32.xlu0 %v1135_v37  ;;  %v758_v3 = vpop.xlane.xlu0 %757 }
 0x1b9   :  { %v910_v32 = vmul.f32 0.010416667, %v761_v29  ;;  %v909_v48 = vmul.f32 0.010416667, %v758_v3 }
 0x1bb   :  { %v5028_v6 = vsub.f32 %v4708_v55, %v910_v32  ;;  %v5031_v30 = vsub.f32 %v4711_v58, %v909_v48 }
 0x1bc   :  { %v5033_v49 = vpop.xlane.xlu1 %856  ;;  %v5035_v8 = vpop.xlane.xlu0 %853 }
 0x1bd   :  { %6202 = vst [vmem:[#allocation39_spill] sm:$0xff] %v5028_v6  ;;  %6203 = vst [vmem:[#allocation40_spill] sm:$0xff] %v5031_v30  ;;  %v1038_v11 = vmul.f32 %v5028_v6, %v5028_v6  ;;  %v1037_v50 = vmul.f32 %v5031_v30, %v5031_v30 }
 0x1bf   :  { %v1144_v63 = vsel %vm116_vm0, %v1038_v11, 0.0  ;;  %v1141_v37 = vsel %vm116_vm0, %v1037_v50, 0.0 }
 0x1c0   :  { %1145 = vadd.xlane.f32.xlu1 %v1144_v63  ;;  %v767_v55 = vpop.xlane.xlu1 %766  ;;  %1142 = vadd.xlane.f32.xlu0 %v1141_v37  ;;  %v764_v29 = vpop.xlane.xlu0 %763 }
 0x1c1   :  { %v912_v58 = vmul.f32 0.010416667, %v767_v55  ;;  %v911_v3 = vmul.f32 0.010416667, %v764_v29 }
 0x1c3   :  { %v5044_v32 = vsub.f32 %v4728_v23, %v912_v58  ;;  %v5047_v48 = vsub.f32 %v4731_v26, %v911_v3 }
 0x1c4   :  { %v5049_v6 = vpop.xlane.xlu1 %862  ;;  %v5051_v31 = vpop.xlane.xlu0 %859 }
 0x1c5   :  { %6204 = vst [vmem:[#allocation41_spill] sm:$0xff] %v5044_v32  ;;  %6205 = vst [vmem:[#allocation42_spill] sm:$0xff] %v5047_v48  ;;  %v1040_v11 = vmul.f32 %v5044_v32, %v5044_v32  ;;  %v1039_v50 = vmul.f32 %v5047_v48, %v5047_v48 }
 0x1c7   :  { %v1150_v63 = vsel %vm116_vm0, %v1040_v11, 0.0  ;;  %v1147_v37 = vsel %vm116_vm0, %v1039_v50, 0.0 }
 0x1c8   :  { %1151 = vadd.xlane.f32.xlu1 %v1150_v63  ;;  %v773_v23 = vpop.xlane.xlu1 %772  ;;  %1148 = vadd.xlane.f32.xlu0 %v1147_v37  ;;  %v770_v55 = vpop.xlane.xlu0 %769 }
 0x1c9   :  { %v914_v26 = vmul.f32 0.010416667, %v773_v23  ;;  %v913_v29 = vmul.f32 0.010416667, %v770_v55 }
 0x1cb   :  { %v5060_v58 = vsub.f32 %v4748_v9, %v914_v26  ;;  %v5063_v3 = vsub.f32 %v4751_v13, %v913_v29 }
 0x1cc   :  { %v779_v32 = vpop.xlane.xlu1 %778  ;;  %v776_v30 = vpop.xlane.xlu0 %775 }
 0x1cd   :  { %v916_v43 = vmul.f32 0.010416667, %v779_v32  ;;  %v915_v48 = vmul.f32 0.010416667, %v776_v30  ;;  %v1042_v11 = vmul.f32 %v5060_v58, %v5060_v58  ;;  %v1041_v50 = vmul.f32 %v5063_v3, %v5063_v3 }
 0x1cf   :  { %v5070_v63 = vsub.f32 %v4758_v42, %v916_v43  ;;  %v5073_v37 = vsub.f32 %v4761_v61, %v915_v48  ;;  %v1156_v9 = vsel %vm116_vm0, %v1042_v11, 0.0  ;;  %v1153_v13 = vsel %vm116_vm0, %v1041_v50, 0.0 }
 0x1d0   :  { %1157 = vadd.xlane.f32.xlu1 %v1156_v9  ;;  %v785_v23 = vpop.xlane.xlu1 %784  ;;  %1154 = vadd.xlane.f32.xlu0 %v1153_v13  ;;  %v782_v30 = vpop.xlane.xlu0 %781  ;;  %v922_v42 = vmul.f32 0.010416667, %v4831_v36  ;;  %v921_v61 = vmul.f32 0.010416667, %v4847_v15 }
 0x1d1   :  { %v918_v32 = vmul.f32 0.010416667, %v785_v23  ;;  %v917_v55 = vmul.f32 0.010416667, %v782_v30  ;;  %v1044_v26 = vmul.f32 %v5070_v63, %v5070_v63  ;;  %v1043_v43 = vmul.f32 %v5073_v37, %v5073_v37 }
 0x1d2   :  { %v5096_v15 = vsub.f32 %v4515_v16, %v922_v42  ;;  %v925_v42 = vmul.f32 0.010416667, %v4871_v33 }
 0x1d3   :  { %v5084_v48 = vsub.f32 %v4768_v18, %v918_v32  ;;  %v5087_v29 = vsub.f32 %v4771_v35, %v917_v55  ;;  %v1162_v11 = vsel %vm116_vm0, %v1044_v26, 0.0  ;;  %v1159_v50 = vsel %vm116_vm0, %v1043_v43, 0.0 }
 0x1d4   :  { %1163 = vadd.xlane.f32.xlu1 %v1162_v11  ;;  %v791_v9 = vpop.xlane.xlu1 %790  ;;  %1160 = vadd.xlane.f32.xlu0 %v1159_v50  ;;  %v788_v13 = vpop.xlane.xlu0 %787  ;;  %v924_v35 = vmul.f32 0.010416667, %v4845_v52  ;;  %v5100_v32 = vsub.f32 %v4531_v27, %v921_v61  ;;  %v923_v55 = vmul.f32 0.010416667, %v4855_v53  ;;  %v1050_v53 = vmul.f32 %v5096_v15, %v5096_v15 }
 0x1d5   :  { %v920_v23 = vmul.f32 0.010416667, %v791_v9  ;;  %v919_v30 = vmul.f32 0.010416667, %v788_v13  ;;  %v1046_v36 = vmul.f32 %v5084_v48, %v5084_v48  ;;  %v1045_v18 = vmul.f32 %v5087_v29, %v5087_v29 }
 0x1d6   :  { %v5116_v52 = vsub.f32 %v4528_v25, %v924_v35  ;;  %v1049_v13 = vmul.f32 %v5100_v32, %v5100_v32 }
 0x1d7   :  { %v5104_v26 = vsub.f32 %v4778_v54, %v920_v23  ;;  %v5107_v43 = vsub.f32 %v4781_v2, %v919_v30  ;;  %v1168_v11 = vsel %vm116_vm0, %v1046_v36, 0.0  ;;  %v1165_v50 = vsel %vm116_vm0, %v1045_v18, 0.0 }
 0x1d8   :  { %1169 = vadd.xlane.f32.xlu1 %v1168_v11  ;;  %1166 = vadd.xlane.f32.xlu0 %v1165_v50  ;;  %v5119_v54 = vsub.f32 %v4543_v34, %v923_v55  ;;  %v926_v2 = vmul.f32 0.010416667, %v4869_v24  ;;  %v1180_v34 = vsel %vm116_vm0, %v1050_v53, 0.0  ;;  %v1052_v24 = vmul.f32 %v5116_v52, %v5116_v52  ;;  %v5155_v50 = vpop.xlane.xlu1 %868 }
 0x1d9   :  { %v1048_v16 = vmul.f32 %v5104_v26, %v5104_v26  ;;  %v1047_v27 = vmul.f32 %v5107_v43, %v5107_v43  ;;  %v5138_v23 = vsub.f32 %v4561_v45, %v925_v42  ;;  %v928_v30 = vmul.f32 0.010416667, %v4894_v38 }
 0x1da   :  { %v5130_v25 = vsub.f32 %v4558_v44, %v926_v2  ;;  %v1051_v33 = vmul.f32 %v5119_v54, %v5119_v54  ;;  %v927_v36 = vmul.f32 0.010416667, %v4896_v22  ;;  %v1177_v18 = vsel %vm116_vm0, %v1049_v13, 0.0 }
 0x1db   :  { %v1174_v61 = vsel %vm116_vm0, %v1048_v16, 0.0  ;;  %v1171_v9 = vsel %vm116_vm0, %v1047_v27, 0.0  ;;  %v930_v44 = vmul.f32 0.010416667, %v4922_v1  ;;  %v1186_v35 = vsel %vm116_vm0, %v1052_v24, 0.0 }
 0x1dc   :  { %1175 = vadd.xlane.f32.xlu1 %v1174_v61  ;;  %1172 = vadd.xlane.f32.xlu0 %v1171_v9  ;;  %v1183_v55 = vsel %vm116_vm0, %v1051_v33, 0.0  ;;  %v1054_v11 = vmul.f32 %v5130_v25, %v5130_v25  ;;  %v5149_v45 = vsub.f32 %v4578_v56, %v928_v30  ;;  %v5152_v38 = vsub.f32 %v4581_v57, %v927_v36 }
 0x1dd   :  { %v929_v22 = vmul.f32 0.010416667, %v4924_v19  ;;  %v1053_v1 = vmul.f32 %v5138_v23, %v5138_v23  ;;  %v5160_v16 = vsub.f32 %v4598_v4, %v930_v44  ;;  %v932_v27 = vmul.f32 0.010416667, %v4947_v62  ;;  %v5168_v19 = vpop.xlane.xlu0 %865  ;;  %v5175_v62 = vpop.xlane.xlu1 %874 }
 0x1de   :  { %v931_v56 = vmul.f32 0.010416667, %v4949_v0  ;;  %v1192_v2 = vsel %vm116_vm0, %v1054_v11, 0.0  ;;  %v1056_v42 = vmul.f32 %v5149_v45, %v5149_v45  ;;  %v1055_v4 = vmul.f32 %v5152_v38, %v5152_v38 }
 0x1df   :  { %v5166_v57 = vsub.f32 %v4601_v5, %v929_v22  ;;  %v1189_v53 = vsel %vm116_vm0, %v1053_v1, 0.0  ;;  %v5178_v0 = vsub.f32 %v4618_v20, %v932_v27  ;;  %v934_v61 = vmul.f32 0.010416667, %v4969_v28 }
 0x1e0   :  { %1181 = vadd.xlane.f32.xlu1 %v1180_v34  ;;  %1178 = vadd.xlane.f32.xlu0 %v1177_v18  ;;  %v5181_v5 = vsub.f32 %v4621_v21, %v931_v56  ;;  %v1058_v9 = vmul.f32 %v5160_v16, %v5160_v16  ;;  %v933_v13 = vmul.f32 0.010416667, %v4971_v10  ;;  %v1198_v34 = vsel %vm116_vm0, %v1056_v42, 0.0  ;;  %v6206_v42 = vld [vmem:[#allocation5_spill] sm:$0xff] }
 0x1e1   :  { %v1195_v24 = vsel %vm116_vm0, %v1055_v4, 0.0  ;;  %v1057_v33 = vmul.f32 %v5166_v57, %v5166_v57  ;;  %v5191_v20 = vpop.xlane.xlu0 %871  ;;  %v5194_v21 = vsub.f32 %v4638_v40, %v934_v61  ;;  %v1060_v30 = vmul.f32 %v5178_v0, %v5178_v0 }
 0x1e2   :  { %v1204_v28 = vsel %vm116_vm0, %v1058_v9, 0.0  ;;  %v1059_v10 = vmul.f32 %v5181_v5, %v5181_v5  ;;  %v5202_v36 = vsub.f32 %v4641_v41, %v933_v13  ;;  %v936_v18 = vmul.f32 0.010416667, %v4985_v39 }
 0x1e3   :  { %v935_v44 = vmul.f32 0.010416667, %v4987_v7  ;;  %v1201_v40 = vsel %vm116_vm0, %v1057_v33, 0.0  ;;  %v1210_v11 = vsel %vm116_vm0, %v1060_v30, 0.0  ;;  %v1062_v41 = vmul.f32 %v5194_v21, %v5194_v21 }
 0x1e4   :  { %1187 = vadd.xlane.f32.xlu1 %v1186_v35  ;;  %1184 = vadd.xlane.f32.xlu0 %v1183_v55  ;;  %v5206_v35 = vpop.xlane.xlu1 %880  ;;  %v938_v55 = vmul.f32 0.010416667, %v5001_v12  ;;  %v1207_v22 = vsel %vm116_vm0, %v1059_v10, 0.0  ;;  %v5215_v1 = vsub.f32 %v4658_v59, %v936_v18  ;;  %v937_v39 = vmul.f32 0.010416667, %v5003_v17 }
 0x1e5   :  { %v5218_v7 = vsub.f32 %v4661_v60, %v935_v44  ;;  %v5221_v27 = vpop.xlane.xlu0 %877  ;;  %v1061_v12 = vmul.f32 %v5202_v36, %v5202_v36  ;;  %v939_v59 = vmul.f32 0.010416667, %v5019_v47  ;;  %v1216_v60 = vsel %vm116_vm0, %v1062_v41, 0.0  ;;  %v6208_v47 = vld [vmem:[#allocation7_spill] sm:$0xff] }
 0x1e6   :  { %v5226_v56 = vsub.f32 %v4678_v14, %v938_v55  ;;  %v5234_v17 = vsub.f32 %v6206_v42, %v937_v39  ;;  %v1064_v61 = vmul.f32 %v5215_v1, %v5215_v1  ;;  %v941_v10 = vmul.f32 0.010416667, %v5035_v8  ;;  %v6209_v39 = vld [vmem:[#allocation8_spill] sm:$0xff] }
 0x1e7   :  { %v1213_v4 = vsel %vm116_vm0, %v1061_v12, 0.0  ;;  %v1063_v14 = vmul.f32 %v5218_v7, %v5218_v7  ;;  %v5245_v13 = vsub.f32 %v6208_v47, %v939_v59  ;;  %v946_v47 = vmul.f32 0.010416667, %v5155_v50 }
 0x1e8   :  { %1193 = vadd.xlane.f32.xlu1 %v1192_v2  ;;  %1190 = vadd.xlane.f32.xlu0 %v1189_v53  ;;  %v940_v2 = vmul.f32 0.010416667, %v5017_v51  ;;  %v5230_v53 = vpop.xlane.xlu1 %886  ;;  %v6207_v51 = vld [vmem:[#allocation6_spill] sm:$0xff]  ;;  %v1066_v33 = vmul.f32 %v5226_v56, %v5226_v56  ;;  %v1222_v18 = vsel %vm116_vm0, %v1064_v61, 0.0  ;;  %v943_v61 = vmul.f32 0.010416667, %v5051_v31 }
 0x1e9   :  { %v1219_v44 = vsel %vm116_vm0, %v1063_v14, 0.0  ;;  %v1067_v8 = vmul.f32 %v5245_v13, %v5245_v13  ;;  %v6212_v31 = vld [vmem:[#allocation11_spill] sm:$0xff] }
 0x1ea   :  { %v5242_v9 = vsub.f32 %v6207_v51, %v940_v2  ;;  %v1228_v41 = vsel %vm116_vm0, %v1066_v33, 0.0 }
 0x1ec   :  { %1199 = vadd.xlane.f32.xlu1 %v1198_v34  ;;  %1196 = vadd.xlane.f32.xlu0 %v1195_v24  ;;  %v5247_v34 = vpop.xlane.xlu0 %883 }
 0x1f0   :  { %1205 = vadd.xlane.f32.xlu1 %v1204_v28  ;;  %1202 = vadd.xlane.f32.xlu0 %v1201_v40  ;;  %v942_v28 = vmul.f32 0.010416667, %v5033_v49  ;;  %v1065_v40 = vmul.f32 %v5234_v17, %v5234_v17  ;;  %v1068_v49 = vmul.f32 %v5242_v9, %v5242_v9 }
 0x1f2   :  { %v5263_v12 = vsub.f32 %v6209_v39, %v942_v28  ;;  %v1225_v14 = vsel %vm116_vm0, %v1065_v40, 0.0  ;;  %v1234_v28 = vsel %vm116_vm0, %v1068_v49, 0.0  ;;  %v6213_v40 = vld [vmem:[#allocation12_spill] sm:$0xff] }
 0x1f4   :  { %1211 = vadd.xlane.f32.xlu1 %v1210_v11  ;;  %1208 = vadd.xlane.f32.xlu0 %v1207_v22 }
 0x1f8   :  { %1217 = vadd.xlane.f32.xlu1 %v1216_v60  ;;  %1214 = vadd.xlane.f32.xlu0 %v1213_v4  ;;  %v6210_v60 = vld [vmem:[#allocation9_spill] sm:$0xff]  ;;  %v944_v4 = vmul.f32 0.010416667, %v5049_v6  ;;  %v6211_v6 = vld [vmem:[#allocation10_spill] sm:$0xff] }
 0x1f9   :  { %v1086_v24 = vpop.xlane.xlu1 %1085  ;;  %v5266_v42 = vsub.f32 %v6210_v60, %v941_v10  ;;  %v1070_v10 = vmul.f32 %v5263_v12, %v5263_v12  ;;  %v6214_v60 = vld [vmem:[#allocation13_spill] sm:$0xff] }
 0x1fa   :  { %v1274_v30 = vmul.f32 0.010416667, %v1086_v24  ;;  %v945_v24 = vmul.f32 0.010416667, %v5168_v19  ;;  %v5286_v19 = vsub.f32 %v4788_v46, %v946_v47 }
 0x1fb   :  { %v1069_v50 = vmul.f32 %v5266_v42, %v5266_v42 }
 0x1fc   :  { %v1338_v55 = vadd.f32 1e-05, %v1274_v30  ;;  %1223 = vadd.xlane.f32.xlu1 %v1222_v18  ;;  %1220 = vadd.xlane.f32.xlu0 %v1219_v44  ;;  %v1231_v30 = vsel %vm116_vm0, %v1067_v8, 0.0  ;;  %v5278_v18 = vsub.f32 %v6211_v6, %v944_v4  ;;  %v5281_v44 = vsub.f32 %v6212_v31, %v943_v61 }
 0x1fd   :  { %v1092_v11 = vpop.xlane.xlu1 %1091  ;;  %v1083_v22 = vpop.xlane.xlu0 %1082  ;;  %v1240_v8 = vsel %vm116_vm0, %v1070_v10, 0.0  ;;  %v1237_v39 = vsel %vm116_vm0, %v1069_v50, 0.0  ;;  %v949_v31 = vmul.f32 0.010416667, %v5221_v27  ;;  %v952_v27 = vmul.f32 0.010416667, %v5230_v53 }
 0x1fe   :  { %3945 = vrsqrt.f32 %v1338_v55  ;;  %v1276_v2 = vmul.f32 0.010416667, %v1092_v11  ;;  %v1273_v59 = vmul.f32 0.010416667, %v1083_v22  ;;  %v5289_v55 = vsub.f32 %v6213_v40, %v945_v24 }
 0x1ff   :  { %v948_v11 = vmul.f32 0.010416667, %v5175_v62  ;;  %v1071_v46 = vmul.f32 %v5281_v44, %v5281_v44 }
 0x200   :  { %v1337_v51 = vadd.f32 1e-05, %v1273_v59  ;;  %1229 = vadd.xlane.f32.xlu1 %v1228_v41  ;;  %1226 = vadd.xlane.f32.xlu0 %v1225_v14  ;;  %v1340_v33 = vadd.f32 1e-05, %v1276_v2  ;;  %v947_v41 = vmul.f32 0.010416667, %v5191_v20  ;;  %v1072_v2 = vmul.f32 %v5278_v18, %v5278_v18 }
 0x201   :  { %v5300_v62 = vsub.f32 %v6214_v60, %v948_v11  ;;  %v1074_v20 = vmul.f32 %v5286_v19, %v5286_v19  ;;  %v1073_v14 = vmul.f32 %v5289_v55, %v5289_v55  ;;  %v1243_v6 = vsel %vm116_vm0, %v1071_v46, 0.0 }
 0x202   :  { %3947 = vrsqrt.f32 %v1337_v51  ;;  %v6215_v51 = vld [vmem:[#allocation14_spill] sm:$0xff]  ;;  %v1246_v10 = vsel %vm116_vm0, %v1072_v2, 0.0  ;;  %v951_v46 = vmul.f32 0.010416667, %v5247_v34 }
 0x203   :  { %3949 = vrsqrt.f32 %v1340_v33  ;;  %v5307_v47 = vsub.f32 %v6215_v51, %v947_v41  ;;  %v1252_v11 = vsel %vm116_vm0, %v1074_v20, 0.0  ;;  %v6216_v41 = vld [vmem:[#allocation19_spill] sm:$0xff] }
 0x204   :  { %1235 = vadd.xlane.f32.xlu1 %v1234_v28  ;;  %1232 = vadd.xlane.f32.xlu0 %v1231_v30  ;;  %v950_v30 = vmul.f32 0.010416667, %v5206_v35  ;;  %v1249_v35 = vsel %vm116_vm0, %v1073_v14, 0.0 }
 0x205   :  { %v1089_v22 = vpop.xlane.xlu0 %1088 }
 0x206   :  { %v1275_v49 = vmul.f32 0.010416667, %v1089_v22  ;;  %v1076_v22 = vmul.f32 %v5300_v62, %v5300_v62 }
 0x208   :  { %v1339_v59 = vadd.f32 1e-05, %v1275_v49  ;;  %1241 = vadd.xlane.f32.xlu1 %v1240_v8  ;;  %1238 = vadd.xlane.f32.xlu0 %v1237_v39  ;;  %v1075_v8 = vmul.f32 %v5307_v47, %v5307_v47  ;;  %v6217_v39 = vld [vmem:[#allocation15_spill] sm:$0xff]  ;;  %v1258_v51 = vsel %vm116_vm0, %v1076_v22, 0.0 }
 0x209   :  { %v1098_v4 = vpop.xlane.xlu1 %1097  ;;  %v1095_v61 = vpop.xlane.xlu0 %1094  ;;  %v5321_v2 = vsub.f32 %v6217_v39, %v950_v30 }
 0x20a   :  { %3951 = vrsqrt.f32 %v1339_v59  ;;  %v1278_v24 = vmul.f32 0.010416667, %v1098_v4  ;;  %v1277_v33 = vmul.f32 0.010416667, %v1095_v61  ;;  %v5328_v59 = vld [vmem:[%s6123_s3] ss:$0 sm:$0xff] }
 0x20b   :  { %v3946_v28 = vpop.eup %3945  ;;  %v6218_v4 = vld [vmem:[#allocation16_spill] sm:$0xff] }
 0x20c   :  { %v1342_v50 = vadd.f32 1e-05, %v1278_v24  ;;  %v1341_v40 = vadd.f32 1e-05, %v1277_v33  ;;  %1247 = vadd.xlane.f32.xlu1 %v1246_v10  ;;  %1244 = vadd.xlane.f32.xlu0 %v1243_v6  ;;  %v1466_v49 = vmul.f32 %v3946_v28, %v6216_v41  ;;  %v5331_v61 = vsub.f32 %v6218_v4, %v949_v31  ;;  %v6219_v24 = vld [vmem:[#allocation21_spill] sm:$0xff]  ;;  %v6221_v31 = vld [vmem:[#allocation18_spill] sm:$0xff] }
 0x20d   :  { %v1255_v10 = vsel %vm116_vm0, %v1075_v8, 0.0  ;;  %v6220_v6 = vld [vmem:[#allocation17_spill] sm:$0xff]  ;;  %v1078_v41 = vmul.f32 %v5321_v2, %v5321_v2 }
 0x20e   :  { %3953 = vrsqrt.f32 %v1342_v50  ;;  %v1536_v34 = vmul.f32 %v5328_v59, %v1466_v49  ;;  %v5338_v50 = vsub.f32 %v6220_v6, %v952_v27  ;;  %v1077_v8 = vmul.f32 %v5331_v61, %v5331_v61  ;;  %v6222_v27 = vld [vmem:[#allocation20_spill] sm:$0xff] }
 0x20f   :  { %3955 = vrsqrt.f32 %v1341_v40  ;;  %v3948_v60 = vpop.eup %3947  ;;  %v5341_v40 = vsub.f32 %v6221_v31, %v951_v46 }
 0x210   :  { %1253 = vadd.xlane.f32.xlu1 %v1252_v11  ;;  %1250 = vadd.xlane.f32.xlu0 %v1249_v35  ;;  %v1465_v53 = vmul.f32 %v3948_v60, %v6219_v24  ;;  %v3950_v33 = vpop.eup %3949  ;;  %v5346_v11 = vld [vmem:[%s6124_s4] ss:$0 sm:$0xff]  ;;  %v1261_v24 = vsel %vm116_vm0, %v1077_v8, 0.0 }
 0x211   :  { %v1104_v20 = vpop.xlane.xlu1 %1103  ;;  %v1101_v14 = vpop.xlane.xlu0 %1100  ;;  %v1468_v46 = vmul.f32 %v3950_v33, %v6222_v27  ;;  %v1606_v60 = vadd.f32 %v5346_v11, %v1536_v34 }
 0x212   :  { %v1280_v28 = vmul.f32 0.010416667, %v1104_v20  ;;  %v1279_v30 = vmul.f32 0.010416667, %v1101_v14  ;;  %v1535_v22 = vmul.f32 %v5328_v59, %v1465_v53  ;;  %v1264_v20 = vsel %vm116_vm0, %v1078_v41, 0.0  ;;  %v6223_v53 = vld [vmem:[#allocation22_spill] sm:$0xff] }
 0x213   :  { %v1080_v14 = vmul.f32 %v5338_v50, %v5338_v50 }
 0x214   :  { %v1344_v49 = vadd.f32 1e-05, %v1280_v28  ;;  %v1343_v35 = vadd.f32 1e-05, %v1279_v30  ;;  %1259 = vadd.xlane.f32.xlu1 %v1258_v51  ;;  %1256 = vadd.xlane.f32.xlu0 %v1255_v10  ;;  %v1605_v39 = vadd.f32 %v5346_v11, %v1535_v22  ;;  %v1079_v51 = vmul.f32 %v5341_v40, %v5341_v40 }
 0x215   :  { %v1538_v30 = vmul.f32 %v5328_v59, %v1468_v46  ;;  %v1270_v41 = vsel %vm116_vm0, %v1080_v14, 0.0 }
 0x216   :  { %3957 = vrsqrt.f32 %v1344_v49  ;;  %3702 = vmatprep.mubr.msk.f32.mxu1 %vm116_vm0, %v1605_v39  ;;  %v1267_v49 = vsel %vm116_vm0, %v1079_v51, 0.0 }
 0x217   :  { %v3952_v4 = vpop.eup %3951  ;;  %3959 = vrsqrt.f32 %v1343_v35  ;;  %3703 = vmatmul.mubr.msk.f32.vlgmr.msra.gmra.mxu1 %vm116_vm0, %v1606_v60  ;;  %v6224_v60 = vld [vmem:[#allocation23_spill] sm:$0xff]  ;;  %v1608_v46 = vadd.f32 %v5346_v11, %v1538_v30 }
 0x218   :  { %1265 = vadd.xlane.f32.xlu1 %v1264_v20  ;;  %v1467_v33 = vmul.f32 %v3952_v4, %v6223_v53  ;;  %1262 = vadd.xlane.f32.xlu0 %v1261_v24  ;;  %v6225_v20 = vld [vmem:[#allocation24_spill] sm:$0xff] }
 0x219   :  { %v1110_v34 = vpop.xlane.xlu1 %1109  ;;  %v1107_v28 = vpop.xlane.xlu0 %1106 }
 0x21a   :  { %v1282_v10 = vmul.f32 0.010416667, %v1110_v34  ;;  %v1281_v6 = vmul.f32 0.010416667, %v1107_v28  ;;  %v1537_v31 = vmul.f32 %v5328_v59, %v1467_v33 }
 0x21b   :  { %v3954_v22 = vpop.eup %3953 }
 0x21c   :  { %v3956_v35 = vpop.eup %3955  ;;  %v1346_v39 = vadd.f32 1e-05, %v1282_v10  ;;  %v1345_v27 = vadd.f32 1e-05, %v1281_v6  ;;  %1271 = vadd.xlane.f32.xlu1 %v1270_v41  ;;  %v1607_v8 = vadd.f32 %v5346_v11, %v1537_v31  ;;  %v1470_v4 = vmul.f32 %v3954_v22, %v6224_v60  ;;  %1268 = vadd.xlane.f32.xlu0 %v1267_v49  ;;  %v6226_v49 = vld [vmem:[#allocation25_spill] sm:$0xff] }
 0x21d   :  { %v1469_v24 = vmul.f32 %v3956_v35, %v6225_v20 }
 0x21e   :  { %3961 = vrsqrt.f32 %v1346_v39  ;;  %3705 = vmatprep.mubr.msk.f32.mxu1 %vm116_vm0, %v1607_v8  ;;  %v1540_v14 = vmul.f32 %v5328_v59, %v1470_v4  ;;  %v6227_v39 = vld [vmem:[#allocation26_spill] sm:$0xff] }
 0x21f   :  { %3963 = vrsqrt.f32 %v1345_v27  ;;  %3706 = vmatmul.mubr.msk.f32.gmra.mxu1 %vm116_vm0, %v1608_v46  ;;  %v1539_v51 = vmul.f32 %v5328_v59, %v1469_v24 }
 0x220   :  { %v1610_v53 = vadd.f32 %v5346_v11, %v1540_v14 }
 0x221   :  { %v1116_v33 = vpop.xlane.xlu1 %1115  ;;  %v1113_v34 = vpop.xlane.xlu0 %1112  ;;  %v1609_v28 = vadd.f32 %v5346_v11, %v1539_v51 }
 0x222   :  { %v1284_v10 = vmul.f32 0.010416667, %v1116_v33  ;;  %v1283_v30 = vmul.f32 0.010416667, %v1113_v34 }
 0x223   :  { %v3958_v6 = vpop.eup %3957  ;;  %3708 = vmatprep.mubr.msk.f32.mxu1 %vm116_vm0, %v1609_v28 }
 0x224   :  { %v3960_v31 = vpop.eup %3959  ;;  %v1348_v22 = vadd.f32 1e-05, %v1284_v10  ;;  %v1347_v41 = vadd.f32 1e-05, %v1283_v30  ;;  %3709 = vmatmul.mubr.msk.f32.gmra.mxu1 %vm116_vm0, %v1610_v53  ;;  %v1472_v35 = vmul.f32 %v3958_v6, %v6226_v49  ;;  %v6228_v10 = vld [vmem:[#allocation27_spill] sm:$0xff]  ;;  %v6229_v6 = vld [vmem:[#allocation28_spill] sm:$0xff] }
 0x225   :  { %v1471_v27 = vmul.f32 %v3960_v31, %v6227_v39 }
 0x226   :  { %3965 = vrsqrt.f32 %v1348_v22  ;;  %v1542_v8 = vmul.f32 %v5328_v59, %v1472_v35 }
 0x227   :  { %3967 = vrsqrt.f32 %v1347_v41  ;;  %v1541_v60 = vmul.f32 %v5328_v59, %v1471_v27 }
 0x228   :  { %v1612_v4 = vadd.f32 %v5346_v11, %v1542_v8 }
 0x229   :  { %v1122_v46 = vpop.xlane.xlu1 %1121  ;;  %v1119_v20 = vpop.xlane.xlu0 %1118  ;;  %v1611_v24 = vadd.f32 %v5346_v11, %v1541_v60 }
 0x22a   :  { %v1286_v14 = vmul.f32 0.010416667, %v1122_v46  ;;  %v1285_v51 = vmul.f32 0.010416667, %v1119_v20 }
 0x22b   :  { %v3962_v33 = vpop.eup %3961  ;;  %3711 = vmatprep.mubr.msk.f32.mxu1 %vm116_vm0, %v1611_v24 }
 0x22c   :  { %v3964_v53 = vpop.eup %3963  ;;  %v1350_v34 = vadd.f32 1e-05, %v1286_v14  ;;  %v1349_v28 = vadd.f32 1e-05, %v1285_v51  ;;  %3712 = vmatmul.mubr.msk.f32.gmra.mxu1 %vm116_vm0, %v1612_v4  ;;  %v1474_v30 = vmul.f32 %v3962_v33, %v6228_v10  ;;  %v6230_v14 = vld [vmem:[#allocation29_spill] sm:$0xff]  ;;  %v6231_v33 = vld [vmem:[#allocation30_spill] sm:$0xff] }
 0x22d   :  { %v1473_v31 = vmul.f32 %v3964_v53, %v6229_v6 }
 0x22e   :  { %3969 = vrsqrt.f32 %v1350_v34  ;;  %v1544_v22 = vmul.f32 %v5328_v59, %v1474_v30 }
 0x22f   :  { %3971 = vrsqrt.f32 %v1349_v28  ;;  %v1543_v41 = vmul.f32 %v5328_v59, %v1473_v31 }
 0x230   :  { %v1614_v49 = vadd.f32 %v5346_v11, %v1544_v22 }
 0x231   :  { %v1128_v35 = vpop.xlane.xlu1 %1127  ;;  %v1125_v39 = vpop.xlane.xlu0 %1124  ;;  %v1613_v27 = vadd.f32 %v5346_v11, %v1543_v41 }
 0x232   :  { %v1288_v8 = vmul.f32 0.010416667, %v1128_v35  ;;  %v1287_v60 = vmul.f32 0.010416667, %v1125_v39 }
 0x233   :  { %v3966_v46 = vpop.eup %3965  ;;  %3714 = vmatprep.mubr.msk.f32.mxu1 %vm116_vm0, %v1613_v27 }
 0x234   :  { %v3968_v4 = vpop.eup %3967  ;;  %v1352_v20 = vadd.f32 1e-05, %v1288_v8  ;;  %v1351_v24 = vadd.f32 1e-05, %v1287_v60  ;;  %3715 = vmatmul.mubr.msk.f32.gmra.mxu1 %vm116_vm0, %v1614_v49  ;;  %v1476_v51 = vmul.f32 %v3966_v46, %v6230_v14  ;;  %v6232_v8 = vld [vmem:[#allocation31_spill] sm:$0xff]  ;;  %v6233_v46 = vld [vmem:[#allocation32_spill] sm:$0xff] }
 0x235   :  { %v1475_v53 = vmul.f32 %v3968_v4, %v6231_v33  ;;  %v2339_v33 = vld [vmem:[%s6127_s7 + $0x50] sm:$0xff] }
 0x236   :  { %3973 = vrsqrt.f32 %v1352_v20  ;;  %v1546_v34 = vmul.f32 %v5328_v59, %v1476_v51  ;;  %v2340_v51 = vld [vmem:[%s6127_s7 + $0x58] sm:$0xff] }
 0x237   :  { %3975 = vrsqrt.f32 %v1351_v24  ;;  %v1545_v28 = vmul.f32 %v5328_v59, %v1475_v53  ;;  %3798 = vmatprep.subr.mxu0 %v2340_v51 }
 0x238   :  { %v1616_v10 = vadd.f32 %v5346_v11, %v1546_v34  ;;  %3799 = vmatpush3.msra.mxu0 %v2340_v51 }
 0x239   :  { %v1134_v30 = vpop.xlane.xlu1 %1133  ;;  %v1131_v6 = vpop.xlane.xlu0 %1130  ;;  %v1615_v31 = vadd.f32 %v5346_v11, %v1545_v28  ;;  %3800 = vmatprep.subr.mxu0 %v2339_v33 }
 0x23a   :  { %v1290_v22 = vmul.f32 0.010416667, %v1134_v30  ;;  %v1289_v41 = vmul.f32 0.010416667, %v1131_v6  ;;  %v2338_v6 = vld [vmem:[%s6127_s7 + $0x48] sm:$0xff]  ;;  %3801 = vmatpush3.msra.mxu0 %v2339_v33 }
 0x23b   :  { %v3970_v35 = vpop.eup %3969  ;;  %3717 = vmatprep.mubr.msk.f32.mxu1 %vm116_vm0, %v1615_v31  ;;  %3802 = vmatprep.subr.mxu0 %v2338_v6 }
 0x23c   :  { %v3972_v49 = vpop.eup %3971  ;;  %v1354_v39 = vadd.f32 1e-05, %v1290_v22  ;;  %v1353_v27 = vadd.f32 1e-05, %v1289_v41  ;;  %3718 = vmatmul.mubr.msk.f32.gmra.mxu1 %vm116_vm0, %v1616_v10  ;;  %v1478_v60 = vmul.f32 %v3970_v35, %v6232_v8  ;;  %v6235_v8 = vld [vmem:[#allocation34_spill] sm:$0xff]  ;;  %3803 = vmatpush3.msra.mxu0 %v2338_v6 }
 0x23d   :  { %v1477_v4 = vmul.f32 %v3972_v49, %v6233_v46  ;;  %v6234_v49 = vld [vmem:[#allocation33_spill] sm:$0xff] }
 0x23e   :  { %3977 = vrsqrt.f32 %v1354_v39  ;;  %v1548_v20 = vmul.f32 %v5328_v59, %v1478_v60 }
 0x23f   :  { %3979 = vrsqrt.f32 %v1353_v27  ;;  %v1547_v24 = vmul.f32 %v5328_v59, %v1477_v4  ;;  %v2337_v27 = vld [vmem:[%s6127_s7 + $0x40] sm:$0xff]  ;;  %v2336_v4 = vld [vmem:[%s6127_s7 + $0x38] sm:$0xff] }
 0x240   :  { %v1618_v14 = vadd.f32 %v5346_v11, %v1548_v20  ;;  %3804 = vmatprep.subr.mxu0 %v2337_v27 }
 0x241   :  { %v1140_v53 = vpop.xlane.xlu1 %1139  ;;  %v1137_v34 = vpop.xlane.xlu0 %1136  ;;  %v1617_v28 = vadd.f32 %v5346_v11, %v1547_v24  ;;  %3805 = vmatpush3.msra.mxu0 %v2337_v27 }
 0x242   :  { %v1292_v10 = vmul.f32 0.010416667, %v1140_v53  ;;  %v1291_v30 = vmul.f32 0.010416667, %v1137_v34  ;;  %3806 = vmatprep.subr.mxu0 %v2336_v4 }
 0x243   :  { %v3974_v31 = vpop.eup %3973  ;;  %3720 = vmatprep.mubr.msk.f32.mxu1 %vm116_vm0, %v1617_v28  ;;  %3807 = vmatpush3.msra.mxu0 %v2336_v4 }
 0x244   :  { %v3976_v22 = vpop.eup %3975  ;;  %v1356_v41 = vadd.f32 1e-05, %v1292_v10  ;;  %v1355_v35 = vadd.f32 1e-05, %v1291_v30  ;;  %3721 = vmatmul.mubr.msk.f32.gmra.mxu1 %vm116_vm0, %v1618_v14  ;;  %v1480_v39 = vmul.f32 %v3974_v31, %v6234_v49  ;;  %v2335_v14 = vld [vmem:[%s6127_s7 + $0x30] sm:$0xff]  ;;  %v2334_v10 = vld [vmem:[%s6127_s7 + $0x28] sm:$0xff] }
 0x245   :  { %v1479_v60 = vmul.f32 %v3976_v22, %v6235_v8  ;;  %3808 = vmatprep.subr.mxu0 %v2335_v14  ;;  %v2333_v49 = vld [vmem:[%s6127_s7 + $0x20] sm:$0xff] }
 0x246   :  { %3981 = vrsqrt.f32 %v1356_v41  ;;  %v1550_v46 = vmul.f32 %v5328_v59, %v1480_v39  ;;  %v6236_v41 = vld [vmem:[#allocation35_spill] sm:$0xff]  ;;  %3809 = vmatpush3.msra.mxu0 %v2335_v14  ;;  %v6237_v39 = vld [vmem:[#allocation36_spill] sm:$0xff] }
 0x247   :  { %3983 = vrsqrt.f32 %v1355_v35  ;;  %v1549_v20 = vmul.f32 %v5328_v59, %v1479_v60  ;;  %3810 = vmatprep.subr.mxu0 %v2334_v10 }
 0x248   :  { %v1620_v24 = vadd.f32 %v5346_v11, %v1550_v46  ;;  %3811 = vmatpush3.msra.mxu0 %v2334_v10  ;;  %v6238_v10 = vld [vmem:[#allocation37_spill] sm:$0xff] }
 0x249   :  { %v1146_v51 = vpop.xlane.xlu1 %1145  ;;  %v1143_v33 = vpop.xlane.xlu0 %1142  ;;  %v1619_v53 = vadd.f32 %v5346_v11, %v1549_v20  ;;  %3812 = vmatprep.subr.mxu0 %v2333_v49 }
 0x24a   :  { %v1294_v34 = vmul.f32 0.010416667, %v1146_v51  ;;  %v1293_v28 = vmul.f32 0.010416667, %v1143_v33  ;;  %3813 = vmatpush3.msra.mxu0 %v2333_v49 }
 0x24b   :  { %v3978_v30 = vpop.eup %3977  ;;  %3723 = vmatprep.mubr.msk.f32.mxu1 %vm116_vm0, %v1619_v53 }
 0x24c   :  { %v3980_v6 = vpop.eup %3979  ;;  %v1358_v31 = vadd.f32 1e-05, %v1294_v34  ;;  %v1357_v22 = vadd.f32 1e-05, %v1293_v28  ;;  %3724 = vmatmul.mubr.msk.f32.gmra.mxu1 %vm116_vm0, %v1620_v24  ;;  %v1482_v35 = vmul.f32 %v3978_v30, %v6236_v41 }
 0x24d   :  { %v1481_v27 = vmul.f32 %v3980_v6, %v6237_v39  ;;  %v6239_v6 = vld [vmem:[#allocation38_spill] sm:$0xff] }
 0x24e   :  { %3985 = vrsqrt.f32 %v1358_v31  ;;  %v1552_v8 = vmul.f32 %v5328_v59, %v1482_v35  ;;  %v2332_v35 = vld [vmem:[%s6127_s7 + $0x18] sm:$0xff] }
 0x24f   :  { %3987 = vrsqrt.f32 %v1357_v22  ;;  %v1551_v60 = vmul.f32 %v5328_v59, %v1481_v27  ;;  %3814 = vmatprep.subr.mxu0 %v2332_v35 }
 0x250   :  { %v1622_v46 = vadd.f32 %v5346_v11, %v1552_v8  ;;  %3815 = vmatpush3.msra.mxu0 %v2332_v35 }
 0x251   :  { %v1152_v4 = vpop.xlane.xlu1 %1151  ;;  %v1149_v20 = vpop.xlane.xlu0 %1148  ;;  %v1621_v24 = vadd.f32 %v5346_v11, %v1551_v60  ;;  %v2331_v60 = vld [vmem:[%s6127_s7 + $0x10] sm:$0xff] }
 0x252   :  { %v1296_v14 = vmul.f32 0.010416667, %v1152_v4  ;;  %v1295_v51 = vmul.f32 0.010416667, %v1149_v20  ;;  %3816 = vmatprep.subr.mxu0 %v2331_v60 }
 0x253   :  { %v3982_v33 = vpop.eup %3981  ;;  %3726 = vmatprep.mubr.msk.f32.mxu1 %vm116_vm0, %v1621_v24  ;;  %3817 = vmatpush3.msra.mxu0 %v2331_v60  ;;  %v2330_v24 = vld [vmem:[%s6127_s7 + $0x8] sm:$0xff] }
 0x254   :  { %v3984_v53 = vpop.eup %3983  ;;  %v1360_v34 = vadd.f32 1e-05, %v1296_v14  ;;  %v1359_v28 = vadd.f32 1e-05, %v1295_v51  ;;  %3727 = vmatmul.mubr.msk.f32.gmra.mxu1 %vm116_vm0, %v1622_v46  ;;  %v1484_v30 = vmul.f32 %v3982_v33, %v6238_v10  ;;  %3818 = vmatprep.subr.mxu0 %v2330_v24 }
 0x255   :  { %v1483_v31 = vmul.f32 %v3984_v53, %v6239_v6  ;;  %v6240_v53 = vld [vmem:[#allocation39_spill] sm:$0xff]  ;;  %3819 = vmatpush3.msra.mxu0 %v2330_v24 }
 0x256   :  { %3989 = vrsqrt.f32 %v1360_v34  ;;  %v1554_v22 = vmul.f32 %v5328_v59, %v1484_v30  ;;  %v6241_v30 = vld [vmem:[#allocation40_spill] sm:$0xff] }
 0x257   :  { %3991 = vrsqrt.f32 %v1359_v28  ;;  %v1553_v41 = vmul.f32 %v5328_v59, %v1483_v31  ;;  %v2329_v31 = vld [vmem:[%s6127_s7] sm:$0xff] }
 0x258   :  { %v1624_v49 = vadd.f32 %v5346_v11, %v1554_v22  ;;  %3820 = vmatprep.subr.mxu0 %v2329_v31 }
 0x259   :  { %v1158_v39 = vpop.xlane.xlu1 %1157  ;;  %v1155_v27 = vpop.xlane.xlu0 %1154  ;;  %v1623_v8 = vadd.f32 %v5346_v11, %v1553_v41  ;;  %3821 = vmatpush3.msra.mxu0 %v2329_v31 }
 0x25a   :  { %v1298_v46 = vmul.f32 0.010416667, %v1158_v39  ;;  %v1297_v4 = vmul.f32 0.010416667, %v1155_v27 }
 0x25b   :  { %v3986_v20 = vpop.eup %3985  ;;  %3729 = vmatprep.mubr.msk.f32.mxu1 %vm116_vm0, %v1623_v8 }
 0x25c   :  { %v3988_v14 = vpop.eup %3987  ;;  %v1362_v51 = vadd.f32 1e-05, %v1298_v46  ;;  %v1361_v33 = vadd.f32 1e-05, %v1297_v4  ;;  %3730 = vmatmul.mubr.msk.f32.gmra.mxu1 %vm116_vm0, %v1624_v49  ;;  %v1486_v34 = vmul.f32 %v3986_v20, %v6240_v53 }
 0x25d   :  { %v1164_v28 = vpop.xlane.xlu1 %1163  ;;  %v1161_v10 = vpop.xlane.xlu0 %1160  ;;  %v1485_v6 = vmul.f32 %v3988_v14, %v6241_v30 }
 0x25e   :  { %3993 = vrsqrt.f32 %v1362_v51  ;;  %v1300_v22 = vmul.f32 0.010416667, %v1164_v28  ;;  %v1299_v41 = vmul.f32 0.010416667, %v1161_v10  ;;  %v1556_v35 = vmul.f32 %v5328_v59, %v1486_v34  ;;  %v6242_v34 = vld [vmem:[#allocation41_spill] sm:$0xff] }
 0x25f   :  { %3995 = vrsqrt.f32 %v1361_v33  ;;  %v1555_v49 = vmul.f32 %v5328_v59, %v1485_v6  ;;  %v6243_v6 = vld [vmem:[#allocation42_spill] sm:$0xff] }
 0x260   :  { %v1364_v39 = vadd.f32 1e-05, %v1300_v22  ;;  %v1363_v27 = vadd.f32 1e-05, %v1299_v41  ;;  %v1626_v8 = vadd.f32 %v5346_v11, %v1556_v35 }
 0x261   :  { %v1170_v60 = vpop.xlane.xlu1 %1169  ;;  %v1167_v46 = vpop.xlane.xlu0 %1166  ;;  %v1625_v4 = vadd.f32 %v5346_v11, %v1555_v49 }
 0x262   :  { %3997 = vrsqrt.f32 %v1364_v39  ;;  %v1302_v20 = vmul.f32 0.010416667, %v1170_v60  ;;  %v1301_v24 = vmul.f32 0.010416667, %v1167_v46 }
 0x263   :  { %v3990_v14 = vpop.eup %3989  ;;  %3999 = vrsqrt.f32 %v1363_v27  ;;  %3732 = vmatprep.mubr.msk.f32.mxu1 %vm116_vm0, %v1625_v4 }
 0x264   :  { %v3992_v51 = vpop.eup %3991  ;;  %v1366_v33 = vadd.f32 1e-05, %v1302_v20  ;;  %v1365_v53 = vadd.f32 1e-05, %v1301_v24  ;;  %3733 = vmatmul.mubr.msk.f32.gmra.mxu1 %vm116_vm0, %v1626_v8  ;;  %v1488_v28 = vmul.f32 %v3990_v14, %v6242_v34 }
 0x265   :  { %v1176_v10 = vpop.xlane.xlu1 %1175  ;;  %v1173_v30 = vpop.xlane.xlu0 %1172  ;;  %v1487_v31 = vmul.f32 %v3992_v51, %v6243_v6 }
 0x266   :  { %4001 = vrsqrt.f32 %v1366_v33  ;;  %v1304_v22 = vmul.f32 0.010416667, %v1176_v10  ;;  %v1303_v41 = vmul.f32 0.010416667, %v1173_v30  ;;  %v1558_v35 = vmul.f32 %v5328_v59, %v1488_v28 }
 0x267   :  { %4003 = vrsqrt.f32 %v1365_v53  ;;  %v1557_v49 = vmul.f32 %v5328_v59, %v1487_v31 }
 0x268   :  { %v1368_v39 = vadd.f32 1e-05, %v1304_v22  ;;  %v1367_v27 = vadd.f32 1e-05, %v1303_v41  ;;  %v1628_v60 = vadd.f32 %v5346_v11, %v1558_v35 }
 0x269   :  { %v1182_v46 = vpop.xlane.xlu1 %1181  ;;  %v1179_v8 = vpop.xlane.xlu0 %1178  ;;  %v1627_v4 = vadd.f32 %v5346_v11, %v1557_v49 }
 0x26a   :  { %4005 = vrsqrt.f32 %v1368_v39  ;;  %v1306_v20 = vmul.f32 0.010416667, %v1182_v46  ;;  %v1305_v24 = vmul.f32 0.010416667, %v1179_v8 }
 0x26b   :  { %v3994_v14 = vpop.eup %3993  ;;  %4007 = vrsqrt.f32 %v1367_v27  ;;  %3735 = vmatprep.mubr.msk.f32.mxu1 %vm116_vm0, %v1627_v4 }
 0x26c   :  { %v3996_v51 = vpop.eup %3995  ;;  %v1370_v33 = vadd.f32 1e-05, %v1306_v20  ;;  %v1369_v53 = vadd.f32 1e-05, %v1305_v24  ;;  %3736 = vmatmul.mubr.msk.f32.gmra.mxu1 %vm116_vm0, %v1628_v60  ;;  %v1490_v34 = vmul.f32 %v3994_v14, %v5060_v58 }
 0x26d   :  { %v1188_v28 = vpop.xlane.xlu1 %1187  ;;  %v1185_v10 = vpop.xlane.xlu0 %1184  ;;  %v1489_v30 = vmul.f32 %v3996_v51, %v5063_v3 }
 0x26e   :  { %4009 = vrsqrt.f32 %v1370_v33  ;;  %v1308_v6 = vmul.f32 0.010416667, %v1188_v28  ;;  %v1307_v31 = vmul.f32 0.010416667, %v1185_v10  ;;  %v1560_v22 = vmul.f32 %v5328_v59, %v1490_v34 }
 0x26f   :  { %v3998_v41 = vpop.eup %3997  ;;  %4011 = vrsqrt.f32 %v1369_v53  ;;  %v1559_v35 = vmul.f32 %v5328_v59, %v1489_v30 }
 0x270   :  { %v4000_v49 = vpop.eup %3999  ;;  %v1372_v39 = vadd.f32 1e-05, %v1308_v6  ;;  %v1371_v27 = vadd.f32 1e-05, %v1307_v31  ;;  %v1630_v60 = vadd.f32 %v5346_v11, %v1560_v22  ;;  %v1492_v58 = vmul.f32 %v3998_v41, %v5070_v63 }
 0x271   :  { %v1194_v46 = vpop.xlane.xlu1 %1193  ;;  %v1191_v8 = vpop.xlane.xlu0 %1190  ;;  %v1629_v3 = vadd.f32 %v5346_v11, %v1559_v35  ;;  %v1491_v4 = vmul.f32 %v4000_v49, %v5073_v37 }
 0x272   :  { %4013 = vrsqrt.f32 %v1372_v39  ;;  %v1310_v20 = vmul.f32 0.010416667, %v1194_v46  ;;  %v1309_v24 = vmul.f32 0.010416667, %v1191_v8  ;;  %v1562_v14 = vmul.f32 %v5328_v59, %v1492_v58 }
 0x273   :  { %v4002_v51 = vpop.eup %4001  ;;  %4015 = vrsqrt.f32 %v1371_v27  ;;  %3738 = vmatprep.mubr.msk.f32.mxu1 %vm116_vm0, %v1629_v3  ;;  %v1561_v33 = vmul.f32 %v5328_v59, %v1491_v4 }
 0x274   :  { %v4004_v53 = vpop.eup %4003  ;;  %v1374_v34 = vadd.f32 1e-05, %v1310_v20  ;;  %v1373_v63 = vadd.f32 1e-05, %v1309_v24  ;;  %3739 = vmatmul.mubr.msk.f32.gmra.mxu1 %vm116_vm0, %v1630_v60  ;;  %v1632_v28 = vadd.f32 %v5346_v11, %v1562_v14  ;;  %v1494_v37 = vmul.f32 %v4002_v51, %v5084_v48 }
 0x275   :  { %v1200_v10 = vpop.xlane.xlu1 %1199  ;;  %v1197_v30 = vpop.xlane.xlu0 %1196  ;;  %v1631_v6 = vadd.f32 %v5346_v11, %v1561_v33  ;;  %v1493_v31 = vmul.f32 %v4004_v53, %v5087_v29 }
 0x276   :  { %4017 = vrsqrt.f32 %v1374_v34  ;;  %v1312_v22 = vmul.f32 0.010416667, %v1200_v10  ;;  %v1311_v41 = vmul.f32 0.010416667, %v1197_v30  ;;  %v1564_v35 = vmul.f32 %v5328_v59, %v1494_v37 }
 0x277   :  { %v4006_v49 = vpop.eup %4005  ;;  %4019 = vrsqrt.f32 %v1373_v63  ;;  %3741 = vmatprep.mubr.msk.f32.mxu1 %vm116_vm0, %v1631_v6  ;;  %v1563_v39 = vmul.f32 %v5328_v59, %v1493_v31 }
 0x278   :  { %v4008_v27 = vpop.eup %4007  ;;  %v1376_v60 = vadd.f32 1e-05, %v1312_v22  ;;  %v1375_v48 = vadd.f32 1e-05, %v1311_v41  ;;  %3742 = vmatmul.mubr.msk.f32.gmra.mxu1 %vm116_vm0, %v1632_v28  ;;  %v1634_v58 = vadd.f32 %v5346_v11, %v1564_v35  ;;  %v1496_v29 = vmul.f32 %v4006_v49, %v5104_v26 }
 0x279   :  { %v1206_v46 = vpop.xlane.xlu1 %1205  ;;  %v1203_v8 = vpop.xlane.xlu0 %1202  ;;  %v1633_v3 = vadd.f32 %v5346_v11, %v1563_v39  ;;  %v1495_v4 = vmul.f32 %v4008_v27, %v5107_v43 }
 0x27a   :  { %4021 = vrsqrt.f32 %v1376_v60  ;;  %v1314_v20 = vmul.f32 0.010416667, %v1206_v46  ;;  %v1313_v24 = vmul.f32 0.010416667, %v1203_v8  ;;  %v1566_v14 = vmul.f32 %v5328_v59, %v1496_v29 }
 0x27b   :  { %v4010_v51 = vpop.eup %4009  ;;  %4023 = vrsqrt.f32 %v1375_v48  ;;  %3744 = vmatprep.mubr.msk.f32.mxu1 %vm116_vm0, %v1633_v3  ;;  %v1565_v33 = vmul.f32 %v5328_v59, %v1495_v4 }
 0x27c   :  { %v4012_v53 = vpop.eup %4011  ;;  %v1378_v34 = vadd.f32 1e-05, %v1314_v20  ;;  %v1377_v26 = vadd.f32 1e-05, %v1313_v24  ;;  %3745 = vmatmul.mubr.msk.f32.gmra.mxu1 %vm116_vm0, %v1634_v58  ;;  %v1636_v63 = vadd.f32 %v5346_v11, %v1566_v14  ;;  %v1498_v43 = vmul.f32 %v4010_v51, %v5096_v15 }
 0x27d   :  { %v1212_v28 = vpop.xlane.xlu1 %1211  ;;  %v1209_v37 = vpop.xlane.xlu0 %1208  ;;  %v1635_v10 = vadd.f32 %v5346_v11, %v1565_v33  ;;  %v1497_v30 = vmul.f32 %v4012_v53, %v5100_v32 }
 0x27e   :  { %4025 = vrsqrt.f32 %v1378_v34  ;;  %v1316_v6 = vmul.f32 0.010416667, %v1212_v28  ;;  %v1315_v31 = vmul.f32 0.010416667, %v1209_v37  ;;  %v1568_v22 = vmul.f32 %v5328_v59, %v1498_v43 }
 0x27f   :  { %v4014_v41 = vpop.eup %4013  ;;  %4027 = vrsqrt.f32 %v1377_v26  ;;  %3747 = vmatprep.mubr.msk.f32.mxu1 %vm116_vm0, %v1635_v10  ;;  %v1567_v35 = vmul.f32 %v5328_v59, %v1497_v30 }
 0x280   :  { %v4016_v49 = vpop.eup %4015  ;;  %v1380_v39 = vadd.f32 1e-05, %v1316_v6  ;;  %v1379_v15 = vadd.f32 1e-05, %v1315_v31  ;;  %3748 = vmatmul.mubr.msk.f32.gmra.mxu1 %vm116_vm0, %v1636_v63  ;;  %v1638_v27 = vadd.f32 %v5346_v11, %v1568_v22  ;;  %v1500_v32 = vmul.f32 %v4014_v41, %v5116_v52 }
 0x281   :  { %v1218_v60 = vpop.xlane.xlu1 %1217  ;;  %v1215_v48 = vpop.xlane.xlu0 %1214  ;;  %v1637_v58 = vadd.f32 %v5346_v11, %v1567_v35  ;;  %v1499_v29 = vmul.f32 %v4016_v49, %v5119_v54 }
 0x282   :  { %4029 = vrsqrt.f32 %v1380_v39  ;;  %v1318_v46 = vmul.f32 0.010416667, %v1218_v60  ;;  %v1317_v8 = vmul.f32 0.010416667, %v1215_v48  ;;  %v1570_v3 = vmul.f32 %v5328_v59, %v1500_v32 }
 0x283   :  { %v4018_v4 = vpop.eup %4017  ;;  %4031 = vrsqrt.f32 %v1379_v15  ;;  %3750 = vmatprep.mubr.msk.f32.mxu1 %vm116_vm0, %v1637_v58  ;;  %v1569_v20 = vmul.f32 %v5328_v59, %v1499_v29 }
 0x284   :  { %v4020_v24 = vpop.eup %4019  ;;  %v1382_v14 = vadd.f32 1e-05, %v1318_v46  ;;  %v1381_v52 = vadd.f32 1e-05, %v1317_v8  ;;  %3751 = vmatmul.mubr.msk.f32.gmra.mxu1 %vm116_vm0, %v1638_v27  ;;  %v1640_v51 = vadd.f32 %v5346_v11, %v1570_v3  ;;  %v1502_v54 = vmul.f32 %v4018_v4, %v5130_v25 }
 0x285   :  { %v1224_v33 = vpop.xlane.xlu1 %1223  ;;  %v1221_v53 = vpop.xlane.xlu0 %1220  ;;  %v1639_v34 = vadd.f32 %v5346_v11, %v1569_v20  ;;  %v1501_v26 = vmul.f32 %v4020_v24, %v5138_v23 }
 0x286   :  { %4033 = vrsqrt.f32 %v1382_v14  ;;  %v1320_v63 = vmul.f32 0.010416667, %v1224_v33  ;;  %v1319_v43 = vmul.f32 0.010416667, %v1221_v53  ;;  %v1572_v28 = vmul.f32 %v5328_v59, %v1502_v54 }
 0x287   :  { %v4022_v37 = vpop.eup %4021  ;;  %4035 = vrsqrt.f32 %v1381_v52  ;;  %3753 = vmatprep.mubr.msk.f32.mxu1 %vm116_vm0, %v1639_v34  ;;  %v1571_v10 = vmul.f32 %v5328_v59, %v1501_v26 }
 0x288   :  { %v4024_v30 = vpop.eup %4023  ;;  %v1384_v6 = vadd.f32 1e-05, %v1320_v63  ;;  %v1383_v25 = vadd.f32 1e-05, %v1319_v43  ;;  %3754 = vmatmul.mubr.msk.f32.gmra.mxu1 %vm116_vm0, %v1640_v51  ;;  %v1642_v31 = vadd.f32 %v5346_v11, %v1572_v28  ;;  %v1504_v23 = vmul.f32 %v4022_v37, %v5149_v45 }
 0x289   :  { %v1230_v22 = vpop.xlane.xlu1 %1229  ;;  %v1227_v41 = vpop.xlane.xlu0 %1226  ;;  %v1641_v35 = vadd.f32 %v5346_v11, %v1571_v10  ;;  %v1503_v49 = vmul.f32 %v4024_v30, %v5152_v38 }
 0x28a   :  { %4037 = vrsqrt.f32 %v1384_v6  ;;  %v1322_v39 = vmul.f32 0.010416667, %v1230_v22  ;;  %v1321_v15 = vmul.f32 0.010416667, %v1227_v41  ;;  %v1574_v27 = vmul.f32 %v5328_v59, %v1504_v23 }
 0x28b   :  { %v4026_v32 = vpop.eup %4025  ;;  %4039 = vrsqrt.f32 %v1383_v25  ;;  %3756 = vmatprep.mubr.msk.f32.mxu1 %vm116_vm0, %v1641_v35  ;;  %v1573_v60 = vmul.f32 %v5328_v59, %v1503_v49 }
 0x28c   :  { %v4028_v48 = vpop.eup %4027  ;;  %v1386_v58 = vadd.f32 1e-05, %v1322_v39  ;;  %v1385_v45 = vadd.f32 1e-05, %v1321_v15  ;;  %3757 = vmatmul.mubr.msk.f32.gmra.mxu1 %vm116_vm0, %v1642_v31  ;;  %v1644_v29 = vadd.f32 %v5346_v11, %v1574_v27  ;;  %v1506_v38 = vmul.f32 %v4026_v32, %v5160_v16 }
 0x28d   :  { %v1236_v46 = vpop.xlane.xlu1 %1235  ;;  %v1233_v8 = vpop.xlane.xlu0 %1232  ;;  %v1643_v3 = vadd.f32 %v5346_v11, %v1573_v60  ;;  %v1505_v4 = vmul.f32 %v4028_v48, %v5166_v57 }
 0x28e   :  { %4041 = vrsqrt.f32 %v1386_v58  ;;  %v1324_v20 = vmul.f32 0.010416667, %v1236_v46  ;;  %v1323_v24 = vmul.f32 0.010416667, %v1233_v8  ;;  %v1576_v14 = vmul.f32 %v5328_v59, %v1506_v38 }
 0x28f   :  { %v4030_v52 = vpop.eup %4029  ;;  %4043 = vrsqrt.f32 %v1385_v45  ;;  %3759 = vmatprep.mubr.msk.f32.mxu1 %vm116_vm0, %v1643_v3  ;;  %v1575_v51 = vmul.f32 %v5328_v59, %v1505_v4 }
 0x290   :  { %v4032_v54 = vpop.eup %4031  ;;  %v1388_v33 = vadd.f32 1e-05, %v1324_v20  ;;  %v1387_v16 = vadd.f32 1e-05, %v1323_v24  ;;  %3760 = vmatmul.mubr.msk.f32.gmra.mxu1 %vm116_vm0, %v1644_v29  ;;  %v1646_v53 = vadd.f32 %v5346_v11, %v1576_v14  ;;  %v1508_v57 = vmul.f32 %v4030_v52, %v5178_v0 }
 0x291   :  { %v1242_v34 = vpop.xlane.xlu1 %1241  ;;  %v1239_v26 = vpop.xlane.xlu0 %1238  ;;  %v1645_v63 = vadd.f32 %v5346_v11, %v1575_v51  ;;  %v1507_v43 = vmul.f32 %v4032_v54, %v5181_v5 }
 0x292   :  { %4045 = vrsqrt.f32 %v1388_v33  ;;  %v1326_v28 = vmul.f32 0.010416667, %v1242_v34  ;;  %v1325_v37 = vmul.f32 0.010416667, %v1239_v26  ;;  %v1578_v10 = vmul.f32 %v5328_v59, %v1508_v57 }
 0x293   :  { %v4034_v30 = vpop.eup %4033  ;;  %4047 = vrsqrt.f32 %v1387_v16  ;;  %3762 = vmatprep.mubr.msk.f32.mxu1 %vm116_vm0, %v1645_v63  ;;  %v1577_v6 = vmul.f32 %v5328_v59, %v1507_v43 }
 0x294   :  { %v4036_v25 = vpop.eup %4035  ;;  %v1390_v31 = vadd.f32 1e-05, %v1326_v28  ;;  %v1389_v0 = vadd.f32 1e-05, %v1325_v37  ;;  %3763 = vmatmul.mubr.msk.f32.gmra.mxu1 %vm116_vm0, %v1646_v53  ;;  %v1648_v23 = vadd.f32 %v5346_v11, %v1578_v10  ;;  %v1510_v5 = vmul.f32 %v4034_v30, %v5194_v21  ;;  %v5590_v28 = vld [vmem:[%s6123_s3] ss:$0 sm:$0xff] }
 0x295   :  { %v1248_v22 = vpop.xlane.xlu1 %1247  ;;  %v1245_v41 = vpop.xlane.xlu0 %1244  ;;  %v1647_v35 = vadd.f32 %v5346_v11, %v1577_v6  ;;  %v1509_v49 = vmul.f32 %v4036_v25, %v5202_v36 }
 0x296   :  { %4049 = vrsqrt.f32 %v1390_v31  ;;  %v1328_v39 = vmul.f32 0.010416667, %v1248_v22  ;;  %v1327_v15 = vmul.f32 0.010416667, %v1245_v41  ;;  %v1580_v27 = vmul.f32 %v5328_v59, %v1510_v5 }
 0x297   :  { %v4038_v32 = vpop.eup %4037  ;;  %4051 = vrsqrt.f32 %v1389_v0  ;;  %3765 = vmatprep.mubr.msk.f32.mxu1 %vm116_vm0, %v1647_v35  ;;  %v1579_v60 = vmul.f32 %v5328_v59, %v1509_v49 }
 0x298   :  { %v4040_v48 = vpop.eup %4039  ;;  %v1392_v58 = vadd.f32 1e-05, %v1328_v39  ;;  %v1391_v21 = vadd.f32 1e-05, %v1327_v15  ;;  %3766 = vmatmul.mubr.msk.f32.gmra.mxu1 %vm116_vm0, %v1648_v23  ;;  %v1650_v45 = vadd.f32 %v5346_v11, %v1580_v27  ;;  %v1512_v36 = vmul.f32 %v4038_v32, %v5215_v1 }
 0x299   :  { %v1254_v29 = vpop.xlane.xlu1 %1253  ;;  %v1251_v38 = vpop.xlane.xlu0 %1250  ;;  %v1649_v46 = vadd.f32 %v5346_v11, %v1579_v60  ;;  %v1511_v8 = vmul.f32 %v4040_v48, %v5218_v7 }
 0x29a   :  { %4053 = vrsqrt.f32 %v1392_v58  ;;  %v1330_v3 = vmul.f32 0.010416667, %v1254_v29  ;;  %v1329_v4 = vmul.f32 0.010416667, %v1251_v38  ;;  %v1582_v20 = vmul.f32 %v5328_v59, %v1512_v36 }
 0x29b   :  { %v4042_v24 = vpop.eup %4041  ;;  %4055 = vrsqrt.f32 %v1391_v21  ;;  %3768 = vmatprep.mubr.msk.f32.mxu1 %vm116_vm0, %v1649_v46  ;;  %v1581_v14 = vmul.f32 %v5328_v59, %v1511_v8 }
 0x29c   :  { %v4044_v52 = vpop.eup %4043  ;;  %v1394_v51 = vadd.f32 1e-05, %v1330_v3  ;;  %v1393_v1 = vadd.f32 1e-05, %v1329_v4  ;;  %3769 = vmatmul.mubr.msk.f32.gmra.mxu1 %vm116_vm0, %v1650_v45  ;;  %v1652_v54 = vadd.f32 %v5346_v11, %v1582_v20  ;;  %v1514_v7 = vmul.f32 %v4042_v24, %v5226_v56 }
 0x29d   :  { %v1260_v33 = vpop.xlane.xlu1 %1259  ;;  %v1257_v16 = vpop.xlane.xlu0 %1256  ;;  %v1651_v53 = vadd.f32 %v5346_v11, %v1581_v14  ;;  %v1513_v57 = vmul.f32 %v4044_v52, %v5234_v17 }
 0x29e   :  { %4057 = vrsqrt.f32 %v1394_v51  ;;  %v1332_v34 = vmul.f32 0.010416667, %v1260_v33  ;;  %v1331_v26 = vmul.f32 0.010416667, %v1257_v16  ;;  %v1584_v63 = vmul.f32 %v5328_v59, %v1514_v7 }
 0x29f   :  { %v4046_v43 = vpop.eup %4045  ;;  %4059 = vrsqrt.f32 %v1393_v1  ;;  %3771 = vmatprep.mubr.msk.f32.mxu1 %vm116_vm0, %v1651_v53  ;;  %v1583_v56 = vmul.f32 %v5590_v28, %v1513_v57 }
 0x2a0   :  { %v4048_v37 = vpop.eup %4047  ;;  %v1396_v10 = vadd.f32 1e-05, %v1332_v34  ;;  %v1395_v30 = vadd.f32 1e-05, %v1331_v26  ;;  %3772 = vmatmul.mubr.msk.f32.gmra.mxu1 %vm116_vm0, %v1652_v54  ;;  %v1654_v17 = vadd.f32 %v5346_v11, %v1584_v63  ;;  %v1516_v59 = vmul.f32 %v4046_v43, %v5242_v9  ;;  %v5605_v9 = vld [vmem:[%s6124_s4] ss:$0 sm:$0xff] }
 0x2a1   :  { %v1266_v6 = vpop.xlane.xlu1 %1265  ;;  %v1653_v25 = vadd.f32 %v5346_v11, %v1583_v56  ;;  %v1515_v31 = vmul.f32 %v4048_v37, %v5245_v13  ;;  %v1263_v23 = vpop.xlane.xlu0 %1262 }
 0x2a2   :  { %4061 = vrsqrt.f32 %v1396_v10  ;;  %v1334_v0 = vmul.f32 0.010416667, %v1266_v6  ;;  %v1586_v5 = vmul.f32 %v5590_v28, %v1516_v59  ;;  %v1333_v41 = vmul.f32 0.010416667, %v1263_v23 }
 0x2a3   :  { %v4050_v22 = vpop.eup %4049  ;;  %4063 = vrsqrt.f32 %v1395_v30  ;;  %3774 = vmatprep.mubr.msk.f32.mxu1 %vm116_vm0, %v1653_v25  ;;  %v1585_v35 = vmul.f32 %v5590_v28, %v1515_v31 }
 0x2a4   :  { %v4052_v49 = vpop.eup %4051  ;;  %v1398_v39 = vadd.f32 1e-05, %v1334_v0  ;;  %3775 = vmatmul.mubr.msk.f32.gmra.mxu1 %vm116_vm0, %v1654_v17  ;;  %v1656_v13 = vadd.f32 %v5605_v9, %v1586_v5  ;;  %v1518_v11 = vmul.f32 %v4050_v22, %v5263_v12  ;;  %v1397_v15 = vadd.f32 1e-05, %v1333_v41 }
 0x2a5   :  { %v1272_v27 = vpop.xlane.xlu1 %1271  ;;  %v1655_v32 = vadd.f32 %v5605_v9, %v1585_v35  ;;  %v1517_v60 = vmul.f32 %v4052_v49, %v5266_v42  ;;  %v1269_v58 = vpop.xlane.xlu0 %1268 }
 0x2a6   :  { %4065 = vrsqrt.f32 %v1398_v39  ;;  %v1336_v48 = vmul.f32 0.010416667, %v1272_v27  ;;  %v1588_v21 = vmul.f32 %v5590_v28, %v1518_v11  ;;  %v1335_v36 = vmul.f32 0.010416667, %v1269_v58 }
 0x2a7   :  { %v4054_v45 = vpop.eup %4053  ;;  %4067 = vrsqrt.f32 %v1397_v15  ;;  %3777 = vmatprep.mubr.msk.f32.mxu1 %vm116_vm0, %v1655_v32  ;;  %v1587_v29 = vmul.f32 %v5590_v28, %v1517_v60 }
 0x2a8   :  { %v4056_v38 = vpop.eup %4055  ;;  %v1400_v12 = vadd.f32 1e-05, %v1336_v48  ;;  %3778 = vmatmul.mubr.msk.f32.gmra.mxu1 %vm116_vm0, %v1656_v13  ;;  %v1658_v46 = vadd.f32 %v5605_v9, %v1588_v21  ;;  %v1520_v42 = vmul.f32 %v4054_v45, %v5278_v18  ;;  %v1399_v8 = vadd.f32 1e-05, %v1335_v36 }
 0x2a9   :  { %v1657_v3 = vadd.f32 %v5605_v9, %v1587_v29  ;;  %v1519_v4 = vmul.f32 %v4056_v38, %v5281_v44 }
 0x2aa   :  { %4069 = vrsqrt.f32 %v1400_v12  ;;  %v1590_v20 = vmul.f32 %v5590_v28, %v1520_v42 }
 0x2ab   :  { %v4058_v24 = vpop.eup %4057  ;;  %4071 = vrsqrt.f32 %v1399_v8  ;;  %3780 = vmatprep.mubr.msk.f32.mxu1 %vm116_vm0, %v1657_v3  ;;  %v1589_v14 = vmul.f32 %v5590_v28, %v1519_v4 }
 0x2ac   :  { %v4060_v52 = vpop.eup %4059  ;;  %3781 = vmatmul.mubr.msk.f32.gmra.mxu1 %vm116_vm0, %v1658_v46  ;;  %v1660_v51 = vadd.f32 %v5605_v9, %v1590_v20  ;;  %v1522_v18 = vmul.f32 %v4058_v24, %v5286_v19 }
 0x2ad   :  { %v1659_v1 = vadd.f32 %v5605_v9, %v1589_v14  ;;  %v1521_v44 = vmul.f32 %v4060_v52, %v5289_v55 }
 0x2ae   :  { %v1592_v54 = vmul.f32 %v5590_v28, %v1522_v18 }
 0x2af   :  { %v4062_v7 = vpop.eup %4061  ;;  %3783 = vmatprep.mubr.msk.f32.mxu1 %vm116_vm0, %v1659_v1  ;;  %v1591_v33 = vmul.f32 %v5590_v28, %v1521_v44 }
 0x2b0   :  { %v4064_v16 = vpop.eup %4063  ;;  %3784 = vmatmul.mubr.msk.f32.gmra.mxu1 %vm116_vm0, %v1660_v51  ;;  %v1662_v53 = vadd.f32 %v5605_v9, %v1592_v54  ;;  %v1524_v57 = vmul.f32 %v4062_v7, %v5300_v62 }
 0x2b1   :  { %v1661_v19 = vadd.f32 %v5605_v9, %v1591_v33  ;;  %v1523_v34 = vmul.f32 %v4064_v16, %v5307_v47 }
 0x2b2   :  { %v1594_v55 = vmul.f32 %v5590_v28, %v1524_v57 }
 0x2b3   :  { %v4066_v26 = vpop.eup %4065  ;;  %3786 = vmatprep.mubr.msk.f32.mxu1 %vm116_vm0, %v1661_v19  ;;  %v1593_v63 = vmul.f32 %v5590_v28, %v1523_v34 }
 0x2b4   :  { %v4068_v43 = vpop.eup %4067  ;;  %3787 = vmatmul.mubr.msk.f32.gmra.mxu1 %vm116_vm0, %v1662_v53  ;;  %v1664_v56 = vadd.f32 %v5605_v9, %v1594_v55  ;;  %v1526_v37 = vmul.f32 %v4066_v26, %v5321_v2 }
 0x2b5   :  { %v1663_v62 = vadd.f32 %v5605_v9, %v1593_v63  ;;  %v1525_v10 = vmul.f32 %v4068_v43, %v5331_v61 }
 0x2b6   :  { %v1596_v47 = vmul.f32 %v5590_v28, %v1526_v37 }
 0x2b7   :  { %v4070_v30 = vpop.eup %4069  ;;  %3789 = vmatprep.mubr.msk.f32.mxu1 %vm116_vm0, %v1663_v62  ;;  %v1595_v17 = vmul.f32 %v5590_v28, %v1525_v10 }
 0x2b8   :  { %v4072_v59 = vpop.eup %4071  ;;  %3790 = vmatmul.mubr.msk.f32.gmra.mxu1 %vm116_vm0, %v1664_v56  ;;  %v1666_v6 = vadd.f32 %v5605_v9, %v1596_v47  ;;  %v1528_v25 = vmul.f32 %v4070_v30, %v5338_v50  ;;  %v5662_v50 = vld [vmem:[%s6126_s6] ss:$0 sm:$0xff] }
 0x2b9   :  { %v1665_v2 = vadd.f32 %v5605_v9, %v1595_v17  ;;  %v1527_v31 = vmul.f32 %v4072_v59, %v5341_v40 }
 0x2ba   :  { %v1598_v61 = vmul.f32 %v5590_v28, %v1528_v25 }
 0x2bb   :  { %3792 = vmatprep.mubr.msk.f32.mxu1 %vm116_vm0, %v1665_v2  ;;  %v1597_v0 = vmul.f32 %v5590_v28, %v1527_v31 }
 0x2bc   :  { %3793 = vmatmul.mubr.msk.f32.gmra.mxu1 %vm116_vm0, %v1666_v6  ;;  %v1668_v23 = vadd.f32 %v5605_v9, %v1598_v61 }
 0x2bd   :  { %v1667_v5 = vadd.f32 %v5605_v9, %v1597_v0 }
 0x2bf   :  { %3795 = vmatprep.mubr.msk.f32.mxu1 %vm116_vm0, %v1667_v5 }
 0x2c0   :  { %3796 = vmatmul.mubr.msk.f32.gmra.mxu1 %vm116_vm0, %v1668_v23 }
 0x2d7   :  { %v3704_v40 = vpop.f32.mrf.mxu1 }
 0x2d8   :  { %v1952_v22 = vadd.f32 %v3704_v40, %v5662_v50 }
 0x2d9   :  { %v1946_v41 = vpop.f32.mrf.mxu1 }
 0x2da   :  { %v1947_v28 = vadd.f32 %v5662_v50, %v1946_v41  ;;  %v2266_v49 = vmax.f32 %v1952_v22, 0.0 }
 0x2dc   :  { %v2265_v35 = vmax.f32 %v1947_v28, 0.0 }
 0x2de   :  { %3822 = vmatprep.mubr.msk.f32.mxu0 %vm116_vm0, %v2265_v35 }
 0x2df   :  { %v3707_v39 = vpop.f32.mrf.mxu1  ;;  %3823 = vmatmul.mubr.msk.f32.vlgmr.msra.gmra.mxu0 %vm116_vm0, %v2266_v49 }
 0x2e0   :  { %v1962_v9 = vadd.f32 %v3707_v39, %v5662_v50 }
 0x2e1   :  { %v1956_v13 = vpop.f32.mrf.mxu1 }
 0x2e2   :  { %v1957_v11 = vadd.f32 %v5662_v50, %v1956_v13  ;;  %v2268_v32 = vmax.f32 %v1962_v9, 0.0 }
 0x2e4   :  { %v2267_v15 = vmax.f32 %v1957_v11, 0.0  ;;  %v3710_v27 = vpop.f32.mrf.mxu1 }
 0x2e5   :  { %v1972_v60 = vadd.f32 %v3710_v27, %v5662_v50 }
 0x2e6   :  { %v1966_v48 = vpop.f32.mrf.mxu1  ;;  %3825 = vmatprep.mubr.msk.f32.mxu0 %vm116_vm0, %v2267_v15 }
 0x2e7   :  { %v1967_v58 = vadd.f32 %v5662_v50, %v1966_v48  ;;  %3826 = vmatmul.mubr.msk.f32.gmra.mxu0 %vm116_vm0, %v2268_v32  ;;  %v2270_v45 = vmax.f32 %v1972_v60, 0.0 }
 0x2e9   :  { %v2269_v21 = vmax.f32 %v1967_v58, 0.0 }
 0x2eb   :  { %3828 = vmatprep.mubr.msk.f32.mxu0 %vm116_vm0, %v2269_v21 }
 0x2ec   :  { %v3713_v36 = vpop.f32.mrf.mxu1  ;;  %3829 = vmatmul.mubr.msk.f32.gmra.mxu0 %vm116_vm0, %v2270_v45 }
 0x2ed   :  { %v1982_v29 = vadd.f32 %v3713_v36, %v5662_v50 }
 0x2ee   :  { %v1976_v38 = vpop.f32.mrf.mxu1 }
 0x2ef   :  { %v1977_v12 = vadd.f32 %v5662_v50, %v1976_v38  ;;  %v2272_v42 = vmax.f32 %v1982_v29, 0.0 }
 0x2f1   :  { %v2271_v46 = vmax.f32 %v1977_v12, 0.0 }
 0x2f3   :  { %3831 = vmatprep.mubr.msk.f32.mxu0 %vm116_vm0, %v2271_v46 }
 0x2f4   :  { %v3716_v8 = vpop.f32.mrf.mxu1  ;;  %3832 = vmatmul.mubr.msk.f32.gmra.mxu0 %vm116_vm0, %v2272_v42 }
 0x2f5   :  { %v1992_v3 = vadd.f32 %v3716_v8, %v5662_v50 }
 0x2f6   :  { %v1986_v4 = vpop.f32.mrf.mxu1 }
 0x2f7   :  { %v1987_v20 = vadd.f32 %v5662_v50, %v1986_v4  ;;  %v2274_v14 = vmax.f32 %v1992_v3, 0.0 }
 0x2f9   :  { %v2273_v24 = vmax.f32 %v1987_v20, 0.0 }
 0x2fb   :  { %3834 = vmatprep.mubr.msk.f32.mxu0 %vm116_vm0, %v2273_v24 }
 0x2fc   :  { %v3719_v52 = vpop.f32.mrf.mxu1  ;;  %3835 = vmatmul.mubr.msk.f32.gmra.mxu0 %vm116_vm0, %v2274_v14 }
 0x2fd   :  { %v2002_v51 = vadd.f32 %v3719_v52, %v5662_v50 }
 0x2fe   :  { %v1996_v18 = vpop.f32.mrf.mxu1 }
 0x2ff   :  { %v1997_v1 = vadd.f32 %v5662_v50, %v1996_v18  ;;  %v2276_v54 = vmax.f32 %v2002_v51, 0.0 }
 0x301   :  { %v2275_v44 = vmax.f32 %v1997_v1, 0.0 }
 0x303   :  { %3837 = vmatprep.mubr.msk.f32.mxu0 %vm116_vm0, %v2275_v44 }
 0x304   :  { %v3722_v7 = vpop.f32.mrf.mxu1  ;;  %3838 = vmatmul.mubr.msk.f32.gmra.mxu0 %vm116_vm0, %v2276_v54 }
 0x305   :  { %v2012_v33 = vadd.f32 %v3722_v7, %v5662_v50 }
 0x306   :  { %v2006_v16 = vpop.f32.mrf.mxu1 }
 0x307   :  { %v2007_v53 = vadd.f32 %v5662_v50, %v2006_v16  ;;  %v2278_v19 = vmax.f32 %v2012_v33, 0.0 }
 0x309   :  { %v2277_v57 = vmax.f32 %v2007_v53, 0.0 }
 0x30b   :  { %3840 = vmatprep.mubr.msk.f32.mxu0 %vm116_vm0, %v2277_v57 }
 0x30c   :  { %v3725_v34 = vpop.f32.mrf.mxu1  ;;  %3841 = vmatmul.mubr.msk.f32.gmra.mxu0 %vm116_vm0, %v2278_v19 }
 0x30d   :  { %v2022_v55 = vadd.f32 %v3725_v34, %v5662_v50 }
 0x30e   :  { %v2016_v26 = vpop.f32.mrf.mxu1 }
 0x30f   :  { %v2017_v63 = vadd.f32 %v5662_v50, %v2016_v26  ;;  %v2280_v56 = vmax.f32 %v2022_v55, 0.0 }
 0x311   :  { %v2279_v43 = vmax.f32 %v2017_v63, 0.0 }
 0x313   :  { %3843 = vmatprep.mubr.msk.f32.mxu0 %vm116_vm0, %v2279_v43 }
 0x314   :  { %v3728_v37 = vpop.f32.mrf.mxu1  ;;  %3844 = vmatmul.mubr.msk.f32.gmra.mxu0 %vm116_vm0, %v2280_v56 }
 0x315   :  { %v2032_v62 = vadd.f32 %v3728_v37, %v5662_v50 }
 0x316   :  { %v2026_v10 = vpop.f32.mrf.mxu1 }
 0x317   :  { %v2027_v47 = vadd.f32 %v5662_v50, %v2026_v10  ;;  %v2282_v17 = vmax.f32 %v2032_v62, 0.0 }
 0x319   :  { %v2281_v30 = vmax.f32 %v2027_v47, 0.0 }
 0x31b   :  { %3846 = vmatprep.mubr.msk.f32.mxu0 %vm116_vm0, %v2281_v30 }
 0x31c   :  { %v3731_v59 = vpop.f32.mrf.mxu1  ;;  %3847 = vmatmul.mubr.msk.f32.gmra.mxu0 %vm116_vm0, %v2282_v17 }
 0x31d   :  { %v2042_v6 = vadd.f32 %v3731_v59, %v5662_v50 }
 0x31e   :  { %v2036_v25 = vpop.f32.mrf.mxu1 }
 0x31f   :  { %v2037_v2 = vadd.f32 %v5662_v50, %v2036_v25  ;;  %v2284_v61 = vmax.f32 %v2042_v6, 0.0 }
 0x321   :  { %v2283_v31 = vmax.f32 %v2037_v2, 0.0 }
 0x323   :  { %3849 = vmatprep.mubr.msk.f32.mxu0 %vm116_vm0, %v2283_v31 }
 0x324   :  { %v3734_v0 = vpop.f32.mrf.mxu1  ;;  %3850 = vmatmul.mubr.msk.f32.gmra.mxu0 %vm116_vm0, %v2284_v61 }
 0x325   :  { %v2052_v23 = vadd.f32 %v3734_v0, %v5662_v50 }
 0x326   :  { %v2046_v5 = vpop.f32.mrf.mxu1 }
 0x327   :  { %v2047_v40 = vadd.f32 %v5662_v50, %v2046_v5  ;;  %v2286_v41 = vmax.f32 %v2052_v23, 0.0 }
 0x329   :  { %v2285_v22 = vmax.f32 %v2047_v40, 0.0 }
 0x32b   :  { %3852 = vmatprep.mubr.msk.f32.mxu0 %vm116_vm0, %v2285_v22 }
 0x32c   :  { %v3737_v28 = vpop.f32.mrf.mxu1  ;;  %3853 = vmatmul.mubr.msk.f32.gmra.mxu0 %vm116_vm0, %v2286_v41 }
 0x32d   :  { %v2062_v35 = vadd.f32 %v3737_v28, %v5662_v50 }
 0x32e   :  { %v2056_v49 = vpop.f32.mrf.mxu1 }
 0x32f   :  { %v2057_v39 = vadd.f32 %v5662_v50, %v2056_v49  ;;  %v2288_v13 = vmax.f32 %v2062_v35, 0.0 }
 0x331   :  { %v2287_v9 = vmax.f32 %v2057_v39, 0.0 }
 0x333   :  { %3855 = vmatprep.mubr.msk.f32.mxu0 %vm116_vm0, %v2287_v9 }
 0x334   :  { %v3740_v11 = vpop.f32.mrf.mxu1  ;;  %3856 = vmatmul.mubr.msk.f32.gmra.mxu0 %vm116_vm0, %v2288_v13 }
 0x335   :  { %v2072_v15 = vadd.f32 %v3740_v11, %v5662_v50 }
 0x336   :  { %v2066_v27 = vpop.f32.mrf.mxu1 }
 0x337   :  { %v2067_v32 = vadd.f32 %v5662_v50, %v2066_v27  ;;  %v2290_v58 = vmax.f32 %v2072_v15, 0.0 }
 0x338   :  { %v3743_v60 = vpop.f32.mrf.mxu1 }
 0x339   :  { %v2289_v48 = vmax.f32 %v2067_v32, 0.0  ;;  %v2082_v21 = vadd.f32 %v3743_v60, %v5662_v50 }
 0x33a   :  { %v2076_v45 = vpop.f32.mrf.mxu1 }
 0x33b   :  { %v2077_v36 = vadd.f32 %v5662_v50, %v2076_v45  ;;  %3858 = vmatprep.mubr.msk.f32.mxu0 %vm116_vm0, %v2289_v48  ;;  %v2292_v12 = vmax.f32 %v2082_v21, 0.0 }
 0x33c   :  { %v3746_v29 = vpop.f32.mrf.mxu1  ;;  %3859 = vmatmul.mubr.msk.f32.gmra.mxu0 %vm116_vm0, %v2290_v58 }
 0x33d   :  { %v2291_v38 = vmax.f32 %v2077_v36, 0.0  ;;  %v2092_v46 = vadd.f32 %v3746_v29, %v5662_v50 }
 0x33e   :  { %v2086_v42 = vpop.f32.mrf.mxu1 }
 0x33f   :  { %v2087_v8 = vadd.f32 %v5662_v50, %v2086_v42  ;;  %3861 = vmatprep.mubr.msk.f32.mxu0 %vm116_vm0, %v2291_v38  ;;  %v2294_v20 = vmax.f32 %v2092_v46, 0.0 }
 0x340   :  { %v3749_v3 = vpop.f32.mrf.mxu1  ;;  %3862 = vmatmul.mubr.msk.f32.gmra.mxu0 %vm116_vm0, %v2292_v12 }
 0x341   :  { %v2293_v4 = vmax.f32 %v2087_v8, 0.0  ;;  %v2102_v24 = vadd.f32 %v3749_v3, %v5662_v50 }
 0x342   :  { %v2096_v14 = vpop.f32.mrf.mxu1 }
 0x343   :  { %v2097_v52 = vadd.f32 %v5662_v50, %v2096_v14  ;;  %3864 = vmatprep.mubr.msk.f32.mxu0 %vm116_vm0, %v2293_v4  ;;  %v2296_v1 = vmax.f32 %v2102_v24, 0.0 }
 0x344   :  { %v3752_v51 = vpop.f32.mrf.mxu1  ;;  %3865 = vmatmul.mubr.msk.f32.gmra.mxu0 %vm116_vm0, %v2294_v20 }
 0x345   :  { %v2295_v18 = vmax.f32 %v2097_v52, 0.0  ;;  %v2112_v44 = vadd.f32 %v3752_v51, %v5662_v50 }
 0x346   :  { %v2106_v54 = vpop.f32.mrf.mxu1 }
 0x347   :  { %v2107_v7 = vadd.f32 %v5662_v50, %v2106_v54  ;;  %3867 = vmatprep.mubr.msk.f32.mxu0 %vm116_vm0, %v2295_v18  ;;  %v2298_v53 = vmax.f32 %v2112_v44, 0.0 }
 0x348   :  { %v3755_v33 = vpop.f32.mrf.mxu1  ;;  %3868 = vmatmul.mubr.msk.f32.gmra.mxu0 %vm116_vm0, %v2296_v1 }
 0x349   :  { %v2297_v16 = vmax.f32 %v2107_v7, 0.0  ;;  %v2122_v57 = vadd.f32 %v3755_v33, %v5662_v50 }
 0x34a   :  { %v2116_v19 = vpop.f32.mrf.mxu1 }
 0x34b   :  { %v2117_v34 = vadd.f32 %v5662_v50, %v2116_v19  ;;  %3870 = vmatprep.mubr.msk.f32.mxu0 %vm116_vm0, %v2297_v16  ;;  %v2300_v63 = vmax.f32 %v2122_v57, 0.0 }
 0x34c   :  { %v3758_v55 = vpop.f32.mrf.mxu1  ;;  %3871 = vmatmul.mubr.msk.f32.gmra.mxu0 %vm116_vm0, %v2298_v53 }
 0x34d   :  { %v2299_v26 = vmax.f32 %v2117_v34, 0.0  ;;  %v2132_v43 = vadd.f32 %v3758_v55, %v5662_v50 }
 0x34e   :  { %v2126_v56 = vpop.f32.mrf.mxu1 }
 0x34f   :  { %v2127_v37 = vadd.f32 %v5662_v50, %v2126_v56  ;;  %3873 = vmatprep.mubr.msk.f32.mxu0 %vm116_vm0, %v2299_v26  ;;  %v2302_v47 = vmax.f32 %v2132_v43, 0.0 }
 0x350   :  { %v3761_v62 = vpop.f32.mrf.mxu1  ;;  %3874 = vmatmul.mubr.msk.f32.gmra.mxu0 %vm116_vm0, %v2300_v63 }
 0x351   :  { %v2301_v10 = vmax.f32 %v2127_v37, 0.0  ;;  %v2142_v30 = vadd.f32 %v3761_v62, %v5662_v50 }
 0x352   :  { %v2136_v17 = vpop.f32.mrf.mxu1 }
 0x353   :  { %v2137_v59 = vadd.f32 %v5662_v50, %v2136_v17  ;;  %3876 = vmatprep.mubr.msk.f32.mxu0 %vm116_vm0, %v2301_v10  ;;  %v2304_v2 = vmax.f32 %v2142_v30, 0.0 }
 0x354   :  { %v3764_v6 = vpop.f32.mrf.mxu1  ;;  %3877 = vmatmul.mubr.msk.f32.gmra.mxu0 %vm116_vm0, %v2302_v47 }
 0x355   :  { %v2303_v25 = vmax.f32 %v2137_v59, 0.0  ;;  %v2152_v31 = vadd.f32 %v3764_v6, %v5662_v50 }
 0x356   :  { %v2146_v61 = vpop.f32.mrf.mxu1 }
 0x357   :  { %v2147_v0 = vadd.f32 %v5662_v50, %v2146_v61  ;;  %3879 = vmatprep.mubr.msk.f32.mxu0 %vm116_vm0, %v2303_v25  ;;  %v2306_v40 = vmax.f32 %v2152_v31, 0.0 }
 0x358   :  { %v3767_v23 = vpop.f32.mrf.mxu1  ;;  %3880 = vmatmul.mubr.msk.f32.gmra.mxu0 %vm116_vm0, %v2304_v2 }
 0x359   :  { %v2305_v5 = vmax.f32 %v2147_v0, 0.0  ;;  %v2162_v22 = vadd.f32 %v3767_v23, %v5662_v50 }
 0x35a   :  { %v2156_v41 = vpop.f32.mrf.mxu1 }
 0x35b   :  { %v2157_v28 = vadd.f32 %v5662_v50, %v2156_v41  ;;  %3882 = vmatprep.mubr.msk.f32.mxu0 %vm116_vm0, %v2305_v5  ;;  %v2308_v39 = vmax.f32 %v2162_v22, 0.0 }
 0x35c   :  { %v3770_v35 = vpop.f32.mrf.mxu1  ;;  %3883 = vmatmul.mubr.msk.f32.gmra.mxu0 %vm116_vm0, %v2306_v40 }
 0x35d   :  { %v2307_v49 = vmax.f32 %v2157_v28, 0.0  ;;  %v2172_v9 = vadd.f32 %v3770_v35, %v5662_v50  ;;  %v5795_v35 = vld [vmem:[%s6128_s8] ss:$0 sm:$0xff] }
 0x35e   :  { %v2166_v13 = vpop.f32.mrf.mxu1 }
 0x35f   :  { %v2167_v11 = vadd.f32 %v5662_v50, %v2166_v13  ;;  %3885 = vmatprep.mubr.msk.f32.mxu0 %vm116_vm0, %v2307_v49  ;;  %v2310_v32 = vmax.f32 %v2172_v9, 0.0  ;;  %v4076_v13 = vld [vmem:[%s6120_s0] sm:$0xff] }
 0x360   :  { %v3773_v15 = vpop.f32.mrf.mxu1  ;;  %3886 = vmatmul.mubr.msk.f32.gmra.mxu0 %vm116_vm0, %v2308_v39 }
 0x361   :  { %v2309_v27 = vmax.f32 %v2167_v11, 0.0  ;;  %v2182_v60 = vadd.f32 %v3773_v15, %v5662_v50 }
 0x362   :  { %v2176_v48 = vpop.f32.mrf.mxu1 }
 0x363   :  { %v2177_v58 = vadd.f32 %v5662_v50, %v2176_v48  ;;  %3888 = vmatprep.mubr.msk.f32.mxu0 %vm116_vm0, %v2309_v27  ;;  %v2312_v36 = vmax.f32 %v2182_v60, 0.0 }
 0x364   :  { %v3776_v21 = vpop.f32.mrf.mxu1  ;;  %3889 = vmatmul.mubr.msk.f32.gmra.mxu0 %vm116_vm0, %v2310_v32  ;;  %v4077_v32 = vld [vmem:[%s6120_s0 + $0x18] sm:$0xff] }
 0x365   :  { %v2311_v45 = vmax.f32 %v2177_v58, 0.0  ;;  %v2192_v29 = vadd.f32 %v3776_v21, %v5662_v50  ;;  %v4078_v21 = vld [vmem:[%s6120_s0 + $0x10] sm:$0xff] }
 0x366   :  { %v2186_v38 = vpop.f32.mrf.mxu1 }
 0x367   :  { %v2187_v12 = vadd.f32 %v5662_v50, %v2186_v38  ;;  %3891 = vmatprep.mubr.msk.f32.mxu0 %vm116_vm0, %v2311_v45  ;;  %v2314_v8 = vmax.f32 %v2192_v29, 0.0  ;;  %v4079_v38 = vld [vmem:[%s6120_s0 + $0x28] sm:$0xff] }
 0x368   :  { %v3779_v46 = vpop.f32.mrf.mxu1  ;;  %3892 = vmatmul.mubr.msk.f32.gmra.mxu0 %vm116_vm0, %v2312_v36 }
 0x369   :  { %v2313_v42 = vmax.f32 %v2187_v12, 0.0  ;;  %v2202_v3 = vadd.f32 %v3779_v46, %v5662_v50 }
 0x36a   :  { %v2196_v4 = vpop.f32.mrf.mxu1 }
 0x36b   :  { %v2197_v20 = vadd.f32 %v5662_v50, %v2196_v4  ;;  %3894 = vmatprep.mubr.msk.f32.mxu0 %vm116_vm0, %v2313_v42  ;;  %v2316_v52 = vmax.f32 %v2202_v3, 0.0 }
 0x36c   :  { %v3782_v24 = vpop.f32.mrf.mxu1  ;;  %3895 = vmatmul.mubr.msk.f32.gmra.mxu0 %vm116_vm0, %v2314_v8  ;;  %v4080_v8 = vld [vmem:[%s6120_s0 + $0x20] sm:$0xff] }
 0x36d   :  { %v2315_v14 = vmax.f32 %v2197_v20, 0.0  ;;  %v2212_v51 = vadd.f32 %v3782_v24, %v5662_v50  ;;  %v4081_v24 = vld [vmem:[%s6120_s0 + $0x38] sm:$0xff] }
 0x36e   :  { %v2206_v18 = vpop.f32.mrf.mxu1 }
 0x36f   :  { %v2207_v1 = vadd.f32 %v5662_v50, %v2206_v18  ;;  %3897 = vmatprep.mubr.msk.f32.mxu0 %vm116_vm0, %v2315_v14  ;;  %v2318_v7 = vmax.f32 %v2212_v51, 0.0  ;;  %v4082_v18 = vld [vmem:[%s6120_s0 + $0x30] sm:$0xff] }
 0x370   :  { %v3785_v44 = vpop.f32.mrf.mxu1  ;;  %3898 = vmatmul.mubr.msk.f32.gmra.mxu0 %vm116_vm0, %v2316_v52 }
 0x371   :  { %v2317_v54 = vmax.f32 %v2207_v1, 0.0  ;;  %v2222_v33 = vadd.f32 %v3785_v44, %v5662_v50 }
 0x372   :  { %v2216_v16 = vpop.f32.mrf.mxu1 }
 0x373   :  { %v2217_v53 = vadd.f32 %v5662_v50, %v2216_v16  ;;  %3900 = vmatprep.mubr.msk.f32.mxu0 %vm116_vm0, %v2317_v54  ;;  %v2320_v34 = vmax.f32 %v2222_v33, 0.0 }
 0x374   :  { %v3788_v57 = vpop.f32.mrf.mxu1  ;;  %3901 = vmatmul.mubr.msk.f32.gmra.mxu0 %vm116_vm0, %v2318_v7  ;;  %v4083_v7 = vld [vmem:[%s6120_s0 + $0x48] sm:$0xff] }
 0x375   :  { %v2319_v19 = vmax.f32 %v2217_v53, 0.0  ;;  %v2232_v55 = vadd.f32 %v3788_v57, %v5662_v50  ;;  %v4084_v57 = vld [vmem:[%s6120_s0 + $0x40] sm:$0xff] }
 0x376   :  { %v2226_v26 = vpop.f32.mrf.mxu1 }
 0x377   :  { %v2227_v63 = vadd.f32 %v5662_v50, %v2226_v26  ;;  %3903 = vmatprep.mubr.msk.f32.mxu0 %vm116_vm0, %v2319_v19  ;;  %v2322_v37 = vmax.f32 %v2232_v55, 0.0  ;;  %v4085_v26 = vld [vmem:[%s6120_s0 + $0x58] sm:$0xff] }
 0x378   :  { %v3791_v43 = vpop.f32.mrf.mxu1  ;;  %3904 = vmatmul.mubr.msk.f32.gmra.mxu0 %vm116_vm0, %v2320_v34 }
 0x379   :  { %v2321_v56 = vmax.f32 %v2227_v63, 0.0  ;;  %v2242_v62 = vadd.f32 %v3791_v43, %v5662_v50 }
 0x37a   :  { %v2236_v10 = vpop.f32.mrf.mxu1 }
 0x37b   :  { %v2237_v47 = vadd.f32 %v5662_v50, %v2236_v10  ;;  %3906 = vmatprep.mubr.msk.f32.mxu0 %vm116_vm0, %v2321_v56  ;;  %v2324_v59 = vmax.f32 %v2242_v62, 0.0 }
 0x37c   :  { %v3794_v30 = vpop.f32.mrf.mxu1  ;;  %3907 = vmatmul.mubr.msk.f32.gmra.mxu0 %vm116_vm0, %v2322_v37  ;;  %v4086_v37 = vld [vmem:[%s6120_s0 + $0x50] sm:$0xff] }
 0x37d   :  { %v2323_v17 = vmax.f32 %v2237_v47, 0.0  ;;  %v2252_v6 = vadd.f32 %v3794_v30, %v5662_v50  ;;  %v4087_v30 = vld [vmem:[%s6120_s0 + $0x68] sm:$0xff] }
 0x37e   :  { %v2246_v25 = vpop.f32.mrf.mxu1 }
 0x37f   :  { %v2247_v2 = vadd.f32 %v5662_v50, %v2246_v25  ;;  %3909 = vmatprep.mubr.msk.f32.mxu0 %vm116_vm0, %v2323_v17  ;;  %v2326_v0 = vmax.f32 %v2252_v6, 0.0  ;;  %v4088_v25 = vld [vmem:[%s6120_s0 + $0x60] sm:$0xff] }
 0x380   :  { %v3797_v31 = vpop.f32.mrf.mxu1  ;;  %3910 = vmatmul.mubr.msk.f32.gmra.mxu0 %vm116_vm0, %v2324_v59 }
 0x381   :  { %v2325_v61 = vmax.f32 %v2247_v2, 0.0  ;;  %v2262_v23 = vadd.f32 %v3797_v31, %v5662_v50 }
 0x382   :  { %v2256_v5 = vpop.f32.mrf.mxu1 }
 0x383   :  { %v2257_v40 = vadd.f32 %v5662_v50, %v2256_v5  ;;  %3912 = vmatprep.mubr.msk.f32.mxu0 %vm116_vm0, %v2325_v61  ;;  %v2328_v41 = vmax.f32 %v2262_v23, 0.0  ;;  %v4075_v50 = vld [vmem:[%s6120_s0 + $0x8] sm:$0xff] }
 0x384   :  { %3913 = vmatmul.mubr.msk.f32.gmra.mxu0 %vm116_vm0, %v2326_v0  ;;  %v4089_v0 = vld [vmem:[%s6120_s0 + $0x78] sm:$0xff] }
 0x385   :  { %v2327_v22 = vmax.f32 %v2257_v40, 0.0 }
 0x387   :  { %3915 = vmatprep.mubr.msk.f32.mxu0 %vm116_vm0, %v2327_v22  ;;  %v4090_v22 = vld [vmem:[%s6120_s0 + $0x70] sm:$0xff] }
 0x388   :  { %3916 = vmatmul.mubr.msk.f32.gmra.mxu0 %vm116_vm0, %v2328_v41 }
 0x39f   :  { %v3824_v28 = vpop.f32.mrf.mxu0 }
 0x3a0   :  { %v2919_v49 = vadd.f32 %v4075_v50, %v3824_v28 }
 0x3a1   :  { %v2599_v39 = vpop.f32.mrf.mxu0 }
 0x3a2   :  { %v2990_v9 = vadd.f32 %v5795_v35, %v2919_v49  ;;  %v2918_v11 = vadd.f32 %v4076_v13, %v2599_v39  ;;  %v4091_v49 = vld [vmem:[%s6120_s0 + $0x88] sm:$0xff] }
 0x3a4   :  { %3054 = vst.msk [vmem:[#allocation2 + $0x8] sm:$0xff] %vm116_vm0, %v2990_v9  ;;  %v2989_v15 = vadd.f32 %v5795_v35, %v2918_v11  ;;  %v4092_v11 = vld [vmem:[%s6120_s0 + $0x80] sm:$0xff] }
 0x3a6   :  { %3053 = vst.msk [vmem:[#allocation2] sm:$0xff] %vm116_vm0, %v2989_v15 }
 0x3a7   :  { %v3827_v27 = vpop.f32.mrf.mxu0 }
 0x3a8   :  { %v2921_v60 = vadd.f32 %v4077_v32, %v3827_v27 }
 0x3a9   :  { %v2609_v48 = vpop.f32.mrf.mxu0 }
 0x3aa   :  { %v2992_v58 = vadd.f32 %v5795_v35, %v2921_v60  ;;  %v2920_v45 = vadd.f32 %v4078_v21, %v2609_v48  ;;  %v4093_v60 = vld [vmem:[%s6120_s0 + $0x98] sm:$0xff] }
 0x3ac   :  { %3056 = vst.msk [vmem:[#allocation2 + $0x18] sm:$0xff] %vm116_vm0, %v2992_v58  ;;  %v2991_v36 = vadd.f32 %v5795_v35, %v2920_v45  ;;  %v3830_v29 = vpop.f32.mrf.mxu0  ;;  %v4094_v45 = vld [vmem:[%s6120_s0 + $0x90] sm:$0xff] }
 0x3ad   :  { %v2923_v12 = vadd.f32 %v4079_v38, %v3830_v29 }
 0x3ae   :  { %3055 = vst.msk [vmem:[#allocation2 + $0x10] sm:$0xff] %vm116_vm0, %v2991_v36  ;;  %v2619_v46 = vpop.f32.mrf.mxu0 }
 0x3af   :  { %v2994_v42 = vadd.f32 %v5795_v35, %v2923_v12  ;;  %v2922_v3 = vadd.f32 %v4080_v8, %v2619_v46  ;;  %v4095_v12 = vld [vmem:[%s6120_s0 + $0xa8] sm:$0xff] }
 0x3b1   :  { %3058 = vst.msk [vmem:[#allocation2 + $0x28] sm:$0xff] %vm116_vm0, %v2994_v42  ;;  %v2993_v4 = vadd.f32 %v5795_v35, %v2922_v3  ;;  %v4096_v3 = vld [vmem:[%s6120_s0 + $0xa0] sm:$0xff] }
 0x3b3   :  { %3057 = vst.msk [vmem:[#allocation2 + $0x20] sm:$0xff] %vm116_vm0, %v2993_v4 }
 0x3b4   :  { %v3833_v20 = vpop.f32.mrf.mxu0 }
 0x3b5   :  { %v2925_v14 = vadd.f32 %v4081_v24, %v3833_v20 }
 0x3b6   :  { %v2629_v52 = vpop.f32.mrf.mxu0 }
 0x3b7   :  { %v2996_v51 = vadd.f32 %v5795_v35, %v2925_v14  ;;  %v2924_v1 = vadd.f32 %v4082_v18, %v2629_v52  ;;  %v4097_v14 = vld [vmem:[%s6120_s0 + $0xb8] sm:$0xff] }
 0x3b9   :  { %3060 = vst.msk [vmem:[#allocation2 + $0x38] sm:$0xff] %vm116_vm0, %v2996_v51  ;;  %v2995_v44 = vadd.f32 %v5795_v35, %v2924_v1  ;;  %v4098_v1 = vld [vmem:[%s6120_s0 + $0xb0] sm:$0xff] }
 0x3bb   :  { %3059 = vst.msk [vmem:[#allocation2 + $0x30] sm:$0xff] %vm116_vm0, %v2995_v44 }
 0x3bc   :  { %v3836_v54 = vpop.f32.mrf.mxu0 }
 0x3bd   :  { %v2927_v33 = vadd.f32 %v4083_v7, %v3836_v54 }
 0x3be   :  { %v2639_v16 = vpop.f32.mrf.mxu0 }
 0x3bf   :  { %v2998_v53 = vadd.f32 %v5795_v35, %v2927_v33  ;;  %v2926_v19 = vadd.f32 %v4084_v57, %v2639_v16  ;;  %v4099_v33 = vld [vmem:[%s6120_s0 + $0xc8] sm:$0xff] }
 0x3c1   :  { %3062 = vst.msk [vmem:[#allocation2 + $0x48] sm:$0xff] %vm116_vm0, %v2998_v53  ;;  %v2997_v34 = vadd.f32 %v5795_v35, %v2926_v19  ;;  %v4100_v19 = vld [vmem:[%s6120_s0 + $0xc0] sm:$0xff] }
 0x3c3   :  { %3061 = vst.msk [vmem:[#allocation2 + $0x40] sm:$0xff] %vm116_vm0, %v2997_v34 }
 0x3c4   :  { %v3839_v55 = vpop.f32.mrf.mxu0 }
 0x3c5   :  { %v2929_v63 = vadd.f32 %v4085_v26, %v3839_v55 }
 0x3c6   :  { %v2649_v43 = vpop.f32.mrf.mxu0 }
 0x3c7   :  { %v3000_v56 = vadd.f32 %v5795_v35, %v2929_v63  ;;  %v2928_v62 = vadd.f32 %v4086_v37, %v2649_v43  ;;  %v4101_v63 = vld [vmem:[%s6120_s0 + $0xd8] sm:$0xff] }
 0x3c9   :  { %3064 = vst.msk [vmem:[#allocation2 + $0x58] sm:$0xff] %vm116_vm0, %v3000_v56  ;;  %v2999_v10 = vadd.f32 %v5795_v35, %v2928_v62  ;;  %v4102_v62 = vld [vmem:[%s6120_s0 + $0xd0] sm:$0xff] }
 0x3cb   :  { %3063 = vst.msk [vmem:[#allocation2 + $0x50] sm:$0xff] %vm116_vm0, %v2999_v10 }
 0x3cc   :  { %v3842_v47 = vpop.f32.mrf.mxu0 }
 0x3cd   :  { %v2931_v17 = vadd.f32 %v4087_v30, %v3842_v47 }
 0x3ce   :  { %v2659_v59 = vpop.f32.mrf.mxu0 }
 0x3cf   :  { %v3002_v6 = vadd.f32 %v5795_v35, %v2931_v17  ;;  %v2930_v2 = vadd.f32 %v4088_v25, %v2659_v59  ;;  %v4103_v17 = vld [vmem:[%s6120_s0 + $0xe8] sm:$0xff] }
 0x3d1   :  { %3066 = vst.msk [vmem:[#allocation2 + $0x68] sm:$0xff] %vm116_vm0, %v3002_v6  ;;  %v3001_v31 = vadd.f32 %v5795_v35, %v2930_v2  ;;  %v4104_v2 = vld [vmem:[%s6120_s0 + $0xe0] sm:$0xff] }
 0x3d3   :  { %3065 = vst.msk [vmem:[#allocation2 + $0x60] sm:$0xff] %vm116_vm0, %v3001_v31 }
 0x3d4   :  { %v3845_v61 = vpop.f32.mrf.mxu0 }
 0x3d5   :  { %v2933_v23 = vadd.f32 %v4089_v0, %v3845_v61 }
 0x3d6   :  { %v2669_v5 = vpop.f32.mrf.mxu0 }
 0x3d7   :  { %v3004_v40 = vadd.f32 %v5795_v35, %v2933_v23  ;;  %v2932_v41 = vadd.f32 %v4090_v22, %v2669_v5  ;;  %v4105_v23 = vld [vmem:[%s6120_s0 + $0xf8] sm:$0xff] }
 0x3d9   :  { %3068 = vst.msk [vmem:[#allocation2 + $0x78] sm:$0xff] %vm116_vm0, %v3004_v40  ;;  %v3003_v28 = vadd.f32 %v5795_v35, %v2932_v41  ;;  %v4106_v41 = vld [vmem:[%s6120_s0 + $0xf0] sm:$0xff] }
 0x3db   :  { %3067 = vst.msk [vmem:[#allocation2 + $0x70] sm:$0xff] %vm116_vm0, %v3003_v28 }
 0x3dc   :  { %v3848_v50 = vpop.f32.mrf.mxu0 }
 0x3dd   :  { %v2935_v39 = vadd.f32 %v4091_v49, %v3848_v50 }
 0x3de   :  { %v2679_v9 = vpop.f32.mrf.mxu0 }
 0x3df   :  { %v3006_v13 = vadd.f32 %v5795_v35, %v2935_v39  ;;  %v2934_v15 = vadd.f32 %v4092_v11, %v2679_v9  ;;  %v4107_v39 = vld [vmem:[%s6120_s0 + $0x108] sm:$0xff] }
 0x3e1   :  { %3070 = vst.msk [vmem:[#allocation2 + $0x88] sm:$0xff] %vm116_vm0, %v3006_v13  ;;  %v3005_v27 = vadd.f32 %v5795_v35, %v2934_v15  ;;  %v4108_v15 = vld [vmem:[%s6120_s0 + $0x100] sm:$0xff] }
 0x3e3   :  { %3069 = vst.msk [vmem:[#allocation2 + $0x80] sm:$0xff] %vm116_vm0, %v3005_v27 }
 0x3e4   :  { %v3851_v32 = vpop.f32.mrf.mxu0 }
 0x3e5   :  { %v2937_v48 = vadd.f32 %v4093_v60, %v3851_v32 }
 0x3e6   :  { %v2689_v58 = vpop.f32.mrf.mxu0 }
 0x3e7   :  { %v3008_v21 = vadd.f32 %v5795_v35, %v2937_v48  ;;  %v2936_v36 = vadd.f32 %v4094_v45, %v2689_v58  ;;  %v4109_v48 = vld [vmem:[%s6120_s0 + $0x118] sm:$0xff] }
 0x3e9   :  { %3072 = vst.msk [vmem:[#allocation2 + $0x98] sm:$0xff] %vm116_vm0, %v3008_v21  ;;  %v3007_v29 = vadd.f32 %v5795_v35, %v2936_v36  ;;  %v4110_v36 = vld [vmem:[%s6120_s0 + $0x110] sm:$0xff] }
 0x3eb   :  { %3071 = vst.msk [vmem:[#allocation2 + $0x90] sm:$0xff] %vm116_vm0, %v3007_v29 }
 0x3ec   :  { %v3854_v38 = vpop.f32.mrf.mxu0 }
 0x3ed   :  { %v2939_v46 = vadd.f32 %v4095_v12, %v3854_v38 }
 0x3ee   :  { %v2699_v42 = vpop.f32.mrf.mxu0 }
 0x3ef   :  { %v3010_v8 = vadd.f32 %v5795_v35, %v2939_v46  ;;  %v2938_v4 = vadd.f32 %v4096_v3, %v2699_v42  ;;  %v4111_v46 = vld [vmem:[%s6120_s0 + $0x128] sm:$0xff] }
 0x3f1   :  { %3074 = vst.msk [vmem:[#allocation2 + $0xa8] sm:$0xff] %vm116_vm0, %v3010_v8  ;;  %v3009_v20 = vadd.f32 %v5795_v35, %v2938_v4  ;;  %v4112_v4 = vld [vmem:[%s6120_s0 + $0x120] sm:$0xff] }
 0x3f3   :  { %3073 = vst.msk [vmem:[#allocation2 + $0xa0] sm:$0xff] %vm116_vm0, %v3009_v20 }
 0x3f4   :  { %v3857_v24 = vpop.f32.mrf.mxu0 }
 0x3f5   :  { %v2941_v52 = vadd.f32 %v4097_v14, %v3857_v24 }
 0x3f6   :  { %v2709_v51 = vpop.f32.mrf.mxu0 }
 0x3f7   :  { %v3012_v18 = vadd.f32 %v5795_v35, %v2941_v52  ;;  %v2940_v44 = vadd.f32 %v4098_v1, %v2709_v51  ;;  %v4113_v52 = vld [vmem:[%s6120_s0 + $0x138] sm:$0xff] }
 0x3f9   :  { %3076 = vst.msk [vmem:[#allocation2 + $0xb8] sm:$0xff] %vm116_vm0, %v3012_v18  ;;  %v3011_v54 = vadd.f32 %v5795_v35, %v2940_v44  ;;  %v4114_v44 = vld [vmem:[%s6120_s0 + $0x130] sm:$0xff] }
 0x3fb   :  { %3075 = vst.msk [vmem:[#allocation2 + $0xb0] sm:$0xff] %vm116_vm0, %v3011_v54 }
 0x3fc   :  { %v3860_v7 = vpop.f32.mrf.mxu0 }
 0x3fd   :  { %v2943_v16 = vadd.f32 %v4099_v33, %v3860_v7 }
 0x3fe   :  { %v2719_v53 = vpop.f32.mrf.mxu0 }
 0x3ff   :  { %v3014_v57 = vadd.f32 %v5795_v35, %v2943_v16  ;;  %v2942_v34 = vadd.f32 %v4100_v19, %v2719_v53  ;;  %v4115_v16 = vld [vmem:[%s6120_s0 + $0x148] sm:$0xff] }
 0x400   :  { %v3863_v55 = vpop.f32.mrf.mxu0 }
 0x401   :  { %3078 = vst.msk [vmem:[#allocation2 + $0xc8] sm:$0xff] %vm116_vm0, %v3014_v57  ;;  %v3013_v26 = vadd.f32 %v5795_v35, %v2942_v34  ;;  %v2945_v43 = vadd.f32 %v4101_v63, %v3863_v55  ;;  %v4116_v34 = vld [vmem:[%s6120_s0 + $0x140] sm:$0xff] }
 0x402   :  { %v2729_v56 = vpop.f32.mrf.mxu0 }
 0x403   :  { %3077 = vst.msk [vmem:[#allocation2 + $0xc0] sm:$0xff] %vm116_vm0, %v3013_v26  ;;  %v3016_v37 = vadd.f32 %v5795_v35, %v2945_v43  ;;  %v2944_v10 = vadd.f32 %v4102_v62, %v2729_v56  ;;  %v4117_v43 = vld [vmem:[%s6120_s0 + $0x158] sm:$0xff] }
 0x404   :  { %v3866_v47 = vpop.f32.mrf.mxu0 }
 0x405   :  { %3080 = vst.msk [vmem:[#allocation2 + $0xd8] sm:$0xff] %vm116_vm0, %v3016_v37  ;;  %v3015_v30 = vadd.f32 %v5795_v35, %v2944_v10  ;;  %v2947_v59 = vadd.f32 %v4103_v17, %v3866_v47  ;;  %v4118_v10 = vld [vmem:[%s6120_s0 + $0x150] sm:$0xff] }
 0x406   :  { %v2739_v6 = vpop.f32.mrf.mxu0 }
 0x407   :  { %3079 = vst.msk [vmem:[#allocation2 + $0xd0] sm:$0xff] %vm116_vm0, %v3015_v30  ;;  %v3018_v25 = vadd.f32 %v5795_v35, %v2947_v59  ;;  %v2946_v31 = vadd.f32 %v4104_v2, %v2739_v6  ;;  %v4119_v59 = vld [vmem:[%s6120_s0 + $0x168] sm:$0xff] }
 0x408   :  { %v3869_v61 = vpop.f32.mrf.mxu0 }
 0x409   :  { %3082 = vst.msk [vmem:[#allocation2 + $0xe8] sm:$0xff] %vm116_vm0, %v3018_v25  ;;  %v3017_v0 = vadd.f32 %v5795_v35, %v2946_v31  ;;  %v2949_v5 = vadd.f32 %v4105_v23, %v3869_v61  ;;  %v4120_v31 = vld [vmem:[%s6120_s0 + $0x160] sm:$0xff] }
 0x40a   :  { %v2749_v40 = vpop.f32.mrf.mxu0 }
 0x40b   :  { %3081 = vst.msk [vmem:[#allocation2 + $0xe0] sm:$0xff] %vm116_vm0, %v3017_v0  ;;  %v3020_v22 = vadd.f32 %v5795_v35, %v2949_v5  ;;  %v2948_v28 = vadd.f32 %v4106_v41, %v2749_v40  ;;  %v4121_v5 = vld [vmem:[%s6120_s0 + $0x178] sm:$0xff] }
 0x40c   :  { %v3872_v50 = vpop.f32.mrf.mxu0 }
 0x40d   :  { %3084 = vst.msk [vmem:[#allocation2 + $0xf8] sm:$0xff] %vm116_vm0, %v3020_v22  ;;  %v3019_v49 = vadd.f32 %v5795_v35, %v2948_v28  ;;  %v2951_v9 = vadd.f32 %v4107_v39, %v3872_v50  ;;  %v4122_v28 = vld [vmem:[%s6120_s0 + $0x170] sm:$0xff] }
 0x40e   :  { %v2759_v13 = vpop.f32.mrf.mxu0 }
 0x40f   :  { %3083 = vst.msk [vmem:[#allocation2 + $0xf0] sm:$0xff] %vm116_vm0, %v3019_v49  ;;  %v3022_v11 = vadd.f32 %v5795_v35, %v2951_v9  ;;  %v2950_v27 = vadd.f32 %v4108_v15, %v2759_v13  ;;  %v4123_v9 = vld [vmem:[%s6120_s0 + $0x188] sm:$0xff] }
 0x410   :  { %v3875_v32 = vpop.f32.mrf.mxu0 }
 0x411   :  { %3086 = vst.msk [vmem:[#allocation2 + $0x108] sm:$0xff] %vm116_vm0, %v3022_v11  ;;  %v3021_v60 = vadd.f32 %v5795_v35, %v2950_v27  ;;  %v2953_v58 = vadd.f32 %v4109_v48, %v3875_v32  ;;  %v4124_v27 = vld [vmem:[%s6120_s0 + $0x180] sm:$0xff] }
 0x412   :  { %v2769_v21 = vpop.f32.mrf.mxu0 }
 0x413   :  { %3085 = vst.msk [vmem:[#allocation2 + $0x100] sm:$0xff] %vm116_vm0, %v3021_v60  ;;  %v3024_v45 = vadd.f32 %v5795_v35, %v2953_v58  ;;  %v2952_v29 = vadd.f32 %v4110_v36, %v2769_v21  ;;  %v4125_v58 = vld [vmem:[%s6120_s0 + $0x198] sm:$0xff] }
 0x414   :  { %v3878_v38 = vpop.f32.mrf.mxu0 }
 0x415   :  { %3088 = vst.msk [vmem:[#allocation2 + $0x118] sm:$0xff] %vm116_vm0, %v3024_v45  ;;  %v3023_v12 = vadd.f32 %v5795_v35, %v2952_v29  ;;  %v2955_v42 = vadd.f32 %v4111_v46, %v3878_v38  ;;  %v4126_v29 = vld [vmem:[%s6120_s0 + $0x190] sm:$0xff] }
 0x416   :  { %v2779_v8 = vpop.f32.mrf.mxu0 }
 0x417   :  { %3087 = vst.msk [vmem:[#allocation2 + $0x110] sm:$0xff] %vm116_vm0, %v3023_v12  ;;  %v3026_v3 = vadd.f32 %v5795_v35, %v2955_v42  ;;  %v2954_v20 = vadd.f32 %v4112_v4, %v2779_v8  ;;  %v4127_v42 = vld [vmem:[%s6120_s0 + $0x1a8] sm:$0xff] }
 0x418   :  { %v3881_v24 = vpop.f32.mrf.mxu0 }
 0x419   :  { %3090 = vst.msk [vmem:[#allocation2 + $0x128] sm:$0xff] %vm116_vm0, %v3026_v3  ;;  %v3025_v14 = vadd.f32 %v5795_v35, %v2954_v20  ;;  %v2957_v51 = vadd.f32 %v4113_v52, %v3881_v24  ;;  %v4128_v20 = vld [vmem:[%s6120_s0 + $0x1a0] sm:$0xff] }
 0x41a   :  { %v2789_v18 = vpop.f32.mrf.mxu0 }
 0x41b   :  { %3089 = vst.msk [vmem:[#allocation2 + $0x120] sm:$0xff] %vm116_vm0, %v3025_v14  ;;  %v3028_v1 = vadd.f32 %v5795_v35, %v2957_v51  ;;  %v2956_v54 = vadd.f32 %v4114_v44, %v2789_v18  ;;  %v4129_v51 = vld [vmem:[%s6120_s0 + $0x1b8] sm:$0xff] }
 0x41c   :  { %v3884_v7 = vpop.f32.mrf.mxu0 }
 0x41d   :  { %3092 = vst.msk [vmem:[#allocation2 + $0x138] sm:$0xff] %vm116_vm0, %v3028_v1  ;;  %v3027_v33 = vadd.f32 %v5795_v35, %v2956_v54  ;;  %v2959_v53 = vadd.f32 %v4115_v16, %v3884_v7  ;;  %v4130_v54 = vld [vmem:[%s6120_s0 + $0x1b0] sm:$0xff] }
 0x41e   :  { %v2799_v57 = vpop.f32.mrf.mxu0 }
 0x41f   :  { %3091 = vst.msk [vmem:[#allocation2 + $0x130] sm:$0xff] %vm116_vm0, %v3027_v33  ;;  %v3030_v19 = vadd.f32 %v5795_v35, %v2959_v53  ;;  %v2958_v55 = vadd.f32 %v4116_v34, %v2799_v57  ;;  %v4131_v53 = vld [vmem:[%s6120_s0 + $0x1c8] sm:$0xff] }
 0x420   :  { %v3887_v26 = vpop.f32.mrf.mxu0 }
 0x421   :  { %3094 = vst.msk [vmem:[#allocation2 + $0x148] sm:$0xff] %vm116_vm0, %v3030_v19  ;;  %v3029_v63 = vadd.f32 %v5795_v35, %v2958_v55  ;;  %v2961_v56 = vadd.f32 %v4117_v43, %v3887_v26  ;;  %v4132_v55 = vld [vmem:[%s6120_s0 + $0x1c0] sm:$0xff] }
 0x422   :  { %v2809_v37 = vpop.f32.mrf.mxu0 }
 0x423   :  { %3093 = vst.msk [vmem:[#allocation2 + $0x140] sm:$0xff] %vm116_vm0, %v3029_v63  ;;  %v3032_v62 = vadd.f32 %v5795_v35, %v2961_v56  ;;  %v2960_v47 = vadd.f32 %v4118_v10, %v2809_v37  ;;  %v4133_v56 = vld [vmem:[%s6120_s0 + $0x1d8] sm:$0xff] }
 0x424   :  { %v3890_v30 = vpop.f32.mrf.mxu0 }
 0x425   :  { %3096 = vst.msk [vmem:[#allocation2 + $0x158] sm:$0xff] %vm116_vm0, %v3032_v62  ;;  %v3031_v17 = vadd.f32 %v5795_v35, %v2960_v47  ;;  %v2963_v6 = vadd.f32 %v4119_v59, %v3890_v30  ;;  %v4134_v47 = vld [vmem:[%s6120_s0 + $0x1d0] sm:$0xff] }
 0x426   :  { %v2819_v25 = vpop.f32.mrf.mxu0 }
 0x427   :  { %3095 = vst.msk [vmem:[#allocation2 + $0x150] sm:$0xff] %vm116_vm0, %v3031_v17  ;;  %v3034_v2 = vadd.f32 %v5795_v35, %v2963_v6  ;;  %v2962_v61 = vadd.f32 %v4120_v31, %v2819_v25  ;;  %v4135_v6 = vld [vmem:[%s6120_s0 + $0x1e8] sm:$0xff] }
 0x428   :  { %v3893_v0 = vpop.f32.mrf.mxu0 }
 0x429   :  { %3098 = vst.msk [vmem:[#allocation2 + $0x168] sm:$0xff] %vm116_vm0, %v3034_v2  ;;  %v3033_v23 = vadd.f32 %v5795_v35, %v2962_v61  ;;  %v2965_v40 = vadd.f32 %v4121_v5, %v3893_v0  ;;  %v4136_v61 = vld [vmem:[%s6120_s0 + $0x1e0] sm:$0xff] }
 0x42a   :  { %v2829_v22 = vpop.f32.mrf.mxu0 }
 0x42b   :  { %3097 = vst.msk [vmem:[#allocation2 + $0x160] sm:$0xff] %vm116_vm0, %v3033_v23  ;;  %v3036_v41 = vadd.f32 %v5795_v35, %v2965_v40  ;;  %v2964_v50 = vadd.f32 %v4122_v28, %v2829_v22  ;;  %v4137_v40 = vld [vmem:[%s6120_s0 + $0x1f8] sm:$0xff] }
 0x42c   :  { %v3896_v49 = vpop.f32.mrf.mxu0 }
 0x42d   :  { %3100 = vst.msk [vmem:[#allocation2 + $0x178] sm:$0xff] %vm116_vm0, %v3036_v41  ;;  %v3035_v39 = vadd.f32 %v5795_v35, %v2964_v50  ;;  %v2967_v13 = vadd.f32 %v4123_v9, %v3896_v49  ;;  %v4138_v50 = vld [vmem:[%s6120_s0 + $0x1f0] sm:$0xff] }
 0x42e   :  { %v2839_v11 = vpop.f32.mrf.mxu0 }
 0x42f   :  { %3099 = vst.msk [vmem:[#allocation2 + $0x170] sm:$0xff] %vm116_vm0, %v3035_v39  ;;  %v3038_v15 = vadd.f32 %v5795_v35, %v2967_v13  ;;  %v2966_v32 = vadd.f32 %v4124_v27, %v2839_v11 }
 0x430   :  { %v3899_v60 = vpop.f32.mrf.mxu0 }
 0x431   :  { %3102 = vst.msk [vmem:[#allocation2 + $0x188] sm:$0xff] %vm116_vm0, %v3038_v15  ;;  %v3037_v48 = vadd.f32 %v5795_v35, %v2966_v32  ;;  %v2969_v21 = vadd.f32 %v4125_v58, %v3899_v60 }
 0x432   :  { %v2849_v45 = vpop.f32.mrf.mxu0 }
 0x433   :  { %3101 = vst.msk [vmem:[#allocation2 + $0x180] sm:$0xff] %vm116_vm0, %v3037_v48  ;;  %v3040_v36 = vadd.f32 %v5795_v35, %v2969_v21  ;;  %v2968_v38 = vadd.f32 %v4126_v29, %v2849_v45 }
 0x434   :  { %v3902_v12 = vpop.f32.mrf.mxu0 }
 0x435   :  { %3104 = vst.msk [vmem:[#allocation2 + $0x198] sm:$0xff] %vm116_vm0, %v3040_v36  ;;  %v3039_v46 = vadd.f32 %v5795_v35, %v2968_v38  ;;  %v2971_v8 = vadd.f32 %v4127_v42, %v3902_v12 }
 0x436   :  { %v2859_v3 = vpop.f32.mrf.mxu0 }
 0x437   :  { %3103 = vst.msk [vmem:[#allocation2 + $0x190] sm:$0xff] %vm116_vm0, %v3039_v46  ;;  %v3042_v4 = vadd.f32 %v5795_v35, %v2971_v8  ;;  %v2970_v24 = vadd.f32 %v4128_v20, %v2859_v3 }
 0x438   :  { %v3905_v14 = vpop.f32.mrf.mxu0 }
 0x439   :  { %3106 = vst.msk [vmem:[#allocation2 + $0x1a8] sm:$0xff] %vm116_vm0, %v3042_v4  ;;  %v3041_v52 = vadd.f32 %v5795_v35, %v2970_v24  ;;  %v2973_v18 = vadd.f32 %v4129_v51, %v3905_v14 }
 0x43a   :  { %v2869_v1 = vpop.f32.mrf.mxu0 }
 0x43b   :  { %3105 = vst.msk [vmem:[#allocation2 + $0x1a0] sm:$0xff] %vm116_vm0, %v3041_v52  ;;  %v3044_v44 = vadd.f32 %v5795_v35, %v2973_v18  ;;  %v2972_v7 = vadd.f32 %v4130_v54, %v2869_v1 }
 0x43c   :  { %v3908_v33 = vpop.f32.mrf.mxu0 }
 0x43d   :  { %3108 = vst.msk [vmem:[#allocation2 + $0x1b8] sm:$0xff] %vm116_vm0, %v3044_v44  ;;  %v3043_v16 = vadd.f32 %v5795_v35, %v2972_v7  ;;  %v2975_v57 = vadd.f32 %v4131_v53, %v3908_v33 }
 0x43e   :  { %v2879_v19 = vpop.f32.mrf.mxu0 }
 0x43f   :  { %3107 = vst.msk [vmem:[#allocation2 + $0x1b0] sm:$0xff] %vm116_vm0, %v3043_v16  ;;  %v3046_v34 = vadd.f32 %v5795_v35, %v2975_v57  ;;  %v2974_v26 = vadd.f32 %v4132_v55, %v2879_v19 }
 0x440   :  { %v3911_v63 = vpop.f32.mrf.mxu0 }
 0x441   :  { %3110 = vst.msk [vmem:[#allocation2 + $0x1c8] sm:$0xff] %vm116_vm0, %v3046_v34  ;;  %v3045_v43 = vadd.f32 %v5795_v35, %v2974_v26  ;;  %v2977_v37 = vadd.f32 %v4133_v56, %v3911_v63 }
 0x442   :  { %v2889_v62 = vpop.f32.mrf.mxu0 }
 0x443   :  { %3109 = vst.msk [vmem:[#allocation2 + $0x1c0] sm:$0xff] %vm116_vm0, %v3045_v43  ;;  %v3048_v10 = vadd.f32 %v5795_v35, %v2977_v37  ;;  %v2976_v30 = vadd.f32 %v4134_v47, %v2889_v62 }
 0x444   :  { %v3914_v17 = vpop.f32.mrf.mxu0 }
 0x445   :  { %3112 = vst.msk [vmem:[#allocation2 + $0x1d8] sm:$0xff] %vm116_vm0, %v3048_v10  ;;  %v3047_v59 = vadd.f32 %v5795_v35, %v2976_v30  ;;  %v2979_v25 = vadd.f32 %v4135_v6, %v3914_v17 }
 0x446   :  { %v2899_v2 = vpop.f32.mrf.mxu0 }
 0x447   :  { %3111 = vst.msk [vmem:[#allocation2 + $0x1d0] sm:$0xff] %vm116_vm0, %v3047_v59  ;;  %v3050_v31 = vadd.f32 %v5795_v35, %v2979_v25  ;;  %v2978_v0 = vadd.f32 %v4136_v61, %v2899_v2 }
 0x448   :  { %v3917_v23 = vpop.f32.mrf.mxu0 }
 0x449   :  { %3114 = vst.msk [vmem:[#allocation2 + $0x1e8] sm:$0xff] %vm116_vm0, %v3050_v31  ;;  %v3049_v5 = vadd.f32 %v5795_v35, %v2978_v0  ;;  %v2981_v22 = vadd.f32 %v4137_v40, %v3917_v23 }
 0x44a   :  { %v2909_v41 = vpop.f32.mrf.mxu0 }
 0x44b   :  { %3113 = vst.msk [vmem:[#allocation2 + $0x1e0] sm:$0xff] %vm116_vm0, %v3049_v5  ;;  %v3052_v28 = vadd.f32 %v5795_v35, %v2981_v22  ;;  %v2980_v49 = vadd.f32 %v4138_v50, %v2909_v41 }
 0x44d   :  { %3116 = vst.msk [vmem:[#allocation2 + $0x1f8] sm:$0xff] %vm116_vm0, %v3052_v28  ;;  %v3051_v39 = vadd.f32 %v5795_v35, %v2980_v49 }
 0x44f   :  { %3115 = vst.msk [vmem:[#allocation2 + $0x1f0] sm:$0xff] %vm116_vm0, %v3051_v39 }
 0x450   :  { %4150 = shalt.err (!%p4147_p4)
}
 0x451   :  { %s4162_s30 = smov 128   ;;  %s4163_s2 = smov 8  }
 0x452   :  { %3128 = dma.vmem_to_hbm [thread:$0]  %s3123_s26, 8192, %s6129_s9, [#allocation3], %s4162_s30, %s4162_s30, %s4163_s2  }
 0x453   :  { %4159 = dma.done.wait [#allocation3], 8192  }
 0x454   :  { %4160 = vsyncadd [#allocation3], 4294959104 }
 0x455   :  { %3132 = vsyncpa [#allocation3], 1 }

</bundles_post_ra>
